<compile_context>
chip_gen: v5e
topology: v5e:2x2
jax: 0.10.0
libtpu: 0.0.40
codegen_flags: <defaults>
</compile_context>

<pallas_src>
import functools

import jax
import jax.numpy as jnp
from jax import lax
from jax.experimental import pallas as pl
from jax.experimental.pallas import tpu as pltpu


VMEM_LIMIT = 32 * 1024 * 1024  # explicit scoped-VMEM limit for the larger kernels


# ----------------------------------------------------------------------------
# small in-kernel helpers
# ----------------------------------------------------------------------------
def _mxu_dot(a, b):
    """a @ b on the MXU with bf16 inputs / f32 accumulation."""
    return jnp.dot(a.astype(jnp.bfloat16), b.astype(jnp.bfloat16),
                   preferred_element_type=jnp.float32)


def _mxu_dot_t(a, b):
    """a @ b.T on the MXU with bf16 inputs / f32 accumulation."""
    return lax.dot_general(a.astype(jnp.bfloat16), b.astype(jnp.bfloat16),
                           (((1,), (1,)), ((), ())),
                           preferred_element_type=jnp.float32)


def _softmax_last(s):
    """Numerically-stable softmax over the last axis (EUP approx reciprocal)."""
    s = s - jnp.max(s, axis=-1, keepdims=True)
    p = jnp.exp(s)
    return p * pl.reciprocal(jnp.sum(p, axis=-1, keepdims=True), approx=True)


def _layernorm(x, g, b, eps=1e-5):
    mu = jnp.mean(x, axis=-1, keepdims=True)
    var = jnp.mean((x - mu) ** 2, axis=-1, keepdims=True)
    return (x - mu) * lax.rsqrt(var + eps) * g + b


def _row_tile(n, pref=256):
    """Largest row tile (multiple of 8, <= pref) that divides n; n if none."""
    if n <= pref:
        return n
    for t in (pref, 128, 64, 32, 16, 8):
        if n % t == 0:
            return t
    return n


# ----------------------------------------------------------------------------
# Kernel 1: fused Node2Edge aggregation
#   emb LayerNorm -> all-head attention scores via one x@A matmul -> softmax over
#   the token axis -> batched MXU pooling -> single (rb, H*d)@(H*d, d) projection.
#   A = scale * Wk_h @ q_h, Wvo = Wv_h @ Wo_h etc. are folded at init.
# ----------------------------------------------------------------------------
def _n2e_kernel(emb_ref, lng_ref, lnb_ref, a_ref, c_ref, wvo_ref, bout_ref,
                o_ref, *, n_heads):
    rb, s, d = emb_ref.shape
    x = _layernorm(emb_ref[...], lng_ref[...].reshape(1, 1, d),
                   lnb_ref[...].reshape(1, 1, d))
    # scores for all heads in one MXU matmul: (rb*s, d) @ (d, H)
    scores = _mxu_dot(x.reshape(rb * s, d), a_ref[...]).reshape(rb, s, n_heads)
    scores = scores + c_ref[...].reshape(1, 1, n_heads)
    # softmax over the token axis (axis=1)
    scores = scores - jnp.max(scores, axis=1, keepdims=True)
    p = jnp.exp(scores)
    p = p * pl.reciprocal(jnp.sum(p, axis=1, keepdims=True), approx=True)
    # pooled per-head vectors: (rb, H, d) = batched (s,H)^T @ (s,d)
    z = lax.dot_general(p.astype(jnp.bfloat16), x.astype(jnp.bfloat16),
                        (((1,), (1,)), ((0,), (0,))),
                        preferred_element_type=jnp.float32)
    # single full-width projection through the folded Wv@Wo
    out = _mxu_dot(z.reshape(rb, n_heads * d), wvo_ref[...]) + bout_ref[...]
    o_ref[...] = out


def node2edge_aggregate(emb, ln_p, n2e_p, n_heads):
    """emb: (R, S, d) -> (R, d). Row-tiled 'parallel' grid, lane-dense 2-D output."""
    # TODO(synk): Node2EdgeAggregator class is not provided in the source file;
    # implemented as multi-head attention pooling with a learned per-head query.
    R, S, d = emb.shape
    r_blk = _row_tile(R)
    return pl.pallas_call(
        functools.partial(_n2e_kernel, n_heads=n_heads),
        grid=(R // r_blk,),
        in_specs=[
            pl.BlockSpec((r_blk, S, d), lambda i: (i, 0, 0)),
            pl.BlockSpec((1, d), lambda i: (0, 0)),
            pl.BlockSpec((1, d), lambda i: (0, 0)),
            pl.BlockSpec((d, n_heads), lambda i: (0, 0)),
            pl.BlockSpec((1, n_heads), lambda i: (0, 0)),
            pl.BlockSpec((n_heads * d, d), lambda i: (0, 0)),
            pl.BlockSpec((1, d), lambda i: (0, 0)),
        ],
        out_specs=pl.BlockSpec((r_blk, d), lambda i: (i, 0)),
        out_shape=jax.ShapeDtypeStruct((R, d), jnp.float32),
        compiler_params=pltpu.CompilerParams(
            dimension_semantics=("parallel",), vmem_limit_bytes=VMEM_LIMIT),
    )(emb, ln_p['g'].reshape(1, d), ln_p['b'].reshape(1, d),
      n2e_p['a'], n2e_p['c'].reshape(1, n_heads),
      n2e_p['wvo'], n2e_p['b_out'].reshape(1, d))


# ----------------------------------------------------------------------------
# Kernel 2: fused from_diag (LayerNorm + Linear) + residual adds
#   out = add1 + add2 + (LN(x) @ W + b)      (row-tiled 'parallel' grid)
# ----------------------------------------------------------------------------
def _ln_linear_add_kernel(x_ref, a1_ref, a2_ref, g_ref, b_ref, w_ref, wb_ref, o_ref):
    y = _layernorm(x_ref[...], g_ref[...], b_ref[...])
    o_ref[...] = a1_ref[...] + a2_ref[...] + _mxu_dot(y, w_ref[...]) + wb_ref[...]


def ln_linear_add(x, add1, add2, p):
    n, d = x.shape
    t = _row_tile(n)
    row_spec = pl.BlockSpec((t, d), lambda i: (i, 0))
    return pl.pallas_call(
        _ln_linear_add_kernel,
        grid=(n // t,),
        in_specs=[row_spec, row_spec, row_spec,
                  pl.BlockSpec((1, d), lambda i: (0, 0)),
                  pl.BlockSpec((1, d), lambda i: (0, 0)),
                  pl.BlockSpec((d, d), lambda i: (0, 0)),
                  pl.BlockSpec((1, d), lambda i: (0, 0))],
        out_specs=pl.BlockSpec((t, d), lambda i: (i, 0)),
        out_shape=jax.ShapeDtypeStruct((n, d), jnp.float32),
        compiler_params=pltpu.CompilerParams(dimension_semantics=("parallel",)),
    )(x, add1, add2, p['ln_g'].reshape(1, d), p['ln_b'].reshape(1, d),
      p['w'], p['b'].reshape(1, d))


# ----------------------------------------------------------------------------
# Kernels 3/4: fused multi-head attention (projections + attention + out proj)
#   per-head contexts are concatenated and a single full-width output projection
#   is issued; 1/sqrt(dh) is folded into wq/bq at init.
# ----------------------------------------------------------------------------
def _mha_core(xq, xk, xv, mask, wq, bq, wk, bk, wv, bv, wo, bo, n_heads):
    nq, d = xq.shape
    dh = d // n_heads
    q = _mxu_dot(xq, wq) + bq      # scale pre-folded into wq / bq
    k = _mxu_dot(xk, wk) + bk
    v = _mxu_dot(xv, wv) + bv
    heads = []
    for h in range(n_heads):
        hs = slice(h * dh, (h + 1) * dh)
        s = _mxu_dot_t(q[:, hs], k[:, hs])          # (nq, nk)
        if mask is not None:
            s = s + mask
        p = _softmax_last(s)
        heads.append(_mxu_dot(p, v[:, hs]))          # (nq, dh)
    ctx = heads[0] if n_heads == 1 else jnp.concatenate(heads, axis=-1)
    return _mxu_dot(ctx, wo) + bo                    # one full-width out proj


def _cross_attn_kernel(xq_ref, xk_ref, xv_ref, wq_ref, bq_ref, wk_ref, bk_ref,
                       wv_ref, bv_ref, wo_ref, bo_ref, o_ref, *, n_heads):
    o_ref[...] = _mha_core(xq_ref[...], xk_ref[...], xv_ref[...], None,
                           wq_ref[...], bq_ref[...], wk_ref[...], bk_ref[...],
                           wv_ref[...], bv_ref[...], wo_ref[...], bo_ref[...],
                           n_heads)


def ehr_memory_attention(xq, xk, xv, p, n_heads):
    # TODO(synk): EHRMemoryAttention class is not provided in the source file;
    # implemented as multi-head cross-attention (Q=visits, K=dp memory, V=med memory).
    nq, d = xq.shape
    nk = xk.shape[0]
    t = _row_tile(nq)
    full = lambda shape: pl.BlockSpec(shape, lambda i: tuple(0 for _ in shape))
    return pl.pallas_call(
        functools.partial(_cross_attn_kernel, n_heads=n_heads),
        grid=(nq // t,),
        in_specs=[pl.BlockSpec((t, d), lambda i: (i, 0)),
                  full((nk, d)), full((nk, d)),
                  full((d, d)), full((1, d)), full((d, d)), full((1, d)),
                  full((d, d)), full((1, d)), full((d, d)), full((1, d))],
        out_specs=pl.BlockSpec((t, d), lambda i: (i, 0)),
        out_shape=jax.ShapeDtypeStruct((nq, d), jnp.float32),
        compiler_params=pltpu.CompilerParams(
            dimension_semantics=("parallel",), vmem_limit_bytes=VMEM_LIMIT),
    )(xq, xk, xv,
      p['wq'], p['bq'].reshape(1, d), p['wk'], p['bk'].reshape(1, d),
      p['wv'], p['bv'].reshape(1, d), p['wo'], p['bo'].reshape(1, d))


def _hist_attn_kernel(x_ref, m_ref, wq_ref, bq_ref, wk_ref, bk_ref, wv_ref, bv_ref,
                      wo_ref, bo_ref, o_ref, *, n_heads):
    """One masked self-attention channel per grid step (channel = grid axis 0)."""
    xc = x_ref[0]
    out = _mha_core(xc, xc, xc, m_ref[...],
                    wq_ref[0], bq_ref[0], wk_ref[0], bk_ref[0],
                    wv_ref[0], bv_ref[0], wo_ref[0], bo_ref[0], n_heads)
    o_ref[0] = out + xc                               # residual connection


def history_attention_batched(x_stack, mask, params_list, n_heads):
    # TODO(synk): HistoryAttention class is not provided in the source file;
    # implemented as masked multi-head self-attention with a residual connection.
    # TODO(synk): if the number of true visits grows beyond a few hundred, this
    # should be re-tiled flash-style (q-row x kv grid, online softmax).
    n_ch, n, d = x_stack.shape

    def stk(name):
        return jnp.stack([p[name] for p in params_list], axis=0)

    w_spec = pl.BlockSpec((1, d, d), lambda c: (c, 0, 0))
    b_spec = pl.BlockSpec((1, 1, d), lambda c: (c, 0, 0))
    return pl.pallas_call(
        functools.partial(_hist_attn_kernel, n_heads=n_heads),
        grid=(n_ch,),
        in_specs=[pl.BlockSpec((1, n, d), lambda c: (c, 0, 0)),
                  pl.BlockSpec((n, n), lambda c: (0, 0)),
                  w_spec, b_spec, w_spec, b_spec, w_spec, b_spec, w_spec, b_spec],
        out_specs=pl.BlockSpec((1, n, d), lambda c: (c, 0, 0)),
        out_shape=jax.ShapeDtypeStruct((n_ch, n, d), jnp.float32),
        compiler_params=pltpu.CompilerParams(
            dimension_semantics=("parallel",), vmem_limit_bytes=VMEM_LIMIT),
    )(x_stack, mask,
      stk('wq'), stk('bq').reshape(n_ch, 1, d),
      stk('wk'), stk('bk').reshape(n_ch, 1, d),
      stk('wv'), stk('bv').reshape(n_ch, 1, d),
      stk('wo'), stk('bo').reshape(n_ch, 1, d))


# ----------------------------------------------------------------------------
# Kernel 5: gate softmax + channel fusion + prediction matmul + LayerNorm + sigmoid
# ----------------------------------------------------------------------------
def _gate_pred_kernel(dp_ref, mem_ref, med_ref, gwd_ref, gwm_ref, gwx_ref, gb_ref,
                      medemb_ref, pbias_ref, lng_ref, lnb_ref, out_ref, prob_ref):
    dp, mem, med = dp_ref[...], mem_ref[...], med_ref[...]
    # gate logits from per-channel weight blocks (same math as the interleaved cat)
    g = (_mxu_dot(dp, gwd_ref[...]) + _mxu_dot(mem, gwm_ref[...])
         + _mxu_dot(med, gwx_ref[...]) + gb_ref[...])
    # exact softmax (not approx) on the 3-way gate feeding the prediction head
    g = g - jnp.max(g, axis=-1, keepdims=True)
    e = jnp.exp(g)
    g = e / jnp.sum(e, axis=-1, keepdims=True)
    fusion = dp * g[:, 0:1] + mem * g[:, 1:2] + med * g[:, 2:3]
    logits = _mxu_dot_t(fusion, medemb_ref[...]) + pbias_ref[...]   # bf16 MXU matmul
    y = _layernorm(logits, lng_ref[...], lnb_ref[...])
    out_ref[...] = y
    prob_ref[...] = jax.nn.sigmoid(y)


def gate_pred(dp, mem, med, gw_dp, gw_mem, gw_med, gb,
              med_emb_bf16, pred_bias, ln_g, ln_b):
    # TODO(synk): add a vocab-tiled two-pass-LayerNorm variant if voc_med grows
    # beyond a few thousand (VMEM: two (n,v) f32 outputs + med_emb resident).
    n, _ = dp.shape
    v = med_emb_bf16.shape[0]
    return pl.pallas_call(
        _gate_pred_kernel,
        out_shape=(jax.ShapeDtypeStruct((n, v), jnp.float32),
                   jax.ShapeDtypeStruct((n, v), jnp.float32)),
        compiler_params=pltpu.CompilerParams(vmem_limit_bytes=VMEM_LIMIT),
    )(dp, mem, med, gw_dp, gw_mem, gw_med, gb.reshape(1, 3),
      med_emb_bf16, pred_bias.reshape(1, v), ln_g.reshape(1, v), ln_b.reshape(1, v))


# ----------------------------------------------------------------------------
# Kernel 6: DDI penalty. Vocab padded to a multiple of 128, ddi_adj in bf16,
# per-i partial sums ('parallel' i x 'arbitrary' j) reduced outside the kernel.
# ----------------------------------------------------------------------------
def _ddi_kernel(pa_ref, ddi_ref, pc_ref, o_ref):
    @pl.when(pl.program_id(1) == 0)
    def _():
        o_ref[...] = jnp.zeros_like(o_ref)
    t = jnp.dot(pa_ref[...].astype(jnp.bfloat16), ddi_ref[...],
                preferred_element_type=jnp.float32)            # (n, t)
    o_ref[...] += jnp.sum(t * pc_ref[...])


def ddi_penalty(probs_pad, ddi_pad):
    """sum_b p_b @ ddi @ p_b over a padded (multiple of 128) vocab."""
    n, v = probs_pad.shape
    t = 512 if v % 512 == 0 else (256 if v % 256 == 0 else 128)
    gi = v // t
    out = pl.pallas_call(
        _ddi_kernel,
        grid=(gi, gi),
        in_specs=[pl.BlockSpec((n, t), lambda i, j: (0, i)),
                  pl.BlockSpec((t, t), lambda i, j: (i, j)),
                  pl.BlockSpec((n, t), lambda i, j: (0, j))],
        out_specs=pl.BlockSpec((1, 8, 128), lambda i, j: (i, 0, 0)),
        out_shape=jax.ShapeDtypeStruct((gi, 8, 128), jnp.float32),
        compiler_params=pltpu.CompilerParams(
            dimension_semantics=("parallel", "arbitrary"),
            vmem_limit_bytes=VMEM_LIMIT),
    )(probs_pad, ddi_pad, probs_pad)
    return jnp.sum(out[:, 0, 0])


# ----------------------------------------------------------------------------
# Parameter init (deterministic, synthetic).  MXU-only weights stored in bf16,
# attention scales / query foldings done once here (not per kernel call).
# ----------------------------------------------------------------------------
def _dense(key, fan_in, fan_out, scale=0.02):
    return scale * jax.random.normal(key, (fan_in, fan_out), jnp.float32)


def init_mha_params(key, d, n_heads):
    ks = jax.random.split(key, 4)
    dh = d // n_heads
    scale = dh ** -0.5
    return {'wq': (_dense(ks[0], d, d) * scale).astype(jnp.bfloat16),
            'bq': jnp.zeros((d,), jnp.float32),          # (* scale, zero anyway)
            'wk': _dense(ks[1], d, d).astype(jnp.bfloat16),
            'bk': jnp.zeros((d,), jnp.float32),
            'wv': _dense(ks[2], d, d).astype(jnp.bfloat16),
            'bv': jnp.zeros((d,), jnp.float32),
            'wo': _dense(ks[3], d, d).astype(jnp.bfloat16),
            'bo': jnp.zeros((d,), jnp.float32)}


def init_n2e_params(key, d, n_heads):
    ks = jax.random.split(key, 4)
    dh = d // n_heads
    scale = dh ** -0.5
    wk, wv, wo = _dense(ks[0], d, d), _dense(ks[1], d, d), _dense(ks[2], d, d)
    bk = jnp.zeros((d,), jnp.float32)
    bv = jnp.zeros((d,), jnp.float32)
    bo = jnp.zeros((d,), jnp.float32)
    q = jax.random.normal(ks[3], (n_heads, dh), jnp.float32)
    # fold Wk@q (+scale), bk@q, Wv@Wo, bv@Wo at parameter-prep time
    a = jnp.stack([wk[:, h * dh:(h + 1) * dh] @ q[h] for h in range(n_heads)],
                  axis=1) * scale                                     # (d, H)
    c = jnp.stack([bk[h * dh:(h + 1) * dh] @ q[h] for h in range(n_heads)]) * scale
    wvo = jnp.concatenate([wv[:, h * dh:(h + 1) * dh] @ wo[h * dh:(h + 1) * dh, :]
                           for h in range(n_heads)], axis=0)          # (H*d, d)
    b_out = bo + jnp.sum(jnp.stack([bv[h * dh:(h + 1) * dh] @ wo[h * dh:(h + 1) * dh, :]
                                    for h in range(n_heads)]), axis=0)
    return {'a': a.astype(jnp.bfloat16), 'c': c,
            'wvo': wvo.astype(jnp.bfloat16), 'b_out': b_out}


def init_hgt_decoder_params(key, d, n_heads, voc, n_ehr_edges):
    names = ['diag', 'proc', 'med']
    keys = iter(jax.random.split(key, 32))
    p = {}
    X_hat = {}
    for n in names:
        w = 0.1 * jax.random.normal(next(keys), (voc[n] + 1, d), jnp.float32)
        X_hat[n] = w.at[voc[n]].set(0.0)            # padding row (padding_idx = voc[n])
    p['X_hat'] = X_hat
    p['med_emb_bf16'] = X_hat['med'][:voc['med']].astype(jnp.bfloat16)
    p['E_mem'] = {c: 0.1 * jax.random.normal(next(keys), (n_ehr_edges, d), jnp.float32)
                  for c in ['d', 'p', 'm']}
    p['emb_norm'] = {n: {'g': jnp.ones((d,), jnp.float32),
                         'b': jnp.zeros((d,), jnp.float32)} for n in names}
    p['n2e'] = {n: init_n2e_params(next(keys), d, n_heads) for n in names}
    p['from_diag'] = {'ln_g': jnp.ones((d,), jnp.float32),
                      'ln_b': jnp.zeros((d,), jnp.float32),
                      'w': _dense(next(keys), d, d).astype(jnp.bfloat16),
                      'b': jnp.zeros((d,), jnp.float32)}
    p['visit_mem_attn'] = init_mha_params(next(keys), d, n_heads)
    p['med_context_attn'] = init_mha_params(next(keys), d, n_heads)
    p['dp_context_attn'] = init_mha_params(next(keys), d, n_heads)
    p['mem_context_attn'] = init_mha_params(next(keys), d, n_heads)
    p['fusion_ln_g'] = jnp.ones((voc['med'],), jnp.float32)
    p['fusion_ln_b'] = jnp.zeros((voc['med'],), jnp.float32)
    p['pred_bias'] = jnp.zeros((voc['med'],), jnp.float32)
    p['gate_w'] = _dense(next(keys), 3 * d, 3)
    p['gate_b'] = jnp.zeros((3,), jnp.float32)
    ddi = (jax.random.uniform(next(keys), (voc['med'], voc['med'])) < 0.1).astype(jnp.float32)
    ddi = jnp.maximum(ddi, ddi.T) * (1.0 - jnp.eye(voc['med'], dtype=jnp.float32))
    v_pad = ((voc['med'] + 127) // 128) * 128
    p['ddi_adj_bf16'] = jnp.pad(ddi, ((0, v_pad - voc['med']),
                                      (0, v_pad - voc['med']))).astype(jnp.bfloat16)
    return p


# ----------------------------------------------------------------------------
# Forward (eval mode; dropout = identity).  `vid` are the true-visit indices
# computed on host with a static shape so the whole forward sits under one jit.
# ----------------------------------------------------------------------------
@functools.partial(jax.jit, static_argnames=("n_heads",))
def hgt_decoder_forward(params, records, attn_mask, vid, *, n_heads):
    names = ['diag', 'proc', 'med']
    d = params['X_hat']['diag'].shape[1]
    voc_med = params['pred_bias'].shape[0]

    # entity embedding gather (glue); emb LayerNorm is fused inside the n2e kernel.
    visit_seq_embed = {}
    for n in names:
        emb = jnp.take(params['X_hat'][n], records[n], axis=0)     # (B, MV, S, d)
        b, mv, s, _ = emb.shape
        visit_seq_embed[n] = node2edge_aggregate(
            emb.reshape(b * mv, s, d), params['emb_norm'][n],
            params['n2e'][n], n_heads).reshape(b, mv, d)

    b, mv, _ = visit_seq_embed['med'].shape

    # shifted med history, then keep only true visits (static gather)
    med_hist_full = jnp.concatenate(
        [jnp.zeros((b, 1, d), jnp.float32), visit_seq_embed['med'][:, :-1, :]], axis=1)
    med_history = med_hist_full.reshape(b * mv, d)[vid]

    diag_v = visit_seq_embed['diag'].reshape(b * mv, d)[vid]
    proc_v = visit_seq_embed['proc'].reshape(b * mv, d)[vid]
    # visit_rep = diag + (proc + from_diag(diag))     -- fused in one kernel
    visit_rep = ln_linear_add(diag_v, diag_v, proc_v, params['from_diag'])

    E_d, E_p, E_m = params['E_mem']['d'], params['E_mem']['p'], params['E_mem']['m']
    # E_mem_patient_rep = E_d + from_diag(E_d) + E_p  -- same fused kernel
    E_pat = ln_linear_add(E_d, E_d, E_p, params['from_diag'])

    visit_rep_mem = ehr_memory_attention(visit_rep, E_pat, E_m,
                                         params['visit_mem_attn'], n_heads)

    med_rep = visit_seq_embed['med'].reshape(b * mv, d)[vid]
    # TODO(synk): training-only InfoNCE SSL loss omitted; eval path of the
    # reference module is ssl_loss = med_rep.mean().
    ssl_loss = jnp.mean(med_rep)

    am = attn_mask[vid][:, vid]

    # three HistoryAttention channels, one fused pallas_call (grid over channels)
    ctx = history_attention_batched(
        jnp.stack([visit_rep, med_history, visit_rep_mem], axis=0), am,
        [params['dp_context_attn'], params['med_context_attn'],
         params['mem_context_attn']], n_heads)
    dp_ctx, med_ctx, mem_ctx = ctx[0], ctx[1], ctx[2]

    # gate weight split: torch builds the gate features as the INTERLEAVED
    # [dp0, mem0, med0, dp1, ...] layout via cat(unsqueeze(-1)).reshape(-1, 3d),
    # so reshape(d, 3, 3) with the channel index in the middle matches the spec.
    gw = params['gate_w'].reshape(d, 3, 3)
    output, probs = gate_pred(
        dp_ctx, mem_ctx, med_ctx,
        gw[:, 0, :], gw[:, 1, :], gw[:, 2, :], params['gate_b'],
        params['med_emb_bf16'],
        params['pred_bias'], params['fusion_ln_g'], params['fusion_ln_b'])

    v_pad = params['ddi_adj_bf16'].shape[0]
    probs_pad = jnp.pad(probs, ((0, 0), (0, v_pad - voc_med)))
    ddi = 0.0005 * ddi_penalty(probs_pad, params['ddi_adj_bf16'])
    return output, {'ddi': ddi, 'ssl': ssl_loss}


# ----------------------------------------------------------------------------
# Example run
# ----------------------------------------------------------------------------
if __name__ == "__main__":
    import numpy as np

    D, H = 32, 2
    voc = {'diag': 20, 'proc': 16, 'med': 24}
    n_ehr_edges = 10
    B, MV = 2, 4
    MS = {'diag': 6, 'proc': 5, 'med': 7}

    key = jax.random.PRNGKey(0)
    kp, kr = jax.random.split(key, 2)
    params = init_hgt_decoder_params(kp, D, H, voc, n_ehr_edges)

    rks = jax.random.split(kr, 3)
    records = {n: jax.random.randint(rks[i], (B, MV, MS[n]), 0, voc[n] + 1, jnp.int32)
               for i, n in enumerate(['diag', 'proc', 'med'])}

    # which (patient, visit) slots are real visits (flattened B*MV); indices are
    # computed on host so every downstream shape is static and jit-able.
    true_visit_idx = np.array([True, True, True, True, True, True, True, False])
    vid = jnp.asarray(np.nonzero(true_visit_idx)[0], jnp.int32)

    # additive attention mask over flattened visits: same patient & causal
    pid = jnp.repeat(jnp.arange(B), MV)
    pos = jnp.tile(jnp.arange(MV), B)
    allowed = (pid[:, None] == pid[None, :]) & (pos[None, :] <= pos[:, None])
    attn_mask = jnp.where(allowed, 0.0, -1e9).astype(jnp.float32)

    out, side = hgt_decoder_forward(params, records, attn_mask, vid, n_heads=H)
    jax.block_until_ready((out, side))
    assert out.shape == (int(true_visit_idx.sum()), voc['med'])
    assert bool(jnp.all(jnp.isfinite(out)))
    assert bool(jnp.isfinite(side['ddi'])) and bool(jnp.isfinite(side['ssl']))
    print("KERNEL_OK")
</pallas_src>

<mosaic_0001>
module attributes {stable_mosaic.version = 11 : i64} {
  func.func @_ln_linear_add_kernel(%arg0: i32, %arg1: memref<10x32xf32, #tpu.memory_space<vmem>>, %arg2: memref<10x32xf32, #tpu.memory_space<vmem>>, %arg3: memref<10x32xf32, #tpu.memory_space<vmem>>, %arg4: memref<1x32xf32, #tpu.memory_space<vmem>>, %arg5: memref<1x32xf32, #tpu.memory_space<vmem>>, %arg6: memref<32x32xbf16, #tpu.memory_space<vmem>>, %arg7: memref<1x32xf32, #tpu.memory_space<vmem>>, %arg8: memref<10x32xf32, #tpu.memory_space<vmem>>) attributes {dimension_semantics = [#tpu.dimension_semantics<parallel>], iteration_bounds = array<i64: 1>, scalar_prefetch = 0 : i64, scratch_operands = 0 : i64, tpu.core_type = #tpu.core_type<tc>, window_params = [{transform_indices = @transform_0, window_bounds = array<i64: 10, 32>}, {transform_indices = @transform_1, window_bounds = array<i64: 10, 32>}, {transform_indices = @transform_2, window_bounds = array<i64: 10, 32>}, {pipeline_mode = #tpu.pipeline_mode<synchronous>, transform_indices = @transform_3, window_bounds = array<i64: 1, 32>}, {pipeline_mode = #tpu.pipeline_mode<synchronous>, transform_indices = @transform_4, window_bounds = array<i64: 1, 32>}, {pipeline_mode = #tpu.pipeline_mode<synchronous>, transform_indices = @transform_5, window_bounds = array<i64: 32, 32>}, {pipeline_mode = #tpu.pipeline_mode<synchronous>, transform_indices = @transform_6, window_bounds = array<i64: 1, 32>}, {transform_indices = @transform_7, window_bounds = array<i64: 10, 32>}]} {
    %c0 = arith.constant 0 : index
    %c0_0 = arith.constant 0 : index
    %0 = vector.load %arg1[%c0, %c0_0] : memref<10x32xf32, #tpu.memory_space<vmem>>, vector<10x32xf32>
    %c0_1 = arith.constant 0 : index
    %c0_2 = arith.constant 0 : index
    %1 = vector.load %arg4[%c0_1, %c0_2] : memref<1x32xf32, #tpu.memory_space<vmem>>, vector<1x32xf32>
    %c0_3 = arith.constant 0 : index
    %c0_4 = arith.constant 0 : index
    %2 = vector.load %arg5[%c0_3, %c0_4] : memref<1x32xf32, #tpu.memory_space<vmem>>, vector<1x32xf32>
    %cst = arith.constant dense<0.000000e+00> : vector<10xf32>
    %3 = vector.multi_reduction <add>, %0, %cst [1] : vector<10x32xf32> to vector<10xf32>
    %4 = vector.shape_cast %3 : vector<10xf32> to vector<10x1xf32>
    %cst_5 = arith.constant 3.200000e+01 : f32
    %5 = vector.broadcast %cst_5 : f32 to vector<10x1xf32>
    %6 = arith.divf %4, %5 : vector<10x1xf32>
    %7 = vector.broadcast %6 : vector<10x1xf32> to vector<10x32xf32>
    %8 = arith.subf %0, %7 : vector<10x32xf32>
    %9 = arith.mulf %8, %8 : vector<10x32xf32>
    %cst_6 = arith.constant dense<0.000000e+00> : vector<10xf32>
    %10 = vector.multi_reduction <add>, %9, %cst_6 [1] : vector<10x32xf32> to vector<10xf32>
    %11 = vector.shape_cast %10 : vector<10xf32> to vector<10x1xf32>
    %cst_7 = arith.constant 3.200000e+01 : f32
    %12 = vector.broadcast %cst_7 : f32 to vector<10x1xf32>
    %13 = arith.divf %11, %12 : vector<10x1xf32>
    %14 = vector.broadcast %6 : vector<10x1xf32> to vector<10x32xf32>
    %15 = arith.subf %0, %14 : vector<10x32xf32>
    %cst_8 = arith.constant 9.99999974E-6 : f32
    %16 = vector.broadcast %cst_8 : f32 to vector<10x1xf32>
    %17 = arith.addf %13, %16 : vector<10x1xf32>
    %18 = math.rsqrt %17 : vector<10x1xf32>
    %19 = vector.broadcast %18 : vector<10x1xf32> to vector<10x32xf32>
    %20 = arith.mulf %15, %19 : vector<10x32xf32>
    %21 = vector.broadcast %1 : vector<1x32xf32> to vector<10x32xf32>
    %22 = arith.mulf %20, %21 : vector<10x32xf32>
    %23 = vector.broadcast %2 : vector<1x32xf32> to vector<10x32xf32>
    %24 = arith.addf %22, %23 : vector<10x32xf32>
    %c0_9 = arith.constant 0 : index
    %c0_10 = arith.constant 0 : index
    %25 = vector.load %arg2[%c0_9, %c0_10] : memref<10x32xf32, #tpu.memory_space<vmem>>, vector<10x32xf32>
    %c0_11 = arith.constant 0 : index
    %c0_12 = arith.constant 0 : index
    %26 = vector.load %arg3[%c0_11, %c0_12] : memref<10x32xf32, #tpu.memory_space<vmem>>, vector<10x32xf32>
    %27 = arith.addf %25, %26 : vector<10x32xf32>
    %c0_13 = arith.constant 0 : index
    %c0_14 = arith.constant 0 : index
    %28 = vector.load %arg6[%c0_13, %c0_14] : memref<32x32xbf16, #tpu.memory_space<vmem>>, vector<32x32xbf16>
    %29 = arith.truncf %24 : vector<10x32xf32> to vector<10x32xbf16>
    %cst_15 = arith.constant dense<0.000000e+00> : vector<10x32xf32>
    %30 = tpu.matmul %29, %28, %cst_15 {dimension_numbers = #tpu.dot_dimension_numbers<[1], [0], [0], [1], [0, 0, 1, 1], [], []>} : vector<10x32xbf16>, vector<32x32xbf16>, vector<10x32xf32> -> vector<10x32xf32>
    %31 = arith.addf %27, %30 : vector<10x32xf32>
    %c0_16 = arith.constant 0 : index
    %c0_17 = arith.constant 0 : index
    %32 = vector.load %arg7[%c0_16, %c0_17] : memref<1x32xf32, #tpu.memory_space<vmem>>, vector<1x32xf32>
    %33 = vector.broadcast %32 : vector<1x32xf32> to vector<10x32xf32>
    %34 = arith.addf %31, %33 : vector<10x32xf32>
    %c0_18 = arith.constant 0 : index
    %c0_19 = arith.constant 0 : index
    %35 = vector.load %arg8[%c0_18, %c0_19] : memref<10x32xf32, #tpu.memory_space<vmem>>, vector<10x32xf32>
    tpu.vector_store %arg8[%c0_18, %c0_19], %34 {strides = array<i32>} : memref<10x32xf32, #tpu.memory_space<vmem>>, vector<10x32xf32>,
    return
  }
  func.func @transform_0(%arg0: i32) -> (i32, i32) {
    %c0_i32 = arith.constant 0 : i32
    %c0_i32_0 = arith.constant 0 : i32
    return %arg0, %c0_i32 : i32, i32
  }
  func.func @transform_1(%arg0: i32) -> (i32, i32) {
    %c0_i32 = arith.constant 0 : i32
    %c0_i32_0 = arith.constant 0 : i32
    return %arg0, %c0_i32 : i32, i32
  }
  func.func @transform_2(%arg0: i32) -> (i32, i32) {
    %c0_i32 = arith.constant 0 : i32
    %c0_i32_0 = arith.constant 0 : i32
    return %arg0, %c0_i32 : i32, i32
  }
  func.func @transform_3(%arg0: i32) -> (i32, i32) {
    %c0_i32 = arith.constant 0 : i32
    %c0_i32_0 = arith.constant 0 : i32
    %c0_i32_1 = arith.constant 0 : i32
    return %c0_i32, %c0_i32_0 : i32, i32
  }
  func.func @transform_4(%arg0: i32) -> (i32, i32) {
    %c0_i32 = arith.constant 0 : i32
    %c0_i32_0 = arith.constant 0 : i32
    %c0_i32_1 = arith.constant 0 : i32
    return %c0_i32, %c0_i32_0 : i32, i32
  }
  func.func @transform_5(%arg0: i32) -> (i32, i32) {
    %c0_i32 = arith.constant 0 : i32
    %c0_i32_0 = arith.constant 0 : i32
    %c0_i32_1 = arith.constant 0 : i32
    return %c0_i32, %c0_i32_0 : i32, i32
  }
  func.func @transform_6(%arg0: i32) -> (i32, i32) {
    %c0_i32 = arith.constant 0 : i32
    %c0_i32_0 = arith.constant 0 : i32
    %c0_i32_1 = arith.constant 0 : i32
    return %c0_i32, %c0_i32_0 : i32, i32
  }
  func.func @transform_7(%arg0: i32) -> (i32, i32) {
    %c0_i32 = arith.constant 0 : i32
    %c0_i32_0 = arith.constant 0 : i32
    return %arg0, %c0_i32 : i32, i32
  }
}

module attributes {stable_mosaic.version = 11 : i64} {
  func.func @_n2e_kernel(%arg0: i32, %arg1: memref<8x5x32xf32, #tpu.memory_space<vmem>>, %arg2: memref<1x32xf32, #tpu.memory_space<vmem>>, %arg3: memref<1x32xf32, #tpu.memory_space<vmem>>, %arg4: memref<32x2xbf16, #tpu.memory_space<vmem>>, %arg5: memref<1x2xf32, #tpu.memory_space<vmem>>, %arg6: memref<64x32xbf16, #tpu.memory_space<vmem>>, %arg7: memref<1x32xf32, #tpu.memory_space<vmem>>, %arg8: memref<8x32xf32, #tpu.memory_space<vmem>>) attributes {dimension_semantics = [#tpu.dimension_semantics<parallel>], iteration_bounds = array<i64: 1>, scalar_prefetch = 0 : i64, scratch_operands = 0 : i64, tpu.core_type = #tpu.core_type<tc>, window_params = [{transform_indices = @transform_0, window_bounds = array<i64: 8, 5, 32>}, {pipeline_mode = #tpu.pipeline_mode<synchronous>, transform_indices = @transform_1, window_bounds = array<i64: 1, 32>}, {pipeline_mode = #tpu.pipeline_mode<synchronous>, transform_indices = @transform_2, window_bounds = array<i64: 1, 32>}, {pipeline_mode = #tpu.pipeline_mode<synchronous>, transform_indices = @transform_3, window_bounds = array<i64: 32, 2>}, {pipeline_mode = #tpu.pipeline_mode<synchronous>, transform_indices = @transform_4, window_bounds = array<i64: 1, 2>}, {pipeline_mode = #tpu.pipeline_mode<synchronous>, transform_indices = @transform_5, window_bounds = array<i64: 64, 32>}, {pipeline_mode = #tpu.pipeline_mode<synchronous>, transform_indices = @transform_6, window_bounds = array<i64: 1, 32>}, {transform_indices = @transform_7, window_bounds = array<i64: 8, 32>}]} {
    %c0 = arith.constant 0 : index
    %c0_0 = arith.constant 0 : index
    %c0_1 = arith.constant 0 : index
    %0 = vector.load %arg1[%c0, %c0_0, %c0_1] : memref<8x5x32xf32, #tpu.memory_space<vmem>>, vector<8x5x32xf32>
    %c0_2 = arith.constant 0 : index
    %c0_3 = arith.constant 0 : index
    %1 = vector.load %arg2[%c0_2, %c0_3] : memref<1x32xf32, #tpu.memory_space<vmem>>, vector<1x32xf32>
    %2 = vector.shape_cast %1 : vector<1x32xf32> to vector<1x1x32xf32>
    %c0_4 = arith.constant 0 : index
    %c0_5 = arith.constant 0 : index
    %3 = vector.load %arg3[%c0_4, %c0_5] : memref<1x32xf32, #tpu.memory_space<vmem>>, vector<1x32xf32>
    %4 = vector.shape_cast %3 : vector<1x32xf32> to vector<1x1x32xf32>
    %cst = arith.constant dense<0.000000e+00> : vector<8x5xf32>
    %5 = vector.multi_reduction <add>, %0, %cst [2] : vector<8x5x32xf32> to vector<8x5xf32>
    %6 = vector.shape_cast %5 : vector<8x5xf32> to vector<8x5x1xf32>
    %cst_6 = arith.constant 3.200000e+01 : f32
    %7 = vector.broadcast %cst_6 : f32 to vector<8x5x1xf32>
    %8 = arith.divf %6, %7 : vector<8x5x1xf32>
    %9 = vector.broadcast %8 : vector<8x5x1xf32> to vector<8x5x32xf32>
    %10 = arith.subf %0, %9 : vector<8x5x32xf32>
    %11 = arith.mulf %10, %10 : vector<8x5x32xf32>
    %cst_7 = arith.constant dense<0.000000e+00> : vector<8x5xf32>
    %12 = vector.multi_reduction <add>, %11, %cst_7 [2] : vector<8x5x32xf32> to vector<8x5xf32>
    %13 = vector.shape_cast %12 : vector<8x5xf32> to vector<8x5x1xf32>
    %cst_8 = arith.constant 3.200000e+01 : f32
    %14 = vector.broadcast %cst_8 : f32 to vector<8x5x1xf32>
    %15 = arith.divf %13, %14 : vector<8x5x1xf32>
    %16 = vector.broadcast %8 : vector<8x5x1xf32> to vector<8x5x32xf32>
    %17 = arith.subf %0, %16 : vector<8x5x32xf32>
    %cst_9 = arith.constant 9.99999974E-6 : f32
    %18 = vector.broadcast %cst_9 : f32 to vector<8x5x1xf32>
    %19 = arith.addf %15, %18 : vector<8x5x1xf32>
    %20 = math.rsqrt %19 : vector<8x5x1xf32>
    %21 = vector.broadcast %20 : vector<8x5x1xf32> to vector<8x5x32xf32>
    %22 = arith.mulf %17, %21 : vector<8x5x32xf32>
    %23 = vector.broadcast %2 : vector<1x1x32xf32> to vector<8x5x32xf32>
    %24 = arith.mulf %22, %23 : vector<8x5x32xf32>
    %25 = vector.broadcast %4 : vector<1x1x32xf32> to vector<8x5x32xf32>
    %26 = arith.addf %24, %25 : vector<8x5x32xf32>
    %27 = vector.shape_cast %26 : vector<8x5x32xf32> to vector<40x32xf32>
    %c0_10 = arith.constant 0 : index
    %c0_11 = arith.constant 0 : index
    %28 = vector.load %arg4[%c0_10, %c0_11] : memref<32x2xbf16, #tpu.memory_space<vmem>>, vector<32x2xbf16>
    %29 = arith.truncf %27 : vector<40x32xf32> to vector<40x32xbf16>
    %cst_12 = arith.constant dense<0.000000e+00> : vector<40x2xf32>
    %30 = tpu.matmul %29, %28, %cst_12 {dimension_numbers = #tpu.dot_dimension_numbers<[1], [0], [0], [1], [0, 0, 1, 1], [], []>} : vector<40x32xbf16>, vector<32x2xbf16>, vector<40x2xf32> -> vector<40x2xf32>
    %31 = vector.shape_cast %30 : vector<40x2xf32> to vector<8x5x2xf32>
    %c0_13 = arith.constant 0 : index
    %c0_14 = arith.constant 0 : index
    %32 = vector.load %arg5[%c0_13, %c0_14] : memref<1x2xf32, #tpu.memory_space<vmem>>, vector<1x2xf32>
    %33 = vector.shape_cast %32 : vector<1x2xf32> to vector<1x1x2xf32>
    %34 = vector.broadcast %33 : vector<1x1x2xf32> to vector<8x5x2xf32>
    %35 = arith.addf %31, %34 : vector<8x5x2xf32>
    %cst_15 = arith.constant dense<0xFF800000> : vector<8x2xf32>
    %36 = vector.multi_reduction <maximumf>, %35, %cst_15 [1] : vector<8x5x2xf32> to vector<8x2xf32>
    %37 = vector.shape_cast %36 : vector<8x2xf32> to vector<8x1x2xf32>
    %38 = vector.broadcast %37 : vector<8x1x2xf32> to vector<8x5x2xf32>
    %39 = arith.subf %35, %38 : vector<8x5x2xf32>
    %40 = math.exp %39 : vector<8x5x2xf32>
    %cst_16 = arith.constant dense<0.000000e+00> : vector<8x2xf32>
    %41 = vector.multi_reduction <add>, %40, %cst_16 [1] : vector<8x5x2xf32> to vector<8x2xf32>
    %42 = vector.shape_cast %41 : vector<8x2xf32> to vector<8x1x2xf32>
    %43 = tpu.reciprocal %42 {approx = true} : vector<8x1x2xf32> -> vector<8x1x2xf32>
    %44 = vector.broadcast %43 : vector<8x1x2xf32> to vector<8x5x2xf32>
    %45 = arith.mulf %40, %44 : vector<8x5x2xf32>
    %46 = arith.truncf %45 : vector<8x5x2xf32> to vector<8x5x2xbf16>
    %47 = arith.truncf %26 : vector<8x5x32xf32> to vector<8x5x32xbf16>
    %cst_17 = arith.constant dense<0.000000e+00> : vector<8x2x32xf32>
    %48 = tpu.matmul %46, %47, %cst_17 {dimension_numbers = #tpu.dot_dimension_numbers<[1], [1], [2], [2], [0, 0, 0, 2, 1, 2], [0], [0]>} : vector<8x5x2xbf16>, vector<8x5x32xbf16>, vector<8x2x32xf32> -> vector<8x2x32xf32>
    %49 = vector.shape_cast %48 : vector<8x2x32xf32> to vector<8x64xf32>
    %c0_18 = arith.constant 0 : index
    %c0_19 = arith.constant 0 : index
    %50 = vector.load %arg6[%c0_18, %c0_19] : memref<64x32xbf16, #tpu.memory_space<vmem>>, vector<64x32xbf16>
    %51 = arith.truncf %49 : vector<8x64xf32> to vector<8x64xbf16>
    %cst_20 = arith.constant dense<0.000000e+00> : vector<8x32xf32>
    %52 = tpu.matmul %51, %50, %cst_20 {dimension_numbers = #tpu.dot_dimension_numbers<[1], [0], [0], [1], [0, 0, 1, 1], [], []>} : vector<8x64xbf16>, vector<64x32xbf16>, vector<8x32xf32> -> vector<8x32xf32>
    %c0_21 = arith.constant 0 : index
    %c0_22 = arith.constant 0 : index
    %53 = vector.load %arg7[%c0_21, %c0_22] : memref<1x32xf32, #tpu.memory_space<vmem>>, vector<1x32xf32>
    %54 = vector.broadcast %53 : vector<1x32xf32> to vector<8x32xf32>
    %55 = arith.addf %52, %54 : vector<8x32xf32>
    %c0_23 = arith.constant 0 : index
    %c0_24 = arith.constant 0 : index
    %56 = vector.load %arg8[%c0_23, %c0_24] : memref<8x32xf32, #tpu.memory_space<vmem>>, vector<8x32xf32>
    tpu.vector_store %arg8[%c0_23, %c0_24], %55 {strides = array<i32>} : memref<8x32xf32, #tpu.memory_space<vmem>>, vector<8x32xf32>,
    return
  }
  func.func @transform_0(%arg0: i32) -> (i32, i32, i32) {
    %c0_i32 = arith.constant 0 : i32
    %c0_i32_0 = arith.constant 0 : i32
    %c0_i32_1 = arith.constant 0 : i32
    return %arg0, %c0_i32, %c0_i32_0 : i32, i32, i32
  }
  func.func @transform_1(%arg0: i32) -> (i32, i32) {
    %c0_i32 = arith.constant 0 : i32
    %c0_i32_0 = arith.constant 0 : i32
    %c0_i32_1 = arith.constant 0 : i32
    return %c0_i32, %c0_i32_0 : i32, i32
  }
  func.func @transform_2(%arg0: i32) -> (i32, i32) {
    %c0_i32 = arith.constant 0 : i32
    %c0_i32_0 = arith.constant 0 : i32
    %c0_i32_1 = arith.constant 0 : i32
    return %c0_i32, %c0_i32_0 : i32, i32
  }
  func.func @transform_3(%arg0: i32) -> (i32, i32) {
    %c0_i32 = arith.constant 0 : i32
    %c0_i32_0 = arith.constant 0 : i32
    %c0_i32_1 = arith.constant 0 : i32
    return %c0_i32, %c0_i32_0 : i32, i32
  }
  func.func @transform_4(%arg0: i32) -> (i32, i32) {
    %c0_i32 = arith.constant 0 : i32
    %c0_i32_0 = arith.constant 0 : i32
    %c0_i32_1 = arith.constant 0 : i32
    return %c0_i32, %c0_i32_0 : i32, i32
  }
  func.func @transform_5(%arg0: i32) -> (i32, i32) {
    %c0_i32 = arith.constant 0 : i32
    %c0_i32_0 = arith.constant 0 : i32
    %c0_i32_1 = arith.constant 0 : i32
    return %c0_i32, %c0_i32_0 : i32, i32
  }
  func.func @transform_6(%arg0: i32) -> (i32, i32) {
    %c0_i32 = arith.constant 0 : i32
    %c0_i32_0 = arith.constant 0 : i32
    %c0_i32_1 = arith.constant 0 : i32
    return %c0_i32, %c0_i32_0 : i32, i32
  }
  func.func @transform_7(%arg0: i32) -> (i32, i32) {
    %c0_i32 = arith.constant 0 : i32
    %c0_i32_0 = arith.constant 0 : i32
    return %arg0, %c0_i32 : i32, i32
  }
}

module attributes {stable_mosaic.version = 11 : i64} {
  func.func @_ln_linear_add_kernel(%arg0: i32, %arg1: memref<7x32xf32, #tpu.memory_space<vmem>>, %arg2: memref<7x32xf32, #tpu.memory_space<vmem>>, %arg3: memref<7x32xf32, #tpu.memory_space<vmem>>, %arg4: memref<1x32xf32, #tpu.memory_space<vmem>>, %arg5: memref<1x32xf32, #tpu.memory_space<vmem>>, %arg6: memref<32x32xbf16, #tpu.memory_space<vmem>>, %arg7: memref<1x32xf32, #tpu.memory_space<vmem>>, %arg8: memref<7x32xf32, #tpu.memory_space<vmem>>) attributes {dimension_semantics = [#tpu.dimension_semantics<parallel>], iteration_bounds = array<i64: 1>, scalar_prefetch = 0 : i64, scratch_operands = 0 : i64, tpu.core_type = #tpu.core_type<tc>, window_params = [{transform_indices = @transform_0, window_bounds = array<i64: 7, 32>}, {transform_indices = @transform_1, window_bounds = array<i64: 7, 32>}, {transform_indices = @transform_2, window_bounds = array<i64: 7, 32>}, {pipeline_mode = #tpu.pipeline_mode<synchronous>, transform_indices = @transform_3, window_bounds = array<i64: 1, 32>}, {pipeline_mode = #tpu.pipeline_mode<synchronous>, transform_indices = @transform_4, window_bounds = array<i64: 1, 32>}, {pipeline_mode = #tpu.pipeline_mode<synchronous>, transform_indices = @transform_5, window_bounds = array<i64: 32, 32>}, {pipeline_mode = #tpu.pipeline_mode<synchronous>, transform_indices = @transform_6, window_bounds = array<i64: 1, 32>}, {transform_indices = @transform_7, window_bounds = array<i64: 7, 32>}]} {
    %c0 = arith.constant 0 : index
    %c0_0 = arith.constant 0 : index
    %0 = vector.load %arg1[%c0, %c0_0] : memref<7x32xf32, #tpu.memory_space<vmem>>, vector<7x32xf32>
    %c0_1 = arith.constant 0 : index
    %c0_2 = arith.constant 0 : index
    %1 = vector.load %arg4[%c0_1, %c0_2] : memref<1x32xf32, #tpu.memory_space<vmem>>, vector<1x32xf32>
    %c0_3 = arith.constant 0 : index
    %c0_4 = arith.constant 0 : index
    %2 = vector.load %arg5[%c0_3, %c0_4] : memref<1x32xf32, #tpu.memory_space<vmem>>, vector<1x32xf32>
    %cst = arith.constant dense<0.000000e+00> : vector<7xf32>
    %3 = vector.multi_reduction <add>, %0, %cst [1] : vector<7x32xf32> to vector<7xf32>
    %4 = vector.shape_cast %3 : vector<7xf32> to vector<7x1xf32>
    %cst_5 = arith.constant 3.200000e+01 : f32
    %5 = vector.broadcast %cst_5 : f32 to vector<7x1xf32>
    %6 = arith.divf %4, %5 : vector<7x1xf32>
    %7 = vector.broadcast %6 : vector<7x1xf32> to vector<7x32xf32>
    %8 = arith.subf %0, %7 : vector<7x32xf32>
    %9 = arith.mulf %8, %8 : vector<7x32xf32>
    %cst_6 = arith.constant dense<0.000000e+00> : vector<7xf32>
    %10 = vector.multi_reduction <add>, %9, %cst_6 [1] : vector<7x32xf32> to vector<7xf32>
    %11 = vector.shape_cast %10 : vector<7xf32> to vector<7x1xf32>
    %cst_7 = arith.constant 3.200000e+01 : f32
    %12 = vector.broadcast %cst_7 : f32 to vector<7x1xf32>
    %13 = arith.divf %11, %12 : vector<7x1xf32>
    %14 = vector.broadcast %6 : vector<7x1xf32> to vector<7x32xf32>
    %15 = arith.subf %0, %14 : vector<7x32xf32>
    %cst_8 = arith.constant 9.99999974E-6 : f32
    %16 = vector.broadcast %cst_8 : f32 to vector<7x1xf32>
    %17 = arith.addf %13, %16 : vector<7x1xf32>
    %18 = math.rsqrt %17 : vector<7x1xf32>
    %19 = vector.broadcast %18 : vector<7x1xf32> to vector<7x32xf32>
    %20 = arith.mulf %15, %19 : vector<7x32xf32>
    %21 = vector.broadcast %1 : vector<1x32xf32> to vector<7x32xf32>
    %22 = arith.mulf %20, %21 : vector<7x32xf32>
    %23 = vector.broadcast %2 : vector<1x32xf32> to vector<7x32xf32>
    %24 = arith.addf %22, %23 : vector<7x32xf32>
    %c0_9 = arith.constant 0 : index
    %c0_10 = arith.constant 0 : index
    %25 = vector.load %arg2[%c0_9, %c0_10] : memref<7x32xf32, #tpu.memory_space<vmem>>, vector<7x32xf32>
    %c0_11 = arith.constant 0 : index
    %c0_12 = arith.constant 0 : index
    %26 = vector.load %arg3[%c0_11, %c0_12] : memref<7x32xf32, #tpu.memory_space<vmem>>, vector<7x32xf32>
    %27 = arith.addf %25, %26 : vector<7x32xf32>
    %c0_13 = arith.constant 0 : index
    %c0_14 = arith.constant 0 : index
    %28 = vector.load %arg6[%c0_13, %c0_14] : memref<32x32xbf16, #tpu.memory_space<vmem>>, vector<32x32xbf16>
    %29 = arith.truncf %24 : vector<7x32xf32> to vector<7x32xbf16>
    %cst_15 = arith.constant dense<0.000000e+00> : vector<7x32xf32>
    %30 = tpu.matmul %29, %28, %cst_15 {dimension_numbers = #tpu.dot_dimension_numbers<[1], [0], [0], [1], [0, 0, 1, 1], [], []>} : vector<7x32xbf16>, vector<32x32xbf16>, vector<7x32xf32> -> vector<7x32xf32>
    %31 = arith.addf %27, %30 : vector<7x32xf32>
    %c0_16 = arith.constant 0 : index
    %c0_17 = arith.constant 0 : index
    %32 = vector.load %arg7[%c0_16, %c0_17] : memref<1x32xf32, #tpu.memory_space<vmem>>, vector<1x32xf32>
    %33 = vector.broadcast %32 : vector<1x32xf32> to vector<7x32xf32>
    %34 = arith.addf %31, %33 : vector<7x32xf32>
    %c0_18 = arith.constant 0 : index
    %c0_19 = arith.constant 0 : index
    %35 = vector.load %arg8[%c0_18, %c0_19] : memref<7x32xf32, #tpu.memory_space<vmem>>, vector<7x32xf32>
    tpu.vector_store %arg8[%c0_18, %c0_19], %34 {strides = array<i32>} : memref<7x32xf32, #tpu.memory_space<vmem>>, vector<7x32xf32>,
    return
  }
  func.func @transform_0(%arg0: i32) -> (i32, i32) {
    %c0_i32 = arith.constant 0 : i32
    %c0_i32_0 = arith.constant 0 : i32
    return %arg0, %c0_i32 : i32, i32
  }
  func.func @transform_1(%arg0: i32) -> (i32, i32) {
    %c0_i32 = arith.constant 0 : i32
    %c0_i32_0 = arith.constant 0 : i32
    return %arg0, %c0_i32 : i32, i32
  }
  func.func @transform_2(%arg0: i32) -> (i32, i32) {
    %c0_i32 = arith.constant 0 : i32
    %c0_i32_0 = arith.constant 0 : i32
    return %arg0, %c0_i32 : i32, i32
  }
  func.func @transform_3(%arg0: i32) -> (i32, i32) {
    %c0_i32 = arith.constant 0 : i32
    %c0_i32_0 = arith.constant 0 : i32
    %c0_i32_1 = arith.constant 0 : i32
    return %c0_i32, %c0_i32_0 : i32, i32
  }
  func.func @transform_4(%arg0: i32) -> (i32, i32) {
    %c0_i32 = arith.constant 0 : i32
    %c0_i32_0 = arith.constant 0 : i32
    %c0_i32_1 = arith.constant 0 : i32
    return %c0_i32, %c0_i32_0 : i32, i32
  }
  func.func @transform_5(%arg0: i32) -> (i32, i32) {
    %c0_i32 = arith.constant 0 : i32
    %c0_i32_0 = arith.constant 0 : i32
    %c0_i32_1 = arith.constant 0 : i32
    return %c0_i32, %c0_i32_0 : i32, i32
  }
  func.func @transform_6(%arg0: i32) -> (i32, i32) {
    %c0_i32 = arith.constant 0 : i32
    %c0_i32_0 = arith.constant 0 : i32
    %c0_i32_1 = arith.constant 0 : i32
    return %c0_i32, %c0_i32_0 : i32, i32
  }
  func.func @transform_7(%arg0: i32) -> (i32, i32) {
    %c0_i32 = arith.constant 0 : i32
    %c0_i32_0 = arith.constant 0 : i32
    return %arg0, %c0_i32 : i32, i32
  }
}

module attributes {stable_mosaic.version = 11 : i64} {
  func.func @_n2e_kernel(%arg0: i32, %arg1: memref<8x6x32xf32, #tpu.memory_space<vmem>>, %arg2: memref<1x32xf32, #tpu.memory_space<vmem>>, %arg3: memref<1x32xf32, #tpu.memory_space<vmem>>, %arg4: memref<32x2xbf16, #tpu.memory_space<vmem>>, %arg5: memref<1x2xf32, #tpu.memory_space<vmem>>, %arg6: memref<64x32xbf16, #tpu.memory_space<vmem>>, %arg7: memref<1x32xf32, #tpu.memory_space<vmem>>, %arg8: memref<8x32xf32, #tpu.memory_space<vmem>>) attributes {dimension_semantics = [#tpu.dimension_semantics<parallel>], iteration_bounds = array<i64: 1>, scalar_prefetch = 0 : i64, scratch_operands = 0 : i64, tpu.core_type = #tpu.core_type<tc>, window_params = [{transform_indices = @transform_0, window_bounds = array<i64: 8, 6, 32>}, {pipeline_mode = #tpu.pipeline_mode<synchronous>, transform_indices = @transform_1, window_bounds = array<i64: 1, 32>}, {pipeline_mode = #tpu.pipeline_mode<synchronous>, transform_indices = @transform_2, window_bounds = array<i64: 1, 32>}, {pipeline_mode = #tpu.pipeline_mode<synchronous>, transform_indices = @transform_3, window_bounds = array<i64: 32, 2>}, {pipeline_mode = #tpu.pipeline_mode<synchronous>, transform_indices = @transform_4, window_bounds = array<i64: 1, 2>}, {pipeline_mode = #tpu.pipeline_mode<synchronous>, transform_indices = @transform_5, window_bounds = array<i64: 64, 32>}, {pipeline_mode = #tpu.pipeline_mode<synchronous>, transform_indices = @transform_6, window_bounds = array<i64: 1, 32>}, {transform_indices = @transform_7, window_bounds = array<i64: 8, 32>}]} {
    %c0 = arith.constant 0 : index
    %c0_0 = arith.constant 0 : index
    %c0_1 = arith.constant 0 : index
    %0 = vector.load %arg1[%c0, %c0_0, %c0_1] : memref<8x6x32xf32, #tpu.memory_space<vmem>>, vector<8x6x32xf32>
    %c0_2 = arith.constant 0 : index
    %c0_3 = arith.constant 0 : index
    %1 = vector.load %arg2[%c0_2, %c0_3] : memref<1x32xf32, #tpu.memory_space<vmem>>, vector<1x32xf32>
    %2 = vector.shape_cast %1 : vector<1x32xf32> to vector<1x1x32xf32>
    %c0_4 = arith.constant 0 : index
    %c0_5 = arith.constant 0 : index
    %3 = vector.load %arg3[%c0_4, %c0_5] : memref<1x32xf32, #tpu.memory_space<vmem>>, vector<1x32xf32>
    %4 = vector.shape_cast %3 : vector<1x32xf32> to vector<1x1x32xf32>
    %cst = arith.constant dense<0.000000e+00> : vector<8x6xf32>
    %5 = vector.multi_reduction <add>, %0, %cst [2] : vector<8x6x32xf32> to vector<8x6xf32>
    %6 = vector.shape_cast %5 : vector<8x6xf32> to vector<8x6x1xf32>
    %cst_6 = arith.constant 3.200000e+01 : f32
    %7 = vector.broadcast %cst_6 : f32 to vector<8x6x1xf32>
    %8 = arith.divf %6, %7 : vector<8x6x1xf32>
    %9 = vector.broadcast %8 : vector<8x6x1xf32> to vector<8x6x32xf32>
    %10 = arith.subf %0, %9 : vector<8x6x32xf32>
    %11 = arith.mulf %10, %10 : vector<8x6x32xf32>
    %cst_7 = arith.constant dense<0.000000e+00> : vector<8x6xf32>
    %12 = vector.multi_reduction <add>, %11, %cst_7 [2] : vector<8x6x32xf32> to vector<8x6xf32>
    %13 = vector.shape_cast %12 : vector<8x6xf32> to vector<8x6x1xf32>
    %cst_8 = arith.constant 3.200000e+01 : f32
    %14 = vector.broadcast %cst_8 : f32 to vector<8x6x1xf32>
    %15 = arith.divf %13, %14 : vector<8x6x1xf32>
    %16 = vector.broadcast %8 : vector<8x6x1xf32> to vector<8x6x32xf32>
    %17 = arith.subf %0, %16 : vector<8x6x32xf32>
    %cst_9 = arith.constant 9.99999974E-6 : f32
    %18 = vector.broadcast %cst_9 : f32 to vector<8x6x1xf32>
    %19 = arith.addf %15, %18 : vector<8x6x1xf32>
    %20 = math.rsqrt %19 : vector<8x6x1xf32>
    %21 = vector.broadcast %20 : vector<8x6x1xf32> to vector<8x6x32xf32>
    %22 = arith.mulf %17, %21 : vector<8x6x32xf32>
    %23 = vector.broadcast %2 : vector<1x1x32xf32> to vector<8x6x32xf32>
    %24 = arith.mulf %22, %23 : vector<8x6x32xf32>
    %25 = vector.broadcast %4 : vector<1x1x32xf32> to vector<8x6x32xf32>
    %26 = arith.addf %24, %25 : vector<8x6x32xf32>
    %27 = vector.shape_cast %26 : vector<8x6x32xf32> to vector<48x32xf32>
    %c0_10 = arith.constant 0 : index
    %c0_11 = arith.constant 0 : index
    %28 = vector.load %arg4[%c0_10, %c0_11] : memref<32x2xbf16, #tpu.memory_space<vmem>>, vector<32x2xbf16>
    %29 = arith.truncf %27 : vector<48x32xf32> to vector<48x32xbf16>
    %cst_12 = arith.constant dense<0.000000e+00> : vector<48x2xf32>
    %30 = tpu.matmul %29, %28, %cst_12 {dimension_numbers = #tpu.dot_dimension_numbers<[1], [0], [0], [1], [0, 0, 1, 1], [], []>} : vector<48x32xbf16>, vector<32x2xbf16>, vector<48x2xf32> -> vector<48x2xf32>
    %31 = vector.shape_cast %30 : vector<48x2xf32> to vector<8x6x2xf32>
    %c0_13 = arith.constant 0 : index
    %c0_14 = arith.constant 0 : index
    %32 = vector.load %arg5[%c0_13, %c0_14] : memref<1x2xf32, #tpu.memory_space<vmem>>, vector<1x2xf32>
    %33 = vector.shape_cast %32 : vector<1x2xf32> to vector<1x1x2xf32>
    %34 = vector.broadcast %33 : vector<1x1x2xf32> to vector<8x6x2xf32>
    %35 = arith.addf %31, %34 : vector<8x6x2xf32>
    %cst_15 = arith.constant dense<0xFF800000> : vector<8x2xf32>
    %36 = vector.multi_reduction <maximumf>, %35, %cst_15 [1] : vector<8x6x2xf32> to vector<8x2xf32>
    %37 = vector.shape_cast %36 : vector<8x2xf32> to vector<8x1x2xf32>
    %38 = vector.broadcast %37 : vector<8x1x2xf32> to vector<8x6x2xf32>
    %39 = arith.subf %35, %38 : vector<8x6x2xf32>
    %40 = math.exp %39 : vector<8x6x2xf32>
    %cst_16 = arith.constant dense<0.000000e+00> : vector<8x2xf32>
    %41 = vector.multi_reduction <add>, %40, %cst_16 [1] : vector<8x6x2xf32> to vector<8x2xf32>
    %42 = vector.shape_cast %41 : vector<8x2xf32> to vector<8x1x2xf32>
    %43 = tpu.reciprocal %42 {approx = true} : vector<8x1x2xf32> -> vector<8x1x2xf32>
    %44 = vector.broadcast %43 : vector<8x1x2xf32> to vector<8x6x2xf32>
    %45 = arith.mulf %40, %44 : vector<8x6x2xf32>
    %46 = arith.truncf %45 : vector<8x6x2xf32> to vector<8x6x2xbf16>
    %47 = arith.truncf %26 : vector<8x6x32xf32> to vector<8x6x32xbf16>
    %cst_17 = arith.constant dense<0.000000e+00> : vector<8x2x32xf32>
    %48 = tpu.matmul %46, %47, %cst_17 {dimension_numbers = #tpu.dot_dimension_numbers<[1], [1], [2], [2], [0, 0, 0, 2, 1, 2], [0], [0]>} : vector<8x6x2xbf16>, vector<8x6x32xbf16>, vector<8x2x32xf32> -> vector<8x2x32xf32>
    %49 = vector.shape_cast %48 : vector<8x2x32xf32> to vector<8x64xf32>
    %c0_18 = arith.constant 0 : index
    %c0_19 = arith.constant 0 : index
    %50 = vector.load %arg6[%c0_18, %c0_19] : memref<64x32xbf16, #tpu.memory_space<vmem>>, vector<64x32xbf16>
    %51 = arith.truncf %49 : vector<8x64xf32> to vector<8x64xbf16>
    %cst_20 = arith.constant dense<0.000000e+00> : vector<8x32xf32>
    %52 = tpu.matmul %51, %50, %cst_20 {dimension_numbers = #tpu.dot_dimension_numbers<[1], [0], [0], [1], [0, 0, 1, 1], [], []>} : vector<8x64xbf16>, vector<64x32xbf16>, vector<8x32xf32> -> vector<8x32xf32>
    %c0_21 = arith.constant 0 : index
    %c0_22 = arith.constant 0 : index
    %53 = vector.load %arg7[%c0_21, %c0_22] : memref<1x32xf32, #tpu.memory_space<vmem>>, vector<1x32xf32>
    %54 = vector.broadcast %53 : vector<1x32xf32> to vector<8x32xf32>
    %55 = arith.addf %52, %54 : vector<8x32xf32>
    %c0_23 = arith.constant 0 : index
    %c0_24 = arith.constant 0 : index
    %56 = vector.load %arg8[%c0_23, %c0_24] : memref<8x32xf32, #tpu.memory_space<vmem>>, vector<8x32xf32>
    tpu.vector_store %arg8[%c0_23, %c0_24], %55 {strides = array<i32>} : memref<8x32xf32, #tpu.memory_space<vmem>>, vector<8x32xf32>,
    return
  }
  func.func @transform_0(%arg0: i32) -> (i32, i32, i32) {
    %c0_i32 = arith.constant 0 : i32
    %c0_i32_0 = arith.constant 0 : i32
    %c0_i32_1 = arith.constant 0 : i32
    return %arg0, %c0_i32, %c0_i32_0 : i32, i32, i32
  }
  func.func @transform_1(%arg0: i32) -> (i32, i32) {
    %c0_i32 = arith.constant 0 : i32
    %c0_i32_0 = arith.constant 0 : i32
    %c0_i32_1 = arith.constant 0 : i32
    return %c0_i32, %c0_i32_0 : i32, i32
  }
  func.func @transform_2(%arg0: i32) -> (i32, i32) {
    %c0_i32 = arith.constant 0 : i32
    %c0_i32_0 = arith.constant 0 : i32
    %c0_i32_1 = arith.constant 0 : i32
    return %c0_i32, %c0_i32_0 : i32, i32
  }
  func.func @transform_3(%arg0: i32) -> (i32, i32) {
    %c0_i32 = arith.constant 0 : i32
    %c0_i32_0 = arith.constant 0 : i32
    %c0_i32_1 = arith.constant 0 : i32
    return %c0_i32, %c0_i32_0 : i32, i32
  }
  func.func @transform_4(%arg0: i32) -> (i32, i32) {
    %c0_i32 = arith.constant 0 : i32
    %c0_i32_0 = arith.constant 0 : i32
    %c0_i32_1 = arith.constant 0 : i32
    return %c0_i32, %c0_i32_0 : i32, i32
  }
  func.func @transform_5(%arg0: i32) -> (i32, i32) {
    %c0_i32 = arith.constant 0 : i32
    %c0_i32_0 = arith.constant 0 : i32
    %c0_i32_1 = arith.constant 0 : i32
    return %c0_i32, %c0_i32_0 : i32, i32
  }
  func.func @transform_6(%arg0: i32) -> (i32, i32) {
    %c0_i32 = arith.constant 0 : i32
    %c0_i32_0 = arith.constant 0 : i32
    %c0_i32_1 = arith.constant 0 : i32
    return %c0_i32, %c0_i32_0 : i32, i32
  }
  func.func @transform_7(%arg0: i32) -> (i32, i32) {
    %c0_i32 = arith.constant 0 : i32
    %c0_i32_0 = arith.constant 0 : i32
    return %arg0, %c0_i32 : i32, i32
  }
}

module attributes {stable_mosaic.version = 11 : i64} {
  func.func @_cross_attn_kernel(%arg0: i32, %arg1: memref<7x32xf32, #tpu.memory_space<vmem>>, %arg2: memref<10x32xf32, #tpu.memory_space<vmem>>, %arg3: memref<10x32xf32, #tpu.memory_space<vmem>>, %arg4: memref<32x32xbf16, #tpu.memory_space<vmem>>, %arg5: memref<1x32xf32, #tpu.memory_space<vmem>>, %arg6: memref<32x32xbf16, #tpu.memory_space<vmem>>, %arg7: memref<1x32xf32, #tpu.memory_space<vmem>>, %arg8: memref<32x32xbf16, #tpu.memory_space<vmem>>, %arg9: memref<1x32xf32, #tpu.memory_space<vmem>>, %arg10: memref<32x32xbf16, #tpu.memory_space<vmem>>, %arg11: memref<1x32xf32, #tpu.memory_space<vmem>>, %arg12: memref<7x32xf32, #tpu.memory_space<vmem>>) attributes {dimension_semantics = [#tpu.dimension_semantics<parallel>], iteration_bounds = array<i64: 1>, scalar_prefetch = 0 : i64, scratch_operands = 0 : i64, tpu.core_type = #tpu.core_type<tc>, window_params = [{transform_indices = @transform_0, window_bounds = array<i64: 7, 32>}, {pipeline_mode = #tpu.pipeline_mode<synchronous>, transform_indices = @transform_1, window_bounds = array<i64: 10, 32>}, {pipeline_mode = #tpu.pipeline_mode<synchronous>, transform_indices = @transform_2, window_bounds = array<i64: 10, 32>}, {pipeline_mode = #tpu.pipeline_mode<synchronous>, transform_indices = @transform_3, window_bounds = array<i64: 32, 32>}, {pipeline_mode = #tpu.pipeline_mode<synchronous>, transform_indices = @transform_4, window_bounds = array<i64: 1, 32>}, {pipeline_mode = #tpu.pipeline_mode<synchronous>, transform_indices = @transform_5, window_bounds = array<i64: 32, 32>}, {pipeline_mode = #tpu.pipeline_mode<synchronous>, transform_indices = @transform_6, window_bounds = array<i64: 1, 32>}, {pipeline_mode = #tpu.pipeline_mode<synchronous>, transform_indices = @transform_7, window_bounds = array<i64: 32, 32>}, {pipeline_mode = #tpu.pipeline_mode<synchronous>, transform_indices = @transform_8, window_bounds = array<i64: 1, 32>}, {pipeline_mode = #tpu.pipeline_mode<synchronous>, transform_indices = @transform_9, window_bounds = array<i64: 32, 32>}, {pipeline_mode = #tpu.pipeline_mode<synchronous>, transform_indices = @transform_10, window_bounds = array<i64: 1, 32>}, {transform_indices = @transform_11, window_bounds = array<i64: 7, 32>}]} {
    %c0 = arith.constant 0 : index
    %c0_0 = arith.constant 0 : index
    %0 = vector.load %arg1[%c0, %c0_0] : memref<7x32xf32, #tpu.memory_space<vmem>>, vector<7x32xf32>
    %c0_1 = arith.constant 0 : index
    %c0_2 = arith.constant 0 : index
    %1 = vector.load %arg2[%c0_1, %c0_2] : memref<10x32xf32, #tpu.memory_space<vmem>>, vector<10x32xf32>
    %c0_3 = arith.constant 0 : index
    %c0_4 = arith.constant 0 : index
    %2 = vector.load %arg3[%c0_3, %c0_4] : memref<10x32xf32, #tpu.memory_space<vmem>>, vector<10x32xf32>
    %c0_5 = arith.constant 0 : index
    %c0_6 = arith.constant 0 : index
    %3 = vector.load %arg4[%c0_5, %c0_6] : memref<32x32xbf16, #tpu.memory_space<vmem>>, vector<32x32xbf16>
    %c0_7 = arith.constant 0 : index
    %c0_8 = arith.constant 0 : index
    %4 = vector.load %arg5[%c0_7, %c0_8] : memref<1x32xf32, #tpu.memory_space<vmem>>, vector<1x32xf32>
    %c0_9 = arith.constant 0 : index
    %c0_10 = arith.constant 0 : index
    %5 = vector.load %arg6[%c0_9, %c0_10] : memref<32x32xbf16, #tpu.memory_space<vmem>>, vector<32x32xbf16>
    %c0_11 = arith.constant 0 : index
    %c0_12 = arith.constant 0 : index
    %6 = vector.load %arg7[%c0_11, %c0_12] : memref<1x32xf32, #tpu.memory_space<vmem>>, vector<1x32xf32>
    %c0_13 = arith.constant 0 : index
    %c0_14 = arith.constant 0 : index
    %7 = vector.load %arg8[%c0_13, %c0_14] : memref<32x32xbf16, #tpu.memory_space<vmem>>, vector<32x32xbf16>
    %c0_15 = arith.constant 0 : index
    %c0_16 = arith.constant 0 : index
    %8 = vector.load %arg9[%c0_15, %c0_16] : memref<1x32xf32, #tpu.memory_space<vmem>>, vector<1x32xf32>
    %c0_17 = arith.constant 0 : index
    %c0_18 = arith.constant 0 : index
    %9 = vector.load %arg10[%c0_17, %c0_18] : memref<32x32xbf16, #tpu.memory_space<vmem>>, vector<32x32xbf16>
    %c0_19 = arith.constant 0 : index
    %c0_20 = arith.constant 0 : index
    %10 = vector.load %arg11[%c0_19, %c0_20] : memref<1x32xf32, #tpu.memory_space<vmem>>, vector<1x32xf32>
    %11 = arith.truncf %0 : vector<7x32xf32> to vector<7x32xbf16>
    %cst = arith.constant dense<0.000000e+00> : vector<7x32xf32>
    %12 = tpu.matmul %11, %3, %cst {dimension_numbers = #tpu.dot_dimension_numbers<[1], [0], [0], [1], [0, 0, 1, 1], [], []>} : vector<7x32xbf16>, vector<32x32xbf16>, vector<7x32xf32> -> vector<7x32xf32>
    %13 = vector.broadcast %4 : vector<1x32xf32> to vector<7x32xf32>
    %14 = arith.addf %12, %13 : vector<7x32xf32>
    %15 = arith.truncf %1 : vector<10x32xf32> to vector<10x32xbf16>
    %cst_21 = arith.constant dense<0.000000e+00> : vector<10x32xf32>
    %16 = tpu.matmul %15, %5, %cst_21 {dimension_numbers = #tpu.dot_dimension_numbers<[1], [0], [0], [1], [0, 0, 1, 1], [], []>} : vector<10x32xbf16>, vector<32x32xbf16>, vector<10x32xf32> -> vector<10x32xf32>
    %17 = vector.broadcast %6 : vector<1x32xf32> to vector<10x32xf32>
    %18 = arith.addf %16, %17 : vector<10x32xf32>
    %19 = arith.truncf %2 : vector<10x32xf32> to vector<10x32xbf16>
    %cst_22 = arith.constant dense<0.000000e+00> : vector<10x32xf32>
    %20 = tpu.matmul %19, %7, %cst_22 {dimension_numbers = #tpu.dot_dimension_numbers<[1], [0], [0], [1], [0, 0, 1, 1], [], []>} : vector<10x32xbf16>, vector<32x32xbf16>, vector<10x32xf32> -> vector<10x32xf32>
    %21 = vector.broadcast %8 : vector<1x32xf32> to vector<10x32xf32>
    %22 = arith.addf %20, %21 : vector<10x32xf32>
    %23 = vector.extract_strided_slice %14 {offsets = [0, 0], sizes = [7, 16], strides = [1, 1]} : vector<7x32xf32> to vector<7x16xf32>
    %24 = vector.extract_strided_slice %18 {offsets = [0, 0], sizes = [10, 16], strides = [1, 1]} : vector<10x32xf32> to vector<10x16xf32>
    %25 = arith.truncf %23 : vector<7x16xf32> to vector<7x16xbf16>
    %26 = arith.truncf %24 : vector<10x16xf32> to vector<10x16xbf16>
    %cst_23 = arith.constant dense<0.000000e+00> : vector<7x10xf32>
    %27 = tpu.matmul %25, %26, %cst_23 {dimension_numbers = #tpu.dot_dimension_numbers<[1], [1], [0], [0], [0, 0, 1, 0], [], []>} : vector<7x16xbf16>, vector<10x16xbf16>, vector<7x10xf32> -> vector<7x10xf32>
    %cst_24 = arith.constant dense<0xFF800000> : vector<7xf32>
    %28 = vector.multi_reduction <maximumf>, %27, %cst_24 [1] : vector<7x10xf32> to vector<7xf32>
    %29 = vector.shape_cast %28 : vector<7xf32> to vector<7x1xf32>
    %30 = vector.broadcast %29 : vector<7x1xf32> to vector<7x10xf32>
    %31 = arith.subf %27, %30 : vector<7x10xf32>
    %32 = math.exp %31 : vector<7x10xf32>
    %cst_25 = arith.constant dense<0.000000e+00> : vector<7xf32>
    %33 = vector.multi_reduction <add>, %32, %cst_25 [1] : vector<7x10xf32> to vector<7xf32>
    %34 = vector.shape_cast %33 : vector<7xf32> to vector<7x1xf32>
    %35 = tpu.reciprocal %34 {approx = true} : vector<7x1xf32> -> vector<7x1xf32>
    %36 = vector.broadcast %35 : vector<7x1xf32> to vector<7x10xf32>
    %37 = arith.mulf %32, %36 : vector<7x10xf32>
    %38 = vector.extract_strided_slice %22 {offsets = [0, 0], sizes = [10, 16], strides = [1, 1]} : vector<10x32xf32> to vector<10x16xf32>
    %39 = arith.truncf %37 : vector<7x10xf32> to vector<7x10xbf16>
    %40 = arith.truncf %38 : vector<10x16xf32> to vector<10x16xbf16>
    %cst_26 = arith.constant dense<0.000000e+00> : vector<7x16xf32>
    %41 = tpu.matmul %39, %40, %cst_26 {dimension_numbers = #tpu.dot_dimension_numbers<[1], [0], [0], [1], [0, 0, 1, 1], [], []>} : vector<7x10xbf16>, vector<10x16xbf16>, vector<7x16xf32> -> vector<7x16xf32>
    %42 = vector.extract_strided_slice %14 {offsets = [0, 16], sizes = [7, 16], strides = [1, 1]} : vector<7x32xf32> to vector<7x16xf32>
    %43 = vector.extract_strided_slice %18 {offsets = [0, 16], sizes = [10, 16], strides = [1, 1]} : vector<10x32xf32> to vector<10x16xf32>
    %44 = arith.truncf %42 : vector<7x16xf32> to vector<7x16xbf16>
    %45 = arith.truncf %43 : vector<10x16xf32> to vector<10x16xbf16>
    %cst_27 = arith.constant dense<0.000000e+00> : vector<7x10xf32>
    %46 = tpu.matmul %44, %45, %cst_27 {dimension_numbers = #tpu.dot_dimension_numbers<[1], [1], [0], [0], [0, 0, 1, 0], [], []>} : vector<7x16xbf16>, vector<10x16xbf16>, vector<7x10xf32> -> vector<7x10xf32>
    %cst_28 = arith.constant dense<0xFF800000> : vector<7xf32>
    %47 = vector.multi_reduction <maximumf>, %46, %cst_28 [1] : vector<7x10xf32> to vector<7xf32>
    %48 = vector.shape_cast %47 : vector<7xf32> to vector<7x1xf32>
    %49 = vector.broadcast %48 : vector<7x1xf32> to vector<7x10xf32>
    %50 = arith.subf %46, %49 : vector<7x10xf32>
    %51 = math.exp %50 : vector<7x10xf32>
    %cst_29 = arith.constant dense<0.000000e+00> : vector<7xf32>
    %52 = vector.multi_reduction <add>, %51, %cst_29 [1] : vector<7x10xf32> to vector<7xf32>
    %53 = vector.shape_cast %52 : vector<7xf32> to vector<7x1xf32>
    %54 = tpu.reciprocal %53 {approx = true} : vector<7x1xf32> -> vector<7x1xf32>
    %55 = vector.broadcast %54 : vector<7x1xf32> to vector<7x10xf32>
    %56 = arith.mulf %51, %55 : vector<7x10xf32>
    %57 = vector.extract_strided_slice %22 {offsets = [0, 16], sizes = [10, 16], strides = [1, 1]} : vector<10x32xf32> to vector<10x16xf32>
    %58 = arith.truncf %56 : vector<7x10xf32> to vector<7x10xbf16>
    %59 = arith.truncf %57 : vector<10x16xf32> to vector<10x16xbf16>
    %cst_30 = arith.constant dense<0.000000e+00> : vector<7x16xf32>
    %60 = tpu.matmul %58, %59, %cst_30 {dimension_numbers = #tpu.dot_dimension_numbers<[1], [0], [0], [1], [0, 0, 1, 1], [], []>} : vector<7x10xbf16>, vector<10x16xbf16>, vector<7x16xf32> -> vector<7x16xf32>
    %61 = tpu.concatenate %41, %60 in 1 : vector<7x16xf32>, vector<7x16xf32> -> vector<7x32xf32>
    %62 = arith.truncf %61 : vector<7x32xf32> to vector<7x32xbf16>
    %cst_31 = arith.constant dense<0.000000e+00> : vector<7x32xf32>
    %63 = tpu.matmul %62, %9, %cst_31 {dimension_numbers = #tpu.dot_dimension_numbers<[1], [0], [0], [1], [0, 0, 1, 1], [], []>} : vector<7x32xbf16>, vector<32x32xbf16>, vector<7x32xf32> -> vector<7x32xf32>
    %64 = vector.broadcast %10 : vector<1x32xf32> to vector<7x32xf32>
    %65 = arith.addf %63, %64 : vector<7x32xf32>
    %c0_32 = arith.constant 0 : index
    %c0_33 = arith.constant 0 : index
    %66 = vector.load %arg12[%c0_32, %c0_33] : memref<7x32xf32, #tpu.memory_space<vmem>>, vector<7x32xf32>
    tpu.vector_store %arg12[%c0_32, %c0_33], %65 {strides = array<i32>} : memref<7x32xf32, #tpu.memory_space<vmem>>, vector<7x32xf32>,
    return
  }
  func.func @transform_0(%arg0: i32) -> (i32, i32) {
    %c0_i32 = arith.constant 0 : i32
    %c0_i32_0 = arith.constant 0 : i32
    return %arg0, %c0_i32 : i32, i32
  }
  func.func @transform_1(%arg0: i32) -> (i32, i32) {
    %c0_i32 = arith.constant 0 : i32
    %c0_i32_0 = arith.constant 0 : i32
    %c0_i32_1 = arith.constant 0 : i32
    return %c0_i32, %c0_i32_0 : i32, i32
  }
  func.func @transform_2(%arg0: i32) -> (i32, i32) {
    %c0_i32 = arith.constant 0 : i32
    %c0_i32_0 = arith.constant 0 : i32
    %c0_i32_1 = arith.constant 0 : i32
    return %c0_i32, %c0_i32_0 : i32, i32
  }
  func.func @transform_3(%arg0: i32) -> (i32, i32) {
    %c0_i32 = arith.constant 0 : i32
    %c0_i32_0 = arith.constant 0 : i32
    %c0_i32_1 = arith.constant 0 : i32
    return %c0_i32, %c0_i32_0 : i32, i32
  }
  func.func @transform_4(%arg0: i32) -> (i32, i32) {
    %c0_i32 = arith.constant 0 : i32
    %c0_i32_0 = arith.constant 0 : i32
    %c0_i32_1 = arith.constant 0 : i32
    return %c0_i32, %c0_i32_0 : i32, i32
  }
  func.func @transform_5(%arg0: i32) -> (i32, i32) {
    %c0_i32 = arith.constant 0 : i32
    %c0_i32_0 = arith.constant 0 : i32
    %c0_i32_1 = arith.constant 0 : i32
    return %c0_i32, %c0_i32_0 : i32, i32
  }
  func.func @transform_6(%arg0: i32) -> (i32, i32) {
    %c0_i32 = arith.constant 0 : i32
    %c0_i32_0 = arith.constant 0 : i32
    %c0_i32_1 = arith.constant 0 : i32
    return %c0_i32, %c0_i32_0 : i32, i32
  }
  func.func @transform_7(%arg0: i32) -> (i32, i32) {
    %c0_i32 = arith.constant 0 : i32
    %c0_i32_0 = arith.constant 0 : i32
    %c0_i32_1 = arith.constant 0 : i32
    return %c0_i32, %c0_i32_0 : i32, i32
  }
  func.func @transform_8(%arg0: i32) -> (i32, i32) {
    %c0_i32 = arith.constant 0 : i32
    %c0_i32_0 = arith.constant 0 : i32
    %c0_i32_1 = arith.constant 0 : i32
    return %c0_i32, %c0_i32_0 : i32, i32
  }
  func.func @transform_9(%arg0: i32) -> (i32, i32) {
    %c0_i32 = arith.constant 0 : i32
    %c0_i32_0 = arith.constant 0 : i32
    %c0_i32_1 = arith.constant 0 : i32
    return %c0_i32, %c0_i32_0 : i32, i32
  }
  func.func @transform_10(%arg0: i32) -> (i32, i32) {
    %c0_i32 = arith.constant 0 : i32
    %c0_i32_0 = arith.constant 0 : i32
    %c0_i32_1 = arith.constant 0 : i32
    return %c0_i32, %c0_i32_0 : i32, i32
  }
  func.func @transform_11(%arg0: i32) -> (i32, i32) {
    %c0_i32 = arith.constant 0 : i32
    %c0_i32_0 = arith.constant 0 : i32
    return %arg0, %c0_i32 : i32, i32
  }
}

module attributes {stable_mosaic.version = 11 : i64} {
  func.func @_n2e_kernel(%arg0: i32, %arg1: memref<8x7x32xf32, #tpu.memory_space<vmem>>, %arg2: memref<1x32xf32, #tpu.memory_space<vmem>>, %arg3: memref<1x32xf32, #tpu.memory_space<vmem>>, %arg4: memref<32x2xbf16, #tpu.memory_space<vmem>>, %arg5: memref<1x2xf32, #tpu.memory_space<vmem>>, %arg6: memref<64x32xbf16, #tpu.memory_space<vmem>>, %arg7: memref<1x32xf32, #tpu.memory_space<vmem>>, %arg8: memref<8x32xf32, #tpu.memory_space<vmem>>) attributes {dimension_semantics = [#tpu.dimension_semantics<parallel>], iteration_bounds = array<i64: 1>, scalar_prefetch = 0 : i64, scratch_operands = 0 : i64, tpu.core_type = #tpu.core_type<tc>, window_params = [{transform_indices = @transform_0, window_bounds = array<i64: 8, 7, 32>}, {pipeline_mode = #tpu.pipeline_mode<synchronous>, transform_indices = @transform_1, window_bounds = array<i64: 1, 32>}, {pipeline_mode = #tpu.pipeline_mode<synchronous>, transform_indices = @transform_2, window_bounds = array<i64: 1, 32>}, {pipeline_mode = #tpu.pipeline_mode<synchronous>, transform_indices = @transform_3, window_bounds = array<i64: 32, 2>}, {pipeline_mode = #tpu.pipeline_mode<synchronous>, transform_indices = @transform_4, window_bounds = array<i64: 1, 2>}, {pipeline_mode = #tpu.pipeline_mode<synchronous>, transform_indices = @transform_5, window_bounds = array<i64: 64, 32>}, {pipeline_mode = #tpu.pipeline_mode<synchronous>, transform_indices = @transform_6, window_bounds = array<i64: 1, 32>}, {transform_indices = @transform_7, window_bounds = array<i64: 8, 32>}]} {
    %c0 = arith.constant 0 : index
    %c0_0 = arith.constant 0 : index
    %c0_1 = arith.constant 0 : index
    %0 = vector.load %arg1[%c0, %c0_0, %c0_1] : memref<8x7x32xf32, #tpu.memory_space<vmem>>, vector<8x7x32xf32>
    %c0_2 = arith.constant 0 : index
    %c0_3 = arith.constant 0 : index
    %1 = vector.load %arg2[%c0_2, %c0_3] : memref<1x32xf32, #tpu.memory_space<vmem>>, vector<1x32xf32>
    %2 = vector.shape_cast %1 : vector<1x32xf32> to vector<1x1x32xf32>
    %c0_4 = arith.constant 0 : index
    %c0_5 = arith.constant 0 : index
    %3 = vector.load %arg3[%c0_4, %c0_5] : memref<1x32xf32, #tpu.memory_space<vmem>>, vector<1x32xf32>
    %4 = vector.shape_cast %3 : vector<1x32xf32> to vector<1x1x32xf32>
    %cst = arith.constant dense<0.000000e+00> : vector<8x7xf32>
    %5 = vector.multi_reduction <add>, %0, %cst [2] : vector<8x7x32xf32> to vector<8x7xf32>
    %6 = vector.shape_cast %5 : vector<8x7xf32> to vector<8x7x1xf32>
    %cst_6 = arith.constant 3.200000e+01 : f32
    %7 = vector.broadcast %cst_6 : f32 to vector<8x7x1xf32>
    %8 = arith.divf %6, %7 : vector<8x7x1xf32>
    %9 = vector.broadcast %8 : vector<8x7x1xf32> to vector<8x7x32xf32>
    %10 = arith.subf %0, %9 : vector<8x7x32xf32>
    %11 = arith.mulf %10, %10 : vector<8x7x32xf32>
    %cst_7 = arith.constant dense<0.000000e+00> : vector<8x7xf32>
    %12 = vector.multi_reduction <add>, %11, %cst_7 [2] : vector<8x7x32xf32> to vector<8x7xf32>
    %13 = vector.shape_cast %12 : vector<8x7xf32> to vector<8x7x1xf32>
    %cst_8 = arith.constant 3.200000e+01 : f32
    %14 = vector.broadcast %cst_8 : f32 to vector<8x7x1xf32>
    %15 = arith.divf %13, %14 : vector<8x7x1xf32>
    %16 = vector.broadcast %8 : vector<8x7x1xf32> to vector<8x7x32xf32>
    %17 = arith.subf %0, %16 : vector<8x7x32xf32>
    %cst_9 = arith.constant 9.99999974E-6 : f32
    %18 = vector.broadcast %cst_9 : f32 to vector<8x7x1xf32>
    %19 = arith.addf %15, %18 : vector<8x7x1xf32>
    %20 = math.rsqrt %19 : vector<8x7x1xf32>
    %21 = vector.broadcast %20 : vector<8x7x1xf32> to vector<8x7x32xf32>
    %22 = arith.mulf %17, %21 : vector<8x7x32xf32>
    %23 = vector.broadcast %2 : vector<1x1x32xf32> to vector<8x7x32xf32>
    %24 = arith.mulf %22, %23 : vector<8x7x32xf32>
    %25 = vector.broadcast %4 : vector<1x1x32xf32> to vector<8x7x32xf32>
    %26 = arith.addf %24, %25 : vector<8x7x32xf32>
    %27 = vector.shape_cast %26 : vector<8x7x32xf32> to vector<56x32xf32>
    %c0_10 = arith.constant 0 : index
    %c0_11 = arith.constant 0 : index
    %28 = vector.load %arg4[%c0_10, %c0_11] : memref<32x2xbf16, #tpu.memory_space<vmem>>, vector<32x2xbf16>
    %29 = arith.truncf %27 : vector<56x32xf32> to vector<56x32xbf16>
    %cst_12 = arith.constant dense<0.000000e+00> : vector<56x2xf32>
    %30 = tpu.matmul %29, %28, %cst_12 {dimension_numbers = #tpu.dot_dimension_numbers<[1], [0], [0], [1], [0, 0, 1, 1], [], []>} : vector<56x32xbf16>, vector<32x2xbf16>, vector<56x2xf32> -> vector<56x2xf32>
    %31 = vector.shape_cast %30 : vector<56x2xf32> to vector<8x7x2xf32>
    %c0_13 = arith.constant 0 : index
    %c0_14 = arith.constant 0 : index
    %32 = vector.load %arg5[%c0_13, %c0_14] : memref<1x2xf32, #tpu.memory_space<vmem>>, vector<1x2xf32>
    %33 = vector.shape_cast %32 : vector<1x2xf32> to vector<1x1x2xf32>
    %34 = vector.broadcast %33 : vector<1x1x2xf32> to vector<8x7x2xf32>
    %35 = arith.addf %31, %34 : vector<8x7x2xf32>
    %cst_15 = arith.constant dense<0xFF800000> : vector<8x2xf32>
    %36 = vector.multi_reduction <maximumf>, %35, %cst_15 [1] : vector<8x7x2xf32> to vector<8x2xf32>
    %37 = vector.shape_cast %36 : vector<8x2xf32> to vector<8x1x2xf32>
    %38 = vector.broadcast %37 : vector<8x1x2xf32> to vector<8x7x2xf32>
    %39 = arith.subf %35, %38 : vector<8x7x2xf32>
    %40 = math.exp %39 : vector<8x7x2xf32>
    %cst_16 = arith.constant dense<0.000000e+00> : vector<8x2xf32>
    %41 = vector.multi_reduction <add>, %40, %cst_16 [1] : vector<8x7x2xf32> to vector<8x2xf32>
    %42 = vector.shape_cast %41 : vector<8x2xf32> to vector<8x1x2xf32>
    %43 = tpu.reciprocal %42 {approx = true} : vector<8x1x2xf32> -> vector<8x1x2xf32>
    %44 = vector.broadcast %43 : vector<8x1x2xf32> to vector<8x7x2xf32>
    %45 = arith.mulf %40, %44 : vector<8x7x2xf32>
    %46 = arith.truncf %45 : vector<8x7x2xf32> to vector<8x7x2xbf16>
    %47 = arith.truncf %26 : vector<8x7x32xf32> to vector<8x7x32xbf16>
    %cst_17 = arith.constant dense<0.000000e+00> : vector<8x2x32xf32>
    %48 = tpu.matmul %46, %47, %cst_17 {dimension_numbers = #tpu.dot_dimension_numbers<[1], [1], [2], [2], [0, 0, 0, 2, 1, 2], [0], [0]>} : vector<8x7x2xbf16>, vector<8x7x32xbf16>, vector<8x2x32xf32> -> vector<8x2x32xf32>
    %49 = vector.shape_cast %48 : vector<8x2x32xf32> to vector<8x64xf32>
    %c0_18 = arith.constant 0 : index
    %c0_19 = arith.constant 0 : index
    %50 = vector.load %arg6[%c0_18, %c0_19] : memref<64x32xbf16, #tpu.memory_space<vmem>>, vector<64x32xbf16>
    %51 = arith.truncf %49 : vector<8x64xf32> to vector<8x64xbf16>
    %cst_20 = arith.constant dense<0.000000e+00> : vector<8x32xf32>
    %52 = tpu.matmul %51, %50, %cst_20 {dimension_numbers = #tpu.dot_dimension_numbers<[1], [0], [0], [1], [0, 0, 1, 1], [], []>} : vector<8x64xbf16>, vector<64x32xbf16>, vector<8x32xf32> -> vector<8x32xf32>
    %c0_21 = arith.constant 0 : index
    %c0_22 = arith.constant 0 : index
    %53 = vector.load %arg7[%c0_21, %c0_22] : memref<1x32xf32, #tpu.memory_space<vmem>>, vector<1x32xf32>
    %54 = vector.broadcast %53 : vector<1x32xf32> to vector<8x32xf32>
    %55 = arith.addf %52, %54 : vector<8x32xf32>
    %c0_23 = arith.constant 0 : index
    %c0_24 = arith.constant 0 : index
    %56 = vector.load %arg8[%c0_23, %c0_24] : memref<8x32xf32, #tpu.memory_space<vmem>>, vector<8x32xf32>
    tpu.vector_store %arg8[%c0_23, %c0_24], %55 {strides = array<i32>} : memref<8x32xf32, #tpu.memory_space<vmem>>, vector<8x32xf32>,
    return
  }
  func.func @transform_0(%arg0: i32) -> (i32, i32, i32) {
    %c0_i32 = arith.constant 0 : i32
    %c0_i32_0 = arith.constant 0 : i32
    %c0_i32_1 = arith.constant 0 : i32
    return %arg0, %c0_i32, %c0_i32_0 : i32, i32, i32
  }
  func.func @transform_1(%arg0: i32) -> (i32, i32) {
    %c0_i32 = arith.constant 0 : i32
    %c0_i32_0 = arith.constant 0 : i32
    %c0_i32_1 = arith.constant 0 : i32
    return %c0_i32, %c0_i32_0 : i32, i32
  }
  func.func @transform_2(%arg0: i32) -> (i32, i32) {
    %c0_i32 = arith.constant 0 : i32
    %c0_i32_0 = arith.constant 0 : i32
    %c0_i32_1 = arith.constant 0 : i32
    return %c0_i32, %c0_i32_0 : i32, i32
  }
  func.func @transform_3(%arg0: i32) -> (i32, i32) {
    %c0_i32 = arith.constant 0 : i32
    %c0_i32_0 = arith.constant 0 : i32
    %c0_i32_1 = arith.constant 0 : i32
    return %c0_i32, %c0_i32_0 : i32, i32
  }
  func.func @transform_4(%arg0: i32) -> (i32, i32) {
    %c0_i32 = arith.constant 0 : i32
    %c0_i32_0 = arith.constant 0 : i32
    %c0_i32_1 = arith.constant 0 : i32
    return %c0_i32, %c0_i32_0 : i32, i32
  }
  func.func @transform_5(%arg0: i32) -> (i32, i32) {
    %c0_i32 = arith.constant 0 : i32
    %c0_i32_0 = arith.constant 0 : i32
    %c0_i32_1 = arith.constant 0 : i32
    return %c0_i32, %c0_i32_0 : i32, i32
  }
  func.func @transform_6(%arg0: i32) -> (i32, i32) {
    %c0_i32 = arith.constant 0 : i32
    %c0_i32_0 = arith.constant 0 : i32
    %c0_i32_1 = arith.constant 0 : i32
    return %c0_i32, %c0_i32_0 : i32, i32
  }
  func.func @transform_7(%arg0: i32) -> (i32, i32) {
    %c0_i32 = arith.constant 0 : i32
    %c0_i32_0 = arith.constant 0 : i32
    return %arg0, %c0_i32 : i32, i32
  }
}

module attributes {stable_mosaic.version = 11 : i64} {
  func.func @_hist_attn_kernel(%arg0: i32, %arg1: memref<1x7x32xf32, #tpu.memory_space<vmem>>, %arg2: memref<7x7xf32, #tpu.memory_space<vmem>>, %arg3: memref<1x32x32xbf16, #tpu.memory_space<vmem>>, %arg4: memref<1x1x32xf32, #tpu.memory_space<vmem>>, %arg5: memref<1x32x32xbf16, #tpu.memory_space<vmem>>, %arg6: memref<1x1x32xf32, #tpu.memory_space<vmem>>, %arg7: memref<1x32x32xbf16, #tpu.memory_space<vmem>>, %arg8: memref<1x1x32xf32, #tpu.memory_space<vmem>>, %arg9: memref<1x32x32xbf16, #tpu.memory_space<vmem>>, %arg10: memref<1x1x32xf32, #tpu.memory_space<vmem>>, %arg11: memref<1x7x32xf32, #tpu.memory_space<vmem>>) attributes {dimension_semantics = [#tpu.dimension_semantics<parallel>], iteration_bounds = array<i64: 3>, scalar_prefetch = 0 : i64, scratch_operands = 0 : i64, tpu.core_type = #tpu.core_type<tc>, window_params = [{transform_indices = @transform_0, window_bounds = array<i64: 1, 7, 32>}, {pipeline_mode = #tpu.pipeline_mode<synchronous>, transform_indices = @transform_1, window_bounds = array<i64: 7, 7>}, {transform_indices = @transform_2, window_bounds = array<i64: 1, 32, 32>}, {transform_indices = @transform_3, window_bounds = array<i64: 1, 1, 32>}, {transform_indices = @transform_4, window_bounds = array<i64: 1, 32, 32>}, {transform_indices = @transform_5, window_bounds = array<i64: 1, 1, 32>}, {transform_indices = @transform_6, window_bounds = array<i64: 1, 32, 32>}, {transform_indices = @transform_7, window_bounds = array<i64: 1, 1, 32>}, {transform_indices = @transform_8, window_bounds = array<i64: 1, 32, 32>}, {transform_indices = @transform_9, window_bounds = array<i64: 1, 1, 32>}, {transform_indices = @transform_10, window_bounds = array<i64: 1, 7, 32>}]} {
    %c0 = arith.constant 0 : index
    %c0_0 = arith.constant 0 : index
    %c0_1 = arith.constant 0 : index
    %0 = vector.load %arg1[%c0, %c0_0, %c0_1] : memref<1x7x32xf32, #tpu.memory_space<vmem>>, vector<1x7x32xf32>
    %1 = vector.shape_cast %0 : vector<1x7x32xf32> to vector<7x32xf32>
    %c0_2 = arith.constant 0 : index
    %c0_3 = arith.constant 0 : index
    %2 = vector.load %arg2[%c0_2, %c0_3] : memref<7x7xf32, #tpu.memory_space<vmem>>, vector<7x7xf32>
    %c0_4 = arith.constant 0 : index
    %c0_5 = arith.constant 0 : index
    %c0_6 = arith.constant 0 : index
    %3 = vector.load %arg3[%c0_4, %c0_5, %c0_6] : memref<1x32x32xbf16, #tpu.memory_space<vmem>>, vector<1x32x32xbf16>
    %4 = vector.shape_cast %3 : vector<1x32x32xbf16> to vector<32x32xbf16>
    %c0_7 = arith.constant 0 : index
    %c0_8 = arith.constant 0 : index
    %c0_9 = arith.constant 0 : index
    %5 = vector.load %arg4[%c0_7, %c0_8, %c0_9] : memref<1x1x32xf32, #tpu.memory_space<vmem>>, vector<1x1x32xf32>
    %6 = vector.shape_cast %5 : vector<1x1x32xf32> to vector<1x32xf32>
    %c0_10 = arith.constant 0 : index
    %c0_11 = arith.constant 0 : index
    %c0_12 = arith.constant 0 : index
    %7 = vector.load %arg5[%c0_10, %c0_11, %c0_12] : memref<1x32x32xbf16, #tpu.memory_space<vmem>>, vector<1x32x32xbf16>
    %8 = vector.shape_cast %7 : vector<1x32x32xbf16> to vector<32x32xbf16>
    %c0_13 = arith.constant 0 : index
    %c0_14 = arith.constant 0 : index
    %c0_15 = arith.constant 0 : index
    %9 = vector.load %arg6[%c0_13, %c0_14, %c0_15] : memref<1x1x32xf32, #tpu.memory_space<vmem>>, vector<1x1x32xf32>
    %10 = vector.shape_cast %9 : vector<1x1x32xf32> to vector<1x32xf32>
    %c0_16 = arith.constant 0 : index
    %c0_17 = arith.constant 0 : index
    %c0_18 = arith.constant 0 : index
    %11 = vector.load %arg7[%c0_16, %c0_17, %c0_18] : memref<1x32x32xbf16, #tpu.memory_space<vmem>>, vector<1x32x32xbf16>
    %12 = vector.shape_cast %11 : vector<1x32x32xbf16> to vector<32x32xbf16>
    %c0_19 = arith.constant 0 : index
    %c0_20 = arith.constant 0 : index
    %c0_21 = arith.constant 0 : index
    %13 = vector.load %arg8[%c0_19, %c0_20, %c0_21] : memref<1x1x32xf32, #tpu.memory_space<vmem>>, vector<1x1x32xf32>
    %14 = vector.shape_cast %13 : vector<1x1x32xf32> to vector<1x32xf32>
    %c0_22 = arith.constant 0 : index
    %c0_23 = arith.constant 0 : index
    %c0_24 = arith.constant 0 : index
    %15 = vector.load %arg9[%c0_22, %c0_23, %c0_24] : memref<1x32x32xbf16, #tpu.memory_space<vmem>>, vector<1x32x32xbf16>
    %16 = vector.shape_cast %15 : vector<1x32x32xbf16> to vector<32x32xbf16>
    %c0_25 = arith.constant 0 : index
    %c0_26 = arith.constant 0 : index
    %c0_27 = arith.constant 0 : index
    %17 = vector.load %arg10[%c0_25, %c0_26, %c0_27] : memref<1x1x32xf32, #tpu.memory_space<vmem>>, vector<1x1x32xf32>
    %18 = vector.shape_cast %17 : vector<1x1x32xf32> to vector<1x32xf32>
    %19 = arith.truncf %1 : vector<7x32xf32> to vector<7x32xbf16>
    %cst = arith.constant dense<0.000000e+00> : vector<7x32xf32>
    %20 = tpu.matmul %19, %4, %cst {dimension_numbers = #tpu.dot_dimension_numbers<[1], [0], [0], [1], [0, 0, 1, 1], [], []>} : vector<7x32xbf16>, vector<32x32xbf16>, vector<7x32xf32> -> vector<7x32xf32>
    %21 = vector.broadcast %6 : vector<1x32xf32> to vector<7x32xf32>
    %22 = arith.addf %20, %21 : vector<7x32xf32>
    %23 = arith.truncf %1 : vector<7x32xf32> to vector<7x32xbf16>
    %cst_28 = arith.constant dense<0.000000e+00> : vector<7x32xf32>
    %24 = tpu.matmul %23, %8, %cst_28 {dimension_numbers = #tpu.dot_dimension_numbers<[1], [0], [0], [1], [0, 0, 1, 1], [], []>} : vector<7x32xbf16>, vector<32x32xbf16>, vector<7x32xf32> -> vector<7x32xf32>
    %25 = vector.broadcast %10 : vector<1x32xf32> to vector<7x32xf32>
    %26 = arith.addf %24, %25 : vector<7x32xf32>
    %27 = arith.truncf %1 : vector<7x32xf32> to vector<7x32xbf16>
    %cst_29 = arith.constant dense<0.000000e+00> : vector<7x32xf32>
    %28 = tpu.matmul %27, %12, %cst_29 {dimension_numbers = #tpu.dot_dimension_numbers<[1], [0], [0], [1], [0, 0, 1, 1], [], []>} : vector<7x32xbf16>, vector<32x32xbf16>, vector<7x32xf32> -> vector<7x32xf32>
    %29 = vector.broadcast %14 : vector<1x32xf32> to vector<7x32xf32>
    %30 = arith.addf %28, %29 : vector<7x32xf32>
    %31 = vector.extract_strided_slice %22 {offsets = [0, 0], sizes = [7, 16], strides = [1, 1]} : vector<7x32xf32> to vector<7x16xf32>
    %32 = vector.extract_strided_slice %26 {offsets = [0, 0], sizes = [7, 16], strides = [1, 1]} : vector<7x32xf32> to vector<7x16xf32>
    %33 = arith.truncf %31 : vector<7x16xf32> to vector<7x16xbf16>
    %34 = arith.truncf %32 : vector<7x16xf32> to vector<7x16xbf16>
    %cst_30 = arith.constant dense<0.000000e+00> : vector<7x7xf32>
    %35 = tpu.matmul %33, %34, %cst_30 {dimension_numbers = #tpu.dot_dimension_numbers<[1], [1], [0], [0], [0, 0, 1, 0], [], []>} : vector<7x16xbf16>, vector<7x16xbf16>, vector<7x7xf32> -> vector<7x7xf32>
    %36 = arith.addf %35, %2 : vector<7x7xf32>
    %cst_31 = arith.constant dense<0xFF800000> : vector<7xf32>
    %37 = vector.multi_reduction <maximumf>, %36, %cst_31 [1] : vector<7x7xf32> to vector<7xf32>
    %38 = vector.shape_cast %37 : vector<7xf32> to vector<7x1xf32>
    %39 = vector.broadcast %38 : vector<7x1xf32> to vector<7x7xf32>
    %40 = arith.subf %36, %39 : vector<7x7xf32>
    %41 = math.exp %40 : vector<7x7xf32>
    %cst_32 = arith.constant dense<0.000000e+00> : vector<7xf32>
    %42 = vector.multi_reduction <add>, %41, %cst_32 [1] : vector<7x7xf32> to vector<7xf32>
    %43 = vector.shape_cast %42 : vector<7xf32> to vector<7x1xf32>
    %44 = tpu.reciprocal %43 {approx = true} : vector<7x1xf32> -> vector<7x1xf32>
    %45 = vector.broadcast %44 : vector<7x1xf32> to vector<7x7xf32>
    %46 = arith.mulf %41, %45 : vector<7x7xf32>
    %47 = vector.extract_strided_slice %30 {offsets = [0, 0], sizes = [7, 16], strides = [1, 1]} : vector<7x32xf32> to vector<7x16xf32>
    %48 = arith.truncf %46 : vector<7x7xf32> to vector<7x7xbf16>
    %49 = arith.truncf %47 : vector<7x16xf32> to vector<7x16xbf16>
    %cst_33 = arith.constant dense<0.000000e+00> : vector<7x16xf32>
    %50 = tpu.matmul %48, %49, %cst_33 {dimension_numbers = #tpu.dot_dimension_numbers<[1], [0], [0], [1], [0, 0, 1, 1], [], []>} : vector<7x7xbf16>, vector<7x16xbf16>, vector<7x16xf32> -> vector<7x16xf32>
    %51 = vector.extract_strided_slice %22 {offsets = [0, 16], sizes = [7, 16], strides = [1, 1]} : vector<7x32xf32> to vector<7x16xf32>
    %52 = vector.extract_strided_slice %26 {offsets = [0, 16], sizes = [7, 16], strides = [1, 1]} : vector<7x32xf32> to vector<7x16xf32>
    %53 = arith.truncf %51 : vector<7x16xf32> to vector<7x16xbf16>
    %54 = arith.truncf %52 : vector<7x16xf32> to vector<7x16xbf16>
    %cst_34 = arith.constant dense<0.000000e+00> : vector<7x7xf32>
    %55 = tpu.matmul %53, %54, %cst_34 {dimension_numbers = #tpu.dot_dimension_numbers<[1], [1], [0], [0], [0, 0, 1, 0], [], []>} : vector<7x16xbf16>, vector<7x16xbf16>, vector<7x7xf32> -> vector<7x7xf32>
    %56 = arith.addf %55, %2 : vector<7x7xf32>
    %cst_35 = arith.constant dense<0xFF800000> : vector<7xf32>
    %57 = vector.multi_reduction <maximumf>, %56, %cst_35 [1] : vector<7x7xf32> to vector<7xf32>
    %58 = vector.shape_cast %57 : vector<7xf32> to vector<7x1xf32>
    %59 = vector.broadcast %58 : vector<7x1xf32> to vector<7x7xf32>
    %60 = arith.subf %56, %59 : vector<7x7xf32>
    %61 = math.exp %60 : vector<7x7xf32>
    %cst_36 = arith.constant dense<0.000000e+00> : vector<7xf32>
    %62 = vector.multi_reduction <add>, %61, %cst_36 [1] : vector<7x7xf32> to vector<7xf32>
    %63 = vector.shape_cast %62 : vector<7xf32> to vector<7x1xf32>
    %64 = tpu.reciprocal %63 {approx = true} : vector<7x1xf32> -> vector<7x1xf32>
    %65 = vector.broadcast %64 : vector<7x1xf32> to vector<7x7xf32>
    %66 = arith.mulf %61, %65 : vector<7x7xf32>
    %67 = vector.extract_strided_slice %30 {offsets = [0, 16], sizes = [7, 16], strides = [1, 1]} : vector<7x32xf32> to vector<7x16xf32>
    %68 = arith.truncf %66 : vector<7x7xf32> to vector<7x7xbf16>
    %69 = arith.truncf %67 : vector<7x16xf32> to vector<7x16xbf16>
    %cst_37 = arith.constant dense<0.000000e+00> : vector<7x16xf32>
    %70 = tpu.matmul %68, %69, %cst_37 {dimension_numbers = #tpu.dot_dimension_numbers<[1], [0], [0], [1], [0, 0, 1, 1], [], []>} : vector<7x7xbf16>, vector<7x16xbf16>, vector<7x16xf32> -> vector<7x16xf32>
    %71 = tpu.concatenate %50, %70 in 1 : vector<7x16xf32>, vector<7x16xf32> -> vector<7x32xf32>
    %72 = arith.truncf %71 : vector<7x32xf32> to vector<7x32xbf16>
    %cst_38 = arith.constant dense<0.000000e+00> : vector<7x32xf32>
    %73 = tpu.matmul %72, %16, %cst_38 {dimension_numbers = #tpu.dot_dimension_numbers<[1], [0], [0], [1], [0, 0, 1, 1], [], []>} : vector<7x32xbf16>, vector<32x32xbf16>, vector<7x32xf32> -> vector<7x32xf32>
    %74 = vector.broadcast %18 : vector<1x32xf32> to vector<7x32xf32>
    %75 = arith.addf %73, %74 : vector<7x32xf32>
    %76 = arith.addf %75, %1 : vector<7x32xf32>
    %c0_39 = arith.constant 0 : index
    %c0_40 = arith.constant 0 : index
    %c0_41 = arith.constant 0 : index
    %77 = vector.load %arg11[%c0_39, %c0_40, %c0_41] : memref<1x7x32xf32, #tpu.memory_space<vmem>>, vector<1x7x32xf32>
    %78 = vector.shape_cast %77 : vector<1x7x32xf32> to vector<7x32xf32>
    %79 = vector.shape_cast %76 : vector<7x32xf32> to vector<1x7x32xf32>
    tpu.vector_store %arg11[%c0_39, %c0_40, %c0_41], %79 {strides = array<i32>} : memref<1x7x32xf32, #tpu.memory_space<vmem>>, vector<1x7x32xf32>,
    return
  }
  func.func @transform_0(%arg0: i32) -> (i32, i32, i32) {
    %c0_i32 = arith.constant 0 : i32
    %c0_i32_0 = arith.constant 0 : i32
    %c0_i32_1 = arith.constant 0 : i32
    return %arg0, %c0_i32, %c0_i32_0 : i32, i32, i32
  }
  func.func @transform_1(%arg0: i32) -> (i32, i32) {
    %c0_i32 = arith.constant 0 : i32
    %c0_i32_0 = arith.constant 0 : i32
    %c0_i32_1 = arith.constant 0 : i32
    return %c0_i32, %c0_i32_0 : i32, i32
  }
  func.func @transform_2(%arg0: i32) -> (i32, i32, i32) {
    %c0_i32 = arith.constant 0 : i32
    %c0_i32_0 = arith.constant 0 : i32
    %c0_i32_1 = arith.constant 0 : i32
    return %arg0, %c0_i32, %c0_i32_0 : i32, i32, i32
  }
  func.func @transform_3(%arg0: i32) -> (i32, i32, i32) {
    %c0_i32 = arith.constant 0 : i32
    %c0_i32_0 = arith.constant 0 : i32
    %c0_i32_1 = arith.constant 0 : i32
    return %arg0, %c0_i32, %c0_i32_0 : i32, i32, i32
  }
  func.func @transform_4(%arg0: i32) -> (i32, i32, i32) {
    %c0_i32 = arith.constant 0 : i32
    %c0_i32_0 = arith.constant 0 : i32
    %c0_i32_1 = arith.constant 0 : i32
    return %arg0, %c0_i32, %c0_i32_0 : i32, i32, i32
  }
  func.func @transform_5(%arg0: i32) -> (i32, i32, i32) {
    %c0_i32 = arith.constant 0 : i32
    %c0_i32_0 = arith.constant 0 : i32
    %c0_i32_1 = arith.constant 0 : i32
    return %arg0, %c0_i32, %c0_i32_0 : i32, i32, i32
  }
  func.func @transform_6(%arg0: i32) -> (i32, i32, i32) {
    %c0_i32 = arith.constant 0 : i32
    %c0_i32_0 = arith.constant 0 : i32
    %c0_i32_1 = arith.constant 0 : i32
    return %arg0, %c0_i32, %c0_i32_0 : i32, i32, i32
  }
  func.func @transform_7(%arg0: i32) -> (i32, i32, i32) {
    %c0_i32 = arith.constant 0 : i32
    %c0_i32_0 = arith.constant 0 : i32
    %c0_i32_1 = arith.constant 0 : i32
    return %arg0, %c0_i32, %c0_i32_0 : i32, i32, i32
  }
  func.func @transform_8(%arg0: i32) -> (i32, i32, i32) {
    %c0_i32 = arith.constant 0 : i32
    %c0_i32_0 = arith.constant 0 : i32
    %c0_i32_1 = arith.constant 0 : i32
    return %arg0, %c0_i32, %c0_i32_0 : i32, i32, i32
  }
  func.func @transform_9(%arg0: i32) -> (i32, i32, i32) {
    %c0_i32 = arith.constant 0 : i32
    %c0_i32_0 = arith.constant 0 : i32
    %c0_i32_1 = arith.constant 0 : i32
    return %arg0, %c0_i32, %c0_i32_0 : i32, i32, i32
  }
  func.func @transform_10(%arg0: i32) -> (i32, i32, i32) {
    %c0_i32 = arith.constant 0 : i32
    %c0_i32_0 = arith.constant 0 : i32
    %c0_i32_1 = arith.constant 0 : i32
    return %arg0, %c0_i32, %c0_i32_0 : i32, i32, i32
  }
}

module attributes {stable_mosaic.version = 11 : i64} {
  func.func @_gate_pred_kernel(%arg0: memref<7x32xf32, #tpu.memory_space<vmem>>, %arg1: memref<7x32xf32, #tpu.memory_space<vmem>>, %arg2: memref<7x32xf32, #tpu.memory_space<vmem>>, %arg3: memref<32x3xf32, #tpu.memory_space<vmem>>, %arg4: memref<32x3xf32, #tpu.memory_space<vmem>>, %arg5: memref<32x3xf32, #tpu.memory_space<vmem>>, %arg6: memref<1x3xf32, #tpu.memory_space<vmem>>, %arg7: memref<24x32xbf16, #tpu.memory_space<vmem>>, %arg8: memref<1x24xf32, #tpu.memory_space<vmem>>, %arg9: memref<1x24xf32, #tpu.memory_space<vmem>>, %arg10: memref<1x24xf32, #tpu.memory_space<vmem>>, %arg11: memref<7x24xf32, #tpu.memory_space<vmem>>, %arg12: memref<7x24xf32, #tpu.memory_space<vmem>>) attributes {dimension_semantics = [], scalar_prefetch = 0 : i64, scratch_operands = 0 : i64, tpu.core_type = #tpu.core_type<tc>} {
    %c0 = arith.constant 0 : index
    %c0_0 = arith.constant 0 : index
    %0 = vector.load %arg0[%c0, %c0_0] : memref<7x32xf32, #tpu.memory_space<vmem>>, vector<7x32xf32>
    %c0_1 = arith.constant 0 : index
    %c0_2 = arith.constant 0 : index
    %1 = vector.load %arg1[%c0_1, %c0_2] : memref<7x32xf32, #tpu.memory_space<vmem>>, vector<7x32xf32>
    %c0_3 = arith.constant 0 : index
    %c0_4 = arith.constant 0 : index
    %2 = vector.load %arg2[%c0_3, %c0_4] : memref<7x32xf32, #tpu.memory_space<vmem>>, vector<7x32xf32>
    %c0_5 = arith.constant 0 : index
    %c0_6 = arith.constant 0 : index
    %3 = vector.load %arg3[%c0_5, %c0_6] : memref<32x3xf32, #tpu.memory_space<vmem>>, vector<32x3xf32>
    %4 = arith.truncf %0 : vector<7x32xf32> to vector<7x32xbf16>
    %5 = arith.truncf %3 : vector<32x3xf32> to vector<32x3xbf16>
    %cst = arith.constant dense<0.000000e+00> : vector<7x3xf32>
    %6 = tpu.matmul %4, %5, %cst {dimension_numbers = #tpu.dot_dimension_numbers<[1], [0], [0], [1], [0, 0, 1, 1], [], []>} : vector<7x32xbf16>, vector<32x3xbf16>, vector<7x3xf32> -> vector<7x3xf32>
    %c0_7 = arith.constant 0 : index
    %c0_8 = arith.constant 0 : index
    %7 = vector.load %arg4[%c0_7, %c0_8] : memref<32x3xf32, #tpu.memory_space<vmem>>, vector<32x3xf32>
    %8 = arith.truncf %1 : vector<7x32xf32> to vector<7x32xbf16>
    %9 = arith.truncf %7 : vector<32x3xf32> to vector<32x3xbf16>
    %cst_9 = arith.constant dense<0.000000e+00> : vector<7x3xf32>
    %10 = tpu.matmul %8, %9, %cst_9 {dimension_numbers = #tpu.dot_dimension_numbers<[1], [0], [0], [1], [0, 0, 1, 1], [], []>} : vector<7x32xbf16>, vector<32x3xbf16>, vector<7x3xf32> -> vector<7x3xf32>
    %11 = arith.addf %6, %10 : vector<7x3xf32>
    %c0_10 = arith.constant 0 : index
    %c0_11 = arith.constant 0 : index
    %12 = vector.load %arg5[%c0_10, %c0_11] : memref<32x3xf32, #tpu.memory_space<vmem>>, vector<32x3xf32>
    %13 = arith.truncf %2 : vector<7x32xf32> to vector<7x32xbf16>
    %14 = arith.truncf %12 : vector<32x3xf32> to vector<32x3xbf16>
    %cst_12 = arith.constant dense<0.000000e+00> : vector<7x3xf32>
    %15 = tpu.matmul %13, %14, %cst_12 {dimension_numbers = #tpu.dot_dimension_numbers<[1], [0], [0], [1], [0, 0, 1, 1], [], []>} : vector<7x32xbf16>, vector<32x3xbf16>, vector<7x3xf32> -> vector<7x3xf32>
    %16 = arith.addf %11, %15 : vector<7x3xf32>
    %c0_13 = arith.constant 0 : index
    %c0_14 = arith.constant 0 : index
    %17 = vector.load %arg6[%c0_13, %c0_14] : memref<1x3xf32, #tpu.memory_space<vmem>>, vector<1x3xf32>
    %18 = vector.broadcast %17 : vector<1x3xf32> to vector<7x3xf32>
    %19 = arith.addf %16, %18 : vector<7x3xf32>
    %cst_15 = arith.constant dense<0xFF800000> : vector<7xf32>
    %20 = vector.multi_reduction <maximumf>, %19, %cst_15 [1] : vector<7x3xf32> to vector<7xf32>
    %21 = vector.shape_cast %20 : vector<7xf32> to vector<7x1xf32>
    %22 = vector.broadcast %21 : vector<7x1xf32> to vector<7x3xf32>
    %23 = arith.subf %19, %22 : vector<7x3xf32>
    %24 = math.exp %23 : vector<7x3xf32>
    %cst_16 = arith.constant dense<0.000000e+00> : vector<7xf32>
    %25 = vector.multi_reduction <add>, %24, %cst_16 [1] : vector<7x3xf32> to vector<7xf32>
    %26 = vector.shape_cast %25 : vector<7xf32> to vector<7x1xf32>
    %27 = vector.broadcast %26 : vector<7x1xf32> to vector<7x3xf32>
    %28 = arith.divf %24, %27 : vector<7x3xf32>
    %29 = vector.extract_strided_slice %28 {offsets = [0, 0], sizes = [7, 1], strides = [1, 1]} : vector<7x3xf32> to vector<7x1xf32>
    %30 = vector.broadcast %29 : vector<7x1xf32> to vector<7x32xf32>
    %31 = arith.mulf %0, %30 : vector<7x32xf32>
    %32 = vector.extract_strided_slice %28 {offsets = [0, 1], sizes = [7, 1], strides = [1, 1]} : vector<7x3xf32> to vector<7x1xf32>
    %33 = vector.broadcast %32 : vector<7x1xf32> to vector<7x32xf32>
    %34 = arith.mulf %1, %33 : vector<7x32xf32>
    %35 = arith.addf %31, %34 : vector<7x32xf32>
    %36 = vector.extract_strided_slice %28 {offsets = [0, 2], sizes = [7, 1], strides = [1, 1]} : vector<7x3xf32> to vector<7x1xf32>
    %37 = vector.broadcast %36 : vector<7x1xf32> to vector<7x32xf32>
    %38 = arith.mulf %2, %37 : vector<7x32xf32>
    %39 = arith.addf %35, %38 : vector<7x32xf32>
    %c0_17 = arith.constant 0 : index
    %c0_18 = arith.constant 0 : index
    %40 = vector.load %arg7[%c0_17, %c0_18] : memref<24x32xbf16, #tpu.memory_space<vmem>>, vector<24x32xbf16>
    %41 = arith.truncf %39 : vector<7x32xf32> to vector<7x32xbf16>
    %cst_19 = arith.constant dense<0.000000e+00> : vector<7x24xf32>
    %42 = tpu.matmul %41, %40, %cst_19 {dimension_numbers = #tpu.dot_dimension_numbers<[1], [1], [0], [0], [0, 0, 1, 0], [], []>} : vector<7x32xbf16>, vector<24x32xbf16>, vector<7x24xf32> -> vector<7x24xf32>
    %c0_20 = arith.constant 0 : index
    %c0_21 = arith.constant 0 : index
    %43 = vector.load %arg8[%c0_20, %c0_21] : memref<1x24xf32, #tpu.memory_space<vmem>>, vector<1x24xf32>
    %44 = vector.broadcast %43 : vector<1x24xf32> to vector<7x24xf32>
    %45 = arith.addf %42, %44 : vector<7x24xf32>
    %c0_22 = arith.constant 0 : index
    %c0_23 = arith.constant 0 : index
    %46 = vector.load %arg9[%c0_22, %c0_23] : memref<1x24xf32, #tpu.memory_space<vmem>>, vector<1x24xf32>
    %c0_24 = arith.constant 0 : index
    %c0_25 = arith.constant 0 : index
    %47 = vector.load %arg10[%c0_24, %c0_25] : memref<1x24xf32, #tpu.memory_space<vmem>>, vector<1x24xf32>
    %cst_26 = arith.constant dense<0.000000e+00> : vector<7xf32>
    %48 = vector.multi_reduction <add>, %45, %cst_26 [1] : vector<7x24xf32> to vector<7xf32>
    %49 = vector.shape_cast %48 : vector<7xf32> to vector<7x1xf32>
    %cst_27 = arith.constant 2.400000e+01 : f32
    %50 = vector.broadcast %cst_27 : f32 to vector<7x1xf32>
    %51 = arith.divf %49, %50 : vector<7x1xf32>
    %52 = vector.broadcast %51 : vector<7x1xf32> to vector<7x24xf32>
    %53 = arith.subf %45, %52 : vector<7x24xf32>
    %54 = arith.mulf %53, %53 : vector<7x24xf32>
    %cst_28 = arith.constant dense<0.000000e+00> : vector<7xf32>
    %55 = vector.multi_reduction <add>, %54, %cst_28 [1] : vector<7x24xf32> to vector<7xf32>
    %56 = vector.shape_cast %55 : vector<7xf32> to vector<7x1xf32>
    %cst_29 = arith.constant 2.400000e+01 : f32
    %57 = vector.broadcast %cst_29 : f32 to vector<7x1xf32>
    %58 = arith.divf %56, %57 : vector<7x1xf32>
    %59 = vector.broadcast %51 : vector<7x1xf32> to vector<7x24xf32>
    %60 = arith.subf %45, %59 : vector<7x24xf32>
    %cst_30 = arith.constant 9.99999974E-6 : f32
    %61 = vector.broadcast %cst_30 : f32 to vector<7x1xf32>
    %62 = arith.addf %58, %61 : vector<7x1xf32>
    %63 = math.rsqrt %62 : vector<7x1xf32>
    %64 = vector.broadcast %63 : vector<7x1xf32> to vector<7x24xf32>
    %65 = arith.mulf %60, %64 : vector<7x24xf32>
    %66 = vector.broadcast %46 : vector<1x24xf32> to vector<7x24xf32>
    %67 = arith.mulf %65, %66 : vector<7x24xf32>
    %68 = vector.broadcast %47 : vector<1x24xf32> to vector<7x24xf32>
    %69 = arith.addf %67, %68 : vector<7x24xf32>
    %c0_31 = arith.constant 0 : index
    %c0_32 = arith.constant 0 : index
    %70 = vector.load %arg11[%c0_31, %c0_32] : memref<7x24xf32, #tpu.memory_space<vmem>>, vector<7x24xf32>
    tpu.vector_store %arg11[%c0_31, %c0_32], %69 {strides = array<i32>} : memref<7x24xf32, #tpu.memory_space<vmem>>, vector<7x24xf32>,
    %71 = arith.negf %69 : vector<7x24xf32>
    %72 = math.exp %71 : vector<7x24xf32>
    %cst_33 = arith.constant 1.000000e+00 : f32
    %73 = vector.broadcast %cst_33 : f32 to vector<7x24xf32>
    %74 = arith.addf %73, %72 : vector<7x24xf32>
    %75 = arith.divf %73, %74 : vector<7x24xf32>
    %c0_34 = arith.constant 0 : index
    %c0_35 = arith.constant 0 : index
    %76 = vector.load %arg12[%c0_34, %c0_35] : memref<7x24xf32, #tpu.memory_space<vmem>>, vector<7x24xf32>
    tpu.vector_store %arg12[%c0_34, %c0_35], %75 {strides = array<i32>} : memref<7x24xf32, #tpu.memory_space<vmem>>, vector<7x24xf32>,
    return
  }
}

module attributes {stable_mosaic.version = 11 : i64} {
  func.func @_ddi_kernel(%arg0: i32, %arg1: i32, %arg2: memref<7x128xf32, #tpu.memory_space<vmem>>, %arg3: memref<128x128xbf16, #tpu.memory_space<vmem>>, %arg4: memref<7x128xf32, #tpu.memory_space<vmem>>, %arg5: memref<1x8x128xf32, #tpu.memory_space<vmem>>) attributes {dimension_semantics = [#tpu.dimension_semantics<parallel>, #tpu.dimension_semantics<arbitrary>], iteration_bounds = array<i64: 1, 1>, scalar_prefetch = 0 : i64, scratch_operands = 0 : i64, tpu.core_type = #tpu.core_type<tc>, window_params = [{transform_indices = @transform_0, window_bounds = array<i64: 7, 128>}, {transform_indices = @transform_1, window_bounds = array<i64: 128, 128>}, {transform_indices = @transform_2, window_bounds = array<i64: 7, 128>}, {transform_indices = @transform_3, window_bounds = array<i64: 1, 8, 128>}]} {
    %c0_i32 = arith.constant 0 : i32
    %0 = arith.cmpi eq, %arg1, %c0_i32 : i32
    %1 = arith.extui %0 : i1 to i32
    %c0_i32_0 = arith.constant 0 : i32
    %2 = arith.cmpi ne, %1, %c0_i32_0 : i32
    scf.if %2 {
      %cst_13 = arith.constant 0.000000e+00 : f32
      %17 = vector.broadcast %cst_13 : f32 to vector<1x8x128xf32>
      %c0_14 = arith.constant 0 : index
      %c0_15 = arith.constant 0 : index
      %c0_16 = arith.constant 0 : index
      %18 = vector.load %arg5[%c0_14, %c0_15, %c0_16] : memref<1x8x128xf32, #tpu.memory_space<vmem>>, vector<1x8x128xf32>
      tpu.vector_store %arg5[%c0_14, %c0_15, %c0_16], %17 {strides = array<i32>} : memref<1x8x128xf32, #tpu.memory_space<vmem>>, vector<1x8x128xf32>,
    } else {
    }
    %c0 = arith.constant 0 : index
    %c0_1 = arith.constant 0 : index
    %3 = vector.load %arg2[%c0, %c0_1] : memref<7x128xf32, #tpu.memory_space<vmem>>, vector<7x128xf32>
    %4 = arith.truncf %3 : vector<7x128xf32> to vector<7x128xbf16>
    %c0_2 = arith.constant 0 : index
    %c0_3 = arith.constant 0 : index
    %5 = vector.load %arg3[%c0_2, %c0_3] : memref<128x128xbf16, #tpu.memory_space<vmem>>, vector<128x128xbf16>
    %cst = arith.constant dense<0.000000e+00> : vector<7x128xf32>
    %6 = tpu.matmul %4, %5, %cst {dimension_numbers = #tpu.dot_dimension_numbers<[1], [0], [0], [1], [0, 0, 1, 1], [], []>} : vector<7x128xbf16>, vector<128x128xbf16>, vector<7x128xf32> -> vector<7x128xf32>
    %c0_4 = arith.constant 0 : index
    %c0_5 = arith.constant 0 : index
    %c0_6 = arith.constant 0 : index
    %7 = vector.load %arg5[%c0_4, %c0_5, %c0_6] : memref<1x8x128xf32, #tpu.memory_space<vmem>>, vector<1x8x128xf32>
    %c0_7 = arith.constant 0 : index
    %c0_8 = arith.constant 0 : index
    %8 = vector.load %arg4[%c0_7, %c0_8] : memref<7x128xf32, #tpu.memory_space<vmem>>, vector<7x128xf32>
    %9 = arith.mulf %6, %8 : vector<7x128xf32>
    %10 = vector.shape_cast %9 : vector<7x128xf32> to vector<1x7x128xf32>
    %cst_9 = arith.constant dense<0.000000e+00> : vector<1xf32>
    %11 = vector.multi_reduction <add>, %10, %cst_9 [1, 2] : vector<1x7x128xf32> to vector<1xf32>
    %12 = vector.shape_cast %11 : vector<1xf32> to vector<1x1x1xf32>
    %13 = vector.extract %12[0, 0, 0] : f32 from vector<1x1x1xf32>
    %14 = vector.broadcast %13 : f32 to vector<1x8x128xf32>
    %15 = arith.addf %7, %14 : vector<1x8x128xf32>
    %c0_10 = arith.constant 0 : index
    %c0_11 = arith.constant 0 : index
    %c0_12 = arith.constant 0 : index
    %16 = vector.load %arg5[%c0_10, %c0_11, %c0_12] : memref<1x8x128xf32, #tpu.memory_space<vmem>>, vector<1x8x128xf32>
    tpu.vector_store %arg5[%c0_10, %c0_11, %c0_12], %15 {strides = array<i32>} : memref<1x8x128xf32, #tpu.memory_space<vmem>>, vector<1x8x128xf32>,
    return
  }
  func.func @transform_0(%arg0: i32, %arg1: i32) -> (i32, i32) {
    %c0_i32 = arith.constant 0 : i32
    %c0_i32_0 = arith.constant 0 : i32
    return %c0_i32, %arg0 : i32, i32
  }
  func.func @transform_1(%arg0: i32, %arg1: i32) -> (i32, i32) {
    %c0_i32 = arith.constant 0 : i32
    return %arg0, %arg1 : i32, i32
  }
  func.func @transform_2(%arg0: i32, %arg1: i32) -> (i32, i32) {
    %c0_i32 = arith.constant 0 : i32
    %c0_i32_0 = arith.constant 0 : i32
    return %c0_i32, %arg1 : i32, i32
  }
  func.func @transform_3(%arg0: i32, %arg1: i32) -> (i32, i32, i32) {
    %c0_i32 = arith.constant 0 : i32
    %c0_i32_0 = arith.constant 0 : i32
    %c0_i32_1 = arith.constant 0 : i32
    return %arg0, %c0_i32, %c0_i32_0 : i32, i32, i32
  }
}

</mosaic_0001>

<bundles_post_ra>
// kernel: hgt_decoder_forward.13
= control target key start
LH: loop header
LB: loop body
LE: loop exit
PB: predicated region body
PF: predicated region fallthrough
CT: control target
= control target key end

     0   :  { %vm31_vm0 = vcmask 261120   ;;  %vm35_vm1 = vcmask 254976   ;;  %v169_v4 = vmov 32.0   ;;  %s256_s0 = inlined_call_operand.vmem [shape: f32[10,32], index: 0, kind: input, shape index: {}, may-alias: {0,1}]   ;;  %s257_s3 = inlined_call_operand.vmem [shape: f32[1,32], index: 3, kind: input, shape index: {}]   ;;  %s258_s4 = inlined_call_operand.vmem [shape: f32[1,32], index: 4, kind: input, shape index: {}]   ;;  %s259_s6 = inlined_call_operand.vmem [shape: f32[1,32], index: 6, kind: input, shape index: {}]   ;;  %s260_s5 = inlined_call_operand.vmem [shape: bf16[32,32], index: 5, kind: input, shape index: {}]   ;;  %s261_s1 = inlined_call_operand.vmem [shape: f32[10,32], index: 1, kind: input, shape index: {}, may-alias: {0,1}]   ;;  %s262_s2 = inlined_call_operand.vmem [shape: f32[10,32], index: 2, kind: input, shape index: {}]   ;;  %s263_s7 = inlined_call_operand.vmem [shape: f32[10,32], index: 7, kind: output, shape index: {}]  }
   0x1   :  { %v27_v0 = vld [vmem:[%s256_s0] sm:$0xff]  ;;  %v28_v2 = vld [vmem:[%s256_s0 + $0x8] sm:$0x3]  ;;  %163 = vrcp.f32 %v169_v4 }
   0x2   :  { %v32_v1 = vsel %vm31_vm0, %v27_v0, 0.0  ;;  %v36_v3 = vsel %vm35_vm1, %v28_v2, 0.0  ;;  %v158_v21 = vld [vmem:[%s260_s5 + $0x8] sm:$0xff]  ;;  %v157_v23 = vld [vmem:[%s260_s5] sm:$0xff] }
   0x3   :  { %33 = vadd.xlane.f32.xlu0 %v32_v1  ;;  %126 = vmatpush.bf16.msra.mxu0 %v158_v21  ;;  %v160_v42 = vld [vmem:[%s257_s3] ss:$0 sm:$0xff]  ;;  %v95_v58 = vld [vmem:[%s261_s1 + $0x8] sm:$0x3] }
   0x4   :  { %v161_v47 = vld [vmem:[%s258_s4] ss:$0 sm:$0xff]  ;;  %v97_v59 = vld [vmem:[%s262_s2 + $0x8] sm:$0x3] }
   0x5   :  { %v94_v52 = vld [vmem:[%s261_s1] sm:$0xff]  ;;  %v99_v61 = vadd.f32 %v97_v59, %v95_v58 }
   0x6   :  { %v96_v53 = vld [vmem:[%s262_s2] sm:$0xff] }
   0x7   :  { %v164_v5 = vpop.eup %163  ;;  %127 = vmatpush.bf16.msra.mxu0 %v157_v23  ;;  %v98_v54 = vadd.f32 %v96_v53, %v94_v52  ;;  %v162_v55 = vld [vmem:[%s259_s6] ss:$0 sm:$0xff] }
   0x8   :  { %v40_v6 = vmul.f32 32.0, %v164_v5  ;;  %vm44_vm2 = vweird.f32 %v164_v5 }
   0xa   :  { %v41_v7 = vsub.f32 1.0, %v40_v6 }
   0xb   :  { %37 = vadd.xlane.f32.xlu0 %v36_v3 }
   0xc   :  { %v42_v8 = vmul.f32 %v164_v5, %v41_v7 }
   0xe   :  { %v43_v9 = vadd.f32 %v164_v5, %v42_v8 }
  0x10   :  { %v45_v10 = vsel %vm44_vm2, %v164_v5, %v43_v9 }
  0x76   :  { %v34_v11 = vpop.xlane.xlu0 %33 }
  0x77   :  { %v46_v12 = vmul.f32 %v45_v10, %v34_v11 }
  0x79   :  { %v48_v13 = vsub.f32 %v27_v0, %v46_v12 }
  0x7b   :  { %v50_v14 = vmul.f32 %v48_v13, %v48_v13 }
  0x7d   :  { %v52_v15 = vsel %vm31_vm0, %v50_v14, 0.0 }
  0x7e   :  { %53 = vadd.xlane.f32.xlu1 %v52_v15  ;;  %v38_v16 = vpop.xlane.xlu0 %37 }
  0x7f   :  { %v47_v17 = vmul.f32 %v45_v10, %v38_v16 }
  0x81   :  { %v49_v18 = vsub.f32 %v28_v2, %v47_v17 }
  0x83   :  { %v51_v19 = vmul.f32 %v49_v18, %v49_v18 }
  0x85   :  { %v55_v20 = vsel %vm35_vm1, %v51_v19, 0.0 }
  0x86   :  { %56 = vadd.xlane.f32.xlu1 %v55_v20 }
  0xf1   :  { %v54_v22 = vpop.xlane.xlu1 %53 }
  0xf2   :  { %v58_v24 = vmul.f32 %v54_v22, %v45_v10 }
  0xf4   :  { %v60_v25 = vadd.f32 1e-05, %v58_v24 }
  0xf6   :  { %165 = vrsqrt.f32 %v60_v25  ;;  %vm68_vm4 = vweird.f32 %v60_v25 }
  0xf9   :  { %v57_v26 = vpop.xlane.xlu1 %56 }
  0xfa   :  { %v59_v27 = vmul.f32 %v57_v26, %v45_v10 }
  0xfc   :  { %v166_v28 = vpop.eup %165  ;;  %v61_v29 = vadd.f32 1e-05, %v59_v27 }
  0xfd   :  { %v63_v30 = vmul.f32 %v166_v28, %v60_v25  ;;  %vm69_vm3 = vweird.f32 %v166_v28 }
  0xfe   :  { %167 = vrsqrt.f32 %v61_v29  ;;  %vm70_vm5 = vmor %vm68_vm4, %vm69_vm3  ;;  %vm78_vm7 = vweird.f32 %v61_v29 }
  0xff   :  { %v64_v31 = vmul.f32 %v166_v28, %v63_v30 }
 0x101   :  { %v65_v32 = vmul.f32 0.5, %v64_v31 }
 0x103   :  { %v66_v33 = vsub.f32 1.5, %v65_v32 }
 0x104   :  { %v168_v34 = vpop.eup %167 }
 0x105   :  { %v67_v35 = vmul.f32 %v166_v28, %v66_v33  ;;  %v73_v36 = vmul.f32 %v168_v34, %v61_v29  ;;  %vm79_vm6 = vweird.f32 %v168_v34 }
 0x106   :  { %vm80_vm8 = vmor %vm78_vm7, %vm79_vm6 }
 0x107   :  { %v74_v37 = vmul.f32 %v168_v34, %v73_v36  ;;  %v71_v38 = vsel %vm70_vm5, %v166_v28, %v67_v35 }
 0x108   :  { %v82_v41 = vmul.f32 %v71_v38, %v48_v13 }
 0x109   :  { %v75_v39 = vmul.f32 0.5, %v74_v37 }
 0x10a   :  { %v87_v46 = vmul.f32 %v160_v42, %v82_v41 }
 0x10b   :  { %v76_v40 = vsub.f32 1.5, %v75_v39 }
 0x10c   :  { %v92_v49 = vadd.f32 %v161_v47, %v87_v46 }
 0x10d   :  { %v77_v43 = vmul.f32 %v168_v34, %v76_v40 }
 0x10f   :  { %v81_v44 = vsel %vm80_vm8, %v168_v34, %v77_v43 }
 0x110   :  { %v83_v45 = vmul.f32 %v81_v44, %v49_v18 }
 0x112   :  { %v88_v48 = vmul.f32 %v160_v42, %v83_v45 }
 0x114   :  { %v93_v50 = vadd.f32 %v161_v47, %v88_v48 }
 0x116   :  { %v104_v51 = vpack.c.bf16 %v93_v50, %v92_v49 }
 0x118   :  { %156 = vmatmul.msk.bf16.vlgmr.msra.gmra.mxu0 %vm31_vm0, %v104_v51 }
 0x195   :  { %v129_v56 = vpop.f32.mrf.mxu0 }
 0x196   :  { %v134_v57 = vadd.f32 %v129_v56, %v98_v54 }
 0x198   :  { %v140_v60 = vadd.f32 %v162_v55, %v134_v57 }
 0x19a   :  { %142 = vst.msk [vmem:[%s263_s7] sm:$0xff] %vm31_vm0, %v140_v60 }
 0x19d   :  { %v131_v62 = vpop.f32.mrf.mxu0 }
 0x19e   :  { %v135_v63 = vadd.f32 %v131_v62, %v99_v61 }
 0x1a0   :  { %v141_v0 = vadd.f32 %v162_v55, %v135_v63 }
 0x1a2   :  { %143 = vst.msk [vmem:[%s263_s7 + $0x8] sm:$0x3] %vm35_vm1, %v141_v0 }

// kernel: hgt_decoder_forward.12
= control target key start
LH: loop header
LB: loop body
LE: loop exit
PB: predicated region body
PF: predicated region fallthrough
CT: control target
= control target key end

     0   :  { %vm30_vm0 = vcmask 260096   ;;  %v135_v2 = vmov 32.0   ;;  %vm88_vm5 = vcmask 261120   ;;  %s206_s0 = inlined_call_operand.vmem [shape: f32[7,32], index: 0, kind: input, shape index: {}, may-alias: {0,1}]   ;;  %s207_s3 = inlined_call_operand.vmem [shape: f32[1,32], index: 3, kind: input, shape index: {}]   ;;  %s208_s4 = inlined_call_operand.vmem [shape: f32[1,32], index: 4, kind: input, shape index: {}]   ;;  %s209_s6 = inlined_call_operand.vmem [shape: f32[1,32], index: 6, kind: input, shape index: {}]   ;;  %s210_s5 = inlined_call_operand.vmem [shape: bf16[32,32], index: 5, kind: input, shape index: {}]   ;;  %s211_s1 = inlined_call_operand.vmem [shape: f32[7,32], index: 1, kind: input, shape index: {}, may-alias: {0,1}]   ;;  %s212_s2 = inlined_call_operand.vmem [shape: f32[7,32], index: 2, kind: input, shape index: {}]   ;;  %s213_s7 = inlined_call_operand.vmem [shape: f32[7,32], index: 7, kind: output, shape index: {}]  }
   0x1   :  { %v27_v0 = vld [vmem:[%s206_s0] sm:$0x7f]  ;;  %131 = vrcp.f32 %v135_v2  ;;  %v126_v14 = vld [vmem:[%s210_s5 + $0x8] sm:$0xff] }
   0x2   :  { %v31_v1 = vsel %vm30_vm0, %v27_v0, 0.0  ;;  %98 = vmatpush.bf16.msra.mxu0 %v126_v14  ;;  %v125_v15 = vld [vmem:[%s210_s5] sm:$0xff] }
   0x3   :  { %32 = vadd.xlane.f32.xlu0 %v31_v1  ;;  %v128_v25 = vld [vmem:[%s207_s3] ss:$0 sm:$0xff] }
   0x4   :  { %v129_v28 = vld [vmem:[%s208_s4] ss:$0 sm:$0xff] }
   0x5   :  { %v68_v32 = vld [vmem:[%s211_s1] sm:$0x7f] }
   0x6   :  { %99 = vmatpush.bf16.msra.mxu0 %v125_v15  ;;  %v69_v33 = vld [vmem:[%s212_s2] sm:$0x7f] }
   0x7   :  { %v132_v3 = vpop.eup %131  ;;  %v70_v34 = vadd.f32 %v69_v33, %v68_v32  ;;  %v130_v35 = vld [vmem:[%s209_s6] ss:$0 sm:$0xff] }
   0x8   :  { %v35_v4 = vmul.f32 32.0, %v132_v3  ;;  %vm39_vm1 = vweird.f32 %v132_v3 }
   0xa   :  { %v36_v5 = vsub.f32 1.0, %v35_v4 }
   0xc   :  { %v37_v6 = vmul.f32 %v132_v3, %v36_v5 }
   0xe   :  { %v38_v7 = vadd.f32 %v132_v3, %v37_v6 }
  0x10   :  { %v40_v8 = vsel %vm39_vm1, %v132_v3, %v38_v7 }
  0x76   :  { %v33_v9 = vpop.xlane.xlu0 %32 }
  0x77   :  { %v41_v10 = vmul.f32 %v40_v8, %v33_v9 }
  0x79   :  { %v42_v11 = vsub.f32 %v27_v0, %v41_v10 }
  0x7b   :  { %v43_v12 = vmul.f32 %v42_v11, %v42_v11 }
  0x7d   :  { %v44_v13 = vsel %vm30_vm0, %v43_v12, 0.0 }
  0x7e   :  { %45 = vadd.xlane.f32.xlu0 %v44_v13 }
  0xf1   :  { %v46_v16 = vpop.xlane.xlu0 %45 }
  0xf2   :  { %v47_v17 = vmul.f32 %v46_v16, %v40_v8 }
  0xf4   :  { %v48_v18 = vadd.f32 1e-05, %v47_v17 }
  0xf6   :  { %133 = vrsqrt.f32 %v48_v18  ;;  %vm55_vm3 = vweird.f32 %v48_v18 }
  0xfc   :  { %v134_v19 = vpop.eup %133 }
  0xfd   :  { %v50_v20 = vmul.f32 %v134_v19, %v48_v18  ;;  %vm56_vm2 = vweird.f32 %v134_v19 }
  0xfe   :  { %vm57_vm4 = vmor %vm55_vm3, %vm56_vm2 }
  0xff   :  { %v51_v21 = vmul.f32 %v134_v19, %v50_v20 }
 0x101   :  { %v52_v22 = vmul.f32 0.5, %v51_v21 }
 0x103   :  { %v53_v23 = vsub.f32 1.5, %v52_v22 }
 0x105   :  { %v54_v24 = vmul.f32 %v134_v19, %v53_v23 }
 0x107   :  { %v58_v26 = vsel %vm57_vm4, %v134_v19, %v54_v24 }
 0x108   :  { %v59_v27 = vmul.f32 %v58_v26, %v42_v11 }
 0x10a   :  { %v63_v29 = vmul.f32 %v128_v25, %v59_v27 }
 0x10c   :  { %v67_v30 = vadd.f32 %v129_v28, %v63_v29 }
 0x10e   :  { %v75_v31 = vpack.c.bf16 %v67_v30, %v67_v30 }
 0x110   :  { %124 = vmatmul.msk.bf16.vlgmr.msra.gmra.mxu0 %vm88_vm5, %v75_v31 }
 0x18d   :  { %v101_v36 = vpop.f32.mrf.mxu0 }
 0x18e   :  { %v105_v37 = vadd.f32 %v101_v36, %v70_v34 }
 0x190   :  { %v110_v38 = vadd.f32 %v130_v35, %v105_v37 }
 0x192   :  { %111 = vst.msk [vmem:[%s213_s7] sm:$0x7f] %vm30_vm0, %v110_v38 }
 0x195   :  { %v103_v39 = vpop.f32.mrf.mxu0 }

// kernel: hgt_decoder_forward.10
= control target key start
LH: loop header
LB: loop body
LE: loop exit
PB: predicated region body
PF: predicated region fallthrough
CT: control target
= control target key end

     0   :  { %vm37_vm0 = vcmask 258048   ;;  %v1825_v14 = vmov 32.0   ;;  %vm1280_vm9 = vcmask 1041408   ;;  %vm1281_vm13 = vcmask 1042432   ;;  %s2588_s0 = inlined_call_operand.vmem [shape: f32[8,5,32], index: 0, kind: input, shape index: {}]   ;;  %s2589_s1 = inlined_call_operand.vmem [shape: f32[1,32], index: 1, kind: input, shape index: {}]   ;;  %s2590_s2 = inlined_call_operand.vmem [shape: f32[1,32], index: 2, kind: input, shape index: {}]   ;;  %s2591_s3 = inlined_call_operand.vmem [shape: bf16[32,2], index: 3, kind: input, shape index: {}]   ;;  %s2592_s4 = inlined_call_operand.vmem [shape: f32[1,2], index: 4, kind: input, shape index: {}]   ;;  %s2593_s5 = inlined_call_operand.vmem [shape: bf16[64,32], index: 5, kind: input, shape index: {}]   ;;  %s2594_s6 = inlined_call_operand.vmem [shape: f32[1,32], index: 6, kind: input, shape index: {}]   ;;  %s2595_s7 = inlined_call_operand.vmem [shape: f32[8,32], index: 7, kind: output, shape index: {}]  }
   0x1   :  { %v29_v0 = vld [vmem:[%s2588_s0 + $0x10] sm:$0x1f]  ;;  %v27_v1 = vld [vmem:[%s2588_s0] sm:$0x1f]  ;;  %v28_v6 = vld [vmem:[%s2588_s0 + $0x8] sm:$0x1f]  ;;  %1711 = vrcp.f32 %v1825_v14 }
   0x2   :  { %v31_v2 = vld [vmem:[%s2588_s0 + $0x20] sm:$0x1f]  ;;  %v44_v3 = vsel %vm37_vm0, %v29_v0, 0.0  ;;  %v38_v4 = vsel %vm37_vm0, %v27_v1, 0.0  ;;  %v30_v7 = vld [vmem:[%s2588_s0 + $0x18] sm:$0x1f] }
   0x3   :  { %v50_v5 = vsel %vm37_vm0, %v31_v2, 0.0  ;;  %45 = vadd.xlane.f32.xlu1 %v44_v3  ;;  %39 = vadd.xlane.f32.xlu0 %v38_v4  ;;  %v32_v8 = vld [vmem:[%s2588_s0 + $0x28] sm:$0x1f]  ;;  %v41_v9 = vsel %vm37_vm0, %v28_v6, 0.0  ;;  %v47_v10 = vsel %vm37_vm0, %v30_v7, 0.0 }
   0x4   :  { %51 = vadd.xlane.f32.xlu2 %v50_v5  ;;  %v53_v11 = vsel %vm37_vm0, %v32_v8, 0.0  ;;  %v33_v12 = vld [vmem:[%s2588_s0 + $0x30] sm:$0x1f]  ;;  %v34_v41 = vld [vmem:[%s2588_s0 + $0x38] sm:$0x1f] }
   0x5   :  { %v56_v13 = vsel %vm37_vm0, %v33_v12, 0.0  ;;  %v59_v45 = vsel %vm37_vm0, %v34_v41, 0.0 }
   0x7   :  { %v1712_v15 = vpop.eup %1711 }
   0x8   :  { %v63_v16 = vmul.f32 32.0, %v1712_v15  ;;  %vm67_vm1 = vweird.f32 %v1712_v15 }
   0xa   :  { %v64_v17 = vsub.f32 1.0, %v63_v16 }
   0xb   :  { %42 = vadd.xlane.f32.xlu0 %v41_v9  ;;  %48 = vadd.xlane.f32.xlu1 %v47_v10 }
   0xc   :  { %54 = vadd.xlane.f32.xlu2 %v53_v11  ;;  %v65_v18 = vmul.f32 %v1712_v15, %v64_v17 }
   0xe   :  { %v66_v19 = vadd.f32 %v1712_v15, %v65_v18 }
  0x10   :  { %v1898_v20 = vsel %vm67_vm1, %v1712_v15, %v66_v19 }
  0x13   :  { %57 = vadd.xlane.f32.xlu0 %v56_v13 }
  0x76   :  { %v46_v21 = vpop.xlane.xlu1 %45  ;;  %v40_v22 = vpop.xlane.xlu0 %39 }
  0x77   :  { %v71_v23 = vmul.f32 %v1898_v20, %v46_v21  ;;  %v69_v24 = vmul.f32 %v1898_v20, %v40_v22  ;;  %v52_v25 = vpop.xlane.xlu2 %51 }
  0x78   :  { %v73_v26 = vmul.f32 %v1898_v20, %v52_v25 }
  0x79   :  { %v1903_v27 = vsub.f32 %v29_v0, %v71_v23  ;;  %v1905_v28 = vsub.f32 %v27_v1, %v69_v24 }
  0x7a   :  { %v1907_v29 = vsub.f32 %v31_v2, %v73_v26 }
  0x7b   :  { %v87_v30 = vmul.f32 %v1903_v27, %v1903_v27  ;;  %v85_v31 = vmul.f32 %v1905_v28, %v1905_v28 }
  0x7c   :  { %v89_v38 = vmul.f32 %v1907_v29, %v1907_v29 }
  0x7d   :  { %v99_v32 = vsel %vm37_vm0, %v87_v30, 0.0  ;;  %v93_v33 = vsel %vm37_vm0, %v85_v31, 0.0 }
  0x7e   :  { %100 = vadd.xlane.f32.xlu0 %v99_v32  ;;  %94 = vadd.xlane.f32.xlu1 %v93_v33  ;;  %v43_v34 = vpop.xlane.xlu0 %42  ;;  %v49_v35 = vpop.xlane.xlu1 %48  ;;  %v105_v44 = vsel %vm37_vm0, %v89_v38, 0.0 }
  0x7f   :  { %v70_v36 = vmul.f32 %v1898_v20, %v43_v34  ;;  %v55_v37 = vpop.xlane.xlu2 %54  ;;  %v72_v40 = vmul.f32 %v1898_v20, %v49_v35  ;;  %v1970_v35 = vld [vmem:[%s2589_s1] ss:$0 sm:$0xff] }
  0x80   :  { %v74_v39 = vmul.f32 %v1898_v20, %v55_v37 }
  0x81   :  { %v1923_v42 = vsub.f32 %v28_v6, %v70_v36  ;;  %v1931_v47 = vsub.f32 %v30_v7, %v72_v40  ;;  %v1979_v40 = vld [vmem:[%s2590_s2] ss:$0 sm:$0xff] }
  0x82   :  { %v1925_v43 = vsub.f32 %v32_v8, %v74_v39 }
  0x83   :  { %v86_v46 = vmul.f32 %v1923_v42, %v1923_v42  ;;  %v88_v51 = vmul.f32 %v1931_v47, %v1931_v47 }
  0x84   :  { %v90_v50 = vmul.f32 %v1925_v43, %v1925_v43 }
  0x85   :  { %v96_v48 = vsel %vm37_vm0, %v86_v46, 0.0  ;;  %v102_v54 = vsel %vm37_vm0, %v88_v51, 0.0 }
  0x86   :  { %106 = vadd.xlane.f32.xlu0 %v105_v44  ;;  %60 = vadd.xlane.f32.xlu1 %v59_v45  ;;  %v58_v49 = vpop.xlane.xlu0 %57  ;;  %v108_v53 = vsel %vm37_vm0, %v90_v50, 0.0 }
  0x87   :  { %97 = vadd.xlane.f32.xlu2 %v96_v48  ;;  %v75_v52 = vmul.f32 %v1898_v20, %v58_v49 }
  0x89   :  { %v1941_v55 = vsub.f32 %v33_v12, %v75_v52 }
  0x8b   :  { %v91_v56 = vmul.f32 %v1941_v55, %v1941_v55 }
  0x8d   :  { %v111_v57 = vsel %vm37_vm0, %v91_v56, 0.0 }
  0x8e   :  { %109 = vadd.xlane.f32.xlu1 %v108_v53 }
  0x8f   :  { %103 = vadd.xlane.f32.xlu2 %v102_v54 }
  0x97   :  { %112 = vadd.xlane.f32.xlu2 %v111_v57 }
  0xf1   :  { %v95_v58 = vpop.xlane.xlu1 %94  ;;  %v101_v59 = vpop.xlane.xlu0 %100 }
  0xf2   :  { %v117_v60 = vmul.f32 %v95_v58, %v1898_v20  ;;  %v119_v61 = vmul.f32 %v101_v59, %v1898_v20 }
  0xf4   :  { %v125_v62 = vadd.f32 1e-05, %v117_v60  ;;  %v127_v63 = vadd.f32 1e-05, %v119_v61 }
  0xf6   :  { %1713 = vrsqrt.f32 %v125_v62  ;;  %vm159_vm2 = vweird.f32 %v127_v63  ;;  %vm139_vm5 = vweird.f32 %v125_v62 }
  0xf7   :  { %1715 = vrsqrt.f32 %v127_v63 }
  0xf9   :  { %v61_v0 = vpop.xlane.xlu1 %60  ;;  %v107_v1 = vpop.xlane.xlu0 %106 }
  0xfa   :  { %v76_v2 = vmul.f32 %v1898_v20, %v61_v0  ;;  %v98_v3 = vpop.xlane.xlu2 %97  ;;  %v121_v4 = vmul.f32 %v107_v1, %v1898_v20 }
  0xfb   :  { %v118_v5 = vmul.f32 %v98_v3, %v1898_v20 }
  0xfc   :  { %v1714_v6 = vpop.eup %1713  ;;  %v1951_v7 = vsub.f32 %v34_v41, %v76_v2  ;;  %v129_v8 = vadd.f32 1e-05, %v121_v4 }
  0xfd   :  { %v1716_v9 = vpop.eup %1715  ;;  %v134_v10 = vmul.f32 %v1714_v6, %v125_v62  ;;  %v1953_v11 = vadd.f32 1e-05, %v118_v5  ;;  %vm140_vm4 = vweird.f32 %v1714_v6 }
  0xfe   :  { %v154_v12 = vmul.f32 %v1716_v9, %v127_v63  ;;  %1717 = vrsqrt.f32 %v129_v8  ;;  %v92_v14 = vmul.f32 %v1951_v7, %v1951_v7  ;;  %vm160_vm3 = vweird.f32 %v1716_v9  ;;  %vm141_vm7 = vmor %vm139_vm5, %vm140_vm4 }
  0xff   :  { %v135_v13 = vmul.f32 %v1714_v6, %v134_v10  ;;  %1719 = vrsqrt.f32 %v1953_v11  ;;  %vm161_vm6 = vmor %vm159_vm2, %vm160_vm3  ;;  %vm179_vm8 = vweird.f32 %v129_v8  ;;  %vm149_vm11 = vweird.f32 %v1953_v11 }
 0x100   :  { %v155_v15 = vmul.f32 %v1716_v9, %v154_v12  ;;  %v114_v17 = vsel %vm37_vm0, %v92_v14, 0.0 }
 0x101   :  { %v136_v16 = vmul.f32 0.5, %v135_v13  ;;  %v110_v18 = vpop.xlane.xlu1 %109  ;;  %115 = vadd.xlane.f32.xlu0 %v114_v17 }
 0x102   :  { %v156_v19 = vmul.f32 0.5, %v155_v15  ;;  %v122_v21 = vmul.f32 %v110_v18, %v1898_v20  ;;  %v104_v22 = vpop.xlane.xlu2 %103 }
 0x103   :  { %v137_v23 = vsub.f32 1.5, %v136_v16  ;;  %v120_v24 = vmul.f32 %v104_v22, %v1898_v20 }
 0x104   :  { %v1718_v25 = vpop.eup %1717  ;;  %v157_v26 = vsub.f32 1.5, %v156_v19  ;;  %v1961_v30 = vadd.f32 1e-05, %v122_v21 }
 0x105   :  { %v1963_v31 = vpop.eup %1719  ;;  %v138_v32 = vmul.f32 %v1714_v6, %v137_v23  ;;  %v174_v33 = vmul.f32 %v1718_v25, %v129_v8  ;;  %v1965_v34 = vadd.f32 1e-05, %v120_v24  ;;  %vm180_vm10 = vweird.f32 %v1718_v25 }
 0x106   :  { %v158_v36 = vmul.f32 %v1716_v9, %v157_v26  ;;  %v144_v37 = vmul.f32 %v1963_v31, %v1953_v11  ;;  %1721 = vrsqrt.f32 %v1961_v30  ;;  %vm150_vm12 = vweird.f32 %v1963_v31  ;;  %vm1990_vm14 = vmor %vm179_vm8, %vm180_vm10 }
 0x107   :  { %v142_v38 = vsel %vm141_vm7, %v1714_v6, %v138_v32  ;;  %v175_v39 = vmul.f32 %v1718_v25, %v174_v33  ;;  %1723 = vrsqrt.f32 %v1965_v34  ;;  %vm2002_vm15 = vmor %vm149_vm11, %vm150_vm12  ;;  %vm189_vm0 = vweird.f32 %v1961_v30 }
 0x108   :  { %v213_v41 = vmul.f32 %v142_v38, %v1905_v28  ;;  %v162_v44 = vsel %vm161_vm6, %v1716_v9, %v158_v36  ;;  %v145_v45 = vmul.f32 %v1963_v31, %v144_v37  ;;  %vm169_vm2 = vweird.f32 %v1965_v34 }
 0x109   :  { %v215_v46 = vmul.f32 %v162_v44, %v1903_v27  ;;  %v176_v48 = vmul.f32 0.5, %v175_v39  ;;  %v1826_v27 = vmov 65535   ;;  %vm359_vm8 = vcmask 261120  }
 0x10a   :  { %v224_v49 = vmul.f32 %v1970_v35, %v213_v41  ;;  %v146_v50 = vmul.f32 0.5, %v145_v45  ;;  %v1282_v56 = vsel %vm1280_vm9, 4294967295, %v1826_v27  ;;  %v113_v9 = vpop.xlane.xlu2 %112 }
 0x10b   :  { %v226_v51 = vmul.f32 %v1970_v35, %v215_v46  ;;  %v177_v52 = vsub.f32 1.5, %v176_v48  ;;  %v2007_v3 = vsel %vm1281_vm13, %v1282_v56, 0  ;;  %v1687_v46 = vld [vmem:[%s2591_s3 + $0x8] sm:$0xff]  ;;  %vm619_vm13 = vcmask 12288  }
 0x10c   :  { %v1722_v28 = vpop.eup %1721  ;;  %v235_v53 = vadd.f32 %v1979_v40, %v224_v49  ;;  %v147_v54 = vsub.f32 1.5, %v146_v50  ;;  %2606 = vst [vmem:[#allocation2_spill] sm:$0xff] %v2007_v3  ;;  %375 = vmatpush.bf16.msra.mxu0 %v1687_v46  ;;  %v1686_v50 = vld [vmem:[%s2591_s3] sm:$0xff] }
 0x10d   :  { %v1724_v57 = vpop.eup %1723  ;;  %v178_v58 = vmul.f32 %v1718_v25, %v177_v52  ;;  %v184_v60 = vmul.f32 %v1722_v28, %v1961_v30  ;;  %v1996_v0 = vadd.f32 %v1979_v40, %v226_v51  ;;  %vm190_vm1 = vweird.f32 %v1722_v28 }
 0x10e   :  { %v251_v61 = vrot.slane %v235_v53, 1  ;;  %v252_v62 = vrot.slane %v235_v53, 2  ;;  %v253_v63 = vrot.slane %v235_v53, 3  ;;  %287 = vst [vmem:[#allocation1] ss:$9 sm:$0xff] %v235_v53  ;;  %v254_v1 = vrot.slane %v235_v53, 4  ;;  %vm191_vm4 = vmor %vm189_vm0, %vm190_vm1 }
 0x10f   :  { %v148_v4 = vmul.f32 %v1963_v31, %v147_v54  ;;  %v182_v5 = vsel %vm1990_vm14, %v1718_v25, %v178_v58  ;;  %v185_v6 = vmul.f32 %v1722_v28, %v184_v60  ;;  %v164_v8 = vmul.f32 %v1724_v57, %v1965_v34 }
 0x110   :  { %289 = vst [vmem:[#allocation1 + $0x1] ss:$9 sm:$0xff] %v251_v61  ;;  %v217_v10 = vmul.f32 %v182_v5, %v1907_v29  ;;  %v1252_v11 = vpack.c.bf16 %v235_v53, %v235_v53  ;;  %v1254_v15 = vpack.c.bf16 %v1996_v0, %v1996_v0  ;;  %v123_v29 = vmul.f32 %v113_v9, %v1898_v20 }
 0x111   :  { %291 = vst [vmem:[#allocation1 + $0x2] ss:$9 sm:$0xff] %v252_v62  ;;  %v152_v12 = vsel %vm2002_vm15, %v1963_v31, %v148_v4  ;;  %v186_v13 = vmul.f32 0.5, %v185_v6  ;;  %v165_v14 = vmul.f32 %v1724_v57, %v164_v8  ;;  %vm170_vm3 = vweird.f32 %v1724_v57  ;;  %376 = vmatpush.bf16.msra.mxu0 %v1686_v50 }
 0x112   :  { %293 = vst [vmem:[#allocation1 + $0x3] ss:$9 sm:$0xff] %v253_v63  ;;  %v214_v16 = vmul.f32 %v152_v12, %v1923_v42  ;;  %v228_v17 = vmul.f32 %v1970_v35, %v217_v10  ;;  %v1285_v18 = vand.u32 %v2007_v3, %v1252_v11  ;;  %v1355_v22 = vand.u32 %v2007_v3, %v1254_v15  ;;  %vm171_vm5 = vmor %vm169_vm2, %vm170_vm3 }
 0x113   :  { %295 = vst [vmem:[#allocation1 + $0x4] ss:$9 sm:$0xff] %v254_v1  ;;  %v187_v19 = vsub.f32 1.5, %v186_v13  ;;  %v166_v21 = vmul.f32 0.5, %v165_v14  ;;  %v2035_v31 = vadd.f32 1e-05, %v123_v29 }
 0x114   :  { %v225_v23 = vmul.f32 %v1970_v35, %v214_v16  ;;  %v2027_v24 = vadd.f32 %v1979_v40, %v228_v17  ;;  %1294 = vmatpush.bf16.msra.mxu1 %v1285_v18  ;;  %1364 = vmatpush.bf16.msra.mxu3 %v1355_v22  ;;  %v261_v56 = vrot.slane %v1996_v0, 3  ;;  %v262_v60 = vrot.slane %v1996_v0, 4 }
 0x115   :  { %v188_v42 = vmul.f32 %v1722_v28, %v187_v19  ;;  %v167_v25 = vsub.f32 1.5, %v166_v21  ;;  %1725 = vrsqrt.f32 %v2035_v31  ;;  %v259_v61 = vrot.slane %v1996_v0, 1 }
 0x116   :  { %v236_v26 = vadd.f32 %v1979_v40, %v225_v23  ;;  %v1256_v36 = vpack.c.bf16 %v2027_v24, %v2027_v24  ;;  %v260_v62 = vrot.slane %v1996_v0, 2  ;;  %vm199_vm6 = vweird.f32 %v2035_v31 }
 0x117   :  { %v192_v32 = vsel %vm191_vm4, %v1722_v28, %v188_v42  ;;  %v168_v33 = vmul.f32 %v1724_v57, %v167_v25  ;;  %v268_v12 = vrot.slane %v2027_v24, 2  ;;  %v269_v13 = vrot.slane %v2027_v24, 3 }
 0x118   :  { %v255_v37 = vrot.slane %v236_v26, 1  ;;  %v256_v38 = vrot.slane %v236_v26, 2  ;;  %297 = vst [vmem:[#allocation1 + $0x5] ss:$9 sm:$0xff] %v236_v26  ;;  %v218_v30 = vmul.f32 %v192_v32, %v1925_v43  ;;  %v1253_v34 = vpack.c.bf16 %v236_v26, %v236_v26 }
 0x119   :  { %v172_v39 = vsel %vm171_vm5, %v1724_v57, %v168_v33  ;;  %v1425_v45 = vand.u32 %v2007_v3, %v1256_v36  ;;  %v257_v52 = vrot.slane %v236_v26, 3  ;;  %v258_v54 = vrot.slane %v236_v26, 4 }
 0x11a   :  { %299 = vst [vmem:[#allocation1 + $0x6] ss:$9 sm:$0xff] %v255_v37  ;;  %v216_v41 = vmul.f32 %v172_v39, %v1931_v47  ;;  %v229_v44 = vmul.f32 %v1970_v35, %v218_v30  ;;  %v1320_v43 = vand.u32 %v2007_v3, %v1253_v34  ;;  %v270_v17 = vrot.slane %v2027_v24, 4 }
 0x11b   :  { %301 = vst [vmem:[#allocation1 + $0x7] ss:$9 sm:$0xff] %v256_v38  ;;  %v1726_v51 = vpop.eup %1725  ;;  %vm1276_vm14 = vcmask 39936   ;;  %vm1546_vm15 = vcmask 1047556   ;;  %vm1628_vm0 = vcmask 523264  }
 0x11c   :  { %v227_v48 = vmul.f32 %v1970_v35, %v216_v41  ;;  %v2050_v49 = vadd.f32 %v1979_v40, %v229_v44  ;;  %1329 = vmatpush.bf16.msra.mxu2 %v1320_v43  ;;  %v194_v57 = vmul.f32 %v1726_v51, %v2035_v31  ;;  %vm200_vm7 = vweird.f32 %v1726_v51 }
 0x11d   :  { %vm201_vm9 = vmor %vm199_vm6, %vm200_vm7 }
 0x11e   :  { %v238_v47 = vadd.f32 %v1979_v40, %v227_v48  ;;  %v1257_v53 = vpack.c.bf16 %v2050_v49, %v2050_v49  ;;  %v195_v63 = vmul.f32 %v1726_v51, %v194_v57  ;;  %v271_v18 = vrot.slane %v2050_v49, 1 }
 0x11f   :  { %v272_v19 = vrot.slane %v2050_v49, 2  ;;  %v273_v22 = vrot.slane %v2050_v49, 3 }
 0x120   :  { %1434 = vmatpush.bf16.msrb.mxu2 %v1425_v45  ;;  %v1255_v28 = vpack.c.bf16 %v238_v47, %v238_v47  ;;  %v1460_v59 = vand.u32 %v2007_v3, %v1257_v53  ;;  %v196_v1 = vmul.f32 0.5, %v195_v63  ;;  %v263_v4 = vrot.slane %v238_v47, 1 }
 0x121   :  { %v264_v5 = vrot.slane %v238_v47, 2  ;;  %v265_v8 = vrot.slane %v238_v47, 3  ;;  %v266_v10 = vrot.slane %v238_v47, 4 }
 0x122   :  { %v302_v27 = vld [vmem:[#allocation1] sm:$0xff]  ;;  %v1390_v58 = vand.u32 %v2007_v3, %v1255_v28  ;;  %1469 = vmatpush.bf16.msrb.mxu3 %v1460_v59  ;;  %v197_v2 = vsub.f32 1.5, %v196_v1 }
 0x123   :  { %303 = vst [vmem:[#allocation1] ss:$9 sm:$0xff] %v257_v52 }
 0x124   :  { %304 = vst [vmem:[#allocation1 + $0x1] ss:$9 sm:$0xff] %v258_v54  ;;  %1399 = vmatpush.bf16.msrb.mxu1 %v1390_v58  ;;  %v198_v11 = vmul.f32 %v1726_v51, %v197_v2 }
 0x125   :  { %308 = vst [vmem:[#allocation1 + $0x5] ss:$9 sm:$0xff] %v261_v56 }
 0x126   :  { %309 = vst [vmem:[#allocation1 + $0x6] ss:$9 sm:$0xff] %v262_v60  ;;  %v202_v14 = vsel %vm201_vm9, %v1726_v51, %v198_v11 }
 0x127   :  { %305 = vst [vmem:[#allocation1 + $0x2] ss:$9 sm:$0xff] %v1996_v0  ;;  %v267_v0 = vrot.slane %v2027_v24, 1  ;;  %v219_v15 = vmul.f32 %v202_v14, %v1941_v55  ;;  %v274_v55 = vrot.slane %v2050_v49, 4 }
 0x128   :  { %306 = vst [vmem:[#allocation1 + $0x3] ss:$9 sm:$0xff] %v259_v61 }
 0x129   :  { %307 = vst [vmem:[#allocation1 + $0x4] ss:$9 sm:$0xff] %v260_v62  ;;  %v230_v16 = vmul.f32 %v1970_v35, %v219_v15 }
 0x12a   :  { %310 = vst [vmem:[#allocation1 + $0x7] ss:$9 sm:$0xff] %v238_v47 }
 0x12b   :  { %v2079_v21 = vadd.f32 %v1979_v40, %v230_v16 }
 0x12d   :  { %2607 = vst [vmem:[#allocation3_spill] sm:$0xff] %v2079_v21  ;;  %v275_v23 = vrot.slane %v2079_v21, 1  ;;  %v277_v42 = vrot.slane %v2079_v21, 3  ;;  %v278_v26 = vrot.slane %v2079_v21, 4 }
 0x131   :  { %v311_v6 = vld [vmem:[#allocation1] sm:$0xff] }
 0x132   :  { %312 = vst [vmem:[#allocation1] ss:$9 sm:$0xff] %v263_v4  ;;  %v344_v9 = vpack.c.bf16 %v311_v6, %v302_v27 }
 0x133   :  { %313 = vst [vmem:[#allocation1 + $0x1] ss:$9 sm:$0xff] %v264_v5 }
 0x134   :  { %314 = vst [vmem:[#allocation1 + $0x2] ss:$9 sm:$0xff] %v265_v8  ;;  %1658 = vmatmul.msk.bf16.vlgmr.msra.gmra.mxu0 %vm359_vm8, %v344_v9 }
 0x135   :  { %315 = vst [vmem:[#allocation1 + $0x3] ss:$9 sm:$0xff] %v266_v10 }
 0x136   :  { %316 = vst [vmem:[#allocation1 + $0x4] ss:$9 sm:$0xff] %v2027_v24  ;;  %v276_v24 = vrot.slane %v2079_v21, 2 }
 0x137   :  { %317 = vst [vmem:[#allocation1 + $0x5] ss:$9 sm:$0xff] %v267_v0 }
 0x138   :  { %318 = vst [vmem:[#allocation1 + $0x6] ss:$9 sm:$0xff] %v268_v12 }
 0x139   :  { %319 = vst [vmem:[#allocation1 + $0x7] ss:$9 sm:$0xff] %v269_v13 }
 0x140   :  { %v320_v29 = vld [vmem:[#allocation1] sm:$0xff] }
 0x141   :  { %321 = vst [vmem:[#allocation1] ss:$9 sm:$0xff] %v270_v17 }
 0x142   :  { %322 = vst [vmem:[#allocation1 + $0x1] ss:$9 sm:$0xff] %v2050_v49 }
 0x143   :  { %323 = vst [vmem:[#allocation1 + $0x2] ss:$9 sm:$0xff] %v271_v18 }
 0x144   :  { %324 = vst [vmem:[#allocation1 + $0x3] ss:$9 sm:$0xff] %v272_v19 }
 0x145   :  { %325 = vst [vmem:[#allocation1 + $0x4] ss:$9 sm:$0xff] %v273_v22 }
 0x146   :  { %326 = vst [vmem:[#allocation1 + $0x5] ss:$9 sm:$0xff] %v274_v55 }
 0x147   :  { %327 = vst [vmem:[#allocation1 + $0x6] ss:$9 sm:$0xff] %v2079_v21 }
 0x148   :  { %328 = vst [vmem:[#allocation1 + $0x7] ss:$9 sm:$0xff] %v275_v23 }
 0x14f   :  { %v329_v25 = vld [vmem:[#allocation1] sm:$0xff] }
 0x150   :  { %330 = vst [vmem:[#allocation1] ss:$9 sm:$0xff] %v276_v24  ;;  %v345_v31 = vpack.c.bf16 %v329_v25, %v320_v29 }
 0x151   :  { %331 = vst [vmem:[#allocation1 + $0x1] ss:$9 sm:$0xff] %v277_v42 }
 0x152   :  { %332 = vst [vmem:[#allocation1 + $0x2] ss:$9 sm:$0xff] %v278_v26  ;;  %1659 = vmatmul.msk.bf16.gmra.mxu0 %vm359_vm8, %v345_v31 }
 0x174   :  { %v116_v32 = vpop.xlane.xlu0 %115 }
 0x175   :  { %v124_v33 = vmul.f32 %v116_v32, %v1898_v20 }
 0x177   :  { %v132_v36 = vadd.f32 1e-05, %v124_v33 }
 0x179   :  { %1727 = vrsqrt.f32 %v132_v36  ;;  %vm209_vm11 = vweird.f32 %v132_v36 }
 0x17f   :  { %v1728_v37 = vpop.eup %1727 }
 0x180   :  { %v204_v38 = vmul.f32 %v1728_v37, %v132_v36  ;;  %vm210_vm10 = vweird.f32 %v1728_v37 }
 0x181   :  { %vm211_vm12 = vmor %vm209_vm11, %vm210_vm10 }
 0x182   :  { %v205_v30 = vmul.f32 %v1728_v37, %v204_v38 }
 0x184   :  { %v206_v39 = vmul.f32 0.5, %v205_v30 }
 0x186   :  { %v207_v41 = vsub.f32 1.5, %v206_v39 }
 0x188   :  { %v208_v34 = vmul.f32 %v1728_v37, %v207_v41 }
 0x18a   :  { %v212_v44 = vsel %vm211_vm12, %v1728_v37, %v208_v34 }
 0x18b   :  { %v220_v45 = vmul.f32 %v212_v44, %v1951_v7 }
 0x18d   :  { %v231_v46 = vmul.f32 %v1970_v35, %v220_v45  ;;  %v2104_v35 = vld [vmem:[%s2592_s4] ss:$0 sm:$0xff] }
 0x18e   :  { %v2110_v51 = vrot.slane %v2104_v35, 2  ;;  %v2113_v52 = vrot.slane %v2104_v35, 3  ;;  %v2116_v53 = vrot.slane %v2104_v35, 4 }
 0x18f   :  { %v2093_v48 = vadd.f32 %v1979_v40, %v231_v46  ;;  %v2107_v40 = vrot.slane %v2104_v35, 1 }
 0x191   :  { %2608 = vst [vmem:[#allocation4_spill] sm:$0xff] %v2093_v48  ;;  %v279_v20 = vrot.slane %v2093_v48, 1  ;;  %v280_v43 = vrot.slane %v2093_v48, 2  ;;  %v281_v49 = vrot.slane %v2093_v48, 3  ;;  %v282_v47 = vrot.slane %v2093_v48, 4 }
 0x192   :  { %333 = vst [vmem:[#allocation1 + $0x3] ss:$9 sm:$0xff] %v2093_v48 }
 0x193   :  { %334 = vst [vmem:[#allocation1 + $0x4] ss:$9 sm:$0xff] %v279_v20 }
 0x194   :  { %335 = vst [vmem:[#allocation1 + $0x5] ss:$9 sm:$0xff] %v280_v43 }
 0x195   :  { %336 = vst [vmem:[#allocation1 + $0x6] ss:$9 sm:$0xff] %v281_v49 }
 0x196   :  { %337 = vst [vmem:[#allocation1 + $0x7] ss:$9 sm:$0xff] %v282_v47 }
 0x19d   :  { %v338_v7 = vld [vmem:[#allocation1] sm:$0xff] }
 0x19e   :  { %v346_v50 = vpack.c.bf16 %v338_v7, %v338_v7 }
 0x1a0   :  { %1660 = vmatmul.msk.bf16.gmra.mxu0 %vm359_vm8, %v346_v50 }
 0x1b1   :  { %v378_v28 = vpop.f32.mrf.mxu0 }
 0x1b2   :  { %v397_v54 = vrot.slane %v378_v28, 1  ;;  %v398_v27 = vrot.slane %v378_v28, 2  ;;  %v399_v56 = vrot.slane %v378_v28, 3  ;;  %v400_v57 = vrot.slane %v378_v28, 4 }
 0x1b3   :  { %v2119_v58 = vadd.f32 %v2104_v35, %v378_v28  ;;  %v401_v1 = vrot.slane %v378_v28, 5  ;;  %v402_v2 = vrot.slane %v378_v28, 6  ;;  %v403_v4 = vrot.slane %v378_v28, 7 }
 0x1b4   :  { %v2122_v59 = vadd.f32 %v2107_v40, %v397_v54  ;;  %v2125_v60 = vadd.f32 %v2110_v51, %v398_v27  ;;  %v2128_v61 = vadd.f32 %v2113_v52, %v399_v56  ;;  %v2131_v62 = vadd.f32 %v2116_v53, %v400_v57 }
 0x1b5   :  { %559 = vst [vmem:[#allocation1] ss:$9 sm:$0xff] %v2119_v58  ;;  %v2139_v6 = vadd.f32 %v2104_v35, %v401_v1  ;;  %v2142_v8 = vadd.f32 %v2107_v40, %v402_v2  ;;  %v2147_v10 = vadd.f32 %v2110_v51, %v403_v4 }
 0x1b6   :  { %561 = vst [vmem:[#allocation1 + $0x1] ss:$9 sm:$0xff] %v2122_v59 }
 0x1b7   :  { %563 = vst [vmem:[#allocation1 + $0x2] ss:$9 sm:$0xff] %v2125_v60 }
 0x1b8   :  { %565 = vst [vmem:[#allocation1 + $0x3] ss:$9 sm:$0xff] %v2128_v61 }
 0x1b9   :  { %567 = vst [vmem:[#allocation1 + $0x4] ss:$9 sm:$0xff] %v2131_v62  ;;  %v380_v63 = vpop.f32.mrf.mxu0 }
 0x1ba   :  { %v404_v5 = vrot.slane %v380_v63, 1  ;;  %v2155_v0 = vadd.f32 %v2113_v52, %v380_v63  ;;  %v405_v12 = vrot.slane %v380_v63, 2  ;;  %v406_v13 = vrot.slane %v380_v63, 3 }
 0x1bb   :  { %v407_v14 = vrot.slane %v380_v63, 4  ;;  %v408_v15 = vrot.slane %v380_v63, 5  ;;  %v409_v16 = vrot.slane %v380_v63, 6  ;;  %v410_v24 = vrot.slane %v380_v63, 7 }
 0x1bc   :  { %v2151_v11 = vadd.f32 %v2116_v53, %v404_v5  ;;  %v2161_v17 = vadd.f32 %v2104_v35, %v405_v12  ;;  %v2164_v29 = vadd.f32 %v2107_v40, %v406_v13 }
 0x1bd   :  { %v2169_v19 = vadd.f32 %v2110_v51, %v407_v14  ;;  %v2173_v22 = vadd.f32 %v2113_v52, %v408_v15  ;;  %v2177_v55 = vadd.f32 %v2116_v53, %v409_v16  ;;  %v2183_v26 = vadd.f32 %v2104_v35, %v410_v24 }
 0x1c0   :  { %v2144_v9 = vld [vmem:[#allocation1] sm:$0xff] }
 0x1c1   :  { %569 = vst [vmem:[#allocation1] ss:$9 sm:$0xff] %v2139_v6  ;;  %v620_v16 = vsel %vm619_vm13, %v2144_v9, -inf }
 0x1c2   :  { %570 = vst [vmem:[#allocation1 + $0x1] ss:$9 sm:$0xff] %v2142_v8 }
 0x1c3   :  { %571 = vst [vmem:[#allocation1 + $0x2] ss:$9 sm:$0xff] %v2147_v10 }
 0x1c4   :  { %572 = vst [vmem:[#allocation1 + $0x3] ss:$9 sm:$0xff] %v2155_v0 }
 0x1c5   :  { %573 = vst [vmem:[#allocation1 + $0x4] ss:$9 sm:$0xff] %v2151_v11 }
 0x1cc   :  { %v2166_v18 = vld [vmem:[#allocation1] sm:$0xff] }
 0x1cd   :  { %575 = vst [vmem:[#allocation1] ss:$9 sm:$0xff] %v2161_v17 }
 0x1ce   :  { %576 = vst [vmem:[#allocation1 + $0x1] ss:$9 sm:$0xff] %v2164_v29 }
 0x1cf   :  { %577 = vst [vmem:[#allocation1 + $0x2] ss:$9 sm:$0xff] %v2169_v19  ;;  %v383_v23 = vpop.f32.mrf.mxu0 }
 0x1d0   :  { %578 = vst [vmem:[#allocation1 + $0x3] ss:$9 sm:$0xff] %v2173_v22  ;;  %v411_v42 = vrot.slane %v383_v23, 1  ;;  %v412_v25 = vrot.slane %v383_v23, 2  ;;  %v413_v31 = vrot.slane %v383_v23, 3  ;;  %v2188_v33 = vadd.f32 %v2107_v40, %v383_v23 }
 0x1d1   :  { %579 = vst [vmem:[#allocation1 + $0x4] ss:$9 sm:$0xff] %v2177_v55  ;;  %v414_v30 = vrot.slane %v383_v23, 4  ;;  %v415_v39 = vrot.slane %v383_v23, 5  ;;  %v416_v41 = vrot.slane %v383_v23, 6  ;;  %v417_v34 = vrot.slane %v383_v23, 7 }
 0x1d2   :  { %v2192_v36 = vadd.f32 %v2110_v51, %v411_v42  ;;  %v2195_v37 = vadd.f32 %v2113_v52, %v412_v25  ;;  %v2199_v38 = vadd.f32 %v2116_v53, %v413_v31  ;;  %v621_v23 = vrot.slane %v620_v16, 4 }
 0x1d3   :  { %v2205_v44 = vadd.f32 %v2104_v35, %v414_v30  ;;  %v2208_v45 = vadd.f32 %v2107_v40, %v415_v39  ;;  %v2213_v43 = vadd.f32 %v2110_v51, %v416_v41  ;;  %v2217_v49 = vadd.f32 %v2113_v52, %v417_v34 }
 0x1d4   :  { %v622_v24 = vmax.f32 %v620_v16, %v621_v23  ;;  %v627_v25 = vsel %vm619_vm13, %v2166_v18, -inf }
 0x1d5   :  { %v628_v30 = vrot.slane %v627_v25, 4 }
 0x1d6   :  { %v623_v42 = vrot.slane %v622_v24, 2 }
 0x1d7   :  { %v385_v20 = vpop.f32.mrf.mxu0  ;;  %v629_v41 = vmax.f32 %v627_v25, %v628_v30 }
 0x1d8   :  { %v2185_v32 = vld [vmem:[#allocation1] sm:$0xff]  ;;  %v2222_v47 = vadd.f32 %v2116_v53, %v385_v20  ;;  %v418_v7 = vrot.slane %v385_v20, 1  ;;  %v419_v50 = vrot.slane %v385_v20, 2  ;;  %v420_v28 = vrot.slane %v385_v20, 3 }
 0x1d9   :  { %581 = vst [vmem:[#allocation1] ss:$9 sm:$0xff] %v2183_v26  ;;  %v421_v54 = vrot.slane %v385_v20, 4  ;;  %v422_v27 = vrot.slane %v385_v20, 5  ;;  %v423_v5 = vrot.slane %v385_v20, 6  ;;  %v424_v12 = vrot.slane %v385_v20, 7 }
 0x1da   :  { %582 = vst [vmem:[#allocation1 + $0x1] ss:$9 sm:$0xff] %v2188_v33  ;;  %v2227_v56 = vadd.f32 %v2104_v35, %v418_v7  ;;  %v2230_v57 = vadd.f32 %v2107_v40, %v419_v50  ;;  %v2235_v1 = vadd.f32 %v2110_v51, %v420_v28  ;;  %v624_v31 = vmax.f32 %v622_v24, %v623_v42 }
 0x1db   :  { %583 = vst [vmem:[#allocation1 + $0x2] ss:$9 sm:$0xff] %v2192_v36  ;;  %v2239_v2 = vadd.f32 %v2113_v52, %v421_v54  ;;  %v2243_v4 = vadd.f32 %v2116_v53, %v422_v27  ;;  %v2249_v13 = vadd.f32 %v2104_v35, %v423_v5  ;;  %v2252_v14 = vadd.f32 %v2107_v40, %v424_v12 }
 0x1dc   :  { %584 = vst [vmem:[#allocation1 + $0x3] ss:$9 sm:$0xff] %v2195_v37  ;;  %v625_v39 = vrot.slane %v624_v31, 1  ;;  %v630_v27 = vrot.slane %v629_v41, 2  ;;  %v634_v18 = vsel %vm619_vm13, %v2185_v32, -inf }
 0x1dd   :  { %585 = vst [vmem:[#allocation1 + $0x4] ss:$9 sm:$0xff] %v2199_v38  ;;  %v635_v16 = vrot.slane %v634_v18, 4 }
 0x1de   :  { %v626_v28 = vmax.f32 %v624_v31, %v625_v39  ;;  %v631_v12 = vmax.f32 %v629_v41, %v630_v27 }
 0x1df   :  { %v636_v3 = vmax.f32 %v634_v18, %v635_v16 }
 0x1e0   :  { %v684_v5 = vrot.slane %v626_v28, 1  ;;  %v685_v42 = vrot.slane %v626_v28, 2  ;;  %v686_v31 = vrot.slane %v626_v28, 3  ;;  %v687_v39 = vrot.slane %v626_v28, 4 }
 0x1e1   :  { %v632_v32 = vrot.slane %v631_v12, 1 }
 0x1e2   :  { %v750_v41 = vsub.f32 %v2125_v60, %v685_v42 }
 0x1e4   :  { %v2210_v46 = vld [vmem:[#allocation1] sm:$0xff] }
 0x1e5   :  { %587 = vst [vmem:[#allocation1] ss:$9 sm:$0xff] %v2205_v44 }
 0x1e6   :  { %588 = vst [vmem:[#allocation1 + $0x1] ss:$9 sm:$0xff] %v2208_v45 }
 0x1e7   :  { %589 = vst [vmem:[#allocation1 + $0x2] ss:$9 sm:$0xff] %v2213_v43 }
 0x1e8   :  { %590 = vst [vmem:[#allocation1 + $0x3] ss:$9 sm:$0xff] %v2217_v49 }
 0x1e9   :  { %591 = vst [vmem:[#allocation1 + $0x4] ss:$9 sm:$0xff] %v2222_v47 }
 0x1f0   :  { %v2232_v63 = vld [vmem:[#allocation1] sm:$0xff] }
 0x1f1   :  { %593 = vst [vmem:[#allocation1] ss:$9 sm:$0xff] %v2227_v56 }
 0x1f2   :  { %594 = vst [vmem:[#allocation1 + $0x1] ss:$9 sm:$0xff] %v2230_v57 }
 0x1f3   :  { %595 = vst [vmem:[#allocation1 + $0x2] ss:$9 sm:$0xff] %v2235_v1 }
 0x1f4   :  { %596 = vst [vmem:[#allocation1 + $0x3] ss:$9 sm:$0xff] %v2239_v2 }
 0x1f5   :  { %597 = vst [vmem:[#allocation1 + $0x4] ss:$9 sm:$0xff] %v2243_v4 }
 0x1fc   :  { %v2254_v15 = vld [vmem:[#allocation1] sm:$0xff] }
 0x1fd   :  { %599 = vst [vmem:[#allocation1] ss:$9 sm:$0xff] %v2249_v13 }
 0x1fe   :  { %600 = vst [vmem:[#allocation1 + $0x1] ss:$9 sm:$0xff] %v2252_v14 }
 0x21d   :  { %v388_v34 = vpop.f32.mrf.mxu0 }
 0x21e   :  { %v425_v20 = vrot.slane %v388_v34, 1  ;;  %v426_v7 = vrot.slane %v388_v34, 2  ;;  %v2263_v50 = vadd.f32 %v2110_v51, %v388_v34  ;;  %v427_v23 = vrot.slane %v388_v34, 3 }
 0x21f   :  { %v428_v25 = vrot.slane %v388_v34, 4  ;;  %v429_v30 = vrot.slane %v388_v34, 5  ;;  %v430_v21 = vrot.slane %v388_v34, 6  ;;  %v431_v48 = vrot.slane %v388_v34, 7 }
 0x220   :  { %v2266_v54 = vadd.f32 %v2113_v52, %v425_v20  ;;  %v2269_v9 = vadd.f32 %v2116_v53, %v426_v7  ;;  %601 = vst [vmem:[#allocation1 + $0x2] ss:$9 sm:$0xff] %v2263_v50  ;;  %v748_v20 = vsub.f32 %v2119_v58, %v626_v28  ;;  %v749_v7 = vsub.f32 %v2122_v59, %v684_v5 }
 0x221   :  { %v2283_v27 = vadd.f32 %v2107_v40, %v428_v25  ;;  %v2289_v58 = vadd.f32 %v2110_v51, %v429_v30  ;;  %v752_v59 = vsub.f32 %v2131_v62, %v687_v39  ;;  %v633_v40 = vmax.f32 %v631_v12, %v632_v32 }
 0x222   :  { %2609 = vst [vmem:[#allocation5_spill] sm:$0xff] %v2266_v54  ;;  %v788_v34 = vmul.f32 1.442695, %v748_v20  ;;  %v790_v60 = vmul.f32 1.442695, %v749_v7  ;;  %v637_v28 = vrot.slane %v636_v3, 2  ;;  %v2298_v18 = vadd.f32 %v2116_v53, %v431_v48 }
 0x223   :  { %2610 = vst [vmem:[#allocation6_spill] sm:$0xff] %v2269_v9  ;;  %v792_v51 = vmul.f32 1.442695, %v750_v41  ;;  %v688_v5 = vrot.slane %v633_v40, 1  ;;  %v689_v48 = vrot.slane %v633_v40, 2  ;;  %v690_v53 = vrot.slane %v633_v40, 3 }
 0x224   :  { %602 = vst [vmem:[#allocation1 + $0x3] ss:$9 sm:$0xff] %v2266_v54  ;;  %v751_v54 = vsub.f32 %v2128_v61, %v686_v31  ;;  %v641_v61 = vsel %vm619_vm13, %v2210_v46, -inf  ;;  %1729 = vpow2.f32 %v788_v34  ;;  %v691_v16 = vrot.slane %v633_v40, 4 }
 0x225   :  { %603 = vst [vmem:[#allocation1 + $0x4] ss:$9 sm:$0xff] %v2269_v9  ;;  %v390_v24 = vpop.f32.mrf.mxu0  ;;  %v2279_v9 = vadd.f32 %v2104_v35, %v427_v23  ;;  %v2294_v35 = vadd.f32 %v2113_v52, %v430_v21  ;;  %v796_v21 = vmul.f32 1.442695, %v752_v59  ;;  %1731 = vpow2.f32 %v790_v60 }
 0x226   :  { %v794_v62 = vmul.f32 1.442695, %v751_v54  ;;  %v638_v52 = vmax.f32 %v636_v3, %v637_v28  ;;  %v642_v12 = vrot.slane %v641_v61, 4  ;;  %1733 = vpow2.f32 %v792_v51 }
 0x227   :  { %v753_v23 = vsub.f32 %v2139_v6, %v633_v40  ;;  %v754_v54 = vsub.f32 %v2142_v8, %v688_v5  ;;  %v755_v31 = vsub.f32 %v2147_v10, %v689_v48  ;;  %v756_v39 = vsub.f32 %v2155_v0, %v690_v53 }
 0x228   :  { %1735 = vpow2.f32 %v794_v62  ;;  %v639_v46 = vrot.slane %v638_v52, 1  ;;  %v643_v42 = vmax.f32 %v641_v61, %v642_v12  ;;  %v757_v6 = vsub.f32 %v2151_v11, %v691_v16 }
 0x229   :  { %1737 = vpow2.f32 %v796_v21  ;;  %v798_v7 = vmul.f32 1.442695, %v753_v23  ;;  %v800_v10 = vmul.f32 1.442695, %v754_v54  ;;  %v648_v0 = vsel %vm619_vm13, %v2232_v63, -inf }
 0x22a   :  { %v2307_v25 = vpop.eup %1729  ;;  %v640_v32 = vmax.f32 %v638_v52, %v639_v46  ;;  %v644_v41 = vrot.slane %v643_v42, 2  ;;  %v802_v34 = vmul.f32 1.442695, %v755_v31  ;;  %v804_v60 = vmul.f32 1.442695, %v756_v39 }
 0x22b   :  { %v2312_v3 = vpop.eup %1731  ;;  %v806_v11 = vmul.f32 1.442695, %v757_v6  ;;  %1739 = vpow2.f32 %v798_v7  ;;  %v649_v51 = vrot.slane %v648_v0, 4 }
 0x22c   :  { %v2285_v24 = vld [vmem:[#allocation1] sm:$0xff]  ;;  %v2316_v20 = vpop.eup %1733  ;;  %v692_v40 = vrot.slane %v640_v32, 1  ;;  %v645_v28 = vmax.f32 %v643_v42, %v644_v41  ;;  %1741 = vpow2.f32 %v800_v10  ;;  %v693_v61 = vrot.slane %v640_v32, 2 }
 0x22d   :  { %605 = vst [vmem:[#allocation1] ss:$9 sm:$0xff] %v2279_v9  ;;  %1743 = vpow2.f32 %v802_v34  ;;  %v694_v62 = vrot.slane %v640_v32, 3  ;;  %v695_v21 = vrot.slane %v640_v32, 4  ;;  %v758_v52 = vsub.f32 %v2161_v17, %v640_v32 }
 0x22e   :  { %606 = vst [vmem:[#allocation1 + $0x1] ss:$9 sm:$0xff] %v2283_v27  ;;  %v2320_v8 = vpop.eup %1735  ;;  %1745 = vpow2.f32 %v804_v60  ;;  %v759_v63 = vsub.f32 %v2164_v29, %v692_v40  ;;  %v646_v5 = vrot.slane %v645_v28, 1  ;;  %v650_v12 = vmax.f32 %v648_v0, %v649_v51 }
 0x22f   :  { %607 = vst [vmem:[#allocation1 + $0x2] ss:$9 sm:$0xff] %v2289_v58  ;;  %v2323_v59 = vpop.eup %1737  ;;  %1747 = vpow2.f32 %v806_v11  ;;  %v760_v53 = vsub.f32 %v2169_v19, %v693_v61  ;;  %v761_v46 = vsub.f32 %v2173_v22, %v694_v62  ;;  %v762_v17 = vsub.f32 %v2177_v55, %v695_v21 }
 0x230   :  { %608 = vst [vmem:[#allocation1 + $0x3] ss:$9 sm:$0xff] %v2294_v35  ;;  %v808_v54 = vmul.f32 1.442695, %v758_v52  ;;  %v810_v31 = vmul.f32 1.442695, %v759_v63  ;;  %v647_v39 = vmax.f32 %v645_v28, %v646_v5 }
 0x231   :  { %609 = vst [vmem:[#allocation1 + $0x4] ss:$9 sm:$0xff] %v2298_v18  ;;  %v2331_v48 = vpop.eup %1739  ;;  %v651_v19 = vrot.slane %v650_v12, 2  ;;  %v812_v7 = vmul.f32 1.442695, %v760_v53  ;;  %v655_v22 = vsel %vm619_vm13, %v2254_v15, -inf }
 0x232   :  { %v2336_v23 = vpop.eup %1741  ;;  %v814_v32 = vmul.f32 1.442695, %v761_v46  ;;  %1749 = vpow2.f32 %v808_v54  ;;  %v816_v55 = vmul.f32 1.442695, %v762_v17  ;;  %v696_v41 = vrot.slane %v647_v39, 1 }
 0x233   :  { %v2340_v42 = vpop.eup %1743  ;;  %1751 = vpow2.f32 %v810_v31  ;;  %v652_v10 = vmax.f32 %v650_v12, %v651_v19  ;;  %v656_v0 = vrot.slane %v655_v22, 4  ;;  %v697_v34 = vrot.slane %v647_v39, 2 }
 0x234   :  { %v2344_v29 = vpop.eup %1745  ;;  %1753 = vpow2.f32 %v812_v7  ;;  %v698_v60 = vrot.slane %v647_v39, 3  ;;  %v699_v11 = vrot.slane %v647_v39, 4  ;;  %v763_v40 = vsub.f32 %v2183_v26, %v647_v39 }
 0x235   :  { %v2347_v6 = vpop.eup %1747  ;;  %1755 = vpow2.f32 %v814_v32  ;;  %v764_v15 = vsub.f32 %v2188_v33, %v696_v41  ;;  %v653_v28 = vrot.slane %v652_v10, 1  ;;  %v657_v51 = vmax.f32 %v655_v22, %v656_v0 }
 0x236   :  { %1757 = vpow2.f32 %v816_v55  ;;  %v765_v62 = vsub.f32 %v2192_v36, %v697_v34  ;;  %v766_v63 = vsub.f32 %v2195_v37, %v698_v60  ;;  %v767_v26 = vsub.f32 %v2199_v38, %v699_v11 }
 0x237   :  { %v818_v12 = vmul.f32 1.442695, %v763_v40  ;;  %v820_v53 = vmul.f32 1.442695, %v764_v15  ;;  %v654_v46 = vmax.f32 %v652_v10, %v653_v28  ;;  %v658_v36 = vrot.slane %v657_v51, 2 }
 0x238   :  { %v2310_v30 = vld [vmem:[#allocation1] sm:$0xff]  ;;  %v2355_v61 = vpop.eup %1749  ;;  %v822_v54 = vmul.f32 1.442695, %v765_v62  ;;  %v662_v37 = vsel %vm619_vm13, %v2285_v24, -inf  ;;  %v824_v31 = vmul.f32 1.442695, %v766_v63 }
 0x239   :  { %908 = vst [vmem:[#allocation1] ss:$9 sm:$0xff] %v2307_v25  ;;  %v2360_v52 = vpop.eup %1751  ;;  %v826_v38 = vmul.f32 1.442695, %v767_v26  ;;  %1759 = vpow2.f32 %v818_v12  ;;  %v659_v39 = vmax.f32 %v657_v51, %v658_v36  ;;  %v700_v19 = vrot.slane %v654_v46, 1 }
 0x23a   :  { %910 = vst [vmem:[#allocation1 + $0x1] ss:$9 sm:$0xff] %v2312_v3  ;;  %v2364_v5 = vpop.eup %1753  ;;  %1761 = vpow2.f32 %v820_v53  ;;  %v663_v7 = vrot.slane %v662_v37, 4  ;;  %v701_v22 = vrot.slane %v654_v46, 2  ;;  %v702_v32 = vrot.slane %v654_v46, 3 }
 0x23b   :  { %912 = vst [vmem:[#allocation1 + $0x2] ss:$9 sm:$0xff] %v2316_v20  ;;  %v2368_v33 = vpop.eup %1755  ;;  %1763 = vpow2.f32 %v822_v54  ;;  %v703_v55 = vrot.slane %v654_v46, 4  ;;  %v768_v41 = vsub.f32 %v2205_v44, %v654_v46  ;;  %v660_v24 = vrot.slane %v659_v39, 1 }
 0x23c   :  { %914 = vst [vmem:[#allocation1 + $0x3] ss:$9 sm:$0xff] %v2320_v8  ;;  %v2371_v17 = vpop.eup %1757  ;;  %1765 = vpow2.f32 %v824_v31  ;;  %v664_v10 = vmax.f32 %v662_v37, %v663_v7  ;;  %v769_v0 = vsub.f32 %v2208_v45, %v700_v19  ;;  %v770_v60 = vsub.f32 %v2213_v43, %v701_v22 }
 0x23d   :  { %916 = vst [vmem:[#allocation1 + $0x4] ss:$9 sm:$0xff] %v2323_v59  ;;  %1767 = vpow2.f32 %v826_v38  ;;  %v771_v15 = vsub.f32 %v2217_v49, %v702_v32  ;;  %v772_v44 = vsub.f32 %v2222_v47, %v703_v55  ;;  %v828_v51 = vmul.f32 1.442695, %v768_v41 }
 0x23e   :  { %v661_v62 = vmax.f32 %v659_v39, %v660_v24  ;;  %v665_v63 = vrot.slane %v664_v10, 2  ;;  %v830_v43 = vmul.f32 1.442695, %v769_v0  ;;  %v669_v49 = vsel %vm619_vm13, %v2310_v30, -inf }
 0x23f   :  { %v2379_v34 = vpop.eup %1759  ;;  %v832_v12 = vmul.f32 1.442695, %v770_v60  ;;  %v834_v53 = vmul.f32 1.442695, %v771_v15  ;;  %v836_v47 = vmul.f32 1.442695, %v772_v44  ;;  %1769 = vpow2.f32 %v828_v51 }
 0x240   :  { %v2384_v40 = vpop.eup %1761  ;;  %v704_v46 = vrot.slane %v661_v62, 1  ;;  %v666_v36 = vmax.f32 %v664_v10, %v665_v63  ;;  %v670_v54 = vrot.slane %v669_v49, 4  ;;  %1771 = vpow2.f32 %v830_v43 }
 0x241   :  { %v2388_v28 = vpop.eup %1763  ;;  %v705_v37 = vrot.slane %v661_v62, 2  ;;  %1773 = vpow2.f32 %v832_v12  ;;  %v706_v31 = vrot.slane %v661_v62, 3  ;;  %v707_v38 = vrot.slane %v661_v62, 4 }
 0x242   :  { %v2392_v45 = vpop.eup %1765  ;;  %1775 = vpow2.f32 %v834_v53  ;;  %v773_v39 = vsub.f32 %v2227_v56, %v661_v62  ;;  %v774_v30 = vsub.f32 %v2230_v57, %v704_v46  ;;  %v667_v19 = vrot.slane %v666_v36, 1 }
 0x243   :  { %v2395_v26 = vpop.eup %1767  ;;  %1777 = vpow2.f32 %v836_v47  ;;  %v671_v7 = vmax.f32 %v669_v49, %v670_v54  ;;  %v775_v32 = vsub.f32 %v2235_v1, %v705_v37  ;;  %v776_v24 = vsub.f32 %v2239_v2, %v706_v31 }
 0x244   :  { %v2334_v16 = vld [vmem:[#allocation1] sm:$0xff]  ;;  %v777_v56 = vsub.f32 %v2243_v4, %v707_v38  ;;  %v838_v0 = vmul.f32 1.442695, %v773_v39  ;;  %v840_v60 = vmul.f32 1.442695, %v774_v30  ;;  %v668_v15 = vmax.f32 %v666_v36, %v667_v19 }
 0x245   :  { %918 = vst [vmem:[#allocation1] ss:$9 sm:$0xff] %v2331_v48  ;;  %v2403_v22 = vpop.eup %1769  ;;  %v672_v1 = vrot.slane %v671_v7, 2  ;;  %v842_v51 = vmul.f32 1.442695, %v775_v32  ;;  %v968_v49 = vsel %vm619_vm13, %v2334_v16, 0.0 }
 0x246   :  { %919 = vst [vmem:[#allocation1 + $0x1] ss:$9 sm:$0xff] %v2336_v23  ;;  %v2408_v41 = vpop.eup %1771  ;;  %v844_v2 = vmul.f32 1.442695, %v776_v24  ;;  %1779 = vpow2.f32 %v838_v0  ;;  %v846_v4 = vmul.f32 1.442695, %v777_v56  ;;  %v778_v47 = vsub.f32 %v2249_v13, %v668_v15 }
 0x247   :  { %920 = vst [vmem:[#allocation1 + $0x2] ss:$9 sm:$0xff] %v2340_v42  ;;  %v2412_v10 = vpop.eup %1773  ;;  %1781 = vpow2.f32 %v840_v60  ;;  %v673_v62 = vmax.f32 %v671_v7, %v672_v1  ;;  %v708_v63 = vrot.slane %v668_v15, 1  ;;  %v709_v43 = vrot.slane %v668_v15, 2  ;;  %v2611_v30 = vld [vmem:[#allocation5_spill] sm:$0xff]  ;;  %v2612_v7 = vld [vmem:[#allocation6_spill] sm:$0xff] }
 0x248   :  { %921 = vst [vmem:[#allocation1 + $0x3] ss:$9 sm:$0xff] %v2344_v29  ;;  %v2416_v57 = vpop.eup %1775  ;;  %1783 = vpow2.f32 %v842_v51  ;;  %v710_v12 = vrot.slane %v668_v15, 3  ;;  %v711_v53 = vrot.slane %v668_v15, 4  ;;  %v969_v54 = vrot.slane %v968_v49, 4 }
 0x249   :  { %922 = vst [vmem:[#allocation1 + $0x4] ss:$9 sm:$0xff] %v2347_v6  ;;  %v2419_v44 = vpop.eup %1777  ;;  %1785 = vpow2.f32 %v844_v2  ;;  %v674_v46 = vrot.slane %v673_v62, 1  ;;  %v779_v36 = vsub.f32 %v2252_v14, %v708_v63  ;;  %v780_v31 = vsub.f32 %v2263_v50, %v709_v43 }
 0x24a   :  { %1787 = vpow2.f32 %v846_v4  ;;  %v781_v16 = vsub.f32 %v2611_v30, %v710_v12  ;;  %v782_v13 = vsub.f32 %v2612_v7, %v711_v53  ;;  %v848_v32 = vmul.f32 1.442695, %v778_v47 }
 0x24b   :  { %v675_v24 = vmax.f32 %v673_v62, %v674_v46  ;;  %v850_v56 = vmul.f32 1.442695, %v779_v36  ;;  %v970_v50 = vadd.f32 %v969_v54, %v968_v49  ;;  %v852_v60 = vmul.f32 1.442695, %v780_v31 }
 0x24c   :  { %v2427_v37 = vpop.eup %1779  ;;  %v854_v15 = vmul.f32 1.442695, %v781_v16  ;;  %1789 = vpow2.f32 %v848_v32  ;;  %v856_v1 = vmul.f32 1.442695, %v782_v13 }
 0x24d   :  { %v2432_v39 = vpop.eup %1781  ;;  %v712_v51 = vrot.slane %v675_v24, 1  ;;  %1791 = vpow2.f32 %v850_v56  ;;  %v971_v2 = vrot.slane %v970_v50, 2  ;;  %v713_v4 = vrot.slane %v675_v24, 2 }
 0x24e   :  { %v2436_v19 = vpop.eup %1783  ;;  %1793 = vpow2.f32 %v852_v60  ;;  %v714_v63 = vrot.slane %v675_v24, 3  ;;  %v715_v43 = vrot.slane %v675_v24, 4  ;;  %v783_v49 = vsub.f32 %v2279_v9, %v675_v24 }
 0x24f   :  { %v2440_v14 = vpop.eup %1785  ;;  %1795 = vpow2.f32 %v854_v15  ;;  %v784_v12 = vsub.f32 %v2283_v27, %v712_v51  ;;  %v972_v47 = vadd.f32 %v971_v2, %v970_v50  ;;  %v785_v36 = vsub.f32 %v2289_v58, %v713_v4 }
 0x250   :  { %v2358_v21 = vld [vmem:[#allocation1] sm:$0xff]  ;;  %v2443_v0 = vpop.eup %1787  ;;  %1797 = vpow2.f32 %v856_v1  ;;  %v787_v9 = vsub.f32 %v2298_v18, %v715_v43  ;;  %v858_v16 = vmul.f32 1.442695, %v783_v49 }
 0x251   :  { %924 = vst [vmem:[#allocation1] ss:$9 sm:$0xff] %v2355_v61  ;;  %v975_v62 = vsel %vm619_vm13, %v2358_v21, 0.0  ;;  %v786_v21 = vsub.f32 %v2294_v35, %v714_v63  ;;  %v860_v7 = vmul.f32 1.442695, %v784_v12  ;;  %v973_v58 = vrot.slane %v972_v47, 1 }
 0x252   :  { %925 = vst [vmem:[#allocation1 + $0x1] ss:$9 sm:$0xff] %v2360_v52  ;;  %v976_v53 = vrot.slane %v975_v62, 4  ;;  %v2451_v46 = vpop.eup %1789  ;;  %v862_v24 = vmul.f32 1.442695, %v785_v36  ;;  %1799 = vpow2.f32 %v858_v16 }
 0x253   :  { %926 = vst [vmem:[#allocation1 + $0x2] ss:$9 sm:$0xff] %v2364_v5  ;;  %v2456_v31 = vpop.eup %1791  ;;  %v864_v35 = vmul.f32 1.442695, %v786_v21  ;;  %v866_v18 = vmul.f32 1.442695, %v787_v9  ;;  %1801 = vpow2.f32 %v860_v7  ;;  %v974_v56 = vadd.f32 %v973_v58, %v972_v47 }
 0x254   :  { %927 = vst [vmem:[#allocation1 + $0x3] ss:$9 sm:$0xff] %v2368_v33  ;;  %v2460_v30 = vpop.eup %1793  ;;  %v977_v13 = vadd.f32 %v976_v53, %v975_v62  ;;  %1803 = vpow2.f32 %v862_v24 }
 0x255   :  { %928 = vst [vmem:[#allocation1 + $0x4] ss:$9 sm:$0xff] %v2371_v17  ;;  %v2464_v27 = vpop.eup %1795  ;;  %1805 = vpow2.f32 %v864_v35 }
 0x256   :  { %v2467_v32 = vpop.eup %1797  ;;  %v978_v50 = vrot.slane %v977_v13, 2  ;;  %1807 = vpow2.f32 %v866_v18 }
 0x257   :  { %1809 = vrcp.f32 %v974_v56 }
 0x258   :  { %v979_v1 = vadd.f32 %v978_v50, %v977_v13  ;;  %v2473_v51 = vpop.eup %1799 }
 0x259   :  { %v2477_v4 = vpop.eup %1801 }
 0x25a   :  { %v2480_v62 = vpop.eup %1803 }
 0x25b   :  { %v2483_v63 = vpop.eup %1805 }
 0x25c   :  { %v2382_v11 = vld [vmem:[#allocation1] sm:$0xff]  ;;  %v2486_v49 = vpop.eup %1807 }
 0x25d   :  { %930 = vst [vmem:[#allocation1] ss:$9 sm:$0xff] %v2379_v34  ;;  %v982_v60 = vsel %vm619_vm13, %v2382_v11, 0.0  ;;  %v980_v11 = vrot.slane %v979_v1, 1  ;;  %v1810_v12 = vpop.eup %1809 }
 0x25e   :  { %931 = vst [vmem:[#allocation1 + $0x1] ss:$9 sm:$0xff] %v2384_v40  ;;  %v983_v15 = vrot.slane %v982_v60, 4  ;;  %v1040_v21 = vrot.slane %v1810_v12, 1  ;;  %v1041_v9 = vrot.slane %v1810_v12, 2  ;;  %v1042_v16 = vrot.slane %v1810_v12, 3 }
 0x25f   :  { %932 = vst [vmem:[#allocation1 + $0x2] ss:$9 sm:$0xff] %v2388_v28  ;;  %v981_v53 = vadd.f32 %v980_v11, %v979_v1  ;;  %v1043_v7 = vrot.slane %v1810_v12, 4  ;;  %v1104_v13 = vmul.f32 %v1810_v12, %v2307_v25 }
 0x260   :  { %933 = vst [vmem:[#allocation1 + $0x3] ss:$9 sm:$0xff] %v2392_v45  ;;  %v984_v43 = vadd.f32 %v983_v15, %v982_v60  ;;  %v1105_v18 = vmul.f32 %v2312_v3, %v1040_v21  ;;  %v1106_v56 = vmul.f32 %v2316_v20, %v1041_v9  ;;  %v1107_v50 = vmul.f32 %v2320_v8, %v1042_v16 }
 0x261   :  { %934 = vst [vmem:[#allocation1 + $0x4] ss:$9 sm:$0xff] %v2395_v26  ;;  %1811 = vrcp.f32 %v981_v53 }
 0x262   :  { %v985_v47 = vrot.slane %v984_v43, 2 }
 0x264   :  { %v986_v24 = vadd.f32 %v985_v47, %v984_v43 }
 0x266   :  { %v987_v15 = vrot.slane %v986_v24, 1 }
 0x267   :  { %v1812_v1 = vpop.eup %1811 }
 0x268   :  { %v2406_v55 = vld [vmem:[#allocation1] sm:$0xff]  ;;  %v988_v25 = vadd.f32 %v987_v15, %v986_v24  ;;  %v1044_v3 = vrot.slane %v1812_v1, 1  ;;  %v1045_v12 = vrot.slane %v1812_v1, 2  ;;  %v1046_v20 = vrot.slane %v1812_v1, 3 }
 0x269   :  { %936 = vst [vmem:[#allocation1] ss:$9 sm:$0xff] %v2403_v22  ;;  %v989_v36 = vsel %vm619_vm13, %v2406_v55, 0.0  ;;  %v1108_v55 = vmul.f32 %v2323_v59, %v1043_v7  ;;  %v1047_v53 = vrot.slane %v1812_v1, 4  ;;  %v1109_v8 = vmul.f32 %v1812_v1, %v2331_v48 }
 0x26a   :  { %937 = vst [vmem:[#allocation1 + $0x1] ss:$9 sm:$0xff] %v2408_v41  ;;  %v990_v58 = vrot.slane %v989_v36, 4  ;;  %1813 = vrcp.f32 %v988_v25  ;;  %v1110_v59 = vmul.f32 %v2336_v23, %v1044_v3  ;;  %v1111_v9 = vmul.f32 %v2340_v42, %v1045_v12 }
 0x26b   :  { %938 = vst [vmem:[#allocation1 + $0x2] ss:$9 sm:$0xff] %v2412_v10  ;;  %v1112_v16 = vmul.f32 %v2344_v29, %v1046_v20 }
 0x26c   :  { %939 = vst [vmem:[#allocation1 + $0x3] ss:$9 sm:$0xff] %v2416_v57  ;;  %v991_v60 = vadd.f32 %v990_v58, %v989_v36 }
 0x26d   :  { %940 = vst [vmem:[#allocation1 + $0x4] ss:$9 sm:$0xff] %v2419_v44 }
 0x26e   :  { %v992_v11 = vrot.slane %v991_v60, 2 }
 0x270   :  { %v993_v21 = vadd.f32 %v992_v11, %v991_v60 }
 0x272   :  { %v994_v58 = vrot.slane %v993_v21, 1 }
 0x274   :  { %v2430_v38 = vld [vmem:[#allocation1] sm:$0xff]  ;;  %v995_v48 = vadd.f32 %v994_v58, %v993_v21 }
 0x275   :  { %942 = vst [vmem:[#allocation1] ss:$9 sm:$0xff] %v2427_v37  ;;  %v996_v43 = vsel %vm619_vm13, %v2430_v38, 0.0  ;;  %v1113_v38 = vmul.f32 %v2347_v6, %v1047_v53 }
 0x276   :  { %943 = vst [vmem:[#allocation1 + $0x1] ss:$9 sm:$0xff] %v2432_v39  ;;  %v997_v47 = vrot.slane %v996_v43, 4  ;;  %1815 = vrcp.f32 %v995_v48 }
 0x277   :  { %944 = vst [vmem:[#allocation1 + $0x2] ss:$9 sm:$0xff] %v2436_v19 }
 0x278   :  { %945 = vst [vmem:[#allocation1 + $0x3] ss:$9 sm:$0xff] %v2440_v14  ;;  %v998_v7 = vadd.f32 %v997_v47, %v996_v43 }
 0x279   :  { %946 = vst [vmem:[#allocation1 + $0x4] ss:$9 sm:$0xff] %v2443_v0 }
 0x27a   :  { %v999_v24 = vrot.slane %v998_v7, 2 }
 0x27c   :  { %v1000_v29 = vadd.f32 %v999_v24, %v998_v7 }
 0x27e   :  { %v1001_v3 = vrot.slane %v1000_v29, 1 }
 0x280   :  { %v2454_v54 = vld [vmem:[#allocation1] sm:$0xff] }
 0x281   :  { %948 = vst [vmem:[#allocation1] ss:$9 sm:$0xff] %v2451_v46  ;;  %v1003_v23 = vsel %vm619_vm13, %v2454_v54, 0.0 }
 0x282   :  { %949 = vst [vmem:[#allocation1 + $0x1] ss:$9 sm:$0xff] %v2456_v31 }
 0x283   :  { %950 = vst [vmem:[#allocation1 + $0x2] ss:$9 sm:$0xff] %v2460_v30 }
 0x284   :  { %951 = vst [vmem:[#allocation1 + $0x3] ss:$9 sm:$0xff] %v2464_v27 }
 0x285   :  { %952 = vst [vmem:[#allocation1 + $0x4] ss:$9 sm:$0xff] %v2467_v32 }
 0x28c   :  { %v2475_v2 = vld [vmem:[#allocation1] sm:$0xff] }
 0x28d   :  { %954 = vst [vmem:[#allocation1] ss:$9 sm:$0xff] %v2473_v51 }
 0x28e   :  { %955 = vst [vmem:[#allocation1 + $0x1] ss:$9 sm:$0xff] %v2477_v4 }
 0x28f   :  { %956 = vst [vmem:[#allocation1 + $0x2] ss:$9 sm:$0xff] %v2480_v62 }
 0x290   :  { %957 = vst [vmem:[#allocation1 + $0x3] ss:$9 sm:$0xff] %v2483_v63 }
 0x291   :  { %958 = vst [vmem:[#allocation1 + $0x4] ss:$9 sm:$0xff] %v2486_v49 }
 0x298   :  { %v2493_v35 = vld [vmem:[#allocation1] sm:$0xff] }
 0x299   :  { %1184 = vst [vmem:[#allocation1] ss:$9 sm:$0xff] %v1104_v13  ;;  %v1814_v13 = vpop.eup %1813 }
 0x29a   :  { %1186 = vst [vmem:[#allocation1 + $0x1] ss:$9 sm:$0xff] %v1105_v18  ;;  %v1048_v18 = vrot.slane %v1814_v13, 1  ;;  %v1050_v42 = vrot.slane %v1814_v13, 3  ;;  %v1114_v6 = vmul.f32 %v1814_v13, %v2355_v61  ;;  %v1816_v20 = vpop.eup %1815  ;;  %v1002_v61 = vadd.f32 %v1001_v3, %v1000_v29 }
 0x29b   :  { %1188 = vst [vmem:[#allocation1 + $0x2] ss:$9 sm:$0xff] %v1106_v56  ;;  %v1049_v56 = vrot.slane %v1814_v13, 2  ;;  %v1052_v47 = vrot.slane %v1816_v20, 1  ;;  %v1055_v21 = vrot.slane %v1816_v20, 4 }
 0x29c   :  { %1190 = vst [vmem:[#allocation1 + $0x3] ss:$9 sm:$0xff] %v1107_v50  ;;  %v1051_v50 = vrot.slane %v1814_v13, 4  ;;  %v1115_v15 = vmul.f32 %v2360_v52, %v1048_v18  ;;  %v1117_v43 = vmul.f32 %v2368_v33, %v1050_v42  ;;  %v1010_v52 = vsel %vm619_vm13, %v2475_v2, 0.0 }
 0x29d   :  { %1192 = vst [vmem:[#allocation1 + $0x4] ss:$9 sm:$0xff] %v1108_v55  ;;  %v1004_v55 = vrot.slane %v1003_v23, 4  ;;  %v1116_v11 = vmul.f32 %v2364_v5, %v1049_v56  ;;  %v1053_v5 = vrot.slane %v1816_v20, 2  ;;  %v1011_v33 = vrot.slane %v1010_v52, 4 }
 0x29e   :  { %v1118_v12 = vmul.f32 %v2371_v17, %v1051_v50  ;;  %1817 = vrcp.f32 %v1002_v61  ;;  %v1120_v17 = vmul.f32 %v2384_v40, %v1052_v47  ;;  %v1123_v2 = vmul.f32 %v2395_v26, %v1055_v21 }
 0x29f   :  { %v1005_v54 = vadd.f32 %v1004_v55, %v1003_v23  ;;  %v1012_v7 = vadd.f32 %v1011_v33, %v1010_v52  ;;  %v1017_v40 = vsel %vm619_vm13, %v2493_v35, 0.0 }
 0x2a1   :  { %v1006_v53 = vrot.slane %v1005_v54, 2  ;;  %v1013_v48 = vrot.slane %v1012_v7, 2 }
 0x2a3   :  { %v1014_v56 = vadd.f32 %v1013_v48, %v1012_v7 }
 0x2a4   :  { %v1193_v36 = vld [vmem:[#allocation1] sm:$0xff]  ;;  %v1818_v13 = vpop.eup %1817 }
 0x2a5   :  { %1194 = vst [vmem:[#allocation1] ss:$9 sm:$0xff] %v1109_v8  ;;  %v1244_v1 = vpack.c.bf16 %v1193_v36, %v1193_v36  ;;  %v1054_v8 = vrot.slane %v1816_v20, 3  ;;  %v1007_v36 = vadd.f32 %v1006_v53, %v1005_v54  ;;  %v1056_v24 = vrot.slane %v1818_v13, 1 }
 0x2a6   :  { %1195 = vst [vmem:[#allocation1 + $0x1] ss:$9 sm:$0xff] %v1110_v59  ;;  %v1119_v59 = vmul.f32 %v1816_v20, %v2379_v34  ;;  %v1057_v23 = vrot.slane %v1818_v13, 2  ;;  %v1059_v18 = vrot.slane %v1818_v13, 4  ;;  %v1124_v42 = vmul.f32 %v1818_v13, %v2403_v22 }
 0x2a7   :  { %1196 = vst [vmem:[#allocation1 + $0x2] ss:$9 sm:$0xff] %v1111_v9  ;;  %v1008_v58 = vrot.slane %v1007_v36, 1  ;;  %v1125_v26 = vmul.f32 %v2408_v41, %v1056_v24  ;;  %v1015_v35 = vrot.slane %v1014_v56, 1 }
 0x2a8   :  { %1197 = vst [vmem:[#allocation1 + $0x3] ss:$9 sm:$0xff] %v1112_v16  ;;  %v1121_v16 = vmul.f32 %v2388_v28, %v1053_v5  ;;  %v1058_v28 = vrot.slane %v1818_v13, 3  ;;  %v1126_v55 = vmul.f32 %v2412_v10, %v1057_v23 }
 0x2a9   :  { %1198 = vst [vmem:[#allocation1 + $0x4] ss:$9 sm:$0xff] %v1113_v38  ;;  %v1122_v38 = vmul.f32 %v2392_v45, %v1054_v8  ;;  %v1009_v34 = vadd.f32 %v1008_v58, %v1007_v36  ;;  %v1018_v45 = vrot.slane %v1017_v40, 4  ;;  %v1016_v22 = vadd.f32 %v1015_v35, %v1014_v56 }
 0x2aa   :  { %v1127_v29 = vmul.f32 %v2416_v57, %v1058_v28 }
 0x2ab   :  { %1819 = vrcp.f32 %v1009_v34 }
 0x2ac   :  { %1821 = vrcp.f32 %v1016_v22 }
 0x2b0   :  { %v1199_v60 = vld [vmem:[#allocation1] sm:$0xff] }
 0x2b1   :  { %v1245_v25 = vpack.c.bf16 %v1199_v60, %v1199_v60  ;;  %1200 = vst [vmem:[#allocation1] ss:$9 sm:$0xff] %v1114_v6  ;;  %v1019_v6 = vadd.f32 %v1018_v45, %v1017_v40  ;;  %v1128_v60 = vmul.f32 %v2419_v44, %v1059_v18 }
 0x2b2   :  { %1201 = vst [vmem:[#allocation1 + $0x1] ss:$9 sm:$0xff] %v1115_v15  ;;  %v1820_v15 = vpop.eup %1819 }
 0x2b3   :  { %1698 = vxpose.binary.xlu1.c.b16.start.end [1/2] (short) (narrow) %v1244_v1, %v1245_v25, 16  ;;  %1202 = vst [vmem:[#allocation1 + $0x2] ss:$9 sm:$0xff] %v1116_v11  ;;  %v1020_v1 = vrot.slane %v1019_v6, 2  ;;  %v1060_v25 = vrot.slane %v1820_v15, 1  ;;  %v1061_v41 = vrot.slane %v1820_v15, 2  ;;  %v1129_v54 = vmul.f32 %v1820_v15, %v2427_v37  ;;  %v1822_v47 = vpop.eup %1821 }
 0x2b4   :  { %1203 = vst [vmem:[#allocation1 + $0x3] ss:$9 sm:$0xff] %v1117_v43  ;;  %v1062_v11 = vrot.slane %v1820_v15, 3  ;;  %v1063_v10 = vrot.slane %v1820_v15, 4  ;;  %v1064_v5 = vrot.slane %v1822_v47, 1  ;;  %v1065_v8 = vrot.slane %v1822_v47, 2 }
 0x2b5   :  { %1204 = vst [vmem:[#allocation1 + $0x4] ss:$9 sm:$0xff] %v1118_v12  ;;  %v1021_v43 = vadd.f32 %v1020_v1, %v1019_v6  ;;  %v1130_v3 = vmul.f32 %v2432_v39, %v1060_v25  ;;  %v1131_v44 = vmul.f32 %v2436_v19, %v1061_v41  ;;  %v1066_v39 = vrot.slane %v1822_v47, 3 }
 0x2b6   :  { %v1132_v61 = vmul.f32 %v2440_v14, %v1062_v11  ;;  %v1133_v52 = vmul.f32 %v2443_v0, %v1063_v10  ;;  %v1067_v21 = vrot.slane %v1822_v47, 4  ;;  %v1134_v19 = vmul.f32 %v1822_v47, %v2451_v46  ;;  %v1690_v10 = vld [vmem:[%s2593_s5 + $0x10] sm:$0xff] }
 0x2b7   :  { %v1022_v53 = vrot.slane %v1021_v43, 1  ;;  %v1135_v33 = vmul.f32 %v2456_v31, %v1064_v5  ;;  %v1137_v0 = vmul.f32 %v2464_v27, %v1066_v39 }
 0x2b8   :  { %v1138_v36 = vmul.f32 %v2467_v32, %v1067_v21 }
 0x2b9   :  { %v1023_v37 = vadd.f32 %v1022_v53, %v1021_v43  ;;  %v1691_v43 = vld [vmem:[%s2593_s5 + $0x18] sm:$0xff] }
 0x2bb   :  { %1823 = vrcp.f32 %v1023_v37  ;;  %v1688_v37 = vld [vmem:[%s2593_s5] sm:$0xff] }
 0x2bc   :  { %v1205_v9 = vld [vmem:[#allocation1] sm:$0xff] }
 0x2bd   :  { %1206 = vst [vmem:[#allocation1] ss:$9 sm:$0xff] %v1119_v59  ;;  %v1246_v12 = vpack.c.bf16 %v1205_v9, %v1205_v9  ;;  %v1136_v59 = vmul.f32 %v2460_v30, %v1065_v8 }
 0x2be   :  { %1207 = vst [vmem:[#allocation1 + $0x1] ss:$9 sm:$0xff] %v1120_v17 }
 0x2bf   :  { %1208 = vst [vmem:[#allocation1 + $0x2] ss:$9 sm:$0xff] %v1121_v16 }
 0x2c0   :  { %1209 = vst [vmem:[#allocation1 + $0x3] ss:$9 sm:$0xff] %v1122_v38 }
 0x2c1   :  { %1210 = vst [vmem:[#allocation1 + $0x4] ss:$9 sm:$0xff] %v1123_v2  ;;  %v1824_v17 = vpop.eup %1823 }
 0x2c2   :  { %v1068_v16 = vrot.slane %v1824_v17, 1  ;;  %v1069_v38 = vrot.slane %v1824_v17, 2  ;;  %v1070_v46 = vrot.slane %v1824_v17, 3  ;;  %v1071_v7 = vrot.slane %v1824_v17, 4 }
 0x2c3   :  { %v1139_v31 = vmul.f32 %v1824_v17, %v2473_v51 }
 0x2c4   :  { %v1140_v30 = vmul.f32 %v2477_v4, %v1068_v16  ;;  %v1141_v27 = vmul.f32 %v2480_v62, %v1069_v38  ;;  %v1142_v32 = vmul.f32 %v2483_v63, %v1070_v46  ;;  %v1143_v58 = vmul.f32 %v2486_v49, %v1071_v7  ;;  %v2613_v4 = vld [vmem:[#allocation4_spill] sm:$0xff]  ;;  %v2614_v63 = vld [vmem:[#allocation2_spill] sm:$0xff]  ;;  %v2615_v49 = vld [vmem:[#allocation3_spill] sm:$0xff] }
 0x2c5   :  { %v1259_v62 = vpack.c.bf16 %v2613_v4, %v2613_v4  ;;  %v1258_v23 = vpack.c.bf16 %v2615_v49, %v2615_v49 }
 0x2c7   :  { %v1530_v24 = vand.u32 %v2614_v63, %v1259_v62  ;;  %v1495_v18 = vand.u32 %v2614_v63, %v1258_v23 }
 0x2c8   :  { %v2524_v50 = vld [vmem:[#allocation1] sm:$0xff] }
 0x2c9   :  { %1212 = vst [vmem:[#allocation1] ss:$9 sm:$0xff] %v1124_v42  ;;  %v1247_v48 = vpack.c.bf16 %v2524_v50, %v2524_v50 }
 0x2ca   :  { %1213 = vst [vmem:[#allocation1 + $0x1] ss:$9 sm:$0xff] %v1125_v26 }
 0x2cb   :  { %1214 = vst [vmem:[#allocation1 + $0x2] ss:$9 sm:$0xff] %v1126_v55 }
 0x2cc   :  { %1215 = vst [vmem:[#allocation1 + $0x3] ss:$9 sm:$0xff] %v1127_v29 }
 0x2cd   :  { %1216 = vst [vmem:[#allocation1 + $0x4] ss:$9 sm:$0xff] %v1128_v60 }
 0x2d4   :  { %v1217_v57 = vld [vmem:[#allocation1] sm:$0xff] }
 0x2d5   :  { %v1248_v20 = vpack.c.bf16 %v1217_v57, %v1217_v57  ;;  %1218 = vst [vmem:[#allocation1] ss:$9 sm:$0xff] %v1129_v54  ;;  %v1827_v54 = vmov 1983009808  }
 0x2d6   :  { %1219 = vst [vmem:[#allocation1 + $0x1] ss:$9 sm:$0xff] %v1130_v3  ;;  %v1549_v57 = vunpack.c.l.s4 %v1827_v54 }
 0x2d7   :  { %1701 = vxpose.binary.xlu2.c.b16.start.end [1/2] (short) (narrow) %v1246_v12, %v1248_v20, 16  ;;  %1220 = vst [vmem:[#allocation1 + $0x2] ss:$9 sm:$0xff] %v1131_v44  ;;  %v1689_v20 = vld [vmem:[%s2593_s5 + $0x8] sm:$0xff]  ;;  %s1829_s5 = smov 32  }
 0x2d8   :  { %1221 = vst [vmem:[#allocation1 + $0x3] ss:$9 sm:$0xff] %v1132_v61  ;;  %v1550_v61 = vunpack.c.0.s8 %v1549_v57 }
 0x2d9   :  { %1222 = vst [vmem:[#allocation1 + $0x4] ss:$9 sm:$0xff] %v1133_v52 }
 0x2e0   :  { %v1223_v14 = vld [vmem:[#allocation1] sm:$0xff] }
 0x2e1   :  { %1224 = vst [vmem:[#allocation1] ss:$9 sm:$0xff] %v1134_v19  ;;  %v1249_v9 = vpack.c.bf16 %v1223_v14, %v1223_v14  ;;  %v1828_v19 = vmov 1934713408  }
 0x2e2   :  { %1225 = vst [vmem:[#allocation1 + $0x1] ss:$9 sm:$0xff] %v1135_v33  ;;  %v1573_v33 = vunpack.c.l.s4 %v1828_v19 }
 0x2e3   :  { %1226 = vst [vmem:[#allocation1 + $0x2] ss:$9 sm:$0xff] %v1136_v59 }
 0x2e4   :  { %1227 = vst [vmem:[#allocation1 + $0x3] ss:$9 sm:$0xff] %v1137_v0  ;;  %v1574_v0 = vunpack.c.0.s8 %v1573_v33 }
 0x2e5   :  { %1228 = vst [vmem:[#allocation1 + $0x4] ss:$9 sm:$0xff] %v1138_v36 }
 0x2e7   :  { %1440 = vxpose.xlu2.c.b16.start.end [1/1] (short) (narrow) %v1249_v9, 16 }
 0x2ec   :  { %v1229_v2 = vld [vmem:[#allocation1] sm:$0xff] }
 0x2ed   :  { %1230 = vst [vmem:[#allocation1] ss:$9 sm:$0xff] %v1139_v31  ;;  %v1250_v51 = vpack.c.bf16 %v1229_v2, %v1229_v2 }
 0x2ee   :  { %1231 = vst [vmem:[#allocation1 + $0x1] ss:$9 sm:$0xff] %v1140_v30 }
 0x2ef   :  { %1232 = vst [vmem:[#allocation1 + $0x2] ss:$9 sm:$0xff] %v1141_v27 }
 0x2f0   :  { %1233 = vst [vmem:[#allocation1 + $0x3] ss:$9 sm:$0xff] %v1142_v32 }
 0x2f1   :  { %1234 = vst [vmem:[#allocation1 + $0x4] ss:$9 sm:$0xff] %v1143_v58 }
 0x2f8   :  { %v1235_v13 = vld [vmem:[#allocation1] sm:$0xff] }
 0x2f9   :  { %v1251_v34 = vpack.c.bf16 %v1235_v13, %v1235_v13 }
 0x2fb   :  { %1704 = vxpose.binary.xlu0.c.b16.start.end [1/2] (short) (narrow) %v1251_v34, %v1247_v48, 16 }
 0x30b   :  { %1475 = vxpose.xlu0.c.b16.start.end [1/1] (short) (narrow) %v1250_v51, 16 }
 0x35f   :  { %v1699_v40 = vpop.trf.xlu1 }
 0x360   :  { %1662 = vmatmul.msk.bf16.vlgmr.msra.gmra.mxu2 %vm1276_vm14, %v1699_v40  ;;  %v1710_v40 = vld [vmem:[%s2594_s6] ss:$0 sm:$0xff] }
 0x361   :  { %1539 = vmatpush.bf16.msra.mxu2 %v1530_v24 }
 0x367   :  { %v1700_v28 = vpop.trf.xlu1 }
 0x368   :  { %1661 = vmatmul.msk.bf16.vlgmr.msra.gmra.mxu1 %vm1276_vm14, %v1700_v28 }
 0x369   :  { %1504 = vmatpush.bf16.msra.mxu1 %v1495_v18 }
 0x378   :  { %v1702_v56 = vpop.trf.xlu2 }
 0x379   :  { %1665 = vmatmul.msk.bf16.vlgmr.msrb.gmra.mxu2 %vm1276_vm14, %v1702_v56 }
 0x380   :  { %v1703_v45 = vpop.trf.xlu2 }
 0x381   :  { %1663 = vmatmul.msk.bf16.vlgmr.msra.gmra.mxu3 %vm1276_vm14, %v1703_v45 }
 0x382   :  { %1636 = vmatpush.bf16.msra.mxu3 %v1691_v43 }
 0x386   :  { %1637 = vmatpush.bf16.msra.mxu3 %v1690_v10 }
 0x388   :  { %v1448_v42 = vpop.trf.xlu2 }
 0x38a   :  { %1638 = vmatpush.bf16.msra.mxu3 %v1689_v20 }
 0x38e   :  { %1639 = vmatpush.bf16.msra.mxu3 %v1688_v37 }
 0x391   :  { %1666 = vmatmul.msk.bf16.vlgmr.msrb.gmra.mxu3 %vm1276_vm14, %v1448_v42 }
 0x3a7   :  { %v1705_v26 = vpop.trf.xlu0 }
 0x3a8   :  { %1664 = vmatmul.msk.bf16.vlgmr.msrb.gmra.mxu1 %vm1276_vm14, %v1705_v26 }
 0x3af   :  { %v1706_v50 = vpop.trf.xlu0 }
 0x3b0   :  { %1668 = vmatmul.msk.bf16.vlgmr.msra.gmra.mxu2 %vm1276_vm14, %v1706_v50 }
 0x3b7   :  { %v1483_v55 = vpop.trf.xlu0 }
 0x3b8   :  { %1667 = vmatmul.msk.bf16.vlgmr.msra.gmra.mxu1 %vm1276_vm14, %v1483_v55 }
 0x3e3   :  { %v1331_v29 = vpop.f32.mrf.mxu2 }
 0x3e5   :  { %v1296_v35 = vpop.f32.mrf.mxu1 }
 0x3eb   :  { %v1333_v6 = vpop.f32.mrf.mxu2 }
 0x3ed   :  { %v1298_v60 = vpop.f32.mrf.mxu1 }
 0x3fc   :  { %v1436_v15 = vpop.f32.mrf.mxu2 }
 0x404   :  { %v1366_v22 = vpop.f32.mrf.mxu3  ;;  %v1438_v1 = vpop.f32.mrf.mxu2 }
 0x405   :  { %v1545_v3 = vrot.slane %v1366_v22, 4 }
 0x407   :  { %v1547_v53 = vsel %vm1546_vm15, %v1545_v3, %v1296_v35 }
 0x408   :  { %v1551_v5 = vperm.slane %v1547_v53, %v1550_v61 }
 0x40c   :  { %v1368_v25 = vpop.f32.mrf.mxu3 }
 0x414   :  { %v1471_v41 = vpop.f32.mrf.mxu3 }
 0x41c   :  { %v1473_v11 = vpop.f32.mrf.mxu3 }
 0x425   :  { %v1401_v12 = vpop.f32.mrf.mxu1 }
 0x426   :  { %v1552_v44 = vrot.slane %v1401_v12, 4 }
 0x428   :  { %v1553_v52 = vsel %vm1546_vm15, %v1552_v44, %v1331_v29 }
 0x429   :  { %v1557_v47 = vperm.slane %v1553_v52, %v1550_v61 }
 0x42b   :  { %v1570_v8 = vrot.slane %v1557_v47, 4 }
 0x42d   :  { %v1403_v39 = vpop.f32.mrf.mxu1  ;;  %v1571_v21 = vsel %vm1546_vm15, %v1570_v8, %v1551_v5 }
 0x42e   :  { %v1575_v46 = vperm.slane %v1571_v21, %v1574_v0 }
 0x430   :  { %v1584_v32 = vrot.slane %v1575_v46, 4 }
 0x433   :  { %v1541_v14 = vpop.f32.mrf.mxu2 }
 0x434   :  { %v1564_v59 = vrot.slane %v1541_v14, 4 }
 0x435   :  { %v1506_v36 = vpop.f32.mrf.mxu1 }
 0x436   :  { %v1565_v17 = vsel %vm1546_vm15, %v1564_v59, %v1471_v41  ;;  %v1558_v9 = vrot.slane %v1506_v36, 4 }
 0x437   :  { %v1569_v16 = vperm.slane %v1565_v17, %v1550_v61 }
 0x438   :  { %v1559_v38 = vsel %vm1546_vm15, %v1558_v9, %v1436_v15 }
 0x439   :  { %v1576_v7 = vrot.slane %v1569_v16, 4  ;;  %v1563_v31 = vperm.slane %v1559_v38, %v1550_v61 }
 0x43b   :  { %v1543_v30 = vpop.f32.mrf.mxu2  ;;  %v1577_v2 = vsel %vm1546_vm15, %v1576_v7, %v1563_v31 }
 0x43c   :  { %v1581_v27 = vperm.slane %v1577_v2, %v1574_v0 }
 0x43d   :  { %v1508_v58 = vpop.f32.mrf.mxu1 }
 0x43e   :  { %v1585_v13 = vsel %vm1546_vm15, %v1581_v27, %v1584_v32  ;;  %v1582_v48 = vrot.slane %v1581_v27, 4 }
 0x43f   :  { %1587 = vrot.lane.b32.xlu2 %v1585_v13, %s1829_s5 }
 0x440   :  { %v1583_v34 = vsel %vm1546_vm15, %v1582_v48, %v1575_v46 }
 0x499   :  { %v1588_v51 = vpop.permute.xlu2 %1587 }
 0x49a   :  { %v1590_v4 = vsel %vm359_vm8, %v1583_v34, %v1588_v51 }
 0x49b   :  { %v1599_v62 = vpack.c.bf16 %v1590_v4, %v1590_v4 }
 0x49d   :  { %1685 = vmatmul.msk.bf16.vlgmr.msra.gmra.mxu3 %vm1628_vm0, %v1599_v62 }
 0x520   :  { %v1641_v63 = vpop.f32.mrf.mxu3 }
 0x521   :  { %v1642_v24 = vadd.f32 %v1710_v40, %v1641_v63 }
 0x523   :  { %1645 = vst.msk [vmem:[%s2595_s7] sm:$0xff] %vm359_vm8, %v1642_v24 }
 0x528   :  { %v1643_v49 = vpop.f32.mrf.mxu3 }

// kernel: hgt_decoder_forward.9
= control target key start
LH: loop header
LB: loop body
LE: loop exit
PB: predicated region body
PF: predicated region fallthrough
CT: control target
= control target key end

     0   :  { %vm37_vm0 = vcmask 259072   ;;  %v1486_v16 = vmov 32.0   ;;  %s2050_s0 = inlined_call_operand.vmem [shape: f32[8,6,32], index: 0, kind: input, shape index: {}]   ;;  %s2051_s1 = inlined_call_operand.vmem [shape: f32[1,32], index: 1, kind: input, shape index: {}]   ;;  %s2052_s2 = inlined_call_operand.vmem [shape: f32[1,32], index: 2, kind: input, shape index: {}]   ;;  %s2053_s4 = inlined_call_operand.vmem [shape: f32[1,2], index: 4, kind: input, shape index: {}]   ;;  %s2054_s3 = inlined_call_operand.vmem [shape: bf16[32,2], index: 3, kind: input, shape index: {}]   ;;  %s2055_s5 = inlined_call_operand.vmem [shape: bf16[64,32], index: 5, kind: input, shape index: {}]   ;;  %s2056_s6 = inlined_call_operand.vmem [shape: f32[1,32], index: 6, kind: input, shape index: {}]   ;;  %s2057_s7 = inlined_call_operand.vmem [shape: f32[8,32], index: 7, kind: output, shape index: {}]  }
   0x1   :  { %v31_v0 = vld [vmem:[%s2050_s0 + $0x20] sm:$0x3f]  ;;  %v29_v1 = vld [vmem:[%s2050_s0 + $0x10] sm:$0x3f]  ;;  %v32_v6 = vld [vmem:[%s2050_s0 + $0x28] sm:$0x3f]  ;;  %1404 = vrcp.f32 %v1486_v16 }
   0x2   :  { %v27_v2 = vld [vmem:[%s2050_s0] sm:$0x3f]  ;;  %v50_v3 = vsel %vm37_vm0, %v31_v0, 0.0  ;;  %v44_v4 = vsel %vm37_vm0, %v29_v1, 0.0  ;;  %v30_v7 = vld [vmem:[%s2050_s0 + $0x18] sm:$0x3f] }
   0x3   :  { %v38_v5 = vsel %vm37_vm0, %v27_v2, 0.0  ;;  %51 = vadd.xlane.f32.xlu2 %v50_v3  ;;  %45 = vadd.xlane.f32.xlu1 %v44_v4  ;;  %v28_v8 = vld [vmem:[%s2050_s0 + $0x8] sm:$0x3f]  ;;  %v53_v9 = vsel %vm37_vm0, %v32_v6, 0.0  ;;  %v47_v10 = vsel %vm37_vm0, %v30_v7, 0.0 }
   0x4   :  { %39 = vadd.xlane.f32.xlu0 %v38_v5  ;;  %v41_v11 = vsel %vm37_vm0, %v28_v8, 0.0  ;;  %v34_v12 = vld [vmem:[%s2050_s0 + $0x38] sm:$0x3f]  ;;  %v33_v13 = vld [vmem:[%s2050_s0 + $0x30] sm:$0x3f] }
   0x5   :  { %v59_v14 = vsel %vm37_vm0, %v34_v12, 0.0  ;;  %v56_v15 = vsel %vm37_vm0, %v33_v13, 0.0 }
   0x7   :  { %v1405_v17 = vpop.eup %1404 }
   0x8   :  { %v63_v18 = vmul.f32 32.0, %v1405_v17  ;;  %vm67_vm1 = vweird.f32 %v1405_v17 }
   0xa   :  { %v64_v19 = vsub.f32 1.0, %v63_v18 }
   0xb   :  { %54 = vadd.xlane.f32.xlu2 %v53_v9  ;;  %48 = vadd.xlane.f32.xlu1 %v47_v10 }
   0xc   :  { %42 = vadd.xlane.f32.xlu0 %v41_v11  ;;  %v65_v20 = vmul.f32 %v1405_v17, %v64_v19 }
   0xe   :  { %v66_v21 = vadd.f32 %v1405_v17, %v65_v20 }
  0x10   :  { %v1562_v22 = vsel %vm67_vm1, %v1405_v17, %v66_v21 }
  0x13   :  { %60 = vadd.xlane.f32.xlu1 %v59_v14 }
  0x14   :  { %57 = vadd.xlane.f32.xlu0 %v56_v15 }
  0x76   :  { %v52_v23 = vpop.xlane.xlu2 %51  ;;  %v46_v24 = vpop.xlane.xlu1 %45 }
  0x77   :  { %v71_v25 = vmul.f32 %v1562_v22, %v46_v24  ;;  %v40_v26 = vpop.xlane.xlu0 %39  ;;  %v73_v39 = vmul.f32 %v1562_v22, %v52_v23 }
  0x78   :  { %v69_v27 = vmul.f32 %v1562_v22, %v40_v26 }
  0x79   :  { %v1566_v28 = vsub.f32 %v29_v1, %v71_v25  ;;  %v1590_v46 = vsub.f32 %v31_v0, %v73_v39  ;;  %v1645_v39 = vld [vmem:[%s2051_s1] ss:$0 sm:$0xff] }
  0x7a   :  { %v1568_v29 = vsub.f32 %v27_v2, %v69_v27 }
  0x7b   :  { %v87_v30 = vmul.f32 %v1566_v28, %v1566_v28  ;;  %v89_v55 = vmul.f32 %v1590_v46, %v1590_v46 }
  0x7c   :  { %v85_v31 = vmul.f32 %v1568_v29, %v1568_v29 }
  0x7d   :  { %v99_v32 = vsel %vm37_vm0, %v87_v30, 0.0  ;;  %v105_v58 = vsel %vm37_vm0, %v89_v55, 0.0  ;;  %v1381_v30 = vld [vmem:[%s2054_s3 + $0x8] sm:$0xff] }
  0x7e   :  { %v55_v33 = vpop.xlane.xlu2 %54  ;;  %100 = vadd.xlane.f32.xlu1 %v99_v32  ;;  %v49_v34 = vpop.xlane.xlu1 %48  ;;  %v93_v35 = vsel %vm37_vm0, %v85_v31, 0.0  ;;  %345 = vmatpush.bf16.msra.mxu0 %v1381_v30 }
  0x7f   :  { %v74_v36 = vmul.f32 %v1562_v22, %v55_v33  ;;  %v72_v37 = vmul.f32 %v1562_v22, %v49_v34  ;;  %94 = vadd.xlane.f32.xlu2 %v93_v35  ;;  %v43_v38 = vpop.xlane.xlu0 %42 }
  0x80   :  { %v70_v40 = vmul.f32 %v1562_v22, %v43_v38 }
  0x81   :  { %v1580_v41 = vsub.f32 %v32_v6, %v74_v36  ;;  %v1582_v42 = vsub.f32 %v30_v7, %v72_v37 }
  0x82   :  { %v1584_v43 = vsub.f32 %v28_v8, %v70_v40 }
  0x83   :  { %v90_v44 = vmul.f32 %v1580_v41, %v1580_v41  ;;  %v88_v45 = vmul.f32 %v1582_v42, %v1582_v42 }
  0x84   :  { %v86_v47 = vmul.f32 %v1584_v43, %v1584_v43 }
  0x85   :  { %v108_v48 = vsel %vm37_vm0, %v90_v44, 0.0  ;;  %v102_v49 = vsel %vm37_vm0, %v88_v45, 0.0 }
  0x86   :  { %109 = vadd.xlane.f32.xlu1 %v108_v48  ;;  %v96_v50 = vsel %vm37_vm0, %v86_v47, 0.0  ;;  %v61_v51 = vpop.xlane.xlu1 %60 }
  0x87   :  { %103 = vadd.xlane.f32.xlu2 %v102_v49  ;;  %97 = vadd.xlane.f32.xlu0 %v96_v50  ;;  %v58_v52 = vpop.xlane.xlu0 %57  ;;  %v76_v54 = vmul.f32 %v1562_v22, %v61_v51  ;;  %v1380_v49 = vld [vmem:[%s2054_s3] sm:$0xff] }
  0x88   :  { %v75_v53 = vmul.f32 %v1562_v22, %v58_v52  ;;  %346 = vmatpush.bf16.msra.mxu0 %v1380_v49 }
  0x89   :  { %v1603_v57 = vsub.f32 %v34_v12, %v76_v54 }
  0x8a   :  { %v1601_v56 = vsub.f32 %v33_v13, %v75_v53  ;;  %v1665_v53 = vld [vmem:[%s2052_s2] ss:$0 sm:$0xff] }
  0x8b   :  { %v92_v61 = vmul.f32 %v1603_v57, %v1603_v57 }
  0x8c   :  { %v91_v59 = vmul.f32 %v1601_v56, %v1601_v56 }
  0x8d   :  { %v114_v62 = vsel %vm37_vm0, %v92_v61, 0.0 }
  0x8e   :  { %v111_v60 = vsel %vm37_vm0, %v91_v59, 0.0  ;;  %vm977_vm0 = vcmask 1042432  }
  0x8f   :  { %106 = vadd.xlane.f32.xlu0 %v105_v58  ;;  %112 = vadd.xlane.f32.xlu2 %v111_v60 }
  0x97   :  { %115 = vadd.xlane.f32.xlu0 %v114_v62 }
  0xf1   :  { %v101_v63 = vpop.xlane.xlu1 %100 }
  0xf2   :  { %v119_v0 = vmul.f32 %v101_v63, %v1562_v22  ;;  %v95_v1 = vpop.xlane.xlu2 %94 }
  0xf3   :  { %v117_v2 = vmul.f32 %v95_v1, %v1562_v22 }
  0xf4   :  { %v127_v3 = vadd.f32 1e-05, %v119_v0 }
  0xf5   :  { %v125_v4 = vadd.f32 1e-05, %v117_v2 }
  0xf6   :  { %1406 = vrsqrt.f32 %v127_v3  ;;  %vm159_vm2 = vweird.f32 %v127_v3 }
  0xf7   :  { %1408 = vrsqrt.f32 %v125_v4  ;;  %vm139_vm5 = vweird.f32 %v125_v4 }
  0xf9   :  { %v110_v5 = vpop.xlane.xlu1 %109 }
  0xfa   :  { %v122_v6 = vmul.f32 %v110_v5, %v1562_v22  ;;  %v104_v7 = vpop.xlane.xlu2 %103  ;;  %v98_v8 = vpop.xlane.xlu0 %97 }
  0xfb   :  { %v120_v9 = vmul.f32 %v104_v7, %v1562_v22  ;;  %v118_v10 = vmul.f32 %v98_v8, %v1562_v22 }
  0xfc   :  { %v1407_v11 = vpop.eup %1406  ;;  %v1617_v12 = vadd.f32 1e-05, %v122_v6 }
  0xfd   :  { %v1409_v13 = vpop.eup %1408  ;;  %v154_v14 = vmul.f32 %v1407_v11, %v127_v3  ;;  %v1619_v15 = vadd.f32 1e-05, %v120_v9  ;;  %v1621_v16 = vadd.f32 1e-05, %v118_v10  ;;  %vm160_vm3 = vweird.f32 %v1407_v11 }
  0xfe   :  { %v134_v17 = vmul.f32 %v1409_v13, %v125_v4  ;;  %1410 = vrsqrt.f32 %v1617_v12  ;;  %vm140_vm4 = vweird.f32 %v1409_v13  ;;  %vm161_vm6 = vmor %vm159_vm2, %vm160_vm3  ;;  %vm189_vm7 = vweird.f32 %v1617_v12 }
  0xff   :  { %v155_v18 = vmul.f32 %v1407_v11, %v154_v14  ;;  %1412 = vrsqrt.f32 %v1619_v15  ;;  %vm141_vm8 = vmor %vm139_vm5, %vm140_vm4  ;;  %vm169_vm9 = vweird.f32 %v1619_v15  ;;  %vm149_vm15 = vweird.f32 %v1621_v16 }
 0x100   :  { %v135_v19 = vmul.f32 %v1409_v13, %v134_v17  ;;  %1414 = vrsqrt.f32 %v1621_v16 }
 0x101   :  { %v156_v20 = vmul.f32 0.5, %v155_v18 }
 0x102   :  { %v136_v21 = vmul.f32 0.5, %v135_v19  ;;  %v113_v23 = vpop.xlane.xlu2 %112  ;;  %v107_v24 = vpop.xlane.xlu0 %106 }
 0x103   :  { %v157_v25 = vsub.f32 1.5, %v156_v20  ;;  %v123_v26 = vmul.f32 %v113_v23, %v1562_v22  ;;  %v121_v27 = vmul.f32 %v107_v24, %v1562_v22 }
 0x104   :  { %v1631_v31 = vpop.eup %1410  ;;  %v137_v32 = vsub.f32 1.5, %v136_v21 }
 0x105   :  { %v1633_v33 = vpop.eup %1412  ;;  %v158_v34 = vmul.f32 %v1407_v11, %v157_v25  ;;  %v184_v35 = vmul.f32 %v1631_v31, %v1617_v12  ;;  %v1637_v36 = vadd.f32 1e-05, %v123_v26  ;;  %v1650_v44 = vadd.f32 1e-05, %v121_v27 }
 0x106   :  { %v1639_v37 = vpop.eup %1414  ;;  %v138_v38 = vmul.f32 %v1409_v13, %v137_v32  ;;  %v164_v40 = vmul.f32 %v1633_v33, %v1619_v15  ;;  %vm190_vm10 = vweird.f32 %v1631_v31  ;;  %vm170_vm11 = vweird.f32 %v1633_v33 }
 0x107   :  { %v162_v45 = vsel %vm161_vm6, %v1407_v11, %v158_v34  ;;  %v185_v47 = vmul.f32 %v1631_v31, %v184_v35  ;;  %v144_v48 = vmul.f32 %v1639_v37, %v1621_v16  ;;  %1416 = vrsqrt.f32 %v1637_v36  ;;  %vm1678_vm12 = vmor %vm189_vm7, %vm190_vm10 }
 0x108   :  { %v215_v50 = vmul.f32 %v162_v45, %v1566_v28  ;;  %v142_v51 = vsel %vm141_vm8, %v1409_v13, %v138_v38  ;;  %v165_v52 = vmul.f32 %v1633_v33, %v164_v40  ;;  %1418 = vrsqrt.f32 %v1650_v44  ;;  %vm1689_vm14 = vmor %vm169_vm9, %vm170_vm11 }
 0x109   :  { %v213_v54 = vmul.f32 %v142_v51, %v1568_v29  ;;  %v186_v55 = vmul.f32 0.5, %v185_v47  ;;  %v145_v58 = vmul.f32 %v1639_v37, %v144_v48  ;;  %vm150_vm13 = vweird.f32 %v1639_v37 }
 0x10a   :  { %v166_v59 = vmul.f32 0.5, %v165_v52  ;;  %v116_v28 = vpop.xlane.xlu0 %115  ;;  %v226_v60 = vmul.f32 %v1645_v39, %v215_v50  ;;  %vm199_vm1 = vweird.f32 %v1637_v36  ;;  %vm151_vm2 = vmor %vm149_vm15, %vm150_vm13  ;;  %vm179_vm6 = vweird.f32 %v1650_v44 }
 0x10b   :  { %v187_v61 = vsub.f32 1.5, %v186_v55  ;;  %v146_v62 = vmul.f32 0.5, %v145_v58  ;;  %v124_v63 = vmul.f32 %v116_v28, %v1562_v22  ;;  %v224_v29 = vmul.f32 %v1645_v39, %v213_v54 }
 0x10c   :  { %v167_v1 = vsub.f32 1.5, %v166_v59  ;;  %v1684_v2 = vadd.f32 %v1665_v53, %v226_v60  ;;  %vm329_vm11 = vcmask 261120   ;;  %vm973_vm13 = vcmask 48128  }
 0x10d   :  { %v188_v3 = vmul.f32 %v1631_v31, %v187_v61  ;;  %v147_v4 = vsub.f32 1.5, %v146_v62  ;;  %v1693_v5 = vadd.f32 1e-05, %v124_v63  ;;  %v235_v6 = vadd.f32 %v1665_v53, %v224_v29  ;;  %v1417_v7 = vpop.eup %1416 }
 0x10e   :  { %v168_v8 = vmul.f32 %v1633_v33, %v167_v1  ;;  %v255_v9 = vrot.slane %v1684_v2, 2  ;;  %283 = vst [vmem:[#allocation1 + $0x22] ss:$4 sm:$0xff] %v1684_v2  ;;  %v194_v12 = vmul.f32 %v1417_v7, %v1637_v36  ;;  %v1419_v13 = vpop.eup %1418  ;;  %v951_v16 = vpack.c.bf16 %v1684_v2, %v1684_v2 }
 0x10f   :  { %v192_v10 = vsel %vm1678_vm12, %v1631_v31, %v188_v3  ;;  %v148_v11 = vmul.f32 %v1639_v37, %v147_v4  ;;  %271 = vst [vmem:[#allocation1] ss:$4 sm:$0xff] %v235_v6  ;;  %1420 = vrsqrt.f32 %v1693_v5  ;;  %vm200_vm3 = vweird.f32 %v1417_v7 }
 0x110   :  { %v218_v14 = vmul.f32 %v192_v10, %v1580_v41  ;;  %v172_v15 = vsel %vm1689_vm14, %v1633_v33, %v168_v8  ;;  %285 = vst [vmem:[#allocation1 + $0x23] ss:$4 sm:$0xff] %v255_v9  ;;  %v195_v19 = vmul.f32 %v1417_v7, %v194_v12  ;;  %v174_v41 = vmul.f32 %v1419_v13, %v1650_v44  ;;  %vm1726_vm4 = vmor %vm199_vm1, %vm200_vm3 }
 0x111   :  { %v216_v17 = vmul.f32 %v172_v15, %v1582_v42  ;;  %v152_v18 = vsel %vm151_vm2, %v1639_v37, %v148_v11  ;;  %v251_v23 = vrot.slane %v235_v6, 2  ;;  %v252_v27 = vrot.slane %v235_v6, 4 }
 0x112   :  { %v229_v20 = vmul.f32 %v1645_v39, %v218_v14  ;;  %v214_v21 = vmul.f32 %v152_v18, %v1584_v43  ;;  %v196_v25 = vmul.f32 0.5, %v195_v19  ;;  %v175_v26 = vmul.f32 %v1419_v13, %v174_v41 }
 0x113   :  { %v227_v24 = vmul.f32 %v1645_v39, %v216_v17  ;;  %273 = vst [vmem:[#allocation1 + $0x1] ss:$4 sm:$0xff] %v251_v23  ;;  %v949_v30 = vpack.c.bf16 %v235_v6, %v235_v6  ;;  %v1049_v31 = vsel %vm977_vm0, %v951_v16, 0  ;;  %vm180_vm5 = vweird.f32 %v1419_v13 }
 0x114   :  { %v225_v42 = vmul.f32 %v1645_v39, %v214_v21  ;;  %v197_v32 = vsub.f32 1.5, %v196_v25  ;;  %v176_v33 = vmul.f32 0.5, %v175_v26  ;;  %275 = vst [vmem:[#allocation1 + $0x2] ss:$4 sm:$0xff] %v252_v27  ;;  %1058 = vmatpush.bf16.msra.mxu3 %v1049_v31  ;;  %v1734_v40 = vadd.f32 %v1665_v53, %v229_v20  ;;  %vm181_vm7 = vmor %vm179_vm6, %vm180_vm5 }
 0x115   :  { %v1421_v34 = vpop.eup %1420  ;;  %v979_v35 = vsel %vm977_vm0, %v949_v30, 0  ;;  %v238_v38 = vadd.f32 %v1665_v53, %v227_v24  ;;  %vm209_vm8 = vweird.f32 %v1693_v5  ;;  %v256_v3 = vrot.slane %v1684_v2, 4 }
 0x116   :  { %v236_v37 = vadd.f32 %v1665_v53, %v225_v42  ;;  %v198_v45 = vmul.f32 %v1417_v7, %v197_v32  ;;  %v177_v47 = vsub.f32 1.5, %v176_v33  ;;  %v204_v48 = vmul.f32 %v1421_v34, %v1693_v5  ;;  %988 = vmatpush.bf16.msra.mxu1 %v979_v35  ;;  %v1772_v42 = vld [vmem:[%s2053_s4] ss:$0 sm:$0xff] }
 0x117   :  { %v952_v59 = vpack.c.bf16 %v238_v38, %v238_v38  ;;  %v954_v28 = vpack.c.bf16 %v1734_v40, %v1734_v40  ;;  %vm210_vm9 = vweird.f32 %v1421_v34  ;;  %v257_v5 = vrot.slane %v238_v38, 2 }
 0x118   :  { %277 = vst [vmem:[#allocation1 + $0x3] ss:$4 sm:$0xff] %v236_v37  ;;  %v253_v36 = vrot.slane %v236_v37, 2  ;;  %v254_v49 = vrot.slane %v236_v37, 4  ;;  %v950_v50 = vpack.c.bf16 %v236_v37, %v236_v37  ;;  %v202_v51 = vsel %vm1726_vm4, %v1417_v7, %v198_v45  ;;  %vm211_vm10 = vmor %vm209_vm8, %vm210_vm9 }
 0x119   :  { %v178_v52 = vmul.f32 %v1419_v13, %v177_v47  ;;  %v205_v54 = vmul.f32 %v1421_v34, %v204_v48  ;;  %v219_v55 = vmul.f32 %v202_v51, %v1601_v56  ;;  %v1084_v56 = vsel %vm977_vm0, %v952_v59, 0 }
 0x11a   :  { %279 = vst [vmem:[#allocation1 + $0x20] ss:$4 sm:$0xff] %v253_v36  ;;  %v1014_v58 = vsel %vm977_vm0, %v950_v50, 0  ;;  %v1154_v63 = vsel %vm977_vm0, %v954_v28, 0  ;;  %1093 = vmatpush.bf16.msrb.mxu1 %v1084_v56  ;;  %v258_v8 = vrot.slane %v238_v38, 4  ;;  %v262_v21 = vrot.slane %v1734_v40, 4 }
 0x11b   :  { %v182_v60 = vsel %vm181_vm7, %v1419_v13, %v178_v52  ;;  %v206_v61 = vmul.f32 0.5, %v205_v54  ;;  %281 = vst [vmem:[#allocation1 + $0x21] ss:$4 sm:$0xff] %v254_v49  ;;  %1023 = vmatpush.bf16.msra.mxu2 %v1014_v58  ;;  %v230_v44 = vmul.f32 %v1645_v39, %v219_v55  ;;  %1163 = vmatpush.bf16.msrb.mxu3 %v1154_v63  ;;  %v1775_v31 = vrot.slane %v1772_v42, 2 }
 0x11c   :  { %v217_v62 = vmul.f32 %v182_v60, %v1590_v46  ;;  %v1778_v32 = vrot.slane %v1772_v42, 4  ;;  %vm506_vm12 = vcmask 13312   ;;  %vm1240_vm14 = vcmask 1047556  }
 0x11d   :  { %v207_v29 = vsub.f32 1.5, %v206_v61  ;;  %v241_v0 = vadd.f32 %v1665_v53, %v230_v44  ;;  %vm1322_vm15 = vcmask 523264  }
 0x11e   :  { %v228_v1 = vmul.f32 %v1645_v39, %v217_v62 }
 0x11f   :  { %v208_v22 = vmul.f32 %v1421_v34, %v207_v29  ;;  %v286_v4 = vld.sshfl [vmem:[#allocation1] sm:$0xff pattern:$0x73625140]  ;;  %v955_v6 = vpack.c.bf16 %v241_v0, %v241_v0  ;;  %v263_v18 = vrot.slane %v241_v0, 2  ;;  %v264_v23 = vrot.slane %v241_v0, 4 }
 0x120   :  { %288 = vst [vmem:[#allocation1] ss:$4 sm:$0xff] %v256_v3  ;;  %v239_v46 = vadd.f32 %v1665_v53, %v228_v1 }
 0x121   :  { %v212_v7 = vsel %vm211_vm10, %v1421_v34, %v208_v22  ;;  %289 = vst [vmem:[#allocation1 + $0x1] ss:$4 sm:$0xff] %v238_v38  ;;  %v1755_v14 = vsel %vm977_vm0, %v955_v6, 0 }
 0x122   :  { %v220_v9 = vmul.f32 %v212_v7, %v1603_v57  ;;  %v287_v10 = vld.sshfl [vmem:[#allocation1 + $0x20] sm:$0xff pattern:$0x73625140]  ;;  %290 = vst [vmem:[#allocation1 + $0x2] ss:$4 sm:$0xff] %v257_v5  ;;  %v259_v11 = vrot.slane %v239_v46, 2  ;;  %v953_v12 = vpack.c.bf16 %v239_v46, %v239_v46 }
 0x123   :  { %291 = vst [vmem:[#allocation1 + $0x3] ss:$4 sm:$0xff] %v258_v8  ;;  %v260_v13 = vrot.slane %v239_v46, 4  ;;  %v314_v2 = vpack.c.bf16 %v287_v10, %v286_v4 }
 0x124   :  { %v231_v15 = vmul.f32 %v1645_v39, %v220_v9  ;;  %292 = vst [vmem:[#allocation1 + $0x20] ss:$4 sm:$0xff] %v239_v46  ;;  %v1119_v16 = vsel %vm977_vm0, %v953_v12, 0  ;;  %v261_v39 = vrot.slane %v1734_v40, 2 }
 0x125   :  { %293 = vst [vmem:[#allocation1 + $0x21] ss:$4 sm:$0xff] %v259_v11  ;;  %1128 = vmatpush.bf16.msrb.mxu2 %v1119_v16  ;;  %1352 = vmatmul.msk.bf16.vlgmr.msra.gmra.mxu0 %vm329_vm11, %v314_v2 }
 0x126   :  { %v242_v57 = vadd.f32 %v1665_v53, %v231_v15  ;;  %294 = vst [vmem:[#allocation1 + $0x22] ss:$4 sm:$0xff] %v260_v13 }
 0x127   :  { %295 = vst [vmem:[#allocation1 + $0x23] ss:$4 sm:$0xff] %v1734_v40 }
 0x128   :  { %v956_v17 = vpack.c.bf16 %v242_v57, %v242_v57  ;;  %v266_v20 = vrot.slane %v242_v57, 4  ;;  %v265_v24 = vrot.slane %v242_v57, 2 }
 0x12a   :  { %v296_v19 = vld.sshfl [vmem:[#allocation1] sm:$0xff pattern:$0x73625140]  ;;  %v1763_v41 = vsel %vm977_vm0, %v956_v17, 0 }
 0x12b   :  { %300 = vst [vmem:[#allocation1 + $0x2] ss:$4 sm:$0xff] %v241_v0 }
 0x12c   :  { %301 = vst [vmem:[#allocation1 + $0x3] ss:$4 sm:$0xff] %v263_v18 }
 0x12d   :  { %298 = vst [vmem:[#allocation1] ss:$4 sm:$0xff] %v261_v39 }
 0x12e   :  { %v297_v53 = vld.sshfl [vmem:[#allocation1 + $0x20] sm:$0xff pattern:$0x73625140]  ;;  %299 = vst [vmem:[#allocation1 + $0x1] ss:$4 sm:$0xff] %v262_v21 }
 0x12f   :  { %305 = vst [vmem:[#allocation1 + $0x23] ss:$4 sm:$0xff] %v266_v20  ;;  %v315_v25 = vpack.c.bf16 %v297_v53, %v296_v19 }
 0x130   :  { %302 = vst [vmem:[#allocation1 + $0x20] ss:$4 sm:$0xff] %v264_v23 }
 0x131   :  { %303 = vst [vmem:[#allocation1 + $0x21] ss:$4 sm:$0xff] %v242_v57 }
 0x132   :  { %304 = vst [vmem:[#allocation1 + $0x22] ss:$4 sm:$0xff] %v265_v24 }
 0x135   :  { %1353 = vmatmul.msk.bf16.gmra.mxu0 %vm329_vm11, %v315_v25  ;;  %v306_v27 = vld.sshfl [vmem:[#allocation1] sm:$0xff pattern:$0x73625140] }
 0x139   :  { %v307_v26 = vld.sshfl [vmem:[#allocation1 + $0x20] sm:$0xff pattern:$0x73625140] }
 0x13a   :  { %v316_v30 = vpack.c.bf16 %v307_v26, %v306_v27 }
 0x145   :  { %1354 = vmatmul.msk.bf16.gmra.mxu0 %vm329_vm11, %v316_v30 }
 0x1a2   :  { %v348_v33 = vpop.f32.mrf.mxu0 }
 0x1a3   :  { %v369_v34 = vrot.slane %v348_v33, 2  ;;  %v370_v43 = vrot.slane %v348_v33, 4  ;;  %v371_v35 = vrot.slane %v348_v33, 6  ;;  %v1781_v37 = vadd.f32 %v1772_v42, %v348_v33 }
 0x1a5   :  { %v1784_v38 = vadd.f32 %v1775_v31, %v369_v34  ;;  %v1787_v40 = vadd.f32 %v1778_v32, %v370_v43  ;;  %v1790_v45 = vadd.f32 %v1772_v42, %v371_v35  ;;  %461 = vst [vmem:[#allocation1] ss:$4 sm:$0xff] %v1781_v37 }
 0x1a7   :  { %463 = vst [vmem:[#allocation1 + $0x1] ss:$4 sm:$0xff] %v1784_v38 }
 0x1a8   :  { %465 = vst [vmem:[#allocation1 + $0x2] ss:$4 sm:$0xff] %v1787_v40 }
 0x1a9   :  { %468 = vst [vmem:[#allocation1 + $0x20] ss:$4 sm:$0xff] %v1790_v45 }
 0x1aa   :  { %v350_v47 = vpop.f32.mrf.mxu0 }
 0x1ab   :  { %v372_v48 = vrot.slane %v350_v47, 2  ;;  %v373_v36 = vrot.slane %v350_v47, 4  ;;  %v374_v49 = vrot.slane %v350_v47, 6  ;;  %v1797_v50 = vadd.f32 %v1775_v31, %v350_v47 }
 0x1ad   :  { %v1800_v51 = vadd.f32 %v1778_v32, %v372_v48  ;;  %v1803_v52 = vadd.f32 %v1772_v42, %v373_v36  ;;  %v1806_v54 = vadd.f32 %v1775_v31, %v374_v49  ;;  %470 = vst [vmem:[#allocation1 + $0x21] ss:$4 sm:$0xff] %v1797_v50 }
 0x1af   :  { %v466_v55 = vld.sshfl [vmem:[#allocation1] sm:$0xff pattern:$0x73625140]  ;;  %472 = vst [vmem:[#allocation1 + $0x22] ss:$4 sm:$0xff] %v1800_v51 }
 0x1b0   :  { %v507_v58 = vsel %vm506_vm12, %v466_v55, -inf  ;;  %474 = vst [vmem:[#allocation1] ss:$4 sm:$0xff] %v1803_v52 }
 0x1b1   :  { %v508_v59 = vrot.slane %v507_v58, 4  ;;  %475 = vst [vmem:[#allocation1 + $0x1] ss:$4 sm:$0xff] %v1806_v54 }
 0x1b2   :  { %v353_v28 = vpop.f32.mrf.mxu0 }
 0x1b3   :  { %v509_v60 = vmax.f32 %v507_v58, %v508_v59  ;;  %v375_v61 = vrot.slane %v353_v28, 2  ;;  %v376_v44 = vrot.slane %v353_v28, 4  ;;  %v377_v62 = vrot.slane %v353_v28, 6 }
 0x1b4   :  { %v1814_v56 = vadd.f32 %v1778_v32, %v353_v28 }
 0x1b5   :  { %v510_v63 = vrot.slane %v509_v60, 2  ;;  %v1817_v29 = vadd.f32 %v1772_v42, %v375_v61  ;;  %v1820_v0 = vadd.f32 %v1775_v31, %v376_v44  ;;  %v1823_v1 = vadd.f32 %v1778_v32, %v377_v62 }
 0x1b6   :  { %v473_v3 = vld.sshfl [vmem:[#allocation1 + $0x20] sm:$0xff pattern:$0x73625140]  ;;  %476 = vst [vmem:[#allocation1 + $0x2] ss:$4 sm:$0xff] %v1814_v56 }
 0x1b7   :  { %v511_v22 = vmax.f32 %v509_v60, %v510_v63  ;;  %v514_v4 = vsel %vm506_vm12, %v473_v3, -inf  ;;  %478 = vst [vmem:[#allocation1 + $0x20] ss:$4 sm:$0xff] %v1817_v29 }
 0x1b8   :  { %v515_v5 = vrot.slane %v514_v4, 4  ;;  %479 = vst [vmem:[#allocation1 + $0x21] ss:$4 sm:$0xff] %v1820_v0 }
 0x1b9   :  { %v512_v46 = vrot.slane %v511_v22, 1  ;;  %480 = vst [vmem:[#allocation1 + $0x22] ss:$4 sm:$0xff] %v1823_v1 }
 0x1ba   :  { %v516_v6 = vmax.f32 %v514_v4, %v515_v5  ;;  %v355_v7 = vpop.f32.mrf.mxu0 }
 0x1bb   :  { %v378_v8 = vrot.slane %v355_v7, 2  ;;  %v379_v9 = vrot.slane %v355_v7, 4  ;;  %v380_v10 = vrot.slane %v355_v7, 6  ;;  %v1831_v12 = vadd.f32 %v1772_v42, %v355_v7 }
 0x1bc   :  { %v517_v11 = vrot.slane %v516_v6, 2  ;;  %v513_v13 = vmax.f32 %v511_v22, %v512_v46 }
 0x1bd   :  { %v477_v2 = vld.sshfl [vmem:[#allocation1] sm:$0xff pattern:$0x73625140]  ;;  %v1834_v15 = vadd.f32 %v1775_v31, %v378_v8  ;;  %v1838_v17 = vadd.f32 %v1778_v32, %v379_v9  ;;  %v1841_v18 = vadd.f32 %v1772_v42, %v380_v10 }
 0x1be   :  { %v518_v16 = vmax.f32 %v516_v6, %v517_v11  ;;  %v521_v57 = vsel %vm506_vm12, %v477_v2, -inf  ;;  %482 = vst [vmem:[#allocation1] ss:$4 sm:$0xff] %v1831_v12  ;;  %v571_v23 = vrot.slane %v513_v13, 2  ;;  %v572_v30 = vrot.slane %v513_v13, 4 }
 0x1bf   :  { %v522_v19 = vrot.slane %v521_v57, 4  ;;  %483 = vst [vmem:[#allocation1 + $0x1] ss:$4 sm:$0xff] %v1834_v15  ;;  %v603_v33 = vsub.f32 %v1781_v37, %v513_v13 }
 0x1c0   :  { %v519_v20 = vrot.slane %v518_v16, 1  ;;  %v481_v39 = vld.sshfl [vmem:[#allocation1 + $0x20] sm:$0xff pattern:$0x73625140]  ;;  %484 = vst [vmem:[#allocation1 + $0x2] ss:$4 sm:$0xff] %v1838_v17  ;;  %v604_v36 = vsub.f32 %v1784_v38, %v571_v23  ;;  %v605_v37 = vsub.f32 %v1787_v40, %v572_v30 }
 0x1c1   :  { %v523_v21 = vmax.f32 %v521_v57, %v522_v19  ;;  %486 = vst [vmem:[#allocation1 + $0x20] ss:$4 sm:$0xff] %v1841_v18  ;;  %v528_v24 = vsel %vm506_vm12, %v481_v39, -inf  ;;  %v627_v61 = vmul.f32 1.442695, %v603_v33 }
 0x1c2   :  { %v358_v53 = vpop.f32.mrf.mxu0  ;;  %v529_v26 = vrot.slane %v528_v24, 4  ;;  %v520_v34 = vmax.f32 %v518_v16, %v519_v20  ;;  %v629_v4 = vmul.f32 1.442695, %v604_v36  ;;  %v631_v10 = vmul.f32 1.442695, %v605_v37 }
 0x1c3   :  { %v524_v25 = vrot.slane %v523_v21, 2  ;;  %v381_v27 = vrot.slane %v358_v53, 2  ;;  %v382_v47 = vrot.slane %v358_v53, 4  ;;  %v383_v48 = vrot.slane %v358_v53, 6 }
 0x1c4   :  { %v530_v35 = vmax.f32 %v528_v24, %v529_v26  ;;  %v1851_v49 = vadd.f32 %v1775_v31, %v358_v53  ;;  %v573_v62 = vrot.slane %v520_v34, 2  ;;  %v574_v5 = vrot.slane %v520_v34, 4 }
 0x1c5   :  { %v525_v43 = vmax.f32 %v523_v21, %v524_v25  ;;  %v1854_v28 = vadd.f32 %v1778_v32, %v381_v27  ;;  %v1857_v60 = vadd.f32 %v1772_v42, %v382_v47  ;;  %v1862_v3 = vadd.f32 %v1775_v31, %v383_v48 }
 0x1c6   :  { %v531_v58 = vrot.slane %v530_v35, 2  ;;  %487 = vst [vmem:[#allocation1 + $0x21] ss:$4 sm:$0xff] %v1851_v49  ;;  %v606_v40 = vsub.f32 %v1790_v45, %v520_v34  ;;  %1422 = vpow2.f32 %v627_v61  ;;  %v607_v11 = vsub.f32 %v1797_v50, %v573_v62 }
 0x1c7   :  { %v526_v55 = vrot.slane %v525_v43, 1  ;;  %v485_v59 = vld.sshfl [vmem:[#allocation1] sm:$0xff pattern:$0x73625140]  ;;  %488 = vst [vmem:[#allocation1 + $0x22] ss:$4 sm:$0xff] %v1854_v28  ;;  %1424 = vpow2.f32 %v629_v4  ;;  %v608_v45 = vsub.f32 %v1800_v51, %v574_v5 }
 0x1c8   :  { %v535_v44 = vsel %vm506_vm12, %v485_v59, -inf  ;;  %v532_v63 = vmax.f32 %v530_v35, %v531_v58  ;;  %490 = vst [vmem:[#allocation1] ss:$4 sm:$0xff] %v1857_v60  ;;  %v633_v21 = vmul.f32 1.442695, %v606_v40  ;;  %1426 = vpow2.f32 %v631_v10 }
 0x1c9   :  { %v536_v38 = vrot.slane %v535_v44, 4  ;;  %v527_v46 = vmax.f32 %v525_v43, %v526_v55  ;;  %491 = vst [vmem:[#allocation1 + $0x1] ss:$4 sm:$0xff] %v1862_v3  ;;  %v635_v50 = vmul.f32 1.442695, %v607_v11 }
 0x1ca   :  { %v360_v22 = vpop.f32.mrf.mxu0  ;;  %v533_v6 = vrot.slane %v532_v63, 1  ;;  %v637_v30 = vmul.f32 1.442695, %v608_v45  ;;  %1428 = vpow2.f32 %v633_v21 }
 0x1cb   :  { %v537_v7 = vmax.f32 %v535_v44, %v536_v38  ;;  %v384_v8 = vrot.slane %v360_v22, 2  ;;  %v385_v9 = vrot.slane %v360_v22, 4  ;;  %v386_v2 = vrot.slane %v360_v22, 6 }
 0x1cc   :  { %v1871_v16 = vadd.f32 %v1778_v32, %v360_v22  ;;  %v534_v19 = vmax.f32 %v532_v63, %v533_v6  ;;  %v575_v20 = vrot.slane %v527_v46, 2  ;;  %v576_v39 = vrot.slane %v527_v46, 4  ;;  %v1887_v27 = vpop.eup %1422 }
 0x1cd   :  { %v538_v13 = vrot.slane %v537_v7, 2  ;;  %v1874_v57 = vadd.f32 %v1772_v42, %v384_v8  ;;  %v1878_v24 = vadd.f32 %v1775_v31, %v385_v9  ;;  %v609_v25 = vsub.f32 %v1803_v52, %v527_v46  ;;  %v1892_v52 = vpop.eup %1424 }
 0x1ce   :  { %492 = vst [vmem:[#allocation1 + $0x2] ss:$4 sm:$0xff] %v1871_v16  ;;  %v489_v53 = vld.sshfl [vmem:[#allocation1 + $0x20] sm:$0xff pattern:$0x73625140]  ;;  %v1884_v51 = vadd.f32 %v1778_v32, %v386_v2  ;;  %v577_v31 = vrot.slane %v534_v19, 2  ;;  %v610_v33 = vsub.f32 %v1806_v54, %v575_v20  ;;  %v611_v35 = vsub.f32 %v1814_v56, %v576_v39  ;;  %v1896_v58 = vpop.eup %1426 }
 0x1cf   :  { %v539_v23 = vmax.f32 %v537_v7, %v538_v13  ;;  %v542_v26 = vsel %vm506_vm12, %v489_v53, -inf  ;;  %494 = vst [vmem:[#allocation1 + $0x20] ss:$4 sm:$0xff] %v1874_v57  ;;  %v578_v43 = vrot.slane %v534_v19, 4  ;;  %1430 = vpow2.f32 %v635_v50 }
 0x1d0   :  { %v543_v34 = vrot.slane %v542_v26, 4  ;;  %495 = vst [vmem:[#allocation1 + $0x21] ss:$4 sm:$0xff] %v1878_v24  ;;  %v612_v48 = vsub.f32 %v1817_v29, %v534_v19  ;;  %v639_v36 = vmul.f32 1.442695, %v609_v25  ;;  %1432 = vpow2.f32 %v637_v30  ;;  %v1906_v5 = vpop.eup %1428 }
 0x1d1   :  { %v540_v42 = vrot.slane %v539_v23, 1  ;;  %496 = vst [vmem:[#allocation1 + $0x22] ss:$4 sm:$0xff] %v1884_v51  ;;  %v613_v54 = vsub.f32 %v1820_v0, %v577_v31  ;;  %v641_v56 = vmul.f32 1.442695, %v610_v33  ;;  %v614_v61 = vsub.f32 %v1823_v1, %v578_v43 }
 0x1d2   :  { %v544_v32 = vmax.f32 %v542_v26, %v543_v34  ;;  %v643_v44 = vmul.f32 1.442695, %v611_v35  ;;  %1434 = vpow2.f32 %v639_v36  ;;  %v645_v4 = vmul.f32 1.442695, %v612_v48 }
 0x1d3   :  { %v541_v47 = vmax.f32 %v539_v23, %v540_v42  ;;  %1436 = vpow2.f32 %v641_v56  ;;  %v647_v1 = vmul.f32 1.442695, %v613_v54 }
 0x1d4   :  { %v545_v59 = vrot.slane %v544_v32, 2  ;;  %1438 = vpow2.f32 %v643_v44 }
 0x1d5   :  { %v579_v55 = vrot.slane %v541_v47, 2  ;;  %v493_v37 = vld.sshfl [vmem:[#allocation1] sm:$0xff pattern:$0x73625140]  ;;  %v580_v62 = vrot.slane %v541_v47, 4  ;;  %v615_v29 = vsub.f32 %v1831_v12, %v541_v47  ;;  %v1908_v40 = vpop.eup %1430  ;;  %1440 = vpow2.f32 %v645_v4 }
 0x1d6   :  { %v549_v63 = vsel %vm506_vm12, %v493_v37, -inf  ;;  %699 = vst [vmem:[#allocation1] ss:$4 sm:$0xff] %v1887_v27  ;;  %v546_v38 = vmax.f32 %v544_v32, %v545_v59  ;;  %v649_v12 = vmul.f32 1.442695, %v614_v61  ;;  %v1911_v9 = vpop.eup %1432  ;;  %1442 = vpow2.f32 %v647_v1 }
 0x1d7   :  { %v550_v22 = vrot.slane %v549_v63, 4  ;;  %701 = vst [vmem:[#allocation1 + $0x1] ss:$4 sm:$0xff] %v1892_v52  ;;  %v616_v0 = vsub.f32 %v1834_v15, %v579_v55  ;;  %v617_v7 = vsub.f32 %v1838_v17, %v580_v62  ;;  %v651_v10 = vmul.f32 1.442695, %v615_v29 }
 0x1d8   :  { %703 = vst [vmem:[#allocation1 + $0x2] ss:$4 sm:$0xff] %v1896_v58  ;;  %v547_v46 = vrot.slane %v546_v38, 1  ;;  %v497_v8 = vld.sshfl [vmem:[#allocation1 + $0x20] sm:$0xff pattern:$0x73625140]  ;;  %v1918_v21 = vpop.eup %1434  ;;  %1444 = vpow2.f32 %v649_v12 }
 0x1d9   :  { %v551_v6 = vmax.f32 %v549_v63, %v550_v22  ;;  %v556_v13 = vsel %vm506_vm12, %v497_v8, -inf  ;;  %706 = vst [vmem:[#allocation1 + $0x20] ss:$4 sm:$0xff] %v1906_v5  ;;  %v653_v2 = vmul.f32 1.442695, %v616_v0  ;;  %v1920_v53 = vpop.eup %1436  ;;  %1446 = vpow2.f32 %v651_v10 }
 0x1da   :  { %v548_v11 = vmax.f32 %v546_v38, %v547_v46  ;;  %v557_v45 = vrot.slane %v556_v13, 4  ;;  %708 = vst [vmem:[#allocation1 + $0x21] ss:$4 sm:$0xff] %v1908_v40  ;;  %v655_v23 = vmul.f32 1.442695, %v617_v7  ;;  %v1924_v31 = vpop.eup %1438 }
 0x1db   :  { %v552_v15 = vrot.slane %v551_v6, 2  ;;  %710 = vst [vmem:[#allocation1 + $0x22] ss:$4 sm:$0xff] %v1911_v9  ;;  %1448 = vpow2.f32 %v653_v2  ;;  %v1929_v47 = vpop.eup %1440 }
 0x1dc   :  { %v581_v19 = vrot.slane %v548_v11, 2  ;;  %v582_v20 = vrot.slane %v548_v11, 4  ;;  %v618_v39 = vsub.f32 %v1841_v18, %v548_v11  ;;  %v558_v50 = vmax.f32 %v556_v13, %v557_v45  ;;  %v1933_v54 = vpop.eup %1442 }
 0x1dd   :  { %v553_v17 = vmax.f32 %v551_v6, %v552_v15  ;;  %1450 = vpow2.f32 %v655_v23 }
 0x1de   :  { %v619_v25 = vsub.f32 %v1851_v49, %v581_v19  ;;  %v620_v42 = vsub.f32 %v1854_v28, %v582_v20  ;;  %v657_v18 = vmul.f32 1.442695, %v618_v39  ;;  %v559_v33 = vrot.slane %v558_v50, 2  ;;  %v1935_v61 = vpop.eup %1444 }
 0x1df   :  { %v554_v26 = vrot.slane %v553_v17, 1  ;;  %v704_v30 = vld.sshfl [vmem:[#allocation1] sm:$0xff pattern:$0x73625140]  ;;  %v1941_v29 = vpop.eup %1446 }
 0x1e0   :  { %712 = vst [vmem:[#allocation1] ss:$4 sm:$0xff] %v1918_v21  ;;  %v744_v34 = vsel %vm506_vm12, %v704_v30, 0.0  ;;  %v659_v43 = vmul.f32 1.442695, %v619_v25  ;;  %v560_v49 = vmax.f32 %v558_v50, %v559_v33  ;;  %1452 = vpow2.f32 %v657_v18 }
 0x1e1   :  { %v555_v35 = vmax.f32 %v553_v17, %v554_v26  ;;  %713 = vst [vmem:[#allocation1 + $0x1] ss:$4 sm:$0xff] %v1920_v53  ;;  %v745_v28 = vrot.slane %v744_v34, 4  ;;  %v661_v32 = vmul.f32 1.442695, %v620_v42  ;;  %v1944_v0 = vpop.eup %1448 }
 0x1e2   :  { %714 = vst [vmem:[#allocation1 + $0x2] ss:$4 sm:$0xff] %v1924_v31  ;;  %v561_v56 = vrot.slane %v560_v49, 1  ;;  %v711_v59 = vld.sshfl [vmem:[#allocation1 + $0x20] sm:$0xff pattern:$0x73625140]  ;;  %1454 = vpow2.f32 %v659_v43 }
 0x1e3   :  { %v583_v48 = vrot.slane %v555_v35, 2  ;;  %v584_v36 = vrot.slane %v555_v35, 4  ;;  %v621_v55 = vsub.f32 %v1857_v60, %v555_v35  ;;  %v746_v37 = vadd.f32 %v745_v28, %v744_v34  ;;  %716 = vst [vmem:[#allocation1 + $0x20] ss:$4 sm:$0xff] %v1929_v47 }
 0x1e4   :  { %v751_v63 = vsel %vm506_vm12, %v711_v59, 0.0  ;;  %v562_v60 = vmax.f32 %v560_v49, %v561_v56  ;;  %717 = vst [vmem:[#allocation1 + $0x21] ss:$4 sm:$0xff] %v1933_v54  ;;  %1456 = vpow2.f32 %v661_v32 }
 0x1e5   :  { %v622_v44 = vsub.f32 %v1862_v3, %v583_v48  ;;  %v623_v62 = vsub.f32 %v1871_v16, %v584_v36  ;;  %v663_v38 = vmul.f32 1.442695, %v621_v55  ;;  %v747_v22 = vrot.slane %v746_v37, 2  ;;  %718 = vst [vmem:[#allocation1 + $0x22] ss:$4 sm:$0xff] %v1935_v61  ;;  %v1947_v3 = vpop.eup %1450 }
 0x1e6   :  { %v752_v4 = vrot.slane %v751_v63, 4  ;;  %v585_v16 = vrot.slane %v562_v60, 2  ;;  %v586_v6 = vrot.slane %v562_v60, 4  ;;  %v624_v12 = vsub.f32 %v1874_v57, %v562_v60  ;;  %v1950_v11 = vpop.eup %1452 }
 0x1e7   :  { %v665_v1 = vmul.f32 1.442695, %v622_v44  ;;  %v667_v46 = vmul.f32 1.442695, %v623_v62  ;;  %v748_v7 = vadd.f32 %v747_v22, %v746_v37  ;;  %1458 = vpow2.f32 %v663_v38 }
 0x1e8   :  { %v753_v10 = vadd.f32 %v752_v4, %v751_v63  ;;  %v625_v15 = vsub.f32 %v1878_v24, %v585_v16  ;;  %v626_v13 = vsub.f32 %v1884_v51, %v586_v6  ;;  %v669_v2 = vmul.f32 1.442695, %v624_v12  ;;  %v1955_v45 = vpop.eup %1454 }
 0x1e9   :  { %v715_v8 = vld.sshfl [vmem:[#allocation1] sm:$0xff pattern:$0x73625140]  ;;  %1460 = vpow2.f32 %v665_v1  ;;  %v749_v19 = vrot.slane %v748_v7, 1 }
 0x1ea   :  { %720 = vst [vmem:[#allocation1] ss:$4 sm:$0xff] %v1941_v29  ;;  %v754_v57 = vrot.slane %v753_v10, 2  ;;  %v758_v20 = vsel %vm506_vm12, %v715_v8, 0.0  ;;  %1462 = vpow2.f32 %v667_v46  ;;  %v1960_v39 = vpop.eup %1456  ;;  %v671_v24 = vmul.f32 1.442695, %v625_v15 }
 0x1eb   :  { %721 = vst [vmem:[#allocation1 + $0x1] ss:$4 sm:$0xff] %v1944_v0  ;;  %v750_v51 = vadd.f32 %v749_v19, %v748_v7  ;;  %v759_v23 = vrot.slane %v758_v20, 4  ;;  %v673_v50 = vmul.f32 1.442695, %v626_v13  ;;  %1464 = vpow2.f32 %v669_v2 }
 0x1ec   :  { %722 = vst [vmem:[#allocation1 + $0x2] ss:$4 sm:$0xff] %v1947_v3  ;;  %v755_v17 = vadd.f32 %v754_v57, %v753_v10  ;;  %v719_v25 = vld.sshfl [vmem:[#allocation1 + $0x20] sm:$0xff pattern:$0x73625140] }
 0x1ed   :  { %724 = vst [vmem:[#allocation1 + $0x20] ss:$4 sm:$0xff] %v1950_v11  ;;  %v760_v26 = vadd.f32 %v759_v23, %v758_v20  ;;  %v765_v30 = vsel %vm506_vm12, %v719_v25, 0.0  ;;  %v1964_v18 = vpop.eup %1458  ;;  %1466 = vrcp.f32 %v750_v51 }
 0x1ee   :  { %v756_v42 = vrot.slane %v755_v17, 1  ;;  %725 = vst [vmem:[#allocation1 + $0x21] ss:$4 sm:$0xff] %v1955_v45  ;;  %v766_v33 = vrot.slane %v765_v30, 4  ;;  %1468 = vpow2.f32 %v671_v24 }
 0x1ef   :  { %v1967_v34 = vpop.eup %1460  ;;  %726 = vst [vmem:[#allocation1 + $0x22] ss:$4 sm:$0xff] %v1960_v39  ;;  %v761_v35 = vrot.slane %v760_v26, 2  ;;  %1470 = vpow2.f32 %v673_v50 }
 0x1f0   :  { %v757_v43 = vadd.f32 %v756_v42, %v755_v17  ;;  %v1970_v49 = vpop.eup %1462  ;;  %v767_v28 = vadd.f32 %v766_v33, %v765_v30 }
 0x1f1   :  { %v762_v48 = vadd.f32 %v761_v35, %v760_v26  ;;  %v1974_v56 = vpop.eup %1464 }
 0x1f2   :  { %v768_v55 = vrot.slane %v767_v28, 2  ;;  %1472 = vrcp.f32 %v757_v43 }
 0x1f3   :  { %v723_v32 = vld.sshfl [vmem:[#allocation1] sm:$0xff pattern:$0x73625140]  ;;  %v763_v59 = vrot.slane %v762_v48, 1  ;;  %v1467_v44 = vpop.eup %1466 }
 0x1f4   :  { %728 = vst [vmem:[#allocation1] ss:$4 sm:$0xff] %v1964_v18  ;;  %v772_v36 = vsel %vm506_vm12, %v723_v32, 0.0  ;;  %v769_v62 = vadd.f32 %v768_v55, %v767_v28  ;;  %v1978_v63 = vpop.eup %1468  ;;  %v816_v46 = vrot.slane %v1467_v44, 2  ;;  %v817_v16 = vrot.slane %v1467_v44, 4 }
 0x1f5   :  { %729 = vst [vmem:[#allocation1 + $0x1] ss:$4 sm:$0xff] %v1967_v34  ;;  %v773_v37 = vrot.slane %v772_v36, 4  ;;  %v764_v60 = vadd.f32 %v763_v59, %v762_v48  ;;  %v1980_v38 = vpop.eup %1470  ;;  %v848_v15 = vmul.f32 %v1467_v44, %v1887_v27 }
 0x1f6   :  { %730 = vst [vmem:[#allocation1 + $0x2] ss:$4 sm:$0xff] %v1970_v49  ;;  %v727_v22 = vld.sshfl [vmem:[#allocation1 + $0x20] sm:$0xff pattern:$0x73625140]  ;;  %v770_v1 = vrot.slane %v769_v62, 1  ;;  %v849_v19 = vmul.f32 %v1892_v52, %v816_v46  ;;  %v850_v57 = vmul.f32 %v1896_v58, %v817_v16 }
 0x1f7   :  { %v774_v4 = vadd.f32 %v773_v37, %v772_v36  ;;  %732 = vst [vmem:[#allocation1 + $0x20] ss:$4 sm:$0xff] %v1974_v56  ;;  %v779_v6 = vsel %vm506_vm12, %v727_v22, 0.0  ;;  %1474 = vrcp.f32 %v764_v60 }
 0x1f8   :  { %733 = vst [vmem:[#allocation1 + $0x21] ss:$4 sm:$0xff] %v1978_v63  ;;  %v1473_v7 = vpop.eup %1472  ;;  %v771_v8 = vadd.f32 %v770_v1, %v769_v62  ;;  %v780_v10 = vrot.slane %v779_v6, 4 }
 0x1f9   :  { %v775_v12 = vrot.slane %v774_v4, 2  ;;  %734 = vst [vmem:[#allocation1 + $0x22] ss:$4 sm:$0xff] %v1980_v38  ;;  %v818_v51 = vrot.slane %v1473_v7, 2  ;;  %v819_v17 = vrot.slane %v1473_v7, 4  ;;  %v851_v30 = vmul.f32 %v1473_v7, %v1906_v5 }
 0x1fa   :  { %v781_v20 = vadd.f32 %v780_v10, %v779_v6  ;;  %1476 = vrcp.f32 %v771_v8 }
 0x1fb   :  { %v776_v13 = vadd.f32 %v775_v12, %v774_v4  ;;  %v852_v58 = vmul.f32 %v1908_v40, %v818_v51  ;;  %v853_v43 = vmul.f32 %v1911_v9, %v819_v17 }
 0x1fc   :  { %v782_v25 = vrot.slane %v781_v20, 2 }
 0x1fd   :  { %v731_v2 = vld.sshfl [vmem:[#allocation1] sm:$0xff pattern:$0x73625140]  ;;  %v777_v23 = vrot.slane %v776_v13, 1  ;;  %v1475_v42 = vpop.eup %1474 }
 0x1fe   :  { %v786_v24 = vsel %vm506_vm12, %v731_v2, 0.0  ;;  %896 = vst [vmem:[#allocation1] ss:$4 sm:$0xff] %v848_v15  ;;  %v783_v52 = vadd.f32 %v782_v25, %v781_v20  ;;  %v820_v32 = vrot.slane %v1475_v42, 2  ;;  %v821_v55 = vrot.slane %v1475_v42, 4 }
 0x1ff   :  { %v787_v50 = vrot.slane %v786_v24, 4  ;;  %898 = vst [vmem:[#allocation1 + $0x1] ss:$4 sm:$0xff] %v849_v19  ;;  %v778_v27 = vadd.f32 %v777_v23, %v776_v13  ;;  %v854_v62 = vmul.f32 %v1475_v42, %v1918_v21 }
 0x200   :  { %900 = vst [vmem:[#allocation1 + $0x2] ss:$4 sm:$0xff] %v850_v57  ;;  %v735_v33 = vld.sshfl [vmem:[#allocation1 + $0x20] sm:$0xff pattern:$0x73625140]  ;;  %v784_v48 = vrot.slane %v783_v52, 1  ;;  %v1477_v59 = vpop.eup %1476  ;;  %v855_v9 = vmul.f32 %v1920_v53, %v820_v32  ;;  %v856_v4 = vmul.f32 %v1924_v31, %v821_v55 }
 0x201   :  { %v788_v26 = vadd.f32 %v787_v50, %v786_v24  ;;  %v793_v28 = vsel %vm506_vm12, %v735_v33, 0.0  ;;  %903 = vst [vmem:[#allocation1 + $0x20] ss:$4 sm:$0xff] %v851_v30  ;;  %1478 = vrcp.f32 %v778_v27  ;;  %v822_v1 = vrot.slane %v1477_v59, 2 }
 0x202   :  { %v794_v36 = vrot.slane %v793_v28, 4  ;;  %905 = vst [vmem:[#allocation1 + $0x21] ss:$4 sm:$0xff] %v852_v58  ;;  %v785_v5 = vadd.f32 %v784_v48, %v783_v52  ;;  %v823_v16 = vrot.slane %v1477_v59, 4  ;;  %v857_v7 = vmul.f32 %v1477_v59, %v1929_v47 }
 0x203   :  { %v789_v35 = vrot.slane %v788_v26, 2  ;;  %907 = vst [vmem:[#allocation1 + $0x22] ss:$4 sm:$0xff] %v853_v43  ;;  %v858_v10 = vmul.f32 %v1933_v54, %v822_v1  ;;  %v1384_v1 = vld [vmem:[%s2055_s5 + $0x10] sm:$0xff] }
 0x204   :  { %v795_v44 = vadd.f32 %v794_v36, %v793_v28  ;;  %1480 = vrcp.f32 %v785_v5  ;;  %v859_v31 = vmul.f32 %v1935_v61, %v823_v16 }
 0x205   :  { %v790_v37 = vadd.f32 %v789_v35, %v788_v26 }
 0x206   :  { %v796_v22 = vrot.slane %v795_v44, 2 }
 0x207   :  { %v791_v40 = vrot.slane %v790_v37, 1  ;;  %v901_v60 = vld.sshfl [vmem:[#allocation1] sm:$0xff pattern:$0x73625140]  ;;  %v1479_v6 = vpop.eup %1478 }
 0x208   :  { %909 = vst [vmem:[#allocation1] ss:$4 sm:$0xff] %v854_v62  ;;  %v797_v12 = vadd.f32 %v796_v22, %v795_v44  ;;  %v941_v15 = vpack.c.bf16 %v901_v60, %v901_v60  ;;  %v824_v2 = vrot.slane %v1479_v6, 2  ;;  %v825_v57 = vrot.slane %v1479_v6, 4  ;;  %v1385_v22 = vld [vmem:[%s2055_s5 + $0x18] sm:$0xff] }
 0x209   :  { %v792_v46 = vadd.f32 %v791_v40, %v790_v37  ;;  %910 = vst [vmem:[#allocation1 + $0x1] ss:$4 sm:$0xff] %v855_v9  ;;  %v860_v20 = vmul.f32 %v1479_v6, %v1941_v29  ;;  %v1383_v6 = vld [vmem:[%s2055_s5 + $0x8] sm:$0xff] }
 0x20a   :  { %911 = vst [vmem:[#allocation1 + $0x2] ss:$4 sm:$0xff] %v856_v4  ;;  %v798_v8 = vrot.slane %v797_v12, 1  ;;  %v908_v21 = vld.sshfl [vmem:[#allocation1 + $0x20] sm:$0xff pattern:$0x73625140]  ;;  %v1481_v53 = vpop.eup %1480  ;;  %v861_v24 = vmul.f32 %v1944_v0, %v824_v2  ;;  %v862_v23 = vmul.f32 %v1947_v3, %v825_v57 }
 0x20b   :  { %1482 = vrcp.f32 %v792_v46  ;;  %v942_v13 = vpack.c.bf16 %v908_v21, %v908_v21  ;;  %913 = vst [vmem:[#allocation1 + $0x20] ss:$4 sm:$0xff] %v857_v7  ;;  %v826_v47 = vrot.slane %v1481_v53, 2  ;;  %v827_v54 = vrot.slane %v1481_v53, 4 }
 0x20c   :  { %v799_v19 = vadd.f32 %v798_v8, %v797_v12  ;;  %914 = vst [vmem:[#allocation1 + $0x21] ss:$4 sm:$0xff] %v858_v10  ;;  %v863_v25 = vmul.f32 %v1481_v53, %v1950_v11  ;;  %v1487_v7 = vmov 1983009808   ;;  %v1382_v10 = vld [vmem:[%s2055_s5] sm:$0xff]  ;;  %s1489_s5 = smov 32  }
 0x20d   :  { %1391 = vxpose.binary.xlu1.c.b16.start.end [1/2] (short) (narrow) %v941_v15, %v942_v13, 16  ;;  %915 = vst [vmem:[#allocation1 + $0x22] ss:$4 sm:$0xff] %v859_v31  ;;  %v864_v61 = vmul.f32 %v1955_v45, %v826_v47  ;;  %v865_v42 = vmul.f32 %v1960_v39, %v827_v54  ;;  %v1243_v8 = vunpack.c.l.s4 %v1487_v7  ;;  %v1488_v57 = vmov 1934713408  }
 0x20e   :  { %1484 = vrcp.f32 %v799_v19 }
 0x20f   :  { %v1244_v15 = vunpack.c.0.s8 %v1243_v8 }
 0x211   :  { %v912_v51 = vld.sshfl [vmem:[#allocation1] sm:$0xff pattern:$0x73625140]  ;;  %v1483_v17 = vpop.eup %1482 }
 0x212   :  { %917 = vst [vmem:[#allocation1] ss:$4 sm:$0xff] %v860_v20  ;;  %v828_v50 = vrot.slane %v1483_v17, 2  ;;  %v829_v29 = vrot.slane %v1483_v17, 4  ;;  %v866_v3 = vmul.f32 %v1483_v17, %v1964_v18  ;;  %v943_v58 = vpack.c.bf16 %v912_v51, %v912_v51 }
 0x213   :  { %918 = vst [vmem:[#allocation1 + $0x1] ss:$4 sm:$0xff] %v861_v24  ;;  %v1267_v20 = vunpack.c.l.s4 %v1488_v57 }
 0x214   :  { %919 = vst [vmem:[#allocation1 + $0x2] ss:$4 sm:$0xff] %v862_v23  ;;  %v916_v27 = vld.sshfl [vmem:[#allocation1 + $0x20] sm:$0xff pattern:$0x73625140]  ;;  %v1485_v26 = vpop.eup %1484  ;;  %v867_v0 = vmul.f32 %v1967_v34, %v828_v50  ;;  %v868_v52 = vmul.f32 %v1970_v49, %v829_v29 }
 0x215   :  { %921 = vst [vmem:[#allocation1 + $0x20] ss:$4 sm:$0xff] %v863_v25  ;;  %v830_v30 = vrot.slane %v1485_v26, 2  ;;  %v831_v33 = vrot.slane %v1485_v26, 4  ;;  %v869_v39 = vmul.f32 %v1485_v26, %v1974_v56  ;;  %v944_v49 = vpack.c.bf16 %v916_v27, %v916_v27 }
 0x216   :  { %922 = vst [vmem:[#allocation1 + $0x21] ss:$4 sm:$0xff] %v864_v61  ;;  %v1268_v23 = vunpack.c.0.s8 %v1267_v20 }
 0x217   :  { %923 = vst [vmem:[#allocation1 + $0x22] ss:$4 sm:$0xff] %v865_v42  ;;  %v870_v11 = vmul.f32 %v1978_v63, %v830_v30  ;;  %v871_v34 = vmul.f32 %v1980_v38, %v831_v33 }
 0x21b   :  { %v920_v45 = vld.sshfl [vmem:[#allocation1] sm:$0xff pattern:$0x73625140] }
 0x21c   :  { %v945_v43 = vpack.c.bf16 %v920_v45, %v920_v45  ;;  %925 = vst [vmem:[#allocation1] ss:$4 sm:$0xff] %v866_v3 }
 0x21d   :  { %926 = vst [vmem:[#allocation1 + $0x1] ss:$4 sm:$0xff] %v867_v0 }
 0x21e   :  { %1394 = vxpose.binary.xlu2.c.b16.start.end [1/2] (short) (narrow) %v943_v58, %v945_v43, 16  ;;  %927 = vst [vmem:[#allocation1 + $0x2] ss:$4 sm:$0xff] %v868_v52  ;;  %v924_v35 = vld.sshfl [vmem:[#allocation1 + $0x20] sm:$0xff pattern:$0x73625140] }
 0x21f   :  { %929 = vst [vmem:[#allocation1 + $0x20] ss:$4 sm:$0xff] %v869_v39  ;;  %v946_v32 = vpack.c.bf16 %v924_v35, %v924_v35 }
 0x220   :  { %930 = vst [vmem:[#allocation1 + $0x21] ss:$4 sm:$0xff] %v870_v11 }
 0x221   :  { %931 = vst [vmem:[#allocation1 + $0x22] ss:$4 sm:$0xff] %v871_v34 }
 0x225   :  { %v928_v48 = vld.sshfl [vmem:[#allocation1] sm:$0xff pattern:$0x73625140] }
 0x226   :  { %v947_v36 = vpack.c.bf16 %v928_v48, %v928_v48 }
 0x228   :  { %v932_v18 = vld.sshfl [vmem:[#allocation1 + $0x20] sm:$0xff pattern:$0x73625140] }
 0x229   :  { %v948_v28 = vpack.c.bf16 %v932_v18, %v932_v18 }
 0x22b   :  { %1397 = vxpose.binary.xlu0.c.b16.start.end [1/2] (short) (narrow) %v948_v28, %v944_v49, 16  ;;  %v1403_v49 = vld [vmem:[%s2056_s6] ss:$0 sm:$0xff] }
 0x22e   :  { %1134 = vxpose.xlu2.c.b16.start.end [1/1] (short) (narrow) %v946_v32, 16 }
 0x23b   :  { %1169 = vxpose.xlu0.c.b16.start.end [1/1] (short) (narrow) %v947_v36, 16 }
 0x2b9   :  { %v1392_v63 = vpop.trf.xlu1 }
 0x2ba   :  { %1356 = vmatmul.msk.bf16.vlgmr.msra.gmra.mxu2 %vm973_vm13, %v1392_v63 }
 0x2bb   :  { %1233 = vmatpush.bf16.msra.mxu2 %v1763_v41 }
 0x2bf   :  { %v1395_v56 = vpop.trf.xlu2 }
 0x2c1   :  { %v1393_v38 = vpop.trf.xlu1 }
 0x2c2   :  { %1355 = vmatmul.msk.bf16.vlgmr.msra.gmra.mxu1 %vm973_vm13, %v1393_v38 }
 0x2c3   :  { %1198 = vmatpush.bf16.msra.mxu1 %v1755_v14 }
 0x2c7   :  { %v1396_v55 = vpop.trf.xlu2 }
 0x2c8   :  { %1357 = vmatmul.msk.bf16.vlgmr.msra.gmra.mxu3 %vm973_vm13, %v1396_v55 }
 0x2c9   :  { %1330 = vmatpush.bf16.msra.mxu3 %v1385_v22 }
 0x2ca   :  { %1359 = vmatmul.msk.bf16.vlgmr.msrb.gmra.mxu2 %vm973_vm13, %v1395_v56 }
 0x2cd   :  { %1331 = vmatpush.bf16.msra.mxu3 %v1384_v1 }
 0x2cf   :  { %v1142_v59 = vpop.trf.xlu2 }
 0x2d1   :  { %1332 = vmatpush.bf16.msra.mxu3 %v1383_v6 }
 0x2d5   :  { %1333 = vmatpush.bf16.msra.mxu3 %v1382_v10 }
 0x2d7   :  { %v1398_v37 = vpop.trf.xlu0 }
 0x2d8   :  { %1360 = vmatmul.msk.bf16.vlgmr.msrb.gmra.mxu3 %vm973_vm13, %v1142_v59  ;;  %1358 = vmatmul.msk.bf16.vlgmr.msrb.gmra.mxu1 %vm973_vm13, %v1398_v37 }
 0x2df   :  { %v1399_v5 = vpop.trf.xlu0 }
 0x2e0   :  { %1362 = vmatmul.msk.bf16.vlgmr.msra.gmra.mxu2 %vm973_vm13, %v1399_v5 }
 0x2e7   :  { %v1177_v41 = vpop.trf.xlu0 }
 0x2e8   :  { %1361 = vmatmul.msk.bf16.vlgmr.msra.gmra.mxu1 %vm973_vm13, %v1177_v41 }
 0x33d   :  { %v1025_v44 = vpop.f32.mrf.mxu2 }
 0x33f   :  { %v990_v62 = vpop.f32.mrf.mxu1 }
 0x345   :  { %v1027_v14 = vpop.f32.mrf.mxu2 }
 0x347   :  { %v992_v40 = vpop.f32.mrf.mxu1 }
 0x34b   :  { %v1060_v60 = vpop.f32.mrf.mxu3 }
 0x34c   :  { %v1239_v13 = vrot.slane %v1060_v60, 4 }
 0x34d   :  { %v1130_v9 = vpop.f32.mrf.mxu2 }
 0x34e   :  { %v1241_v19 = vsel %vm1240_vm14, %v1239_v13, %v990_v62 }
 0x34f   :  { %v1245_v51 = vperm.slane %v1241_v19, %v1244_v15 }
 0x353   :  { %v1062_v4 = vpop.f32.mrf.mxu3 }
 0x355   :  { %v1095_v46 = vpop.f32.mrf.mxu1  ;;  %v1132_v16 = vpop.f32.mrf.mxu2 }
 0x356   :  { %v1246_v12 = vrot.slane %v1095_v46, 4 }
 0x358   :  { %v1247_v53 = vsel %vm1240_vm14, %v1246_v12, %v1025_v44 }
 0x359   :  { %v1251_v2 = vperm.slane %v1247_v53, %v1244_v15 }
 0x35b   :  { %v1165_v21 = vpop.f32.mrf.mxu3  ;;  %v1264_v47 = vrot.slane %v1251_v2, 4 }
 0x35d   :  { %v1097_v31 = vpop.f32.mrf.mxu1  ;;  %v1265_v50 = vsel %vm1240_vm14, %v1264_v47, %v1245_v51 }
 0x35e   :  { %v1269_v26 = vperm.slane %v1265_v50, %v1268_v23 }
 0x360   :  { %v1278_v45 = vrot.slane %v1269_v26, 4 }
 0x363   :  { %v1167_v24 = vpop.f32.mrf.mxu3  ;;  %v1235_v54 = vpop.f32.mrf.mxu2 }
 0x364   :  { %v1258_v17 = vrot.slane %v1235_v54, 4 }
 0x365   :  { %v1200_v61 = vpop.f32.mrf.mxu1 }
 0x366   :  { %v1259_v25 = vsel %vm1240_vm14, %v1258_v17, %v1165_v21  ;;  %v1252_v42 = vrot.slane %v1200_v61, 4 }
 0x367   :  { %v1263_v29 = vperm.slane %v1259_v25, %v1244_v15 }
 0x368   :  { %v1253_v27 = vsel %vm1240_vm14, %v1252_v42, %v1130_v9 }
 0x369   :  { %v1270_v0 = vrot.slane %v1263_v29, 4  ;;  %v1257_v30 = vperm.slane %v1253_v27, %v1244_v15 }
 0x36b   :  { %v1237_v3 = vpop.f32.mrf.mxu2  ;;  %v1271_v52 = vsel %vm1240_vm14, %v1270_v0, %v1257_v30 }
 0x36c   :  { %v1275_v33 = vperm.slane %v1271_v52, %v1268_v23 }
 0x36d   :  { %v1202_v58 = vpop.f32.mrf.mxu1 }
 0x36e   :  { %v1279_v43 = vsel %vm1240_vm14, %v1275_v33, %v1278_v45  ;;  %v1276_v11 = vrot.slane %v1275_v33, 4 }
 0x36f   :  { %1281 = vrot.lane.b32.xlu2 %v1279_v43, %s1489_s5 }
 0x370   :  { %v1277_v39 = vsel %vm1240_vm14, %v1276_v11, %v1269_v26 }
 0x3c9   :  { %v1282_v34 = vpop.permute.xlu2 %1281 }
 0x3ca   :  { %v1284_v35 = vsel %vm329_vm11, %v1277_v39, %v1282_v34 }
 0x3cb   :  { %v1293_v18 = vpack.c.bf16 %v1284_v35, %v1284_v35 }
 0x3cd   :  { %1379 = vmatmul.msk.bf16.vlgmr.msra.gmra.mxu3 %vm1322_vm15, %v1293_v18 }
 0x450   :  { %v1335_v28 = vpop.f32.mrf.mxu3 }
 0x451   :  { %v1336_v32 = vadd.f32 %v1403_v49, %v1335_v28 }
 0x453   :  { %1339 = vst.msk [vmem:[%s2057_s7] sm:$0xff] %vm329_vm11, %v1336_v32 }
 0x458   :  { %v1337_v48 = vpop.f32.mrf.mxu3 }

// kernel: hgt_decoder_forward.14
= control target key start
LH: loop header
LB: loop body
LE: loop exit
PB: predicated region body
PF: predicated region fallthrough
CT: control target
= control target key end

     0   :  { %vm80_vm0 = vcmask 261120   ;;  %vm165_vm1 = vcmask 130048   ;;  %vm185_vm2 = vcmask 79872   ;;  %vm203_vm3 = vcmask 1044480   ;;  %s385_s20 = smov 16   ;;  %s518_s5 = inlined_call_operand.vmem [shape: bf16[32,32], index: 5, kind: input, shape index: {}]   ;;  %s519_s1 = inlined_call_operand.vmem [shape: f32[10,32], index: 1, kind: input, shape index: {}]   ;;  %s520_s3 = inlined_call_operand.vmem [shape: bf16[32,32], index: 3, kind: input, shape index: {}]   ;;  %s521_s0 = inlined_call_operand.vmem [shape: f32[7,32], index: 0, kind: input, shape index: {}]   ;;  %s522_s6 = inlined_call_operand.vmem [shape: f32[1,32], index: 6, kind: input, shape index: {}]   ;;  %s523_s4 = inlined_call_operand.vmem [shape: f32[1,32], index: 4, kind: input, shape index: {}]   ;;  %s524_s7 = inlined_call_operand.vmem [shape: bf16[32,32], index: 7, kind: input, shape index: {}]   ;;  %s525_s2 = inlined_call_operand.vmem [shape: f32[10,32], index: 2, kind: input, shape index: {}]   ;;  %s526_s8 = inlined_call_operand.vmem [shape: f32[1,32], index: 8, kind: input, shape index: {}]   ;;  %s527_s9 = inlined_call_operand.vmem [shape: bf16[32,32], index: 9, kind: input, shape index: {}]   ;;  %s528_s10 = inlined_call_operand.vmem [shape: f32[1,32], index: 10, kind: input, shape index: {}]   ;;  %s529_s11 = inlined_call_operand.vmem [shape: f32[7,32], index: 11, kind: output, shape index: {}]  }
   0x1   :  { %v365_v0 = vld [vmem:[%s518_s5 + $0x8] sm:$0xff]  ;;  %v364_v1 = vld [vmem:[%s518_s5] sm:$0xff]  ;;  %vm199_vm4 = vcmask 80896   ;;  %vm316_vm5 = vcmask 260096  }
   0x2   :  { %v363_v2 = vld [vmem:[%s520_s3 + $0x8] sm:$0xff]  ;;  %122 = vmatpush.bf16.msra.mxu1 %v365_v0  ;;  %v40_v3 = vld [vmem:[%s519_s1] sm:$0xff] }
   0x3   :  { %v41_v4 = vld [vmem:[%s519_s1 + $0x8] sm:$0x3]  ;;  %90 = vmatpush.bf16.msra.mxu0 %v363_v2  ;;  %v362_v5 = vld [vmem:[%s520_s3] sm:$0xff] }
   0x4   :  { %v39_v6 = vld [vmem:[%s521_s0] sm:$0x7f]  ;;  %v97_v7 = vpack.c.bf16 %v41_v4, %v40_v3  ;;  %s384_s0 = smov 112   ;;  %v367_v26 = vld [vmem:[%s524_s7 + $0x8] sm:$0xff] }
   0x5   :  { %v64_v8 = vpack.c.bf16 %v39_v6, %v39_v6  ;;  %v372_v11 = vld [vmem:[%s522_s6] ss:$0 sm:$0xff]  ;;  %155 = vmatpush.bf16.msra.mxu2 %v367_v26  ;;  %v43_v29 = vld [vmem:[%s525_s2 + $0x8] sm:$0x3] }
   0x6   :  { %123 = vmatpush.bf16.msra.mxu1 %v364_v1  ;;  %v373_v14 = vld [vmem:[%s523_s4] ss:$0 sm:$0xff]  ;;  %v369_v62 = vld [vmem:[%s527_s9 + $0x8] sm:$0xff] }
   0x7   :  { %91 = vmatpush.bf16.msra.mxu0 %v362_v5  ;;  %v366_v27 = vld [vmem:[%s524_s7] sm:$0xff] }
   0x8   :  { %v42_v28 = vld [vmem:[%s525_s2] sm:$0xff] }
   0x9   :  { %339 = vmatmul.msk.bf16.vlgmr.msra.gmra.mxu1 %vm80_vm0, %v97_v7  ;;  %156 = vmatpush.bf16.msra.mxu2 %v366_v27  ;;  %v130_v30 = vpack.c.bf16 %v43_v29, %v42_v28  ;;  %v374_v36 = vld [vmem:[%s526_s8] ss:$0 sm:$0xff] }
   0xa   :  { %330 = vmatmul.msk.bf16.vlgmr.msra.gmra.mxu0 %vm80_vm0, %v64_v8  ;;  %v368_v3 = vld [vmem:[%s527_s9] sm:$0xff] }
   0xb   :  { %v375_v7 = vld [vmem:[%s528_s10] ss:$0 sm:$0xff] }
   0xc   :  { %348 = vmatmul.msk.bf16.vlgmr.msra.gmra.mxu2 %vm80_vm0, %v130_v30 }
  0x86   :  { %v125_v9 = vpop.f32.mrf.mxu1 }
  0x87   :  { %v93_v10 = vpop.f32.mrf.mxu0  ;;  %v126_v13 = vadd.f32 %v372_v11, %v125_v9 }
  0x88   :  { %v94_v18 = vadd.f32 %v373_v14, %v93_v10 }
  0x8a   :  { %v163_v20 = vpack.c.bf16 %v94_v18, %v94_v18 }
  0x8e   :  { %v127_v12 = vpop.f32.mrf.mxu1 }
  0x8f   :  { %v128_v15 = vadd.f32 %v372_v11, %v127_v12  ;;  %v95_v16 = vpop.f32.mrf.mxu0  ;;  %v158_v35 = vpop.f32.mrf.mxu2 }
  0x90   :  { %v159_v38 = vadd.f32 %v374_v36, %v158_v35 }
  0x91   :  { %v164_v17 = vpack.c.bf16 %v128_v15, %v126_v13 }
  0x93   :  { %224 = vrot.lane.b32.xlu0 %v164_v17, %s384_s0  ;;  %v170_v19 = vsel %vm165_vm1, %v164_v17, 0 }
  0x94   :  { %179 = vmatpush.bf16.xpose.msra.mxu3 %v170_v19 }
  0x97   :  { %v160_v40 = vpop.f32.mrf.mxu2 }
  0x98   :  { %v161_v41 = vadd.f32 %v374_v36, %v160_v40 }
  0x9a   :  { %v198_v43 = vpack.c.bf16 %v161_v41, %v159_v38 }
  0x9b   :  { %221 = vrot.lane.b32.xlu0 %v163_v20, %s384_s0  ;;  %349 = vmatmul.msk.bf16.vlgmr.msra.gmra.mxu3 %vm165_vm1, %v163_v20 }
  0x9c   :  { %v205_v44 = vsel %vm203_vm3, %v198_v43, 0  ;;  %309 = vmatpush.bf16.msrb.mxu3 %v369_v62 }
  0x9d   :  { %214 = vmatpush.bf16.msrb.mxu0 %v205_v44 }
  0xa0   :  { %310 = vmatpush.bf16.msrb.mxu3 %v368_v3 }
 0x105   :  { %v225_v21 = vpop.permute.xlu0 %224 }
 0x106   :  { %v230_v22 = vsel %vm165_vm1, %v225_v21, 0 }
 0x107   :  { %239 = vmatpush.bf16.xpose.msrb.mxu1 %v230_v22 }
 0x10d   :  { %v222_v23 = vpop.permute.xlu0 %221 }
 0x10e   :  { %351 = vmatmul.msk.bf16.vlgmr.msrb.gmra.mxu1 %vm165_vm1, %v222_v23 }
 0x11e   :  { %v181_v24 = vpop.f32.mrf.mxu3 }
 0x11f   :  { %v186_v34 = vsel %vm185_vm2, %v181_v24, -inf }
 0x126   :  { %v183_v25 = vpop.f32.mrf.mxu3 }
 0x18b   :  { %v241_v31 = vpop.f32.mrf.mxu1 }
 0x18c   :  { %v245_v32 = vsel %vm185_vm2, %v241_v31, -inf }
 0x18d   :  { %246 = vmax.xlane.f32.xlu1 %v245_v32 }
 0x193   :  { %v243_v33 = vpop.f32.mrf.mxu1 }
 0x195   :  { %187 = vmax.xlane.f32.xlu1 %v186_v34 }
 0x200   :  { %v247_v37 = vpop.xlane.xlu1 %246 }
 0x201   :  { %v248_v39 = vsub.f32 %v241_v31, %v247_v37 }
 0x203   :  { %v249_v42 = vmul.f32 1.442695, %v248_v39 }
 0x205   :  { %376 = vpow2.f32 %v249_v42 }
 0x208   :  { %v188_v45 = vpop.xlane.xlu1 %187 }
 0x209   :  { %v189_v46 = vsub.f32 %v181_v24, %v188_v45 }
 0x20b   :  { %v377_v47 = vpop.eup %376  ;;  %v190_v48 = vmul.f32 1.442695, %v189_v46 }
 0x20c   :  { %v251_v49 = vsel %vm185_vm2, %v377_v47, 0.0 }
 0x20d   :  { %378 = vpow2.f32 %v190_v48  ;;  %252 = vadd.xlane.f32.xlu2 %v251_v49 }
 0x213   :  { %v379_v50 = vpop.eup %378 }
 0x214   :  { %v192_v51 = vsel %vm185_vm2, %v379_v50, 0.0 }
 0x215   :  { %193 = vadd.xlane.f32.xlu0 %v192_v51 }
 0x225   :  { %258 = vrot.lane.b32.xlu2 %v198_v43, %s384_s0 }
 0x280   :  { %v253_v52 = vpop.xlane.xlu2 %252 }
 0x281   :  { %380 = vrcp.f32 %v253_v52 }
 0x287   :  { %v381_v53 = vpop.eup %380 }
 0x288   :  { %v255_v54 = vmul.f32 %v381_v53, %v377_v47  ;;  %v259_v55 = vpop.permute.xlu2 %258  ;;  %v194_v56 = vpop.xlane.xlu0 %193 }
 0x289   :  { %382 = vrcp.f32 %v194_v56  ;;  %v264_v57 = vsel %vm203_vm3, %v259_v55, 0 }
 0x28a   :  { %273 = vmatpush.bf16.msrb.mxu2 %v264_v57  ;;  %v256_v58 = vpack.c.bf16 %v255_v54, %v255_v54 }
 0x28d   :  { %352 = vmatmul.msk.bf16.vlgmr.msrb.gmra.mxu2 %vm199_vm4, %v256_v58 }
 0x28f   :  { %v383_v59 = vpop.eup %382 }
 0x290   :  { %v196_v60 = vmul.f32 %v383_v59, %v379_v50 }
 0x292   :  { %v197_v61 = vpack.c.bf16 %v196_v60, %v196_v60 }
 0x294   :  { %350 = vmatmul.msk.bf16.vlgmr.msrb.gmra.mxu0 %vm199_vm4, %v197_v61 }
 0x310   :  { %v275_v63 = vpop.f32.mrf.mxu2 }
 0x311   :  { %280 = vrot.lane.b32.xlu1 %v275_v63, %s385_s20  ;;  %v216_v0 = vpop.f32.mrf.mxu0 }
 0x318   :  { %v277_v1 = vpop.f32.mrf.mxu2 }
 0x319   :  { %v218_v2 = vpop.f32.mrf.mxu0 }
 0x383   :  { %v281_v4 = vpop.permute.xlu1 %280 }
 0x384   :  { %v283_v5 = vsel %vm165_vm1, %v216_v0, %v281_v4 }
 0x385   :  { %v284_v6 = vpack.c.bf16 %v283_v5, %v283_v5 }
 0x387   :  { %361 = vmatmul.msk.bf16.vlgmr.msrb.gmra.mxu3 %vm80_vm0, %v284_v6 }
 0x40a   :  { %v312_v8 = vpop.f32.mrf.mxu3 }
 0x40b   :  { %v313_v9 = vadd.f32 %v375_v7, %v312_v8 }
 0x40d   :  { %317 = vst.msk [vmem:[%s529_s11] sm:$0x7f] %vm316_vm5, %v313_v9 }
 0x412   :  { %v314_v10 = vpop.f32.mrf.mxu3 }

// kernel: hgt_decoder_forward.15
= control target key start
LH: loop header
LB: loop body
LE: loop exit
PB: predicated region body
PF: predicated region fallthrough
CT: control target
= control target key end

     0   :  { %s1057_s13 = smov 0   ;;  %s1140_s0 = inlined_call_operand.vmem [shape: f32[3,7,32], index: 0, kind: input, shape index: {}]   ;;  %s1141_s1 = inlined_call_operand.vmem [shape: f32[7,7], index: 1, kind: input, shape index: {}]   ;;  %s1142_s2 = inlined_call_operand.vmem [shape: bf16[3,32,32], index: 2, kind: input, shape index: {}]   ;;  %s1143_s3 = inlined_call_operand.vmem [shape: f32[3,1,32], index: 3, kind: input, shape index: {}]   ;;  %s1144_s4 = inlined_call_operand.vmem [shape: bf16[3,32,32], index: 4, kind: input, shape index: {}]   ;;  %s1145_s5 = inlined_call_operand.vmem [shape: f32[3,1,32], index: 5, kind: input, shape index: {}]   ;;  %s1146_s6 = inlined_call_operand.vmem [shape: bf16[3,32,32], index: 6, kind: input, shape index: {}]   ;;  %s1147_s7 = inlined_call_operand.vmem [shape: f32[3,1,32], index: 7, kind: input, shape index: {}]   ;;  %s1148_s8 = inlined_call_operand.vmem [shape: bf16[3,32,32], index: 8, kind: input, shape index: {}]   ;;  %s1149_s9 = inlined_call_operand.vmem [shape: f32[3,1,32], index: 9, kind: input, shape index: {}]   ;;  %s1150_s10 = inlined_call_operand.vmem [shape: f32[3,7,32], index: 10, kind: output, shape index: {}]  }
   0x1 LB: > { %s899_s14 = sadd.s32 4294967295, %s997_s13   ;;  %p903_p0 = scmp.ge.s32.totalorder %s997_s13, 1  ;;  %s997_s13 = sphi %s1057_s13, %s20_s13  }
   0x2   : > { %p383_p1 = scmp.lt.s32.totalorder %s997_s13, 4 }
   0x4   : > { %p384_p2 = pnand %p903_p0, %p383_p1 }
   0x5   : > { %p451_p3 = scmp.lt.s32.totalorder (!%p384_p2), %s899_s14, 2  ;;  %s999_s12 = smov (!%p384_p2), 112  }
   0x6   : > { %387 = sbr.rel (%p384_p2) target bundleno = 1052 (0x41c), region = 60 }
   0xb   : > { %s1152_s14 = smov (!%p451_p3, %s899_s14), 2  ;;  %vm530_vm0 = vcmask 261120   ;;  %vm605_vm1 = vcmask 130048   ;;  %v493_v24 = vld [vmem:[%s1141_s1] sm:$0x7f]  ;;  %vm625_vm2 = vcmask 55296  }
   0xc   : > { %s1068_s15 = sshll.u32 %s1152_s14, 4  ;;  %s904_s16 = sshll.u32 %s1152_s14, 3  ;;  %vm643_vm3 = vcmask 1042432   ;;  %vm644_vm4 = vcmask 1043456   ;;  %v1000_v38 = vmov 65535   ;;  %vm639_vm5 = vcmask 56320  }
   0xd   : > { %s459_s19 = scalar_lea.vmem %s1142_s2, %s1068_s15  ;;  %s467_s22 = scalar_lea.vmem %s1144_s4, %s1068_s15  ;;  %v645_v39 = vsel %vm643_vm3, 4294967295, %v1000_v38  ;;  %vm760_vm6 = vcmask 260096  }
   0xe   : > { %v961_v0 = vld [vmem:[%s459_s19 + $0x8] sm:$0xff]  ;;  %s454_s25 = scalar_lea.vmem %s1140_s0, %s904_s16  ;;  %v960_v2 = vld [vmem:[%s459_s19] sm:$0xff]  ;;  %s462_s28 = scalar_lea.vmem %s1143_s3, %s1152_s14  ;;  %v646_v40 = vsel %vm644_vm4, %v645_v39, 0 }
   0xf   : > { %v963_v1 = vld [vmem:[%s467_s22 + $0x8] sm:$0xff]  ;;  %540 = vmatpush.bf16.msra.mxu0 %v961_v0  ;;  %v962_v3 = vld [vmem:[%s467_s22] sm:$0xff]  ;;  %s470_s11 = scalar_lea.vmem %s1145_s5, %s1152_s14  ;;  %s475_s19 = scalar_lea.vmem %s1146_s6, %s1068_s15 }
  0x10   : > { %568 = vmatpush.bf16.msra.mxu1 %v963_v1  ;;  %v1088_v4 = vld [vmem:[%s454_s25] sm:$0x7f]  ;;  %v965_v22 = vld [vmem:[%s475_s19 + $0x8] sm:$0xff]  ;;  %s478_s24 = scalar_lea.vmem %s1147_s7, %s1152_s14  ;;  %s483_s27 = scalar_lea.vmem %s1148_s8, %s1068_s15 }
  0x11   : > { %v514_v5 = vpack.c.bf16 %v1088_v4, %v1088_v4  ;;  %v980_v6 = vld [vmem:[%s470_s11] ss:$0 sm:$0xff]  ;;  %596 = vmatpush.bf16.msra.mxu2 %v965_v22  ;;  %v967_v60 = vld [vmem:[%s483_s27 + $0x8] sm:$0xff]  ;;  %s486_s30 = scalar_lea.vmem %s1149_s9, %s1152_s14  ;;  %s1001_s11 = smov 16  }
  0x12   : > { %v979_v9 = vld [vmem:[%s462_s28] ss:$0 sm:$0xff]  ;;  %s490_s17 = scalar_lea.vmem %s1150_s10, %s904_s16 }
  0x13   : > { %541 = vmatpush.bf16.msra.mxu0 %v960_v2  ;;  %v964_v23 = vld [vmem:[%s475_s19] sm:$0xff] }
  0x14   : > { %569 = vmatpush.bf16.msra.mxu1 %v962_v3  ;;  %v981_v31 = vld [vmem:[%s478_s24] ss:$0 sm:$0xff] }
  0x15   : > { %597 = vmatpush.bf16.msra.mxu2 %v964_v23  ;;  %v966_v1 = vld [vmem:[%s483_s27] sm:$0xff] }
  0x16   : > { %922 = vmatmul.msk.bf16.vlgmr.msra.gmra.mxu0 %vm530_vm0, %v514_v5 }
  0x17   : > { %931 = vmatmul.msk.bf16.vlgmr.msra.gmra.mxu1 %vm530_vm0, %v514_v5 }
  0x18   : > { %940 = vmatmul.msk.bf16.vlgmr.msra.gmra.mxu2 %vm530_vm0, %v514_v5 }
  0x93   : > { %v543_v7 = vpop.f32.mrf.mxu0 }
  0x94   : > { %v571_v8 = vpop.f32.mrf.mxu1  ;;  %v544_v12 = vadd.f32 %v979_v9, %v543_v7 }
  0x95   : > { %v572_v10 = vadd.f32 %v980_v6, %v571_v8  ;;  %v982_v6 = vld [vmem:[%s486_s30] ss:$0 sm:$0xff] }
  0x96   : > { %v603_v16 = vpack.c.bf16 %v544_v12, %v544_v12 }
  0x97   : > { %v604_v11 = vpack.c.bf16 %v572_v10, %v572_v10 }
  0x99   : > { %667 = vrot.lane.b32.xlu0 %v604_v11, %s999_s12  ;;  %v610_v13 = vsel %vm605_vm1, %v604_v11, 0 }
  0x9a   : > { %619 = vmatpush.bf16.xpose.msra.mxu3 %v610_v13 }
  0x9b   : > { %v545_v14 = vpop.f32.mrf.mxu0  ;;  %v599_v34 = vpop.f32.mrf.mxu2 }
  0x9c   : > { %v573_v15 = vpop.f32.mrf.mxu1  ;;  %v600_v35 = vadd.f32 %v981_v31, %v599_v34 }
  0x9e   : > { %v638_v37 = vpack.c.bf16 %v600_v35, %v600_v35 }
  0xa0   : > { %v648_v42 = vand.u32 %v646_v40, %v638_v37 }
  0xa1   : > { %664 = vrot.lane.b32.xlu0 %v603_v16, %s999_s12  ;;  %941 = vmatmul.msk.bf16.vlgmr.msra.gmra.mxu3 %vm605_vm1, %v603_v16 }
  0xa2   : > { %657 = vmatpush.bf16.msrb.mxu0 %v648_v42  ;;  %752 = vmatpush.bf16.msrb.mxu3 %v967_v60 }
  0xa3   : > { %v601_v44 = vpop.f32.mrf.mxu2 }
  0xa6   : > { %753 = vmatpush.bf16.msrb.mxu3 %v966_v1 }
 0x10b   : > { %v668_v17 = vpop.permute.xlu0 %667 }
 0x10c   : > { %v673_v18 = vsel %vm605_vm1, %v668_v17, 0 }
 0x10d   : > { %682 = vmatpush.bf16.xpose.msrb.mxu1 %v673_v18 }
 0x113   : > { %v665_v19 = vpop.permute.xlu0 %664 }
 0x114   : > { %943 = vmatmul.msk.bf16.vlgmr.msrb.gmra.mxu1 %vm605_vm1, %v665_v19 }
 0x124   : > { %v621_v20 = vpop.f32.mrf.mxu3 }
 0x125   : > { %v622_v28 = vadd.f32 %v621_v20, %v493_v24 }
 0x127   : > { %v626_v30 = vsel %vm625_vm2, %v622_v28, -inf }
 0x12c   : > { %v623_v21 = vpop.f32.mrf.mxu3 }
 0x191   : > { %v684_v25 = vpop.f32.mrf.mxu1 }
 0x192   : > { %v685_v26 = vadd.f32 %v684_v25, %v493_v24 }
 0x194   : > { %v688_v27 = vsel %vm625_vm2, %v685_v26, -inf }
 0x195   : > { %689 = vmax.xlane.f32.xlu1 %v688_v27 }
 0x199   : > { %v686_v29 = vpop.f32.mrf.mxu1 }
 0x19d   : > { %627 = vmax.xlane.f32.xlu1 %v626_v30 }
 0x208   : > { %v690_v32 = vpop.xlane.xlu1 %689 }
 0x209   : > { %v691_v33 = vsub.f32 %v685_v26, %v690_v32 }
 0x20b   : > { %v692_v36 = vmul.f32 1.442695, %v691_v33 }
 0x20d   : > { %983 = vpow2.f32 %v692_v36 }
 0x210   : > { %v628_v41 = vpop.xlane.xlu1 %627 }
 0x211   : > { %v629_v43 = vsub.f32 %v622_v28, %v628_v41 }
 0x213   : > { %v984_v45 = vpop.eup %983  ;;  %v630_v46 = vmul.f32 1.442695, %v629_v43 }
 0x214   : > { %v694_v47 = vsel %vm625_vm2, %v984_v45, 0.0 }
 0x215   : > { %985 = vpow2.f32 %v630_v46  ;;  %695 = vadd.xlane.f32.xlu2 %v694_v47 }
 0x21b   : > { %v986_v48 = vpop.eup %985 }
 0x21c   : > { %v632_v49 = vsel %vm625_vm2, %v986_v48, 0.0 }
 0x21d   : > { %633 = vadd.xlane.f32.xlu0 %v632_v49 }
 0x22d   : > { %701 = vrot.lane.b32.xlu2 %v638_v37, %s999_s12 }
 0x288   : > { %v696_v50 = vpop.xlane.xlu2 %695 }
 0x289   : > { %987 = vrcp.f32 %v696_v50 }
 0x28f   : > { %v988_v51 = vpop.eup %987 }
 0x290   : > { %v698_v52 = vmul.f32 %v988_v51, %v984_v45  ;;  %v702_v53 = vpop.permute.xlu2 %701  ;;  %v634_v54 = vpop.xlane.xlu0 %633 }
 0x291   : > { %v707_v55 = vand.u32 %v702_v53, %v646_v40  ;;  %989 = vrcp.f32 %v634_v54 }
 0x292   : > { %v699_v56 = vpack.c.bf16 %v698_v52, %v698_v52 }
 0x293   : > { %716 = vmatpush.bf16.msrb.mxu2 %v707_v55 }
 0x296   : > { %944 = vmatmul.msk.bf16.vlgmr.msrb.gmra.mxu2 %vm639_vm5, %v699_v56 }
 0x297   : > { %v990_v57 = vpop.eup %989 }
 0x298   : > { %v636_v58 = vmul.f32 %v990_v57, %v986_v48 }
 0x29a   : > { %v637_v59 = vpack.c.bf16 %v636_v58, %v636_v58 }
 0x29c   : > { %942 = vmatmul.msk.bf16.vlgmr.msrb.gmra.mxu0 %vm639_vm5, %v637_v59 }
 0x319   : > { %v659_v61 = vpop.f32.mrf.mxu0  ;;  %v718_v62 = vpop.f32.mrf.mxu2 }
 0x31a   : > { %723 = vrot.lane.b32.xlu1 %v718_v62, %s1001_s11 }
 0x321   : > { %v661_v63 = vpop.f32.mrf.mxu0  ;;  %v720_v0 = vpop.f32.mrf.mxu2 }
 0x38c   : > { %v724_v2 = vpop.permute.xlu1 %723 }
 0x38d   : > { %v726_v3 = vsel %vm605_vm1, %v659_v61, %v724_v2 }
 0x38e   : > { %v727_v5 = vpack.c.bf16 %v726_v3, %v726_v3 }
 0x390   : > { %953 = vmatmul.msk.bf16.vlgmr.msrb.gmra.mxu3 %vm530_vm0, %v727_v5 }
 0x413   : > { %v755_v7 = vpop.f32.mrf.mxu3 }
 0x414   : > { %v756_v8 = vadd.f32 %v982_v6, %v755_v7 }
 0x416   : > { %v759_v9 = vadd.f32 %v756_v8, %v1088_v4 }
 0x418   : > { %761 = vst.msk [vmem:[%s490_s17] sm:$0x7f] %vm760_vm6, %v759_v9 }
 0x41b   : > { %v757_v10 = vpop.f32.mrf.mxu3 }
 0x41c PF: > { %s20_s13 = sadd.s32 1, %s997_s13  }
 0x41d   : > { %p17_p4 = scmp.ge.s32.totalorder %s20_s13, 5  }
 0x41f   :  { %19 = sbr.rel (!%p17_p4) target bundleno = 1 (0x1), region = 114 }

// kernel: hgt_decoder_forward.16
= control target key start
LH: loop header
LB: loop body
LE: loop exit
PB: predicated region body
PF: predicated region fallthrough
CT: control target
= control target key end

     0   :  { %s508_s0 = inlined_call_operand.vmem [shape: f32[7,32], index: 0, kind: input, shape index: {}]   ;;  %s509_s1 = inlined_call_operand.vmem [shape: f32[7,32], index: 1, kind: input, shape index: {}]   ;;  %s510_s2 = inlined_call_operand.vmem [shape: f32[7,32], index: 2, kind: input, shape index: {}]   ;;  %s511_s3 = inlined_call_operand.vmem [shape: f32[32,3], index: 3, kind: input, shape index: {}]   ;;  %s512_s4 = inlined_call_operand.vmem [shape: f32[32,3], index: 4, kind: input, shape index: {}]   ;;  %s513_s5 = inlined_call_operand.vmem [shape: f32[32,3], index: 5, kind: input, shape index: {}]   ;;  %s514_s6 = inlined_call_operand.vmem [shape: f32[1,3], index: 6, kind: input, shape index: {}]   ;;  %s515_s7 = inlined_call_operand.vmem [shape: bf16[24,32], index: 7, kind: input, shape index: {}]   ;;  %s516_s8 = inlined_call_operand.vmem [shape: f32[1,24], index: 8, kind: input, shape index: {}]   ;;  %s517_s9 = inlined_call_operand.vmem [shape: f32[1,24], index: 9, kind: input, shape index: {}]   ;;  %s518_s10 = inlined_call_operand.vmem [shape: f32[1,24], index: 10, kind: input, shape index: {}]   ;;  %s519_s11 = inlined_call_operand.hbm [shape: f32[7,24], index: 11, kind: output, shape index: {0}]   ;;  %s520_s12 = inlined_call_operand.vmem [shape: f32[7,24], index: 12, kind: output, shape index: {1}]  }
   0x1   :  { %v54_v0 = vld [vmem:[%s512_s4 + $0x10] sm:$0xff]  ;;  %v55_v1 = vld [vmem:[%s512_s4 + $0x18] sm:$0xff]  ;;  %v52_v9 = vld [vmem:[%s512_s4] sm:$0xff] }
   0x2   :  { %v47_v2 = vld [vmem:[%s511_s3 + $0x10] sm:$0xff]  ;;  %v58_v3 = vpack.c.bf16 %v55_v1, %v54_v0  ;;  %v48_v4 = vld [vmem:[%s511_s3 + $0x18] sm:$0xff]  ;;  %v53_v10 = vld [vmem:[%s512_s4 + $0x8] sm:$0xff] }
   0x3   :  { %v94_v5 = vld [vmem:[%s513_s5 + $0x10] sm:$0xff]  ;;  %v95_v6 = vld [vmem:[%s513_s5 + $0x18] sm:$0xff]  ;;  %v51_v7 = vpack.c.bf16 %v48_v4, %v47_v2  ;;  %v45_v11 = vld [vmem:[%s511_s3] sm:$0xff]  ;;  %v57_v12 = vpack.c.bf16 %v53_v10, %v52_v9 }
   0x4   :  { %v98_v8 = vpack.c.bf16 %v95_v6, %v94_v5  ;;  %69 = vmatpush.bf16.msra.mxu0 %v58_v3  ;;  %v46_v13 = vld [vmem:[%s511_s3 + $0x8] sm:$0xff]  ;;  %v92_v14 = vld [vmem:[%s513_s5] sm:$0xff] }
   0x5   :  { %v93_v15 = vld [vmem:[%s513_s5 + $0x8] sm:$0xff]  ;;  %85 = vmatpush.bf16.msra.mxu1 %v51_v7  ;;  %v50_v16 = vpack.c.bf16 %v46_v13, %v45_v11  ;;  %v453_v18 = vld [vmem:[%s509_s1] sm:$0x7f] }
   0x6   :  { %108 = vmatpush.bf16.msra.mxu2 %v98_v8  ;;  %v97_v17 = vpack.c.bf16 %v93_v15, %v92_v14  ;;  %v458_v19 = vld [vmem:[%s508_s0] sm:$0x7f] }
   0x7   :  { %v463_v20 = vld [vmem:[%s510_s2] sm:$0x7f] }
   0x8   :  { %18 = vsyncpa [#allocation3], 0  ;;  %v56_v21 = vpack.c.bf16 %v453_v18, %v453_v18  ;;  %70 = vmatpush.bf16.msra.mxu0 %v57_v12  ;;  %vm59_vm0 = vcmask 261120   ;;  %v49_v22 = vpack.c.bf16 %v458_v19, %v458_v19  ;;  %v96_v23 = vpack.c.bf16 %v463_v20, %v463_v20  ;;  %v302_v27 = vld [vmem:[%s514_s6] ss:$0 sm:$0xff]  ;;  %s348_s18 = smov [#allocation2]  }
   0x9   :  { %86 = vmatpush.bf16.msra.mxu1 %v50_v16  ;;  %vm121_vm1 = vcmask 22528   ;;  %v344_v40 = vmov 2   ;;  %v345_v41 = vmov 0   ;;  %v346_v54 = vmov 1   ;;  %v166_v55 = vld [vmem:[%s515_s7 + $0x8] sm:$0xf] }
   0xa   :  { %109 = vmatpush.bf16.msra.mxu2 %v97_v17  ;;  %300 = vset.pattern.permute.xlu2 %v344_v40  ;;  %v177_v56 = vunpack.c.l.b16 %v166_v55  ;;  %v292_v59 = vld [vmem:[%s515_s7] sm:$0xff]  ;;  %vm204_vm6 = vcmask 194560   ;;  %v347_v11 = vmov 24.0   ;;  %s268_s19 = sshll.u32 %s348_s18, 4  ;;  %s270_s22 = sshll.u32 %s519_s11, 4  ;;  %s269_s19 = int_to_ptr.vmem [resolvable:$true] %s268_s19  ;;  %s271_s22 = int_to_ptr.hbm [resolvable:$true] %s270_s22 }
   0xb   :  { %283 = vmatmul.msk.bf16.vlgmr.msra.gmra.mxu0 %vm59_vm0, %v56_v21  ;;  %298 = vset.pattern.permute.xlu1 %v345_v41  ;;  %v184_v60 = vsel %vm59_vm0, %v292_v59, 0  ;;  %v303_v6 = vld [vmem:[%s516_s8] ss:$0 sm:$0xff] }
   0xc   :  { %284 = vmatmul.msk.bf16.vlgmr.msra.gmra.mxu1 %vm59_vm0, %v49_v22  ;;  %301 = vset.pattern.permute.xlu0 %v344_v40  ;;  %v179_v57 = vpack.c.b16 %v177_v56, %v177_v56 }
   0xd   :  { %285 = vmatmul.msk.bf16.vlgmr.msra.gmra.mxu2 %vm59_vm0, %v96_v23 }
   0xe   :  { %v187_v58 = vsel %vm59_vm0, %v179_v57, 0 }
   0xf   :  { %195 = vmatpush.bf16.xpose.msra.mxu3 %v187_v58 }
  0x17   :  { %196 = vmatpush.bf16.xpose.msra.mxu3 %v184_v60 }
  0x88   :  { %v72_v24 = vpop.f32.mrf.mxu0 }
  0x89   :  { %v88_v25 = vpop.f32.mrf.mxu1 }
  0x8a   :  { %v89_v26 = vadd.f32 %v88_v25, %v72_v24 }
  0x90   :  { %v111_v28 = vpop.f32.mrf.mxu2  ;;  %v74_v30 = vpop.f32.mrf.mxu0 }
  0x91   :  { %v115_v29 = vadd.f32 %v111_v28, %v89_v26  ;;  %v90_v31 = vpop.f32.mrf.mxu1 }
  0x93   :  { %v120_v32 = vadd.f32 %v302_v27, %v115_v29 }
  0x95   :  { %v122_v33 = vsel %vm121_vm1, %v120_v32, -inf }
  0x96   :  { %123 = vmax.xlane.f32.xlu0 %v122_v33 }
  0x98   :  { %v113_v34 = vpop.f32.mrf.mxu2 }
 0x109   :  { %v124_v35 = vpop.xlane.xlu0 %123 }
 0x10a   :  { %v125_v36 = vsub.f32 %v120_v32, %v124_v35  ;;  %v304_v32 = vld [vmem:[%s517_s9] ss:$0 sm:$0xff] }
 0x10b   :  { %v305_v35 = vld [vmem:[%s518_s10] ss:$0 sm:$0xff] }
 0x10c   :  { %v126_v37 = vmul.f32 1.442695, %v125_v36 }
 0x10e   :  { %306 = vpow2.f32 %v126_v37 }
 0x114   :  { %v307_v38 = vpop.eup %306 }
 0x115   :  { %v128_v39 = vsel %vm121_vm1, %v307_v38, 0.0 }
 0x116   :  { %129 = vadd.xlane.f32.xlu0 %v128_v39 }
 0x189   :  { %v130_v42 = vpop.xlane.xlu0 %129 }
 0x18a   :  { %308 = vrcp.f32 %v130_v42  ;;  %v142_v46 = vand.u32 2147483648, %v130_v42  ;;  %v140_v48 = vand.u32 2147483647, %v130_v42  ;;  %vm136_vm3 = vweird.f32 %v130_v42 }
 0x18b   :  { %310 = vrcp.f32 %v347_v11 }
 0x18c   :  { %v143_v50 = vor.u32 1.1754944e-38, %v142_v46  ;;  %vm141_vm5 = vcmp.eq.f32.partialorder %v140_v48, 8.507059e+37 }
 0x190   :  { %v309_v43 = vpop.eup %308 }
 0x191   :  { %v132_v44 = vmul.f32 %v309_v43, %v130_v42  ;;  %vm137_vm2 = vweird.f32 %v309_v43  ;;  %v311_v12 = vpop.eup %310 }
 0x192   :  { %vm138_vm4 = vmor %vm136_vm3, %vm137_vm2  ;;  %v209_v13 = vmul.f32 24.0, %v311_v12  ;;  %vm213_vm7 = vweird.f32 %v311_v12 }
 0x193   :  { %v133_v45 = vsub.f32 1.0, %v132_v44 }
 0x194   :  { %v210_v14 = vsub.f32 1.0, %v209_v13 }
 0x195   :  { %v134_v47 = vmul.f32 %v309_v43, %v133_v45 }
 0x196   :  { %v211_v15 = vmul.f32 %v311_v12, %v210_v14 }
 0x197   :  { %v135_v49 = vadd.f32 %v309_v43, %v134_v47 }
 0x198   :  { %v212_v16 = vadd.f32 %v311_v12, %v211_v15 }
 0x199   :  { %v139_v51 = vsel %vm138_vm4, %v309_v43, %v135_v49 }
 0x19a   :  { %v144_v52 = vsel %vm141_vm5, %v143_v50, %v139_v51  ;;  %v214_v17 = vsel %vm213_vm7, %v311_v12, %v212_v16 }
 0x19b   :  { %v145_v53 = vmul.f32 %v307_v38, %v144_v52 }
 0x19d   :  { %159 = vperm.xlu2 %300, %v145_v53   ;;  %148 = vperm.xlu1 %298, %v145_v53  }
 0x1a5   :  { %299 = vset.pattern.permute.xlu1 %v346_v54 }
 0x1a6   :  { %153 = vperm.xlu1 %299, %v145_v53  }
 0x1f7   :  { %v160_v62 = vpop.permute.xlu2 %159 }
 0x1f8   :  { %v162_v2 = vmul.f32 %v160_v62, %v463_v20 }
 0x20f   :  { %v149_v61 = vpop.permute.xlu1 %148 }
 0x210   :  { %v151_v0 = vmul.f32 %v149_v61, %v458_v19 }
 0x218   :  { %v154_v63 = vpop.permute.xlu1 %153 }
 0x219   :  { %v156_v1 = vmul.f32 %v154_v63, %v453_v18 }
 0x21b   :  { %v157_v3 = vadd.f32 %v156_v1, %v151_v0 }
 0x21d   :  { %v163_v4 = vadd.f32 %v162_v2, %v157_v3 }
 0x21f   :  { %v167_v5 = vpack.c.bf16 %v163_v4, %v163_v4 }
 0x221   :  { %290 = vmatmul.msk.bf16.vlgmr.msra.gmra.mxu3 %vm59_vm0, %v167_v5 }
 0x2a4   :  { %v198_v7 = vpop.f32.mrf.mxu3 }
 0x2a5   :  { %v199_v8 = vadd.f32 %v303_v6, %v198_v7 }
 0x2a7   :  { %v205_v9 = vsel %vm204_vm6, %v199_v8, 0.0 }
 0x2a8   :  { %206 = vadd.xlane.f32.xlu2 %v205_v9 }
 0x2ac   :  { %v200_v10 = vpop.f32.mrf.mxu3 }
 0x31b   :  { %v207_v18 = vpop.xlane.xlu2 %206 }
 0x31c   :  { %v215_v19 = vmul.f32 %v214_v17, %v207_v18 }
 0x31e   :  { %v216_v20 = vsub.f32 %v199_v8, %v215_v19 }
 0x320   :  { %v217_v21 = vmul.f32 %v216_v20, %v216_v20 }
 0x322   :  { %v218_v22 = vsel %vm204_vm6, %v217_v21, 0.0 }
 0x323   :  { %219 = vadd.xlane.f32.xlu0 %v218_v22 }
 0x396   :  { %v220_v23 = vpop.xlane.xlu0 %219 }
 0x397   :  { %v221_v24 = vmul.f32 %v220_v23, %v214_v17 }
 0x399   :  { %v222_v25 = vadd.f32 1e-05, %v221_v24 }
 0x39b   :  { %312 = vrsqrt.f32 %v222_v25  ;;  %vm229_vm9 = vweird.f32 %v222_v25 }
 0x3a1   :  { %v313_v26 = vpop.eup %312 }
 0x3a2   :  { %v224_v27 = vmul.f32 %v313_v26, %v222_v25  ;;  %vm230_vm8 = vweird.f32 %v313_v26 }
 0x3a3   :  { %vm231_vm10 = vmor %vm229_vm9, %vm230_vm8 }
 0x3a4   :  { %v225_v28 = vmul.f32 %v313_v26, %v224_v27 }
 0x3a6   :  { %v226_v29 = vmul.f32 0.5, %v225_v28 }
 0x3a8   :  { %v227_v30 = vsub.f32 1.5, %v226_v29 }
 0x3aa   :  { %v228_v31 = vmul.f32 %v313_v26, %v227_v30 }
 0x3ac   :  { %v232_v33 = vsel %vm231_vm10, %v313_v26, %v228_v31 }
 0x3ad   :  { %v233_v34 = vmul.f32 %v232_v33, %v216_v20 }
 0x3af   :  { %v237_v36 = vmul.f32 %v304_v32, %v233_v34 }
 0x3b1   :  { %v241_v37 = vadd.f32 %v305_v35, %v237_v36 }
 0x3b3   :  { %242 = vst.msk [vmem:[#allocation2] sm:$0x7f] %vm204_vm6, %v241_v37  ;;  %v291_v38 = vmul.f32 -1.442695, %v241_v37 }
 0x3b4   :  { %273 = dma.vmem_to_hbm [thread:$0]  %s269_s19, 128, %s271_s22, [#allocation3]  }
 0x3b5   :  { %314 = vpow2.f32 %v291_v38 }
 0x3bb   :  { %v315_v39 = vpop.eup %314 }
 0x3bc   :  { %v246_v40 = vadd.f32 1.0, %v315_v39 }
 0x3be   :  { %316 = vrcp.f32 %v246_v40  ;;  %v258_v44 = vand.u32 2147483648, %v246_v40  ;;  %v256_v46 = vand.u32 2147483647, %v246_v40  ;;  %vm252_vm12 = vweird.f32 %v246_v40 }
 0x3c0   :  { %v259_v48 = vor.u32 1.1754944e-38, %v258_v44  ;;  %vm257_vm14 = vcmp.eq.f32.partialorder %v256_v46, 8.507059e+37 }
 0x3c4   :  { %v317_v41 = vpop.eup %316 }
 0x3c5   :  { %v248_v42 = vmul.f32 %v317_v41, %v246_v40  ;;  %vm253_vm11 = vweird.f32 %v317_v41 }
 0x3c6   :  { %vm254_vm13 = vmor %vm252_vm12, %vm253_vm11 }
 0x3c7   :  { %v249_v43 = vsub.f32 1.0, %v248_v42 }
 0x3c9   :  { %v250_v45 = vmul.f32 %v317_v41, %v249_v43 }
 0x3cb   :  { %v251_v47 = vadd.f32 %v317_v41, %v250_v45 }
 0x3cd   :  { %v255_v49 = vsel %vm254_vm13, %v317_v41, %v251_v47 }
 0x3ce   :  { %v260_v50 = vsel %vm257_vm14, %v259_v48, %v255_v49 }
 0x3cf   :  { %262 = vst.msk [vmem:[%s520_s12] sm:$0x7f] %vm204_vm6, %v260_v50 }
 0x3d0   :  { %342 = dma.done.wait [#allocation3], 128  }
 0x3d1   :  { %343 = vsyncadd [#allocation3], 4294967168 }
 0x3d2   :  { %282 = vsyncpa [#allocation3], 1 }

// kernel: hgt_decoder_forward.11
= control target key start
LH: loop header
LB: loop body
LE: loop exit
PB: predicated region body
PF: predicated region fallthrough
CT: control target
= control target key end

     0   :  { %vm37_vm0 = vcmask 260096   ;;  %v2183_v14 = vmov 32.0   ;;  %s3110_s0 = inlined_call_operand.vmem [shape: f32[8,7,32], index: 0, kind: input, shape index: {}]   ;;  %s3111_s1 = inlined_call_operand.vmem [shape: f32[1,32], index: 1, kind: input, shape index: {}]   ;;  %s3112_s2 = inlined_call_operand.vmem [shape: f32[1,32], index: 2, kind: input, shape index: {}]   ;;  %s3113_s3 = inlined_call_operand.vmem [shape: bf16[32,2], index: 3, kind: input, shape index: {}]   ;;  %s3114_s4 = inlined_call_operand.vmem [shape: f32[1,2], index: 4, kind: input, shape index: {}]   ;;  %s3115_s5 = inlined_call_operand.vmem [shape: bf16[64,32], index: 5, kind: input, shape index: {}]   ;;  %s3116_s6 = inlined_call_operand.vmem [shape: f32[1,32], index: 6, kind: input, shape index: {}]   ;;  %s3117_s7 = inlined_call_operand.vmem [shape: f32[8,32], index: 7, kind: output, shape index: {}]  }
   0x1   :  { %v29_v0 = vld [vmem:[%s3110_s0 + $0x10] sm:$0x7f]  ;;  %v27_v1 = vld [vmem:[%s3110_s0] sm:$0x7f]  ;;  %v28_v6 = vld [vmem:[%s3110_s0 + $0x8] sm:$0x7f]  ;;  %2037 = vrcp.f32 %v2183_v14 }
   0x2   :  { %v31_v2 = vld [vmem:[%s3110_s0 + $0x20] sm:$0x7f]  ;;  %v44_v3 = vsel %vm37_vm0, %v29_v0, 0.0  ;;  %v38_v4 = vsel %vm37_vm0, %v27_v1, 0.0  ;;  %v30_v7 = vld [vmem:[%s3110_s0 + $0x18] sm:$0x7f] }
   0x3   :  { %v50_v5 = vsel %vm37_vm0, %v31_v2, 0.0  ;;  %45 = vadd.xlane.f32.xlu1 %v44_v3  ;;  %39 = vadd.xlane.f32.xlu0 %v38_v4  ;;  %v32_v8 = vld [vmem:[%s3110_s0 + $0x28] sm:$0x7f]  ;;  %v41_v9 = vsel %vm37_vm0, %v28_v6, 0.0  ;;  %v47_v10 = vsel %vm37_vm0, %v30_v7, 0.0 }
   0x4   :  { %51 = vadd.xlane.f32.xlu2 %v50_v5  ;;  %v53_v11 = vsel %vm37_vm0, %v32_v8, 0.0  ;;  %v33_v12 = vld [vmem:[%s3110_s0 + $0x30] sm:$0x7f]  ;;  %v34_v41 = vld [vmem:[%s3110_s0 + $0x38] sm:$0x7f] }
   0x5   :  { %v56_v13 = vsel %vm37_vm0, %v33_v12, 0.0  ;;  %v59_v45 = vsel %vm37_vm0, %v34_v41, 0.0 }
   0x7   :  { %v2038_v15 = vpop.eup %2037 }
   0x8   :  { %v63_v16 = vmul.f32 32.0, %v2038_v15  ;;  %vm67_vm1 = vweird.f32 %v2038_v15 }
   0xa   :  { %v64_v17 = vsub.f32 1.0, %v63_v16 }
   0xb   :  { %42 = vadd.xlane.f32.xlu0 %v41_v9  ;;  %48 = vadd.xlane.f32.xlu1 %v47_v10 }
   0xc   :  { %54 = vadd.xlane.f32.xlu2 %v53_v11  ;;  %v65_v18 = vmul.f32 %v2038_v15, %v64_v17 }
   0xe   :  { %v66_v19 = vadd.f32 %v2038_v15, %v65_v18 }
  0x10   :  { %v2256_v20 = vsel %vm67_vm1, %v2038_v15, %v66_v19 }
  0x13   :  { %57 = vadd.xlane.f32.xlu0 %v56_v13 }
  0x76   :  { %v46_v21 = vpop.xlane.xlu1 %45  ;;  %v40_v22 = vpop.xlane.xlu0 %39 }
  0x77   :  { %v71_v23 = vmul.f32 %v2256_v20, %v46_v21  ;;  %v69_v24 = vmul.f32 %v2256_v20, %v40_v22  ;;  %v52_v25 = vpop.xlane.xlu2 %51 }
  0x78   :  { %v73_v26 = vmul.f32 %v2256_v20, %v52_v25 }
  0x79   :  { %v2261_v27 = vsub.f32 %v29_v0, %v71_v23  ;;  %v2263_v28 = vsub.f32 %v27_v1, %v69_v24 }
  0x7a   :  { %v2265_v29 = vsub.f32 %v31_v2, %v73_v26 }
  0x7b   :  { %v87_v30 = vmul.f32 %v2261_v27, %v2261_v27  ;;  %v85_v31 = vmul.f32 %v2263_v28, %v2263_v28 }
  0x7c   :  { %v89_v38 = vmul.f32 %v2265_v29, %v2265_v29 }
  0x7d   :  { %v99_v32 = vsel %vm37_vm0, %v87_v30, 0.0  ;;  %v93_v33 = vsel %vm37_vm0, %v85_v31, 0.0 }
  0x7e   :  { %100 = vadd.xlane.f32.xlu0 %v99_v32  ;;  %94 = vadd.xlane.f32.xlu1 %v93_v33  ;;  %v43_v34 = vpop.xlane.xlu0 %42  ;;  %v49_v35 = vpop.xlane.xlu1 %48  ;;  %v105_v44 = vsel %vm37_vm0, %v89_v38, 0.0 }
  0x7f   :  { %v70_v36 = vmul.f32 %v2256_v20, %v43_v34  ;;  %v55_v37 = vpop.xlane.xlu2 %54  ;;  %v72_v40 = vmul.f32 %v2256_v20, %v49_v35  ;;  %v2327_v35 = vld [vmem:[%s3111_s1] ss:$0 sm:$0xff] }
  0x80   :  { %v74_v39 = vmul.f32 %v2256_v20, %v55_v37 }
  0x81   :  { %v2281_v42 = vsub.f32 %v28_v6, %v70_v36  ;;  %v2289_v47 = vsub.f32 %v30_v7, %v72_v40 }
  0x82   :  { %v2283_v43 = vsub.f32 %v32_v8, %v74_v39 }
  0x83   :  { %v86_v46 = vmul.f32 %v2281_v42, %v2281_v42  ;;  %v88_v51 = vmul.f32 %v2289_v47, %v2289_v47 }
  0x84   :  { %v90_v50 = vmul.f32 %v2283_v43, %v2283_v43 }
  0x85   :  { %v96_v48 = vsel %vm37_vm0, %v86_v46, 0.0  ;;  %v102_v54 = vsel %vm37_vm0, %v88_v51, 0.0 }
  0x86   :  { %106 = vadd.xlane.f32.xlu0 %v105_v44  ;;  %60 = vadd.xlane.f32.xlu1 %v59_v45  ;;  %v58_v49 = vpop.xlane.xlu0 %57  ;;  %v108_v53 = vsel %vm37_vm0, %v90_v50, 0.0 }
  0x87   :  { %97 = vadd.xlane.f32.xlu2 %v96_v48  ;;  %v75_v52 = vmul.f32 %v2256_v20, %v58_v49 }
  0x89   :  { %v2299_v55 = vsub.f32 %v33_v12, %v75_v52 }
  0x8b   :  { %v91_v56 = vmul.f32 %v2299_v55, %v2299_v55 }
  0x8d   :  { %v111_v57 = vsel %vm37_vm0, %v91_v56, 0.0 }
  0x8e   :  { %109 = vadd.xlane.f32.xlu1 %v108_v53 }
  0x8f   :  { %103 = vadd.xlane.f32.xlu2 %v102_v54 }
  0x97   :  { %112 = vadd.xlane.f32.xlu2 %v111_v57 }
  0xf1   :  { %v95_v58 = vpop.xlane.xlu1 %94  ;;  %v101_v59 = vpop.xlane.xlu0 %100 }
  0xf2   :  { %v117_v60 = vmul.f32 %v95_v58, %v2256_v20  ;;  %v119_v61 = vmul.f32 %v101_v59, %v2256_v20 }
  0xf4   :  { %v125_v62 = vadd.f32 1e-05, %v117_v60  ;;  %v127_v63 = vadd.f32 1e-05, %v119_v61 }
  0xf6   :  { %2039 = vrsqrt.f32 %v125_v62  ;;  %vm159_vm3 = vweird.f32 %v127_v63  ;;  %vm139_vm5 = vweird.f32 %v125_v62 }
  0xf7   :  { %2041 = vrsqrt.f32 %v127_v63 }
  0xf9   :  { %v61_v0 = vpop.xlane.xlu1 %60  ;;  %v107_v1 = vpop.xlane.xlu0 %106 }
  0xfa   :  { %v76_v2 = vmul.f32 %v2256_v20, %v61_v0  ;;  %v98_v3 = vpop.xlane.xlu2 %97  ;;  %v121_v4 = vmul.f32 %v107_v1, %v2256_v20 }
  0xfb   :  { %v118_v5 = vmul.f32 %v98_v3, %v2256_v20 }
  0xfc   :  { %v2040_v6 = vpop.eup %2039  ;;  %v2309_v7 = vsub.f32 %v34_v41, %v76_v2  ;;  %v129_v8 = vadd.f32 1e-05, %v121_v4  ;;  %v2338_v41 = vld [vmem:[%s3112_s2] ss:$0 sm:$0xff] }
  0xfd   :  { %v2042_v9 = vpop.eup %2041  ;;  %v134_v10 = vmul.f32 %v2040_v6, %v125_v62  ;;  %v2311_v11 = vadd.f32 1e-05, %v118_v5  ;;  %vm140_vm2 = vweird.f32 %v2040_v6 }
  0xfe   :  { %v154_v12 = vmul.f32 %v2042_v9, %v127_v63  ;;  %2043 = vrsqrt.f32 %v129_v8  ;;  %v92_v14 = vmul.f32 %v2309_v7, %v2309_v7  ;;  %vm160_vm4 = vweird.f32 %v2042_v9  ;;  %vm141_vm6 = vmor %vm139_vm5, %vm140_vm2 }
  0xff   :  { %v135_v13 = vmul.f32 %v2040_v6, %v134_v10  ;;  %2045 = vrsqrt.f32 %v2311_v11  ;;  %vm2329_vm7 = vmor %vm159_vm3, %vm160_vm4  ;;  %vm179_vm8 = vweird.f32 %v129_v8  ;;  %vm149_vm10 = vweird.f32 %v2311_v11 }
 0x100   :  { %v155_v15 = vmul.f32 %v2042_v9, %v154_v12  ;;  %v114_v17 = vsel %vm37_vm0, %v92_v14, 0.0  ;;  %vm1605_vm2 = vcmask 1042432   ;;  %vm1606_vm4 = vcmask 1043456  }
 0x101   :  { %v136_v16 = vmul.f32 0.5, %v135_v13  ;;  %v110_v18 = vpop.xlane.xlu1 %109  ;;  %115 = vadd.xlane.f32.xlu0 %v114_v17 }
 0x102   :  { %v156_v19 = vmul.f32 0.5, %v155_v15  ;;  %v122_v21 = vmul.f32 %v110_v18, %v2256_v20  ;;  %v104_v22 = vpop.xlane.xlu2 %103 }
 0x103   :  { %v137_v23 = vsub.f32 1.5, %v136_v16  ;;  %v120_v24 = vmul.f32 %v104_v22, %v2256_v20  ;;  %v2184_v22 = vmov 65535  }
 0x104   :  { %v2044_v25 = vpop.eup %2043  ;;  %v157_v26 = vsub.f32 1.5, %v156_v19  ;;  %v2319_v30 = vadd.f32 1e-05, %v122_v21 }
 0x105   :  { %v2046_v31 = vpop.eup %2045  ;;  %v138_v32 = vmul.f32 %v2040_v6, %v137_v23  ;;  %v174_v33 = vmul.f32 %v2044_v25, %v129_v8  ;;  %v2322_v34 = vadd.f32 1e-05, %v120_v24  ;;  %vm180_vm9 = vweird.f32 %v2044_v25 }
 0x106   :  { %v158_v36 = vmul.f32 %v2042_v9, %v157_v26  ;;  %v144_v38 = vmul.f32 %v2046_v31, %v2311_v11  ;;  %2047 = vrsqrt.f32 %v2319_v30  ;;  %vm150_vm11 = vweird.f32 %v2046_v31  ;;  %vm2350_vm12 = vmor %vm179_vm8, %vm180_vm9 }
 0x107   :  { %v142_v39 = vsel %vm141_vm6, %v2040_v6, %v138_v32  ;;  %v175_v40 = vmul.f32 %v2044_v25, %v174_v33  ;;  %2049 = vrsqrt.f32 %v2322_v34  ;;  %vm151_vm13 = vmor %vm149_vm10, %vm150_vm11  ;;  %vm189_vm14 = vweird.f32 %v2319_v30 }
 0x108   :  { %v213_v44 = vmul.f32 %v142_v39, %v2263_v28  ;;  %v145_v45 = vmul.f32 %v2046_v31, %v144_v38  ;;  %v162_v46 = vsel %vm2329_vm7, %v2042_v9, %v158_v36  ;;  %vm169_vm1 = vweird.f32 %v2322_v34 }
 0x109   :  { %v176_v48 = vmul.f32 0.5, %v175_v40  ;;  %v215_v54 = vmul.f32 %v162_v46, %v2261_v27  ;;  %v1607_v23 = vsel %vm1605_vm2, 4294967295, %v2184_v22  ;;  %vm396_vm6 = vcmask 261120  }
 0x10a   :  { %v224_v49 = vmul.f32 %v2327_v35, %v213_v44  ;;  %v146_v50 = vmul.f32 0.5, %v145_v45 }
 0x10b   :  { %v177_v51 = vsub.f32 1.5, %v176_v48  ;;  %v226_v1 = vmul.f32 %v2327_v35, %v215_v54 }
 0x10c   :  { %v2048_v52 = vpop.eup %2047  ;;  %v235_v53 = vadd.f32 %v2338_v41, %v224_v49  ;;  %v147_v28 = vsub.f32 1.5, %v146_v50 }
 0x10d   :  { %v178_v56 = vmul.f32 %v2044_v25, %v177_v51  ;;  %v184_v57 = vmul.f32 %v2048_v52, %v2319_v30  ;;  %v2050_v58 = vpop.eup %2049  ;;  %vm190_vm15 = vweird.f32 %v2048_v52  ;;  %v2364_v12 = vadd.f32 %v2338_v41, %v226_v1 }
 0x10e   :  { %v251_v59 = vrot.slane %v235_v53, 1  ;;  %v252_v60 = vrot.slane %v235_v53, 2  ;;  %v253_v61 = vrot.slane %v235_v53, 3  ;;  %303 = vst [vmem:[#allocation1] ss:$9 sm:$0xff] %v235_v53  ;;  %v254_v63 = vrot.slane %v235_v53, 4  ;;  %vm2367_vm0 = vmor %vm189_vm14, %vm190_vm15 }
 0x10f   :  { %v255_v0 = vrot.slane %v235_v53, 5  ;;  %v256_v27 = vrot.slane %v235_v53, 6  ;;  %v148_v2 = vmul.f32 %v2046_v31, %v147_v28  ;;  %v182_v3 = vsel %vm2350_vm12, %v2044_v25, %v178_v56  ;;  %v2013_v28 = vld [vmem:[%s3113_s3 + $0x8] sm:$0xff] }
 0x110   :  { %305 = vst [vmem:[#allocation1 + $0x1] ss:$9 sm:$0xff] %v251_v59  ;;  %v185_v4 = vmul.f32 %v2048_v52, %v184_v57  ;;  %v164_v5 = vmul.f32 %v2050_v58, %v2322_v34  ;;  %v217_v8 = vmul.f32 %v182_v3, %v2265_v29  ;;  %vm170_vm3 = vweird.f32 %v2050_v58  ;;  %v113_v59 = vpop.xlane.xlu2 %112  ;;  %415 = vmatpush.bf16.msra.mxu0 %v2013_v28 }
 0x111   :  { %307 = vst [vmem:[#allocation1 + $0x2] ss:$9 sm:$0xff] %v252_v60  ;;  %v152_v6 = vsel %vm151_vm13, %v2046_v31, %v148_v2  ;;  %v1577_v19 = vpack.c.bf16 %v235_v53, %v235_v53  ;;  %v1579_v24 = vpack.c.bf16 %v2364_v12, %v2364_v12  ;;  %vm171_vm5 = vmor %vm169_vm1, %vm170_vm3  ;;  %v2382_v31 = vsel %vm1606_vm4, %v1607_v23, 0 }
 0x112   :  { %309 = vst [vmem:[#allocation1 + $0x3] ss:$9 sm:$0xff] %v253_v61  ;;  %v186_v9 = vmul.f32 0.5, %v185_v4  ;;  %v165_v10 = vmul.f32 %v2050_v58, %v164_v5  ;;  %v214_v11 = vmul.f32 %v152_v6, %v2281_v42  ;;  %v228_v29 = vmul.f32 %v2327_v35, %v217_v8  ;;  %v2012_v61 = vld [vmem:[%s3113_s3] sm:$0xff] }
 0x113   :  { %311 = vst [vmem:[#allocation1 + $0x4] ss:$9 sm:$0xff] %v254_v63  ;;  %v1610_v33 = vand.u32 %v2382_v31, %v1577_v19  ;;  %v1680_v34 = vand.u32 %v2382_v31, %v1579_v24  ;;  %v263_v57 = vrot.slane %v2364_v12, 1  ;;  %v123_v62 = vmul.f32 %v113_v59, %v2256_v20 }
 0x114   :  { %313 = vst [vmem:[#allocation1 + $0x5] ss:$9 sm:$0xff] %v255_v0  ;;  %v187_v13 = vsub.f32 1.5, %v186_v9  ;;  %v166_v14 = vmul.f32 0.5, %v165_v10  ;;  %v225_v15 = vmul.f32 %v2327_v35, %v214_v11  ;;  %v2379_v25 = vadd.f32 %v2338_v41, %v228_v29  ;;  %416 = vmatpush.bf16.msra.mxu0 %v2012_v61 }
 0x115   :  { %315 = vst [vmem:[#allocation1 + $0x6] ss:$9 sm:$0xff] %v256_v27  ;;  %1619 = vmatpush.bf16.msra.mxu1 %v1610_v33  ;;  %1689 = vmatpush.bf16.msra.mxu3 %v1680_v34  ;;  %v264_v63 = vrot.slane %v2364_v12, 2  ;;  %v131_v0 = vadd.f32 1e-05, %v123_v62  ;;  %v265_v27 = vrot.slane %v2364_v12, 3 }
 0x116   :  { %v188_v17 = vmul.f32 %v2048_v52, %v187_v13  ;;  %v167_v18 = vsub.f32 1.5, %v166_v14  ;;  %v236_v42 = vadd.f32 %v2338_v41, %v225_v15  ;;  %3160 = vst [vmem:[#allocation2_spill] sm:$0xff] %v2382_v31  ;;  %v1581_v39 = vpack.c.bf16 %v2379_v25, %v2379_v25 }
 0x117   :  { %v266_v2 = vrot.slane %v2364_v12, 4  ;;  %v267_v4 = vrot.slane %v2364_v12, 5  ;;  %v268_v5 = vrot.slane %v2364_v12, 6  ;;  %2051 = vrsqrt.f32 %v131_v0 }
 0x118   :  { %v192_v21 = vsel %vm2367_vm0, %v2048_v52, %v188_v17  ;;  %317 = vst [vmem:[#allocation1 + $0x7] ss:$9 sm:$0xff] %v236_v42  ;;  %v168_v30 = vmul.f32 %v2050_v58, %v167_v18  ;;  %v1578_v38 = vpack.c.bf16 %v236_v42, %v236_v42  ;;  %v257_v40 = vrot.slane %v236_v42, 1 }
 0x119   :  { %v218_v26 = vmul.f32 %v192_v21, %v2283_v43  ;;  %v258_v44 = vrot.slane %v236_v42, 2  ;;  %v259_v46 = vrot.slane %v236_v42, 3  ;;  %v1750_v51 = vand.u32 %v2382_v31, %v1581_v39 }
 0x11a   :  { %v172_v32 = vsel %vm171_vm5, %v2050_v58, %v168_v30  ;;  %v1645_v50 = vand.u32 %v2382_v31, %v1578_v38  ;;  %v261_v52 = vrot.slane %v236_v42, 5  ;;  %v262_v53 = vrot.slane %v236_v42, 6 }
 0x11b   :  { %v229_v36 = vmul.f32 %v2327_v35, %v218_v26  ;;  %v216_v37 = vmul.f32 %v172_v32, %v2289_v47  ;;  %v260_v47 = vrot.slane %v236_v42, 4  ;;  %v275_v29 = vrot.slane %v2379_v25, 1 }
 0x11c   :  { %1654 = vmatpush.bf16.msra.mxu2 %v1645_v50  ;;  %v276_v17 = vrot.slane %v2379_v25, 2  ;;  %v277_v42 = vrot.slane %v2379_v25, 3  ;;  %vm199_vm7 = vweird.f32 %v131_v0  ;;  %v278_v22 = vrot.slane %v2379_v25, 4 }
 0x11d   :  { %v227_v43 = vmul.f32 %v2327_v35, %v216_v37  ;;  %v2392_v48 = vadd.f32 %v2338_v41, %v229_v36  ;;  %v2052_v9 = vpop.eup %2051  ;;  %v279_v23 = vrot.slane %v2379_v25, 5  ;;  %v280_v26 = vrot.slane %v2379_v25, 6 }
 0x11e   :  { %v194_v10 = vmul.f32 %v2052_v9, %v131_v0  ;;  %vm200_vm8 = vweird.f32 %v2052_v9  ;;  %vm748_vm13 = vcmask 14336   ;;  %vm1601_vm14 = vcmask 56320  }
 0x11f   :  { %v318_v45 = vld [vmem:[#allocation1] sm:$0xff]  ;;  %v2395_v49 = vadd.f32 %v2338_v41, %v227_v43  ;;  %v1582_v56 = vpack.c.bf16 %v2392_v48, %v2392_v48  ;;  %vm201_vm9 = vmor %vm199_vm7, %vm200_vm8  ;;  %v281_v33 = vrot.slane %v2392_v48, 1  ;;  %v282_v34 = vrot.slane %v2392_v48, 2 }
 0x120   :  { %319 = vst [vmem:[#allocation1] ss:$9 sm:$0xff] %v257_v40  ;;  %1759 = vmatpush.bf16.msrb.mxu2 %v1750_v51  ;;  %v195_v15 = vmul.f32 %v2052_v9, %v194_v10  ;;  %v283_v36 = vrot.slane %v2392_v48, 3  ;;  %v285_v40 = vrot.slane %v2392_v48, 5  ;;  %v286_v43 = vrot.slane %v2392_v48, 6 }
 0x121   :  { %320 = vst [vmem:[#allocation1 + $0x1] ss:$9 sm:$0xff] %v258_v44  ;;  %v1580_v54 = vpack.c.bf16 %v2395_v49, %v2395_v49  ;;  %v1785_v60 = vand.u32 %v2382_v31, %v1582_v56  ;;  %v269_v6 = vrot.slane %v2395_v49, 1  ;;  %v270_v8 = vrot.slane %v2395_v49, 2 }
 0x122   :  { %321 = vst [vmem:[#allocation1 + $0x2] ss:$9 sm:$0xff] %v259_v46  ;;  %v271_v11 = vrot.slane %v2395_v49, 3  ;;  %v273_v14 = vrot.slane %v2395_v49, 5  ;;  %v274_v16 = vrot.slane %v2395_v49, 6  ;;  %v196_v18 = vmul.f32 0.5, %v195_v15 }
 0x123   :  { %322 = vst [vmem:[#allocation1 + $0x3] ss:$9 sm:$0xff] %v260_v47  ;;  %v1715_v58 = vand.u32 %v2382_v31, %v1580_v54  ;;  %1794 = vmatpush.bf16.msrb.mxu3 %v1785_v60  ;;  %vm1871_vm15 = vcmask 1047556   ;;  %vm1953_vm0 = vcmask 523264  }
 0x124   :  { %323 = vst [vmem:[#allocation1 + $0x4] ss:$9 sm:$0xff] %v261_v52  ;;  %v197_v19 = vsub.f32 1.5, %v196_v18 }
 0x125   :  { %324 = vst [vmem:[#allocation1 + $0x5] ss:$9 sm:$0xff] %v262_v53  ;;  %1724 = vmatpush.bf16.msrb.mxu1 %v1715_v58 }
 0x126   :  { %325 = vst [vmem:[#allocation1 + $0x6] ss:$9 sm:$0xff] %v2364_v12  ;;  %v272_v12 = vrot.slane %v2395_v49, 4  ;;  %v198_v21 = vmul.f32 %v2052_v9, %v197_v19 }
 0x127   :  { %326 = vst [vmem:[#allocation1 + $0x7] ss:$9 sm:$0xff] %v263_v57 }
 0x128   :  { %v202_v32 = vsel %vm201_vm9, %v2052_v9, %v198_v21 }
 0x129   :  { %v219_v37 = vmul.f32 %v202_v32, %v2299_v55 }
 0x12b   :  { %v230_v38 = vmul.f32 %v2327_v35, %v219_v37 }
 0x12d   :  { %v2443_v39 = vadd.f32 %v2338_v41, %v230_v38 }
 0x12e   :  { %v327_v1 = vld [vmem:[#allocation1] sm:$0xff] }
 0x12f   :  { %328 = vst [vmem:[#allocation1] ss:$9 sm:$0xff] %v264_v63  ;;  %v380_v3 = vpack.c.bf16 %v327_v1, %v318_v45  ;;  %v287_v45 = vrot.slane %v2443_v39, 1  ;;  %v288_v55 = vrot.slane %v2443_v39, 2  ;;  %v289_v46 = vrot.slane %v2443_v39, 3 }
 0x130   :  { %329 = vst [vmem:[#allocation1 + $0x1] ss:$9 sm:$0xff] %v265_v27  ;;  %v291_v47 = vrot.slane %v2443_v39, 5 }
 0x131   :  { %330 = vst [vmem:[#allocation1 + $0x2] ss:$9 sm:$0xff] %v266_v2  ;;  %1983 = vmatmul.msk.bf16.vlgmr.msra.gmra.mxu0 %vm396_vm6, %v380_v3 }
 0x132   :  { %331 = vst [vmem:[#allocation1 + $0x3] ss:$9 sm:$0xff] %v267_v4  ;;  %v2472_v4 = vld [vmem:[%s3114_s4] ss:$0 sm:$0xff] }
 0x133   :  { %332 = vst [vmem:[#allocation1 + $0x4] ss:$9 sm:$0xff] %v268_v5  ;;  %v2475_v5 = vrot.slane %v2472_v4, 1  ;;  %v2484_v10 = vrot.slane %v2472_v4, 4 }
 0x134   :  { %333 = vst [vmem:[#allocation1 + $0x5] ss:$9 sm:$0xff] %v2395_v49  ;;  %v290_v49 = vrot.slane %v2443_v39, 4 }
 0x135   :  { %334 = vst [vmem:[#allocation1 + $0x6] ss:$9 sm:$0xff] %v269_v6  ;;  %v2478_v6 = vrot.slane %v2472_v4, 2 }
 0x136   :  { %335 = vst [vmem:[#allocation1 + $0x7] ss:$9 sm:$0xff] %v270_v8  ;;  %v2481_v8 = vrot.slane %v2472_v4, 3 }
 0x137   :  { %3161 = vst [vmem:[#allocation3_spill] sm:$0xff] %v2443_v39 }
 0x13d   :  { %v336_v13 = vld [vmem:[#allocation1] sm:$0xff] }
 0x13e   :  { %337 = vst [vmem:[#allocation1] ss:$9 sm:$0xff] %v271_v11  ;;  %v2487_v11 = vrot.slane %v2472_v4, 5 }
 0x13f   :  { %338 = vst [vmem:[#allocation1 + $0x1] ss:$9 sm:$0xff] %v272_v12 }
 0x140   :  { %339 = vst [vmem:[#allocation1 + $0x2] ss:$9 sm:$0xff] %v273_v14 }
 0x141   :  { %340 = vst [vmem:[#allocation1 + $0x3] ss:$9 sm:$0xff] %v274_v16 }
 0x142   :  { %341 = vst [vmem:[#allocation1 + $0x4] ss:$9 sm:$0xff] %v2379_v25  ;;  %v284_v25 = vrot.slane %v2392_v48, 4 }
 0x143   :  { %342 = vst [vmem:[#allocation1 + $0x5] ss:$9 sm:$0xff] %v275_v29 }
 0x144   :  { %343 = vst [vmem:[#allocation1 + $0x6] ss:$9 sm:$0xff] %v276_v17  ;;  %v2490_v17 = vrot.slane %v2472_v4, 6 }
 0x145   :  { %344 = vst [vmem:[#allocation1 + $0x7] ss:$9 sm:$0xff] %v277_v42 }
 0x14c   :  { %v345_v24 = vld [vmem:[#allocation1] sm:$0xff] }
 0x14d   :  { %346 = vst [vmem:[#allocation1] ss:$9 sm:$0xff] %v278_v22  ;;  %v381_v30 = vpack.c.bf16 %v345_v24, %v336_v13 }
 0x14e   :  { %347 = vst [vmem:[#allocation1 + $0x1] ss:$9 sm:$0xff] %v279_v23 }
 0x14f   :  { %348 = vst [vmem:[#allocation1 + $0x2] ss:$9 sm:$0xff] %v280_v26  ;;  %1984 = vmatmul.msk.bf16.gmra.mxu0 %vm396_vm6, %v381_v30 }
 0x150   :  { %349 = vst [vmem:[#allocation1 + $0x3] ss:$9 sm:$0xff] %v2392_v48  ;;  %v292_v48 = vrot.slane %v2443_v39, 6 }
 0x151   :  { %350 = vst [vmem:[#allocation1 + $0x4] ss:$9 sm:$0xff] %v281_v33 }
 0x152   :  { %351 = vst [vmem:[#allocation1 + $0x5] ss:$9 sm:$0xff] %v282_v34 }
 0x153   :  { %352 = vst [vmem:[#allocation1 + $0x6] ss:$9 sm:$0xff] %v283_v36 }
 0x154   :  { %353 = vst [vmem:[#allocation1 + $0x7] ss:$9 sm:$0xff] %v284_v25 }
 0x15b   :  { %v354_v44 = vld [vmem:[#allocation1] sm:$0xff] }
 0x15c   :  { %355 = vst [vmem:[#allocation1] ss:$9 sm:$0xff] %v285_v40 }
 0x15d   :  { %356 = vst [vmem:[#allocation1 + $0x1] ss:$9 sm:$0xff] %v286_v43 }
 0x15e   :  { %357 = vst [vmem:[#allocation1 + $0x2] ss:$9 sm:$0xff] %v2443_v39 }
 0x15f   :  { %358 = vst [vmem:[#allocation1 + $0x3] ss:$9 sm:$0xff] %v287_v45 }
 0x160   :  { %359 = vst [vmem:[#allocation1 + $0x4] ss:$9 sm:$0xff] %v288_v55 }
 0x161   :  { %360 = vst [vmem:[#allocation1 + $0x5] ss:$9 sm:$0xff] %v289_v46 }
 0x162   :  { %361 = vst [vmem:[#allocation1 + $0x6] ss:$9 sm:$0xff] %v290_v49 }
 0x163   :  { %362 = vst [vmem:[#allocation1 + $0x7] ss:$9 sm:$0xff] %v291_v47 }
 0x16a   :  { %v363_v50 = vld [vmem:[#allocation1] sm:$0xff] }
 0x16b   :  { %364 = vst [vmem:[#allocation1] ss:$9 sm:$0xff] %v292_v48  ;;  %v382_v51 = vpack.c.bf16 %v363_v50, %v354_v44 }
 0x16d   :  { %1985 = vmatmul.msk.bf16.gmra.mxu0 %vm396_vm6, %v382_v51 }
 0x174   :  { %v116_v52 = vpop.xlane.xlu0 %115 }
 0x175   :  { %v124_v53 = vmul.f32 %v116_v52, %v2256_v20 }
 0x177   :  { %v132_v54 = vadd.f32 1e-05, %v124_v53 }
 0x179   :  { %2053 = vrsqrt.f32 %v132_v54  ;;  %vm209_vm11 = vweird.f32 %v132_v54 }
 0x17f   :  { %v2054_v28 = vpop.eup %2053 }
 0x180   :  { %v204_v56 = vmul.f32 %v2054_v28, %v132_v54  ;;  %vm210_vm10 = vweird.f32 %v2054_v28 }
 0x181   :  { %vm211_vm12 = vmor %vm209_vm11, %vm210_vm10 }
 0x182   :  { %v205_v57 = vmul.f32 %v2054_v28, %v204_v56 }
 0x184   :  { %v206_v58 = vmul.f32 0.5, %v205_v57 }
 0x186   :  { %v207_v59 = vsub.f32 1.5, %v206_v58 }
 0x188   :  { %v208_v60 = vmul.f32 %v2054_v28, %v207_v59 }
 0x18a   :  { %v212_v61 = vsel %vm211_vm12, %v2054_v28, %v208_v60 }
 0x18b   :  { %v220_v62 = vmul.f32 %v212_v61, %v2309_v7 }
 0x18d   :  { %v231_v63 = vmul.f32 %v2327_v35, %v220_v62 }
 0x18f   :  { %v2459_v0 = vadd.f32 %v2338_v41, %v231_v63 }
 0x191   :  { %3162 = vst [vmem:[#allocation4_spill] sm:$0xff] %v2459_v0  ;;  %v293_v20 = vrot.slane %v2459_v0, 1  ;;  %v294_v27 = vrot.slane %v2459_v0, 2  ;;  %v295_v1 = vrot.slane %v2459_v0, 3  ;;  %v296_v2 = vrot.slane %v2459_v0, 4 }
 0x192   :  { %365 = vst [vmem:[#allocation1 + $0x1] ss:$9 sm:$0xff] %v2459_v0  ;;  %v297_v3 = vrot.slane %v2459_v0, 5  ;;  %v298_v7 = vrot.slane %v2459_v0, 6 }
 0x193   :  { %366 = vst [vmem:[#allocation1 + $0x2] ss:$9 sm:$0xff] %v293_v20 }
 0x194   :  { %367 = vst [vmem:[#allocation1 + $0x3] ss:$9 sm:$0xff] %v294_v27 }
 0x195   :  { %368 = vst [vmem:[#allocation1 + $0x4] ss:$9 sm:$0xff] %v295_v1 }
 0x196   :  { %369 = vst [vmem:[#allocation1 + $0x5] ss:$9 sm:$0xff] %v296_v2 }
 0x197   :  { %370 = vst [vmem:[#allocation1 + $0x6] ss:$9 sm:$0xff] %v297_v3 }
 0x198   :  { %371 = vst [vmem:[#allocation1 + $0x7] ss:$9 sm:$0xff] %v298_v7 }
 0x19f   :  { %v372_v35 = vld [vmem:[#allocation1] sm:$0xff] }
 0x1a0   :  { %v383_v41 = vpack.c.bf16 %v372_v35, %v372_v35 }
 0x1a2   :  { %1986 = vmatmul.msk.bf16.gmra.mxu0 %vm396_vm6, %v383_v41 }
 0x1ae   :  { %v418_v9 = vpop.f32.mrf.mxu0 }
 0x1af   :  { %v444_v12 = vrot.slane %v418_v9, 1  ;;  %v445_v13 = vrot.slane %v418_v9, 2  ;;  %v446_v14 = vrot.slane %v418_v9, 3  ;;  %v447_v15 = vrot.slane %v418_v9, 4 }
 0x1b0   :  { %v448_v16 = vrot.slane %v418_v9, 5  ;;  %v449_v29 = vrot.slane %v418_v9, 6  ;;  %v2493_v18 = vadd.f32 %v2472_v4, %v418_v9  ;;  %v450_v30 = vrot.slane %v418_v9, 7 }
 0x1b1   :  { %v2496_v42 = vadd.f32 %v2475_v5, %v444_v12  ;;  %v2499_v19 = vadd.f32 %v2478_v6, %v445_v13  ;;  %v2502_v21 = vadd.f32 %v2481_v8, %v446_v14  ;;  %v2505_v22 = vadd.f32 %v2484_v10, %v447_v15 }
 0x1b2   :  { %670 = vst [vmem:[#allocation1] ss:$9 sm:$0xff] %v2493_v18  ;;  %v2509_v23 = vadd.f32 %v2487_v11, %v448_v16  ;;  %v2513_v24 = vadd.f32 %v2490_v17, %v449_v29  ;;  %v2521_v37 = vadd.f32 %v2472_v4, %v450_v30 }
 0x1b3   :  { %672 = vst [vmem:[#allocation1 + $0x1] ss:$9 sm:$0xff] %v2496_v42 }
 0x1b4   :  { %674 = vst [vmem:[#allocation1 + $0x2] ss:$9 sm:$0xff] %v2499_v19 }
 0x1b5   :  { %676 = vst [vmem:[#allocation1 + $0x3] ss:$9 sm:$0xff] %v2502_v21 }
 0x1b6   :  { %678 = vst [vmem:[#allocation1 + $0x4] ss:$9 sm:$0xff] %v2505_v22  ;;  %v420_v26 = vpop.f32.mrf.mxu0 }
 0x1b7   :  { %680 = vst [vmem:[#allocation1 + $0x5] ss:$9 sm:$0xff] %v2509_v23  ;;  %v451_v32 = vrot.slane %v420_v26, 1  ;;  %v452_v33 = vrot.slane %v420_v26, 2  ;;  %v453_v34 = vrot.slane %v420_v26, 3  ;;  %v454_v36 = vrot.slane %v420_v26, 4 }
 0x1b8   :  { %682 = vst [vmem:[#allocation1 + $0x6] ss:$9 sm:$0xff] %v2513_v24  ;;  %v455_v25 = vrot.slane %v420_v26, 5  ;;  %v2529_v43 = vadd.f32 %v2475_v5, %v420_v26  ;;  %v456_v49 = vrot.slane %v420_v26, 6  ;;  %v457_v47 = vrot.slane %v420_v26, 7 }
 0x1b9   :  { %v2524_v38 = vadd.f32 %v2478_v6, %v451_v32  ;;  %v2532_v44 = vadd.f32 %v2481_v8, %v452_v33  ;;  %v2536_v45 = vadd.f32 %v2484_v10, %v453_v34  ;;  %v2539_v55 = vadd.f32 %v2487_v11, %v454_v36 }
 0x1ba   :  { %v2543_v46 = vadd.f32 %v2490_v17, %v455_v25  ;;  %v2551_v48 = vadd.f32 %v2472_v4, %v456_v49  ;;  %v2554_v50 = vadd.f32 %v2475_v5, %v457_v47 }
 0x1bf   :  { %v2526_v40 = vld [vmem:[#allocation1] sm:$0xff] }
 0x1c0   :  { %684 = vst [vmem:[#allocation1] ss:$9 sm:$0xff] %v2521_v37 }
 0x1c1   :  { %685 = vst [vmem:[#allocation1 + $0x1] ss:$9 sm:$0xff] %v2529_v43 }
 0x1c2   :  { %686 = vst [vmem:[#allocation1 + $0x2] ss:$9 sm:$0xff] %v2524_v38 }
 0x1c3   :  { %687 = vst [vmem:[#allocation1 + $0x3] ss:$9 sm:$0xff] %v2532_v44 }
 0x1c4   :  { %688 = vst [vmem:[#allocation1 + $0x4] ss:$9 sm:$0xff] %v2536_v45 }
 0x1c5   :  { %689 = vst [vmem:[#allocation1 + $0x5] ss:$9 sm:$0xff] %v2539_v55 }
 0x1c6   :  { %690 = vst [vmem:[#allocation1 + $0x6] ss:$9 sm:$0xff] %v2543_v46 }
 0x1cc   :  { %v423_v52 = vpop.f32.mrf.mxu0 }
 0x1cd   :  { %v2556_v51 = vld [vmem:[#allocation1] sm:$0xff]  ;;  %v2561_v53 = vadd.f32 %v2478_v6, %v423_v52  ;;  %v458_v54 = vrot.slane %v423_v52, 1  ;;  %v459_v28 = vrot.slane %v423_v52, 2  ;;  %v460_v56 = vrot.slane %v423_v52, 3 }
 0x1ce   :  { %692 = vst [vmem:[#allocation1] ss:$9 sm:$0xff] %v2551_v48  ;;  %v461_v57 = vrot.slane %v423_v52, 4  ;;  %v462_v63 = vrot.slane %v423_v52, 5  ;;  %v463_v20 = vrot.slane %v423_v52, 6  ;;  %v464_v27 = vrot.slane %v423_v52, 7 }
 0x1cf   :  { %693 = vst [vmem:[#allocation1 + $0x1] ss:$9 sm:$0xff] %v2554_v50  ;;  %v2565_v58 = vadd.f32 %v2481_v8, %v458_v54  ;;  %v2568_v59 = vadd.f32 %v2484_v10, %v459_v28  ;;  %v2571_v60 = vadd.f32 %v2487_v11, %v460_v56 }
 0x1d0   :  { %694 = vst [vmem:[#allocation1 + $0x2] ss:$9 sm:$0xff] %v2561_v53  ;;  %v2574_v61 = vadd.f32 %v2490_v17, %v461_v57  ;;  %v2581_v3 = vadd.f32 %v2472_v4, %v462_v63  ;;  %v2584_v35 = vadd.f32 %v2475_v5, %v463_v20  ;;  %v2589_v9 = vadd.f32 %v2478_v6, %v464_v27 }
 0x1d1   :  { %695 = vst [vmem:[#allocation1 + $0x3] ss:$9 sm:$0xff] %v2565_v58 }
 0x1d2   :  { %696 = vst [vmem:[#allocation1 + $0x4] ss:$9 sm:$0xff] %v2568_v59 }
 0x1d3   :  { %697 = vst [vmem:[#allocation1 + $0x5] ss:$9 sm:$0xff] %v2571_v60 }
 0x1d4   :  { %698 = vst [vmem:[#allocation1 + $0x6] ss:$9 sm:$0xff] %v2574_v61  ;;  %v425_v62 = vpop.f32.mrf.mxu0 }
 0x1d5   :  { %v465_v1 = vrot.slane %v425_v62, 1  ;;  %v466_v2 = vrot.slane %v425_v62, 2  ;;  %v467_v7 = vrot.slane %v425_v62, 3  ;;  %v2597_v13 = vadd.f32 %v2481_v8, %v425_v62 }
 0x1d6   :  { %v468_v16 = vrot.slane %v425_v62, 4  ;;  %v469_v29 = vrot.slane %v425_v62, 5  ;;  %v470_v30 = vrot.slane %v425_v62, 6  ;;  %v471_v32 = vrot.slane %v425_v62, 7 }
 0x1d7   :  { %v2593_v12 = vadd.f32 %v2484_v10, %v465_v1  ;;  %v2600_v14 = vadd.f32 %v2487_v11, %v466_v2  ;;  %v2604_v15 = vadd.f32 %v2490_v17, %v467_v7 }
 0x1d8   :  { %v2611_v33 = vadd.f32 %v2472_v4, %v468_v16  ;;  %v2614_v36 = vadd.f32 %v2475_v5, %v469_v29  ;;  %v2619_v47 = vadd.f32 %v2478_v6, %v470_v30  ;;  %v2624_v52 = vadd.f32 %v2481_v8, %v471_v32 }
 0x1db   :  { %v2586_v41 = vld [vmem:[#allocation1] sm:$0xff] }
 0x1dc   :  { %700 = vst [vmem:[#allocation1] ss:$9 sm:$0xff] %v2581_v3 }
 0x1dd   :  { %701 = vst [vmem:[#allocation1 + $0x1] ss:$9 sm:$0xff] %v2584_v35 }
 0x1de   :  { %702 = vst [vmem:[#allocation1 + $0x2] ss:$9 sm:$0xff] %v2589_v9 }
 0x1df   :  { %703 = vst [vmem:[#allocation1 + $0x3] ss:$9 sm:$0xff] %v2597_v13 }
 0x1e0   :  { %704 = vst [vmem:[#allocation1 + $0x4] ss:$9 sm:$0xff] %v2593_v12 }
 0x1e1   :  { %705 = vst [vmem:[#allocation1 + $0x5] ss:$9 sm:$0xff] %v2600_v14 }
 0x1e2   :  { %706 = vst [vmem:[#allocation1 + $0x6] ss:$9 sm:$0xff] %v2604_v15 }
 0x1e9   :  { %v2616_v25 = vld [vmem:[#allocation1] sm:$0xff] }
 0x1ea   :  { %v428_v26 = vpop.f32.mrf.mxu0  ;;  %708 = vst [vmem:[#allocation1] ss:$9 sm:$0xff] %v2611_v33 }
 0x1eb   :  { %v472_v34 = vrot.slane %v428_v26, 1  ;;  %v473_v49 = vrot.slane %v428_v26, 2  ;;  %709 = vst [vmem:[#allocation1 + $0x1] ss:$9 sm:$0xff] %v2614_v36  ;;  %v2631_v28 = vadd.f32 %v2484_v10, %v428_v26  ;;  %v474_v57 = vrot.slane %v428_v26, 3 }
 0x1ec   :  { %710 = vst [vmem:[#allocation1 + $0x2] ss:$9 sm:$0xff] %v2619_v47  ;;  %v475_v62 = vrot.slane %v428_v26, 4  ;;  %v476_v63 = vrot.slane %v428_v26, 5  ;;  %v477_v27 = vrot.slane %v428_v26, 6  ;;  %v478_v2 = vrot.slane %v428_v26, 7 }
 0x1ed   :  { %v2628_v54 = vadd.f32 %v2487_v11, %v472_v34  ;;  %3164 = vst [vmem:[#allocation6_spill] sm:$0xff] %v2631_v28  ;;  %v2634_v56 = vadd.f32 %v2490_v17, %v473_v49  ;;  %v2641_v1 = vadd.f32 %v2472_v4, %v474_v57 }
 0x1ee   :  { %711 = vst [vmem:[#allocation1 + $0x3] ss:$9 sm:$0xff] %v2624_v52  ;;  %v2644_v7 = vadd.f32 %v2475_v5, %v475_v62  ;;  %v2649_v30 = vadd.f32 %v2478_v6, %v476_v63  ;;  %v2654_v32 = vadd.f32 %v2481_v8, %v477_v27  ;;  %v2658_v26 = vadd.f32 %v2484_v10, %v478_v2 }
 0x1ef   :  { %3163 = vst [vmem:[#allocation5_spill] sm:$0xff] %v2628_v54  ;;  %v749_v63 = vsel %vm748_vm13, %v2526_v40, -inf }
 0x1f0   :  { %3165 = vst [vmem:[#allocation7_spill] sm:$0xff] %v2634_v56  ;;  %v750_v39 = vrot.slane %v749_v63, 4 }
 0x1f1   :  { %712 = vst [vmem:[#allocation1 + $0x4] ss:$9 sm:$0xff] %v2631_v28 }
 0x1f2   :  { %713 = vst [vmem:[#allocation1 + $0x5] ss:$9 sm:$0xff] %v2628_v54  ;;  %v430_v20 = vpop.f32.mrf.mxu0 }
 0x1f3   :  { %714 = vst [vmem:[#allocation1 + $0x6] ss:$9 sm:$0xff] %v2634_v56  ;;  %v479_v29 = vrot.slane %v430_v20, 1  ;;  %v2665_v49 = vadd.f32 %v2487_v11, %v430_v20  ;;  %v480_v57 = vrot.slane %v430_v20, 2  ;;  %v481_v62 = vrot.slane %v430_v20, 3 }
 0x1f4   :  { %3166 = vst [vmem:[#allocation8_spill] sm:$0xff] %v2641_v1  ;;  %v482_v27 = vrot.slane %v430_v20, 4  ;;  %v483_v2 = vrot.slane %v430_v20, 5  ;;  %v484_v31 = vrot.slane %v430_v20, 6 }
 0x1f5   :  { %3167 = vst [vmem:[#allocation9_spill] sm:$0xff] %v2644_v7  ;;  %v2661_v34 = vadd.f32 %v2490_v17, %v479_v29  ;;  %v2673_v29 = vadd.f32 %v2472_v4, %v480_v57  ;;  %v2676_v0 = vadd.f32 %v2475_v5, %v481_v62  ;;  %v751_v57 = vmax.f32 %v749_v63, %v750_v39 }
 0x1f6   :  { %3168 = vst [vmem:[#allocation10_spill] sm:$0xff] %v2649_v30  ;;  %v2686_v40 = vadd.f32 %v2481_v8, %v483_v2  ;;  %v756_v2 = vsel %vm748_vm13, %v2556_v51, -inf }
 0x1f7   :  { %3169 = vst [vmem:[#allocation11_spill] sm:$0xff] %v2654_v32  ;;  %v757_v39 = vrot.slane %v756_v2, 4 }
 0x1f8   :  { %3170 = vst [vmem:[#allocation12_spill] sm:$0xff] %v2658_v26 }
 0x1f9   :  { %3171 = vst [vmem:[#allocation13_spill] sm:$0xff] %v2661_v34 }
 0x1fa   :  { %v2646_v16 = vld [vmem:[#allocation1] sm:$0xff]  ;;  %3172 = vst [vmem:[#allocation14_spill] sm:$0xff] %v2665_v49 }
 0x1fb   :  { %716 = vst [vmem:[#allocation1] ss:$9 sm:$0xff] %v2641_v1 }
 0x1fc   :  { %717 = vst [vmem:[#allocation1 + $0x1] ss:$9 sm:$0xff] %v2644_v7 }
 0x1fd   :  { %718 = vst [vmem:[#allocation1 + $0x2] ss:$9 sm:$0xff] %v2649_v30 }
 0x1fe   :  { %719 = vst [vmem:[#allocation1 + $0x3] ss:$9 sm:$0xff] %v2654_v32  ;;  %v2690_v32 = vadd.f32 %v2484_v10, %v484_v31 }
 0x1ff   :  { %720 = vst [vmem:[#allocation1 + $0x4] ss:$9 sm:$0xff] %v2658_v26 }
 0x200   :  { %721 = vst [vmem:[#allocation1 + $0x5] ss:$9 sm:$0xff] %v2665_v49  ;;  %v485_v49 = vrot.slane %v430_v20, 7  ;;  %v752_v20 = vrot.slane %v751_v57, 2 }
 0x201   :  { %722 = vst [vmem:[#allocation1 + $0x6] ss:$9 sm:$0xff] %v2661_v34  ;;  %v2681_v34 = vadd.f32 %v2478_v6, %v482_v27 }
 0x202   :  { %3173 = vst [vmem:[#allocation15_spill] sm:$0xff] %v2673_v29  ;;  %v2693_v62 = vadd.f32 %v2487_v11, %v485_v49  ;;  %v753_v27 = vmax.f32 %v751_v57, %v752_v20  ;;  %v758_v49 = vmax.f32 %v756_v2, %v757_v39 }
 0x203   :  { %3174 = vst [vmem:[#allocation16_spill] sm:$0xff] %v2676_v0 }
 0x204   :  { %3175 = vst [vmem:[#allocation17_spill] sm:$0xff] %v2681_v34  ;;  %v759_v20 = vrot.slane %v758_v49, 2 }
 0x205   :  { %3176 = vst [vmem:[#allocation18_spill] sm:$0xff] %v2686_v40 }
 0x206   :  { %3177 = vst [vmem:[#allocation19_spill] sm:$0xff] %v2690_v32 }
 0x207   :  { %3178 = vst [vmem:[#allocation20_spill] sm:$0xff] %v2693_v62 }
 0x208   :  { %v2678_v26 = vld [vmem:[#allocation1] sm:$0xff] }
 0x209   :  { %724 = vst [vmem:[#allocation1] ss:$9 sm:$0xff] %v2673_v29 }
 0x20a   :  { %725 = vst [vmem:[#allocation1 + $0x1] ss:$9 sm:$0xff] %v2676_v0 }
 0x20b   :  { %726 = vst [vmem:[#allocation1 + $0x2] ss:$9 sm:$0xff] %v2681_v34  ;;  %v754_v34 = vrot.slane %v753_v27, 1 }
 0x20c   :  { %727 = vst [vmem:[#allocation1 + $0x3] ss:$9 sm:$0xff] %v2686_v40 }
 0x20d   :  { %728 = vst [vmem:[#allocation1 + $0x4] ss:$9 sm:$0xff] %v2690_v32  ;;  %v755_v63 = vmax.f32 %v753_v27, %v754_v34 }
 0x20e   :  { %729 = vst [vmem:[#allocation1 + $0x5] ss:$9 sm:$0xff] %v2693_v62 }
 0x20f   :  { %v813_v30 = vrot.slane %v755_v63, 1  ;;  %v814_v7 = vrot.slane %v755_v63, 2  ;;  %v909_v56 = vsub.f32 %v2493_v18, %v755_v63  ;;  %v815_v2 = vrot.slane %v755_v63, 3 }
 0x210   :  { %v816_v28 = vrot.slane %v755_v63, 4  ;;  %v763_v18 = vsel %vm748_vm13, %v2586_v41, -inf }
 0x211   :  { %v764_v41 = vrot.slane %v763_v18, 4 }
 0x21f   :  { %v433_v0 = vpop.f32.mrf.mxu0 }
 0x220   :  { %v2701_v31 = vadd.f32 %v2490_v17, %v433_v0  ;;  %v486_v40 = vrot.slane %v433_v0, 1  ;;  %v487_v29 = vrot.slane %v433_v0, 2  ;;  %v488_v62 = vrot.slane %v433_v0, 3 }
 0x221   :  { %v489_v57 = vrot.slane %v433_v0, 4  ;;  %v490_v1 = vrot.slane %v433_v0, 5  ;;  %v491_v54 = vrot.slane %v433_v0, 6  ;;  %v492_v39 = vrot.slane %v433_v0, 7 }
 0x222   :  { %3179 = vst [vmem:[#allocation21_spill] sm:$0xff] %v2701_v31  ;;  %v2705_v51 = vadd.f32 %v2472_v4, %v486_v40  ;;  %v2709_v34 = vadd.f32 %v2475_v5, %v487_v29  ;;  %v911_v4 = vsub.f32 %v2499_v19, %v814_v7  ;;  %v817_v29 = vrot.slane %v755_v63, 5 }
 0x223   :  { %730 = vst [vmem:[#allocation1 + $0x6] ss:$9 sm:$0xff] %v2701_v31  ;;  %v2715_v31 = vadd.f32 %v2478_v6, %v488_v62  ;;  %v2722_v5 = vadd.f32 %v2481_v8, %v489_v57  ;;  %v760_v40 = vmax.f32 %v758_v49, %v759_v20  ;;  %v2726_v0 = vadd.f32 %v2484_v10, %v490_v1 }
 0x224   :  { %v818_v6 = vrot.slane %v755_v63, 6  ;;  %v912_v19 = vsub.f32 %v2502_v21, %v815_v2  ;;  %v2735_v7 = vadd.f32 %v2490_v17, %v492_v39  ;;  %v913_v10 = vsub.f32 %v2505_v22, %v816_v28 }
 0x225   :  { %v969_v1 = vmul.f32 1.442695, %v911_v4  ;;  %v765_v62 = vmax.f32 %v763_v18, %v764_v41  ;;  %v770_v4 = vsel %vm748_vm13, %v2616_v25, -inf }
 0x226   :  { %v971_v21 = vmul.f32 1.442695, %v912_v19  ;;  %v973_v17 = vmul.f32 1.442695, %v913_v10 }
 0x227   :  { %v435_v32 = vpop.f32.mrf.mxu0  ;;  %v766_v22 = vrot.slane %v765_v62, 2 }
 0x228   :  { %v910_v32 = vsub.f32 %v2496_v42, %v813_v30  ;;  %v965_v42 = vmul.f32 1.442695, %v909_v56  ;;  %v2730_v30 = vadd.f32 %v2487_v11, %v491_v54  ;;  %v914_v56 = vsub.f32 %v2509_v23, %v817_v29 }
 0x229   :  { %v761_v11 = vrot.slane %v760_v40, 1  ;;  %v915_v54 = vsub.f32 %v2513_v24, %v818_v6  ;;  %v767_v29 = vmax.f32 %v765_v62, %v766_v22 }
 0x22a   :  { %v2711_v27 = vld [vmem:[#allocation1] sm:$0xff]  ;;  %v967_v8 = vmul.f32 1.442695, %v910_v32  ;;  %2055 = vpow2.f32 %v965_v42  ;;  %v975_v63 = vmul.f32 1.442695, %v914_v56 }
 0x22b   :  { %732 = vst [vmem:[#allocation1] ss:$9 sm:$0xff] %v2705_v51  ;;  %v762_v49 = vmax.f32 %v760_v40, %v761_v11  ;;  %v977_v57 = vmul.f32 1.442695, %v915_v54  ;;  %v768_v11 = vrot.slane %v767_v29, 1 }
 0x22c   :  { %733 = vst [vmem:[#allocation1 + $0x1] ss:$9 sm:$0xff] %v2709_v34  ;;  %2057 = vpow2.f32 %v967_v8  ;;  %v771_v8 = vrot.slane %v770_v4, 4 }
 0x22d   :  { %734 = vst [vmem:[#allocation1 + $0x2] ss:$9 sm:$0xff] %v2715_v31  ;;  %2059 = vpow2.f32 %v969_v1  ;;  %v819_v24 = vrot.slane %v762_v49, 1  ;;  %v820_v32 = vrot.slane %v762_v49, 2  ;;  %v916_v39 = vsub.f32 %v2521_v37, %v762_v49 }
 0x22e   :  { %735 = vst [vmem:[#allocation1 + $0x3] ss:$9 sm:$0xff] %v2722_v5  ;;  %2061 = vpow2.f32 %v971_v21  ;;  %v821_v18 = vrot.slane %v762_v49, 3  ;;  %v822_v40 = vrot.slane %v762_v49, 4  ;;  %v823_v42 = vrot.slane %v762_v49, 5 }
 0x22f   :  { %736 = vst [vmem:[#allocation1 + $0x4] ss:$9 sm:$0xff] %v2726_v0  ;;  %2063 = vpow2.f32 %v973_v17  ;;  %v917_v19 = vsub.f32 %v2529_v43, %v819_v24  ;;  %v824_v10 = vrot.slane %v762_v49, 6  ;;  %v918_v37 = vsub.f32 %v2524_v38, %v820_v32 }
 0x230   :  { %737 = vst [vmem:[#allocation1 + $0x5] ss:$9 sm:$0xff] %v2730_v30  ;;  %v2743_v28 = vpop.eup %2055  ;;  %2065 = vpow2.f32 %v975_v63  ;;  %v979_v1 = vmul.f32 1.442695, %v916_v39  ;;  %v919_v56 = vsub.f32 %v2532_v44, %v821_v18  ;;  %v920_v43 = vsub.f32 %v2536_v45, %v822_v40 }
 0x231   :  { %738 = vst [vmem:[#allocation1 + $0x6] ss:$9 sm:$0xff] %v2735_v7  ;;  %2067 = vpow2.f32 %v977_v57  ;;  %v921_v21 = vsub.f32 %v2539_v55, %v823_v42  ;;  %v981_v62 = vmul.f32 1.442695, %v917_v19  ;;  %v772_v38 = vmax.f32 %v770_v4, %v771_v8 }
 0x232   :  { %v2747_v20 = vpop.eup %2057  ;;  %v922_v17 = vsub.f32 %v2543_v46, %v824_v10  ;;  %v983_v63 = vmul.f32 1.442695, %v918_v37  ;;  %2069 = vpow2.f32 %v979_v1  ;;  %v985_v44 = vmul.f32 1.442695, %v919_v56 }
 0x233   :  { %v2750_v2 = vpop.eup %2059  ;;  %v769_v49 = vmax.f32 %v767_v29, %v768_v11  ;;  %v987_v57 = vmul.f32 1.442695, %v920_v43  ;;  %2071 = vpow2.f32 %v981_v62  ;;  %v989_v22 = vmul.f32 1.442695, %v921_v21 }
 0x234   :  { %v2757_v6 = vpop.eup %2061  ;;  %v773_v24 = vrot.slane %v772_v38, 2  ;;  %2073 = vpow2.f32 %v983_v63  ;;  %v991_v45 = vmul.f32 1.442695, %v922_v17  ;;  %v777_v4 = vsel %vm748_vm13, %v2646_v16, -inf }
 0x235   :  { %v2760_v41 = vpop.eup %2063  ;;  %2075 = vpow2.f32 %v985_v44  ;;  %v825_v32 = vrot.slane %v769_v49, 1  ;;  %v826_v55 = vrot.slane %v769_v49, 2  ;;  %v827_v18 = vrot.slane %v769_v49, 3 }
 0x236   :  { %v2764_v25 = vpop.eup %2065  ;;  %2077 = vpow2.f32 %v987_v57  ;;  %v774_v29 = vmax.f32 %v772_v38, %v773_v24  ;;  %v828_v40 = vrot.slane %v769_v49, 4  ;;  %v923_v42 = vsub.f32 %v2551_v48, %v769_v49 }
 0x237   :  { %v2768_v54 = vpop.eup %2067  ;;  %2079 = vpow2.f32 %v989_v22  ;;  %v829_v8 = vrot.slane %v769_v49, 5  ;;  %v924_v10 = vsub.f32 %v2554_v50, %v825_v32  ;;  %v778_v37 = vrot.slane %v777_v4, 4 }
 0x238   :  { %v2745_v23 = vld [vmem:[#allocation1] sm:$0xff]  ;;  %v2775_v39 = vpop.eup %2069  ;;  %2081 = vpow2.f32 %v991_v45  ;;  %v830_v16 = vrot.slane %v769_v49, 6  ;;  %v925_v56 = vsub.f32 %v2561_v53, %v826_v55  ;;  %v926_v43 = vsub.f32 %v2565_v58, %v827_v18 }
 0x239   :  { %1133 = vst [vmem:[#allocation1] ss:$9 sm:$0xff] %v2743_v28  ;;  %v2783_v19 = vpop.eup %2071  ;;  %v775_v21 = vrot.slane %v774_v29, 1  ;;  %v927_v62 = vsub.f32 %v2568_v59, %v828_v40  ;;  %v993_v50 = vmul.f32 1.442695, %v923_v42  ;;  %v928_v53 = vsub.f32 %v2571_v60, %v829_v8 }
 0x23a   :  { %1135 = vst [vmem:[#allocation1 + $0x1] ss:$9 sm:$0xff] %v2747_v20  ;;  %v2786_v1 = vpop.eup %2073  ;;  %v779_v17 = vmax.f32 %v777_v4, %v778_v37  ;;  %v995_v63 = vmul.f32 1.442695, %v924_v10  ;;  %v929_v58 = vsub.f32 %v2574_v61, %v830_v16  ;;  %v997_v49 = vmul.f32 1.442695, %v925_v56 }
 0x23b   :  { %1137 = vst [vmem:[#allocation1 + $0x2] ss:$9 sm:$0xff] %v2750_v2  ;;  %v2790_v11 = vpop.eup %2075  ;;  %v999_v57 = vmul.f32 1.442695, %v926_v43  ;;  %v776_v59 = vmax.f32 %v774_v29, %v775_v21  ;;  %v1001_v22 = vmul.f32 1.442695, %v927_v62  ;;  %2083 = vpow2.f32 %v993_v50 }
 0x23c   :  { %1139 = vst [vmem:[#allocation1 + $0x3] ss:$9 sm:$0xff] %v2757_v6  ;;  %v2794_v48 = vpop.eup %2077  ;;  %v1003_v24 = vmul.f32 1.442695, %v928_v53  ;;  %v780_v45 = vrot.slane %v779_v17, 2  ;;  %2085 = vpow2.f32 %v995_v63  ;;  %v784_v61 = vsel %vm748_vm13, %v2678_v26, -inf }
 0x23d   :  { %1141 = vst [vmem:[#allocation1 + $0x4] ss:$9 sm:$0xff] %v2760_v41  ;;  %v2798_v38 = vpop.eup %2079  ;;  %2087 = vpow2.f32 %v997_v49  ;;  %v1005_v60 = vmul.f32 1.442695, %v929_v58  ;;  %v831_v32 = vrot.slane %v776_v59, 1  ;;  %v832_v55 = vrot.slane %v776_v59, 2 }
 0x23e   :  { %1143 = vst [vmem:[#allocation1 + $0x5] ss:$9 sm:$0xff] %v2764_v25  ;;  %v2802_v44 = vpop.eup %2081  ;;  %2089 = vpow2.f32 %v999_v57  ;;  %v833_v4 = vrot.slane %v776_v59, 3  ;;  %v781_v18 = vmax.f32 %v779_v17, %v780_v45  ;;  %v834_v40 = vrot.slane %v776_v59, 4 }
 0x23f   :  { %1145 = vst [vmem:[#allocation1 + $0x6] ss:$9 sm:$0xff] %v2768_v54  ;;  %2091 = vpow2.f32 %v1001_v22  ;;  %v930_v42 = vsub.f32 %v2581_v3, %v776_v59  ;;  %v835_v37 = vrot.slane %v776_v59, 5  ;;  %v931_v16 = vsub.f32 %v2584_v35, %v831_v32 }
 0x240   :  { %2093 = vpow2.f32 %v1003_v24  ;;  %v785_v56 = vrot.slane %v784_v61, 4  ;;  %v836_v43 = vrot.slane %v776_v59, 6  ;;  %v932_v21 = vsub.f32 %v2589_v9, %v832_v55 }
 0x241   :  { %v2809_v29 = vpop.eup %2083  ;;  %2095 = vpow2.f32 %v1005_v60  ;;  %v933_v3 = vsub.f32 %v2597_v13, %v833_v4  ;;  %v782_v50 = vrot.slane %v781_v18, 1  ;;  %v934_v35 = vsub.f32 %v2593_v12, %v834_v40 }
 0x242   :  { %v2814_v10 = vpop.eup %2085  ;;  %v1007_v17 = vmul.f32 1.442695, %v930_v42  ;;  %v935_v9 = vsub.f32 %v2600_v14, %v835_v37  ;;  %v786_v58 = vmax.f32 %v784_v61, %v785_v56  ;;  %v1009_v49 = vmul.f32 1.442695, %v931_v16 }
 0x243   :  { %v2818_v26 = vpop.eup %2087  ;;  %v936_v13 = vsub.f32 %v2604_v15, %v836_v43  ;;  %v1011_v59 = vmul.f32 1.442695, %v932_v21  ;;  %v1013_v22 = vmul.f32 1.442695, %v933_v3  ;;  %v783_v12 = vmax.f32 %v781_v18, %v782_v50 }
 0x244   :  { %v2822_v62 = vpop.eup %2089  ;;  %v1015_v24 = vmul.f32 1.442695, %v934_v35  ;;  %2097 = vpow2.f32 %v1007_v17  ;;  %v1017_v45 = vmul.f32 1.442695, %v935_v9  ;;  %v787_v60 = vrot.slane %v786_v58, 2 }
 0x245   :  { %v2826_v53 = vpop.eup %2091  ;;  %2099 = vpow2.f32 %v1009_v49  ;;  %v1019_v14 = vmul.f32 1.442695, %v936_v13  ;;  %v837_v32 = vrot.slane %v783_v12, 1  ;;  %v838_v55 = vrot.slane %v783_v12, 2 }
 0x246   :  { %v2779_v46 = vld [vmem:[#allocation1] sm:$0xff]  ;;  %v2830_v63 = vpop.eup %2093  ;;  %2101 = vpow2.f32 %v1011_v59  ;;  %v791_v15 = vsel %vm748_vm13, %v2711_v27, -inf  ;;  %v839_v61 = vrot.slane %v783_v12, 3  ;;  %v788_v4 = vmax.f32 %v786_v58, %v787_v60 }
 0x247   :  { %1147 = vst [vmem:[#allocation1] ss:$9 sm:$0xff] %v2775_v39  ;;  %v2834_v57 = vpop.eup %2095  ;;  %2103 = vpow2.f32 %v1013_v22  ;;  %v840_v40 = vrot.slane %v783_v12, 4  ;;  %v937_v42 = vsub.f32 %v2611_v33, %v783_v12  ;;  %v841_v56 = vrot.slane %v783_v12, 5  ;;  %v3181_v59 = vld [vmem:[#allocation5_spill] sm:$0xff] }
 0x248   :  { %1148 = vst [vmem:[#allocation1 + $0x1] ss:$9 sm:$0xff] %v2783_v19  ;;  %2105 = vpow2.f32 %v1015_v24  ;;  %v938_v43 = vsub.f32 %v2614_v36, %v837_v32  ;;  %v792_v21 = vrot.slane %v791_v15, 4  ;;  %v842_v3 = vrot.slane %v783_v12, 6  ;;  %v3180_v36 = vld [vmem:[#allocation6_spill] sm:$0xff] }
 0x249   :  { %1149 = vst [vmem:[#allocation1 + $0x2] ss:$9 sm:$0xff] %v2786_v1  ;;  %2107 = vpow2.f32 %v1017_v45  ;;  %v939_v50 = vsub.f32 %v2619_v47, %v838_v55  ;;  %v789_v33 = vrot.slane %v788_v4, 1  ;;  %v940_v17 = vsub.f32 %v2624_v52, %v839_v61  ;;  %v3183_v52 = vld [vmem:[#allocation7_spill] sm:$0xff] }
 0x24a   :  { %1150 = vst [vmem:[#allocation1 + $0x3] ss:$9 sm:$0xff] %v2790_v11  ;;  %v2841_v18 = vpop.eup %2097  ;;  %2109 = vpow2.f32 %v1019_v14  ;;  %v941_v58 = vsub.f32 %v3180_v36, %v840_v40  ;;  %v1021_v49 = vmul.f32 1.442695, %v937_v42  ;;  %v942_v47 = vsub.f32 %v3181_v59, %v841_v56 }
 0x24b   :  { %1151 = vst [vmem:[#allocation1 + $0x4] ss:$9 sm:$0xff] %v2794_v48  ;;  %v2846_v16 = vpop.eup %2099  ;;  %v793_v22 = vmax.f32 %v791_v15, %v792_v21  ;;  %v1023_v12 = vmul.f32 1.442695, %v938_v43  ;;  %v943_v45 = vsub.f32 %v3183_v52, %v842_v3  ;;  %v1025_v60 = vmul.f32 1.442695, %v939_v50 }
 0x24c   :  { %1152 = vst [vmem:[#allocation1 + $0x5] ss:$9 sm:$0xff] %v2798_v38  ;;  %v2850_v27 = vpop.eup %2101  ;;  %v790_v14 = vmax.f32 %v788_v4, %v789_v33  ;;  %v1027_v32 = vmul.f32 1.442695, %v940_v17  ;;  %v1029_v55 = vmul.f32 1.442695, %v941_v58  ;;  %2111 = vpow2.f32 %v1021_v49 }
 0x24d   :  { %1153 = vst [vmem:[#allocation1 + $0x6] ss:$9 sm:$0xff] %v2802_v44  ;;  %v2854_v35 = vpop.eup %2103  ;;  %v1031_v61 = vmul.f32 1.442695, %v942_v47  ;;  %v794_v40 = vrot.slane %v793_v22, 2  ;;  %2113 = vpow2.f32 %v1023_v12  ;;  %v798_v43 = vsel %vm748_vm13, %v2745_v23, -inf }
 0x24e   :  { %v2858_v9 = vpop.eup %2105  ;;  %v1033_v15 = vmul.f32 1.442695, %v943_v45  ;;  %2115 = vpow2.f32 %v1025_v60  ;;  %v843_v42 = vrot.slane %v790_v14, 1  ;;  %v844_v56 = vrot.slane %v790_v14, 2  ;;  %v3185_v33 = vld [vmem:[#allocation8_spill] sm:$0xff]  ;;  %v3187_v47 = vld [vmem:[#allocation9_spill] sm:$0xff] }
 0x24f   :  { %v2862_v13 = vpop.eup %2107  ;;  %2117 = vpow2.f32 %v1027_v32  ;;  %v845_v21 = vrot.slane %v790_v14, 3  ;;  %v795_v4 = vmax.f32 %v793_v22, %v794_v40  ;;  %v846_v50 = vrot.slane %v790_v14, 4  ;;  %v3189_v22 = vld [vmem:[#allocation10_spill] sm:$0xff] }
 0x250   :  { %v2866_v24 = vpop.eup %2109  ;;  %2119 = vpow2.f32 %v1029_v55  ;;  %v944_v17 = vsub.f32 %v3185_v33, %v790_v14  ;;  %v847_v49 = vrot.slane %v790_v14, 5  ;;  %v799_v59 = vrot.slane %v798_v43, 4  ;;  %v3191_v55 = vld [vmem:[#allocation11_spill] sm:$0xff] }
 0x251   :  { %3182 = vst [vmem:[#allocation6_spill] sm:$0xff] %v2866_v24  ;;  %2121 = vpow2.f32 %v1031_v61  ;;  %v945_v12 = vsub.f32 %v3187_v47, %v843_v42  ;;  %v848_v52 = vrot.slane %v790_v14, 6  ;;  %v946_v45 = vsub.f32 %v3189_v22, %v844_v56  ;;  %v3194_v14 = vld [vmem:[#allocation14_spill] sm:$0xff] }
 0x252   :  { %v2873_v3 = vpop.eup %2111  ;;  %2123 = vpow2.f32 %v1033_v15  ;;  %v796_v32 = vrot.slane %v795_v4, 1  ;;  %v947_v61 = vsub.f32 %v3191_v55, %v845_v21  ;;  %v3192_v15 = vld [vmem:[#allocation12_spill] sm:$0xff]  ;;  %v1035_v33 = vmul.f32 1.442695, %v944_v17  ;;  %v3196_v21 = vld [vmem:[#allocation13_spill] sm:$0xff] }
 0x253   :  { %3184 = vst [vmem:[#allocation5_spill] sm:$0xff] %v2873_v3  ;;  %v2878_v58 = vpop.eup %2113  ;;  %v948_v42 = vsub.f32 %v3192_v15, %v846_v50  ;;  %v949_v56 = vsub.f32 %v3194_v14, %v847_v49  ;;  %v800_v22 = vmax.f32 %v798_v43, %v799_v59  ;;  %v950_v55 = vsub.f32 %v3196_v21, %v848_v52  ;;  %v3200_v14 = vld [vmem:[#allocation16_spill] sm:$0xff] }
 0x254   :  { %v2812_v8 = vld [vmem:[#allocation1] sm:$0xff]  ;;  %3186 = vst [vmem:[#allocation7_spill] sm:$0xff] %v2878_v58  ;;  %v2882_v23 = vpop.eup %2115  ;;  %v1041_v50 = vmul.f32 1.442695, %v947_v61  ;;  %2125 = vpow2.f32 %v1035_v33 }
 0x255   :  { %1155 = vst [vmem:[#allocation1] ss:$9 sm:$0xff] %v2809_v29  ;;  %v2886_v60 = vpop.eup %2117  ;;  %v1043_v17 = vmul.f32 1.442695, %v948_v42  ;;  %v1045_v15 = vmul.f32 1.442695, %v949_v56 }
 0x256   :  { %1156 = vst [vmem:[#allocation1 + $0x1] ss:$9 sm:$0xff] %v2814_v10  ;;  %v2890_v40 = vpop.eup %2119  ;;  %v1047_v43 = vmul.f32 1.442695, %v950_v55  ;;  %v1211_v55 = vsel %vm748_vm13, %v2779_v46, 0.0 }
 0x257   :  { %1157 = vst [vmem:[#allocation1 + $0x2] ss:$9 sm:$0xff] %v2818_v26  ;;  %v2894_v47 = vpop.eup %2121  ;;  %v1212_v46 = vrot.slane %v1211_v55, 4 }
 0x258   :  { %1158 = vst [vmem:[#allocation1 + $0x3] ss:$9 sm:$0xff] %v2822_v62 }
 0x259   :  { %1159 = vst [vmem:[#allocation1 + $0x4] ss:$9 sm:$0xff] %v2826_v53 }
 0x25a   :  { %1160 = vst [vmem:[#allocation1 + $0x5] ss:$9 sm:$0xff] %v2830_v63 }
 0x25b   :  { %1161 = vst [vmem:[#allocation1 + $0x6] ss:$9 sm:$0xff] %v2834_v57 }
 0x25c   :  { %3188 = vst [vmem:[#allocation8_spill] sm:$0xff] %v2882_v23 }
 0x25d   :  { %3190 = vst [vmem:[#allocation9_spill] sm:$0xff] %v2886_v60 }
 0x25e   :  { %3193 = vst [vmem:[#allocation10_spill] sm:$0xff] %v2894_v47 }
 0x262   :  { %v2844_v37 = vld [vmem:[#allocation1] sm:$0xff] }
 0x263   :  { %1163 = vst [vmem:[#allocation1] ss:$9 sm:$0xff] %v2841_v18 }
 0x264   :  { %1164 = vst [vmem:[#allocation1 + $0x1] ss:$9 sm:$0xff] %v2846_v16 }
 0x265   :  { %1165 = vst [vmem:[#allocation1 + $0x2] ss:$9 sm:$0xff] %v2850_v27 }
 0x266   :  { %1166 = vst [vmem:[#allocation1 + $0x3] ss:$9 sm:$0xff] %v2854_v35 }
 0x267   :  { %1167 = vst [vmem:[#allocation1 + $0x4] ss:$9 sm:$0xff] %v2858_v9 }
 0x268   :  { %1168 = vst [vmem:[#allocation1 + $0x5] ss:$9 sm:$0xff] %v2862_v13 }
 0x269   :  { %1169 = vst [vmem:[#allocation1 + $0x6] ss:$9 sm:$0xff] %v2866_v24  ;;  %v797_v24 = vmax.f32 %v795_v4, %v796_v32  ;;  %v3198_v32 = vld [vmem:[#allocation15_spill] sm:$0xff] }
 0x26b   :  { %v849_v49 = vrot.slane %v797_v24, 1  ;;  %v850_v59 = vrot.slane %v797_v24, 2  ;;  %v851_v52 = vrot.slane %v797_v24, 3  ;;  %v852_v4 = vrot.slane %v797_v24, 4 }
 0x26c   :  { %v951_v61 = vsub.f32 %v3198_v32, %v797_v24  ;;  %v854_v21 = vrot.slane %v797_v24, 6  ;;  %v3206_v32 = vld [vmem:[#allocation19_spill] sm:$0xff] }
 0x270   :  { %v2876_v36 = vld [vmem:[#allocation1] sm:$0xff] }
 0x271   :  { %1171 = vst [vmem:[#allocation1] ss:$9 sm:$0xff] %v2873_v3  ;;  %v2898_v3 = vpop.eup %2123 }
 0x272   :  { %1172 = vst [vmem:[#allocation1 + $0x1] ss:$9 sm:$0xff] %v2878_v58  ;;  %v1037_v58 = vmul.f32 1.442695, %v945_v12 }
 0x273   :  { %1173 = vst [vmem:[#allocation1 + $0x2] ss:$9 sm:$0xff] %v2882_v23  ;;  %v1039_v23 = vmul.f32 1.442695, %v946_v45  ;;  %v2903_v45 = vpop.eup %2125 }
 0x274   :  { %1174 = vst [vmem:[#allocation1 + $0x3] ss:$9 sm:$0xff] %v2886_v60  ;;  %v801_v60 = vrot.slane %v800_v22, 2  ;;  %2127 = vpow2.f32 %v1037_v58  ;;  %v853_v58 = vrot.slane %v797_v24, 5 }
 0x275   :  { %1175 = vst [vmem:[#allocation1 + $0x4] ss:$9 sm:$0xff] %v2890_v40  ;;  %2129 = vpow2.f32 %v1039_v23  ;;  %v952_v23 = vsub.f32 %v3200_v14, %v849_v49  ;;  %v955_v14 = vsub.f32 %v3206_v32, %v852_v4 }
 0x276   :  { %3195 = vst [vmem:[#allocation11_spill] sm:$0xff] %v2898_v3  ;;  %2131 = vpow2.f32 %v1041_v50  ;;  %v802_v12 = vmax.f32 %v800_v22, %v801_v60  ;;  %v3202_v60 = vld [vmem:[#allocation17_spill] sm:$0xff] }
 0x277   :  { %1176 = vst [vmem:[#allocation1 + $0x5] ss:$9 sm:$0xff] %v2894_v47  ;;  %2133 = vpow2.f32 %v1043_v17  ;;  %v953_v22 = vsub.f32 %v3202_v60, %v850_v59  ;;  %v3207_v59 = vld [vmem:[#allocation20_spill] sm:$0xff] }
 0x278   :  { %1177 = vst [vmem:[#allocation1 + $0x6] ss:$9 sm:$0xff] %v2898_v3  ;;  %2135 = vpow2.f32 %v1045_v15  ;;  %v803_v17 = vrot.slane %v802_v12, 1  ;;  %v3204_v15 = vld [vmem:[#allocation18_spill] sm:$0xff]  ;;  %v956_v60 = vsub.f32 %v3207_v59, %v853_v58  ;;  %v1213_v58 = vadd.f32 %v1212_v46, %v1211_v55 }
 0x279   :  { %3197 = vst [vmem:[#allocation12_spill] sm:$0xff] %v2903_v45  ;;  %2137 = vpow2.f32 %v1047_v43  ;;  %v954_v43 = vsub.f32 %v3204_v15, %v851_v52  ;;  %v3208_v52 = vld [vmem:[#allocation21_spill] sm:$0xff] }
 0x27a   :  { %v2908_v42 = vpop.eup %2127  ;;  %v957_v15 = vsub.f32 %v3208_v52, %v854_v21  ;;  %v804_v47 = vmax.f32 %v802_v12, %v803_v17  ;;  %v1059_v32 = vmul.f32 1.442695, %v956_v60  ;;  %v1214_v21 = vrot.slane %v1213_v58, 2 }
 0x27b   :  { %3199 = vst [vmem:[#allocation14_spill] sm:$0xff] %v2908_v42  ;;  %v2912_v56 = vpop.eup %2129  ;;  %v1055_v4 = vmul.f32 1.442695, %v954_v43 }
 0x27c   :  { %3201 = vst [vmem:[#allocation13_spill] sm:$0xff] %v2912_v56  ;;  %v2918_v50 = vpop.eup %2131  ;;  %v855_v59 = vrot.slane %v804_v47, 1  ;;  %v858_v12 = vrot.slane %v804_v47, 4  ;;  %v958_v17 = vsub.f32 %v2705_v51, %v804_v47  ;;  %v859_v55 = vrot.slane %v804_v47, 5 }
 0x27d   :  { %3203 = vst [vmem:[#allocation15_spill] sm:$0xff] %v2918_v50  ;;  %v2922_v49 = vpop.eup %2133  ;;  %v1218_v51 = vsel %vm748_vm13, %v2812_v8, 0.0 }
 0x27e   :  { %3205 = vst [vmem:[#allocation16_spill] sm:$0xff] %v2922_v49  ;;  %v2926_v24 = vpop.eup %2135  ;;  %v1219_v8 = vrot.slane %v1218_v51, 4 }
 0x27f   :  { %v2906_v33 = vld [vmem:[#allocation1] sm:$0xff]  ;;  %v2930_v3 = vpop.eup %2137 }
 0x280   :  { %1179 = vst [vmem:[#allocation1] ss:$9 sm:$0xff] %v2903_v45  ;;  %v1049_v45 = vmul.f32 1.442695, %v951_v61  ;;  %v1057_v61 = vmul.f32 1.442695, %v955_v14 }
 0x281   :  { %1180 = vst [vmem:[#allocation1 + $0x1] ss:$9 sm:$0xff] %v2908_v42  ;;  %v1051_v42 = vmul.f32 1.442695, %v952_v23  ;;  %v1061_v23 = vmul.f32 1.442695, %v957_v15  ;;  %v1215_v15 = vadd.f32 %v1214_v21, %v1213_v58 }
 0x282   :  { %1181 = vst [vmem:[#allocation1 + $0x2] ss:$9 sm:$0xff] %v2912_v56  ;;  %v1053_v56 = vmul.f32 1.442695, %v953_v22  ;;  %2139 = vpow2.f32 %v1049_v45  ;;  %v860_v14 = vrot.slane %v804_v47, 6 }
 0x283   :  { %1182 = vst [vmem:[#allocation1 + $0x3] ss:$9 sm:$0xff] %v2918_v50  ;;  %2141 = vpow2.f32 %v1051_v42  ;;  %v857_v50 = vrot.slane %v804_v47, 3 }
 0x284   :  { %1183 = vst [vmem:[#allocation1 + $0x4] ss:$9 sm:$0xff] %v2922_v49  ;;  %2143 = vpow2.f32 %v1053_v56  ;;  %v856_v49 = vrot.slane %v804_v47, 2  ;;  %v959_v56 = vsub.f32 %v2709_v34, %v855_v59  ;;  %v963_v47 = vsub.f32 %v2730_v30, %v859_v55 }
 0x285   :  { %1184 = vst [vmem:[#allocation1 + $0x5] ss:$9 sm:$0xff] %v2926_v24  ;;  %2145 = vpow2.f32 %v1055_v4  ;;  %v961_v52 = vsub.f32 %v2722_v5, %v857_v50  ;;  %v962_v4 = vsub.f32 %v2726_v0, %v858_v12  ;;  %v964_v5 = vsub.f32 %v2735_v7, %v860_v14 }
 0x286   :  { %1185 = vst [vmem:[#allocation1 + $0x6] ss:$9 sm:$0xff] %v2930_v3  ;;  %2147 = vpow2.f32 %v1057_v61  ;;  %v960_v60 = vsub.f32 %v2715_v31, %v856_v49  ;;  %v1063_v61 = vmul.f32 1.442695, %v958_v17  ;;  %v1065_v49 = vmul.f32 1.442695, %v959_v56 }
 0x287   :  { %2149 = vpow2.f32 %v1059_v32  ;;  %v1069_v58 = vmul.f32 1.442695, %v961_v52  ;;  %v1216_v0 = vrot.slane %v1215_v15, 1  ;;  %v1073_v59 = vmul.f32 1.442695, %v963_v47 }
 0x288   :  { %v2935_v22 = vpop.eup %2139  ;;  %2151 = vpow2.f32 %v1061_v23  ;;  %v1067_v50 = vmul.f32 1.442695, %v960_v60  ;;  %v1071_v23 = vmul.f32 1.442695, %v962_v4  ;;  %v1220_v30 = vadd.f32 %v1219_v8, %v1218_v51 }
 0x289   :  { %v2940_v42 = vpop.eup %2141  ;;  %2153 = vpow2.f32 %v1063_v61  ;;  %v1075_v21 = vmul.f32 1.442695, %v964_v5  ;;  %v1217_v12 = vadd.f32 %v1216_v0, %v1215_v15  ;;  %v1225_v60 = vsel %vm748_vm13, %v2844_v37, 0.0 }
 0x28a   :  { %v2944_v43 = vpop.eup %2143  ;;  %2155 = vpow2.f32 %v1065_v49  ;;  %v1221_v17 = vrot.slane %v1220_v30, 2  ;;  %v1226_v61 = vrot.slane %v1225_v60, 4 }
 0x28b   :  { %v2950_v46 = vpop.eup %2145  ;;  %2157 = vpow2.f32 %v1067_v50 }
 0x28c   :  { %v2954_v34 = vpop.eup %2147  ;;  %2159 = vpow2.f32 %v1069_v58  ;;  %v1222_v52 = vadd.f32 %v1221_v17, %v1220_v30  ;;  %v1227_v8 = vadd.f32 %v1226_v61, %v1225_v60 }
 0x28d   :  { %v2938_v45 = vld [vmem:[#allocation1] sm:$0xff]  ;;  %v2958_v31 = vpop.eup %2149  ;;  %2161 = vpow2.f32 %v1071_v23 }
 0x28e   :  { %1187 = vst [vmem:[#allocation1] ss:$9 sm:$0xff] %v2935_v22  ;;  %v2962_v32 = vpop.eup %2151  ;;  %2163 = vpow2.f32 %v1073_v59  ;;  %v1223_v37 = vrot.slane %v1222_v52, 1  ;;  %v1228_v30 = vrot.slane %v1227_v8, 2 }
 0x28f   :  { %1188 = vst [vmem:[#allocation1 + $0x1] ss:$9 sm:$0xff] %v2940_v42  ;;  %v2967_v7 = vpop.eup %2153  ;;  %2165 = vpow2.f32 %v1075_v21 }
 0x290   :  { %1189 = vst [vmem:[#allocation1 + $0x2] ss:$9 sm:$0xff] %v2944_v43  ;;  %v2971_v56 = vpop.eup %2155  ;;  %2167 = vrcp.f32 %v1217_v12  ;;  %v1224_v50 = vadd.f32 %v1223_v37, %v1222_v52 }
 0x291   :  { %1190 = vst [vmem:[#allocation1 + $0x3] ss:$9 sm:$0xff] %v2950_v46  ;;  %v2974_v14 = vpop.eup %2157 }
 0x292   :  { %1191 = vst [vmem:[#allocation1 + $0x4] ss:$9 sm:$0xff] %v2954_v34  ;;  %v2979_v51 = vpop.eup %2159  ;;  %2169 = vrcp.f32 %v1224_v50 }
 0x293   :  { %1192 = vst [vmem:[#allocation1 + $0x5] ss:$9 sm:$0xff] %v2958_v31  ;;  %v2982_v15 = vpop.eup %2161 }
 0x294   :  { %1193 = vst [vmem:[#allocation1 + $0x6] ss:$9 sm:$0xff] %v2962_v32  ;;  %v2985_v4 = vpop.eup %2163 }
 0x295   :  { %3209 = vst [vmem:[#allocation17_spill] sm:$0xff] %v2982_v15  ;;  %v2988_v47 = vpop.eup %2165 }
 0x296   :  { %3210 = vst [vmem:[#allocation18_spill] sm:$0xff] %v2985_v4  ;;  %v2168_v49 = vpop.eup %2167 }
 0x297   :  { %3211 = vst [vmem:[#allocation19_spill] sm:$0xff] %v2988_v47  ;;  %v1283_v5 = vrot.slane %v2168_v49, 1  ;;  %v1284_v58 = vrot.slane %v2168_v49, 2  ;;  %v1285_v0 = vrot.slane %v2168_v49, 3  ;;  %v1286_v23 = vrot.slane %v2168_v49, 4 }
 0x298   :  { %v1379_v59 = vmul.f32 %v2168_v49, %v2743_v28  ;;  %v1287_v12 = vrot.slane %v2168_v49, 5  ;;  %v1229_v28 = vadd.f32 %v1228_v30, %v1227_v8 }
 0x299   :  { %v1380_v17 = vmul.f32 %v2747_v20, %v1283_v5  ;;  %v1381_v60 = vmul.f32 %v2750_v2, %v1284_v58  ;;  %v1382_v52 = vmul.f32 %v2757_v6, %v1285_v0  ;;  %v1383_v61 = vmul.f32 %v2760_v41, %v1286_v23 }
 0x29b   :  { %v2969_v55 = vld [vmem:[#allocation1] sm:$0xff] }
 0x29c   :  { %1195 = vst [vmem:[#allocation1] ss:$9 sm:$0xff] %v2967_v7 }
 0x29d   :  { %1196 = vst [vmem:[#allocation1 + $0x1] ss:$9 sm:$0xff] %v2971_v56 }
 0x29e   :  { %1197 = vst [vmem:[#allocation1 + $0x2] ss:$9 sm:$0xff] %v2974_v14 }
 0x29f   :  { %1198 = vst [vmem:[#allocation1 + $0x3] ss:$9 sm:$0xff] %v2979_v51 }
 0x2a0   :  { %1199 = vst [vmem:[#allocation1 + $0x4] ss:$9 sm:$0xff] %v2982_v15  ;;  %v1384_v15 = vmul.f32 %v2764_v25, %v1287_v12 }
 0x2a1   :  { %1200 = vst [vmem:[#allocation1 + $0x5] ss:$9 sm:$0xff] %v2985_v4  ;;  %v1232_v4 = vsel %vm748_vm13, %v2876_v36, 0.0  ;;  %v2170_v36 = vpop.eup %2169 }
 0x2a2   :  { %1201 = vst [vmem:[#allocation1 + $0x6] ss:$9 sm:$0xff] %v2988_v47  ;;  %v1288_v47 = vrot.slane %v2168_v49, 6  ;;  %v1233_v37 = vrot.slane %v1232_v4, 4  ;;  %v1230_v49 = vrot.slane %v1229_v28, 1  ;;  %v1289_v5 = vrot.slane %v2170_v36, 1 }
 0x2a3   :  { %v1290_v50 = vrot.slane %v2170_v36, 2  ;;  %v1291_v58 = vrot.slane %v2170_v36, 3  ;;  %v1292_v41 = vrot.slane %v2170_v36, 4  ;;  %v1386_v8 = vmul.f32 %v2170_v36, %v2775_v39 }
 0x2a4   :  { %v1385_v20 = vmul.f32 %v2768_v54, %v1288_v47  ;;  %v1234_v2 = vadd.f32 %v1233_v37, %v1232_v4  ;;  %v1231_v6 = vadd.f32 %v1230_v49, %v1229_v28  ;;  %v1293_v23 = vrot.slane %v2170_v36, 5 }
 0x2a5   :  { %v1387_v25 = vmul.f32 %v2783_v19, %v1289_v5  ;;  %v1294_v30 = vrot.slane %v2170_v36, 6  ;;  %v1388_v54 = vmul.f32 %v2786_v1, %v1290_v50  ;;  %v1389_v4 = vmul.f32 %v2790_v11, %v1291_v58 }
 0x2a6   :  { %v1235_v0 = vrot.slane %v1234_v2, 2  ;;  %2171 = vrcp.f32 %v1231_v6  ;;  %v1390_v12 = vmul.f32 %v2794_v48, %v1292_v41  ;;  %v1391_v39 = vmul.f32 %v2798_v38, %v1293_v23 }
 0x2a7   :  { %v1246_v6 = vsel %vm748_vm13, %v2938_v45, 0.0 }
 0x2a8   :  { %v1236_v47 = vadd.f32 %v1235_v0, %v1234_v2 }
 0x2a9   :  { %v2993_v21 = vld [vmem:[#allocation1] sm:$0xff] }
 0x2aa   :  { %1491 = vst [vmem:[#allocation1] ss:$9 sm:$0xff] %v1379_v59  ;;  %v1237_v1 = vrot.slane %v1236_v47, 1 }
 0x2ab   :  { %1493 = vst [vmem:[#allocation1 + $0x1] ss:$9 sm:$0xff] %v1380_v17  ;;  %v1392_v17 = vmul.f32 %v2802_v44, %v1294_v30 }
 0x2ac   :  { %1495 = vst [vmem:[#allocation1 + $0x2] ss:$9 sm:$0xff] %v1381_v60  ;;  %v2172_v60 = vpop.eup %2171 }
 0x2ad   :  { %1497 = vst [vmem:[#allocation1 + $0x3] ss:$9 sm:$0xff] %v1382_v52  ;;  %v1296_v11 = vrot.slane %v2172_v60, 2  ;;  %v1297_v28 = vrot.slane %v2172_v60, 3  ;;  %v1393_v48 = vmul.f32 %v2172_v60, %v2809_v29  ;;  %v1299_v38 = vrot.slane %v2172_v60, 5 }
 0x2ae   :  { %1499 = vst [vmem:[#allocation1 + $0x4] ss:$9 sm:$0xff] %v1383_v61  ;;  %v1295_v61 = vrot.slane %v2172_v60, 1  ;;  %v1300_v5 = vrot.slane %v2172_v60, 6 }
 0x2af   :  { %1501 = vst [vmem:[#allocation1 + $0x5] ss:$9 sm:$0xff] %v1384_v15  ;;  %v1239_v15 = vsel %vm748_vm13, %v2906_v33, 0.0  ;;  %v1238_v33 = vadd.f32 %v1237_v1, %v1236_v47  ;;  %v1395_v50 = vmul.f32 %v2818_v26, %v1296_v11  ;;  %v1396_v58 = vmul.f32 %v2822_v62, %v1297_v28 }
 0x2b0   :  { %1503 = vst [vmem:[#allocation1 + $0x6] ss:$9 sm:$0xff] %v1385_v20  ;;  %v1240_v19 = vrot.slane %v1239_v15, 4  ;;  %v1298_v20 = vrot.slane %v2172_v60, 4  ;;  %v1394_v49 = vmul.f32 %v2814_v10, %v1295_v61  ;;  %v1398_v41 = vmul.f32 %v2830_v63, %v1299_v38  ;;  %v3212_v60 = vld [vmem:[#allocation6_spill] sm:$0xff]  ;;  %v3214_v38 = vld [vmem:[#allocation7_spill] sm:$0xff] }
 0x2b1   :  { %2173 = vrcp.f32 %v1238_v33  ;;  %v1247_v10 = vrot.slane %v1246_v6, 4 }
 0x2b2   :  { %v1241_v52 = vadd.f32 %v1240_v19, %v1239_v15  ;;  %v1397_v29 = vmul.f32 %v2826_v53, %v1298_v20  ;;  %v3213_v20 = vld [vmem:[#allocation5_spill] sm:$0xff] }
 0x2b3   :  { %v1248_v45 = vadd.f32 %v1247_v10, %v1246_v6  ;;  %v1260_v6 = vsel %vm748_vm13, %v2993_v21, 0.0 }
 0x2b4   :  { %v1242_v37 = vrot.slane %v1241_v52, 2 }
 0x2b5   :  { %v1249_v15 = vrot.slane %v1248_v45, 2 }
 0x2b6   :  { %v1243_v0 = vadd.f32 %v1242_v37, %v1241_v52 }
 0x2b7   :  { %v1504_v59 = vld [vmem:[#allocation1] sm:$0xff]  ;;  %v2174_v26 = vpop.eup %2173 }
 0x2b8   :  { %1505 = vst [vmem:[#allocation1] ss:$9 sm:$0xff] %v1386_v8  ;;  %v1569_v44 = vpack.c.bf16 %v1504_v59, %v1504_v59  ;;  %v1399_v8 = vmul.f32 %v2834_v57, %v1300_v5  ;;  %v1244_v23 = vrot.slane %v1243_v0, 1  ;;  %v1302_v59 = vrot.slane %v2174_v26, 2 }
 0x2b9   :  { %1506 = vst [vmem:[#allocation1 + $0x1] ss:$9 sm:$0xff] %v1387_v25  ;;  %v1301_v25 = vrot.slane %v2174_v26, 1  ;;  %v1303_v30 = vrot.slane %v2174_v26, 3  ;;  %v1400_v53 = vmul.f32 %v2174_v26, %v2841_v18  ;;  %v1253_v57 = vsel %vm748_vm13, %v2969_v55, 0.0 }
 0x2ba   :  { %1507 = vst [vmem:[#allocation1 + $0x2] ss:$9 sm:$0xff] %v1388_v54  ;;  %v1245_v62 = vadd.f32 %v1244_v23, %v1243_v0  ;;  %v1304_v54 = vrot.slane %v2174_v26, 4  ;;  %v1250_v18 = vadd.f32 %v1249_v15, %v1248_v45  ;;  %v1254_v1 = vrot.slane %v1253_v57, 4 }
 0x2bb   :  { %1508 = vst [vmem:[#allocation1 + $0x3] ss:$9 sm:$0xff] %v1389_v4  ;;  %v1305_v4 = vrot.slane %v2174_v26, 5  ;;  %v1401_v63 = vmul.f32 %v2846_v16, %v1301_v25  ;;  %v1403_v19 = vmul.f32 %v2854_v35, %v1303_v30 }
 0x2bc   :  { %1509 = vst [vmem:[#allocation1 + $0x4] ss:$9 sm:$0xff] %v1390_v12  ;;  %2175 = vrcp.f32 %v1245_v62  ;;  %v1306_v12 = vrot.slane %v2174_v26, 6  ;;  %v1251_v33 = vrot.slane %v1250_v18, 1  ;;  %v3218_v26 = vld [vmem:[#allocation11_spill] sm:$0xff] }
 0x2bd   :  { %1510 = vst [vmem:[#allocation1 + $0x5] ss:$9 sm:$0xff] %v1391_v39  ;;  %v1402_v39 = vmul.f32 %v2850_v27, %v1302_v59  ;;  %v1405_v16 = vmul.f32 %v2862_v13, %v1305_v4  ;;  %v1255_v27 = vadd.f32 %v1254_v1, %v1253_v57  ;;  %v3221_v1 = vld [vmem:[#allocation13_spill] sm:$0xff] }
 0x2be   :  { %1511 = vst [vmem:[#allocation1 + $0x6] ss:$9 sm:$0xff] %v1392_v17  ;;  %v1404_v17 = vmul.f32 %v2858_v9, %v1304_v54  ;;  %v1406_v52 = vmul.f32 %v3212_v60, %v1306_v12  ;;  %v1252_v35 = vadd.f32 %v1251_v33, %v1250_v18  ;;  %v3220_v12 = vld [vmem:[#allocation14_spill] sm:$0xff]  ;;  %v3222_v60 = vld [vmem:[#allocation15_spill] sm:$0xff]  ;;  %v3223_v33 = vld [vmem:[#allocation16_spill] sm:$0xff] }
 0x2bf   :  { %v1256_v28 = vrot.slane %v1255_v27, 2 }
 0x2c0   :  { %2177 = vrcp.f32 %v1252_v35 }
 0x2c2   :  { %v2176_v55 = vpop.eup %2175 }
 0x2c3   :  { %v1307_v61 = vrot.slane %v2176_v55, 1  ;;  %v1308_v11 = vrot.slane %v2176_v55, 2  ;;  %v1309_v37 = vrot.slane %v2176_v55, 3  ;;  %v1310_v9 = vrot.slane %v2176_v55, 4 }
 0x2c5   :  { %v1512_v36 = vld [vmem:[#allocation1] sm:$0xff]  ;;  %v1408_v13 = vmul.f32 %v3214_v38, %v1307_v61 }
 0x2c6   :  { %v1570_v2 = vpack.c.bf16 %v1512_v36, %v1512_v36  ;;  %1513 = vst [vmem:[#allocation1] ss:$9 sm:$0xff] %v1393_v48  ;;  %v1407_v48 = vmul.f32 %v2176_v55, %v3213_v20  ;;  %v1311_v36 = vrot.slane %v2176_v55, 5  ;;  %v2178_v25 = vpop.eup %2177 }
 0x2c7   :  { %1514 = vst [vmem:[#allocation1 + $0x1] ss:$9 sm:$0xff] %v1394_v49  ;;  %v1313_v21 = vrot.slane %v2178_v25, 1  ;;  %v1314_v30 = vrot.slane %v2178_v25, 2  ;;  %v1315_v54 = vrot.slane %v2178_v25, 3  ;;  %v1316_v15 = vrot.slane %v2178_v25, 4 }
 0x2c8   :  { %2024 = vxpose.binary.xlu1.c.b16.start.end [1/2] (short) (narrow) %v1569_v44, %v1570_v2, 16  ;;  %1515 = vst [vmem:[#allocation1 + $0x2] ss:$9 sm:$0xff] %v1395_v50  ;;  %v1312_v44 = vrot.slane %v2176_v55, 6  ;;  %v3215_v2 = vld [vmem:[#allocation8_spill] sm:$0xff]  ;;  %v1257_v50 = vadd.f32 %v1256_v28, %v1255_v27  ;;  %v1317_v57 = vrot.slane %v2178_v25, 5 }
 0x2c9   :  { %1516 = vst [vmem:[#allocation1 + $0x3] ss:$9 sm:$0xff] %v1396_v58  ;;  %v1409_v5 = vmul.f32 %v3215_v2, %v1308_v11  ;;  %v3216_v58 = vld [vmem:[#allocation9_spill] sm:$0xff]  ;;  %v1318_v18 = vrot.slane %v2178_v25, 6  ;;  %v1418_v27 = vmul.f32 %v3223_v33, %v1316_v15 }
 0x2ca   :  { %1517 = vst [vmem:[#allocation1 + $0x4] ss:$9 sm:$0xff] %v1397_v29  ;;  %v1410_v0 = vmul.f32 %v3216_v58, %v1309_v37  ;;  %v1411_v29 = vmul.f32 %v2890_v40, %v1310_v9  ;;  %v1413_v23 = vmul.f32 %v3218_v26, %v1312_v44  ;;  %v1258_v45 = vrot.slane %v1257_v50, 1  ;;  %v3219_v40 = vld [vmem:[#allocation12_spill] sm:$0xff]  ;;  %v3224_v26 = vld [vmem:[#allocation17_spill] sm:$0xff] }
 0x2cb   :  { %1518 = vst [vmem:[#allocation1 + $0x5] ss:$9 sm:$0xff] %v1398_v41  ;;  %v3217_v41 = vld [vmem:[#allocation10_spill] sm:$0xff]  ;;  %v1414_v4 = vmul.f32 %v2178_v25, %v3219_v40  ;;  %v1419_v61 = vmul.f32 %v2926_v24, %v1317_v57  ;;  %v1420_v11 = vmul.f32 %v2930_v3, %v1318_v18  ;;  %v3229_v40 = vld [vmem:[#allocation3_spill] sm:$0xff] }
 0x2cc   :  { %1519 = vst [vmem:[#allocation1 + $0x6] ss:$9 sm:$0xff] %v1399_v8  ;;  %v1412_v10 = vmul.f32 %v3217_v41, %v1311_v36  ;;  %v1261_v8 = vrot.slane %v1260_v6, 4  ;;  %v1259_v59 = vadd.f32 %v1258_v45, %v1257_v50  ;;  %v3225_v45 = vld [vmem:[#allocation18_spill] sm:$0xff] }
 0x2ce   :  { %v1262_v62 = vadd.f32 %v1261_v8, %v1260_v6  ;;  %2179 = vrcp.f32 %v1259_v59 }
 0x2d3   :  { %v3023_v47 = vld [vmem:[#allocation1] sm:$0xff] }
 0x2d4   :  { %1521 = vst [vmem:[#allocation1] ss:$9 sm:$0xff] %v1400_v53  ;;  %v1263_v53 = vrot.slane %v1262_v62, 2 }
 0x2d5   :  { %1522 = vst [vmem:[#allocation1 + $0x1] ss:$9 sm:$0xff] %v1401_v63 }
 0x2d6   :  { %1523 = vst [vmem:[#allocation1 + $0x2] ss:$9 sm:$0xff] %v1402_v39  ;;  %v1415_v39 = vmul.f32 %v3220_v12, %v1313_v21  ;;  %v1264_v55 = vadd.f32 %v1263_v53, %v1262_v62  ;;  %v3226_v62 = vld [vmem:[#allocation19_spill] sm:$0xff]  ;;  %v3228_v53 = vld [vmem:[#allocation2_spill] sm:$0xff] }
 0x2d7   :  { %1524 = vst [vmem:[#allocation1 + $0x3] ss:$9 sm:$0xff] %v1403_v19  ;;  %v1571_v19 = vpack.c.bf16 %v3023_v47, %v3023_v47  ;;  %v2180_v47 = vpop.eup %2179 }
 0x2d8   :  { %1525 = vst [vmem:[#allocation1 + $0x4] ss:$9 sm:$0xff] %v1404_v17  ;;  %v1265_v35 = vrot.slane %v1264_v55, 1  ;;  %v1319_v28 = vrot.slane %v2180_v47, 1  ;;  %v1320_v9 = vrot.slane %v2180_v47, 2  ;;  %v1321_v20 = vrot.slane %v2180_v47, 3 }
 0x2d9   :  { %1526 = vst [vmem:[#allocation1 + $0x5] ss:$9 sm:$0xff] %v1405_v16  ;;  %v1416_v16 = vmul.f32 %v3221_v1, %v1314_v30  ;;  %v1421_v36 = vmul.f32 %v2180_v47, %v2935_v22  ;;  %v1323_v38 = vrot.slane %v2180_v47, 5  ;;  %v1324_v24 = vrot.slane %v2180_v47, 6 }
 0x2da   :  { %1527 = vst [vmem:[#allocation1 + $0x6] ss:$9 sm:$0xff] %v1406_v52  ;;  %v1417_v52 = vmul.f32 %v3222_v60, %v1315_v54  ;;  %v1266_v37 = vadd.f32 %v1265_v35, %v1264_v55  ;;  %v1423_v3 = vmul.f32 %v2944_v43, %v1320_v9  ;;  %v1424_v2 = vmul.f32 %v2950_v46, %v1321_v20  ;;  %v2017_v35 = vld [vmem:[%s3115_s5 + $0x18] sm:$0xff]  ;;  %v2015_v9 = vld [vmem:[%s3115_s5 + $0x8] sm:$0xff] }
 0x2db   :  { %v1426_v6 = vmul.f32 %v2958_v31, %v1323_v38  ;;  %v1427_v22 = vmul.f32 %v2962_v32, %v1324_v24  ;;  %v2014_v38 = vld [vmem:[%s3115_s5] sm:$0xff] }
 0x2dc   :  { %2181 = vrcp.f32 %v1266_v37 }
 0x2e1   :  { %v3034_v49 = vld [vmem:[#allocation1] sm:$0xff] }
 0x2e2   :  { %1529 = vst [vmem:[#allocation1] ss:$9 sm:$0xff] %v1407_v48  ;;  %v1322_v48 = vrot.slane %v2180_v47, 4 }
 0x2e3   :  { %1530 = vst [vmem:[#allocation1 + $0x1] ss:$9 sm:$0xff] %v1408_v13  ;;  %v1422_v13 = vmul.f32 %v2940_v42, %v1319_v28  ;;  %v2182_v42 = vpop.eup %2181  ;;  %v2016_v28 = vld [vmem:[%s3115_s5 + $0x10] sm:$0xff]  ;;  %s2187_s5 = smov 32  }
 0x2e4   :  { %1531 = vst [vmem:[#allocation1 + $0x2] ss:$9 sm:$0xff] %v1409_v5  ;;  %v1425_v5 = vmul.f32 %v2954_v34, %v1322_v48  ;;  %v1325_v58 = vrot.slane %v2182_v42, 1  ;;  %v1326_v43 = vrot.slane %v2182_v42, 2  ;;  %v1428_v46 = vmul.f32 %v2182_v42, %v2967_v7 }
 0x2e5   :  { %1532 = vst [vmem:[#allocation1 + $0x3] ss:$9 sm:$0xff] %v1410_v0  ;;  %v1327_v0 = vrot.slane %v2182_v42, 3  ;;  %v1329_v41 = vrot.slane %v2182_v42, 5  ;;  %v1330_v8 = vrot.slane %v2182_v42, 6 }
 0x2e6   :  { %1533 = vst [vmem:[#allocation1 + $0x4] ss:$9 sm:$0xff] %v1411_v29  ;;  %v1328_v29 = vrot.slane %v2182_v42, 4  ;;  %v1429_v34 = vmul.f32 %v2971_v56, %v1325_v58  ;;  %v1430_v31 = vmul.f32 %v2974_v14, %v1326_v43  ;;  %v1572_v56 = vpack.c.bf16 %v3034_v49, %v3034_v49 }
 0x2e7   :  { %1534 = vst [vmem:[#allocation1 + $0x5] ss:$9 sm:$0xff] %v1412_v10  ;;  %v1431_v32 = vmul.f32 %v2979_v51, %v1327_v0  ;;  %v1433_v25 = vmul.f32 %v3225_v45, %v1329_v41  ;;  %v1434_v59 = vmul.f32 %v3226_v62, %v1330_v8  ;;  %v3227_v51 = vld [vmem:[#allocation4_spill] sm:$0xff]  ;;  %v2185_v48 = vmov 1983009808  }
 0x2e8   :  { %1535 = vst [vmem:[#allocation1 + $0x6] ss:$9 sm:$0xff] %v1413_v23  ;;  %v1432_v23 = vmul.f32 %v3224_v26, %v1328_v29  ;;  %v1584_v30 = vpack.c.bf16 %v3227_v51, %v3227_v51 }
 0x2ea   :  { %v1855_v15 = vand.u32 %v3228_v53, %v1584_v30 }
 0x2ef   :  { %v1536_v63 = vld [vmem:[#allocation1] sm:$0xff] }
 0x2f0   :  { %v1573_v17 = vpack.c.bf16 %v1536_v63, %v1536_v63  ;;  %1537 = vst [vmem:[#allocation1] ss:$9 sm:$0xff] %v1414_v4  ;;  %v1583_v4 = vpack.c.bf16 %v3229_v40, %v3229_v40 }
 0x2f1   :  { %1538 = vst [vmem:[#allocation1 + $0x1] ss:$9 sm:$0xff] %v1415_v39 }
 0x2f2   :  { %2027 = vxpose.binary.xlu2.c.b16.start.end [1/2] (short) (narrow) %v1571_v19, %v1573_v17, 16  ;;  %1539 = vst [vmem:[#allocation1 + $0x2] ss:$9 sm:$0xff] %v1416_v16  ;;  %v1820_v49 = vand.u32 %v3228_v53, %v1583_v4 }
 0x2f3   :  { %1540 = vst [vmem:[#allocation1 + $0x3] ss:$9 sm:$0xff] %v1417_v52 }
 0x2f4   :  { %1541 = vst [vmem:[#allocation1 + $0x4] ss:$9 sm:$0xff] %v1418_v27 }
 0x2f5   :  { %1542 = vst [vmem:[#allocation1 + $0x5] ss:$9 sm:$0xff] %v1419_v61 }
 0x2f6   :  { %1543 = vst [vmem:[#allocation1 + $0x6] ss:$9 sm:$0xff] %v1420_v11 }
 0x2fd   :  { %v1544_v44 = vld [vmem:[#allocation1] sm:$0xff] }
 0x2fe   :  { %1545 = vst [vmem:[#allocation1] ss:$9 sm:$0xff] %v1421_v36  ;;  %v1574_v50 = vpack.c.bf16 %v1544_v44, %v1544_v44  ;;  %v1874_v36 = vunpack.c.l.s4 %v2185_v48 }
 0x2ff   :  { %1546 = vst [vmem:[#allocation1 + $0x1] ss:$9 sm:$0xff] %v1422_v13 }
 0x300   :  { %1547 = vst [vmem:[#allocation1 + $0x2] ss:$9 sm:$0xff] %v1423_v3  ;;  %v1875_v44 = vunpack.c.0.s8 %v1874_v36 }
 0x301   :  { %1548 = vst [vmem:[#allocation1 + $0x3] ss:$9 sm:$0xff] %v1424_v2 }
 0x302   :  { %1765 = vxpose.xlu2.c.b16.start.end [1/1] (short) (narrow) %v1574_v50, 16  ;;  %1549 = vst [vmem:[#allocation1 + $0x4] ss:$9 sm:$0xff] %v1425_v5  ;;  %v2186_v50 = vmov 1934713408  }
 0x303   :  { %1550 = vst [vmem:[#allocation1 + $0x5] ss:$9 sm:$0xff] %v1426_v6  ;;  %v1898_v6 = vunpack.c.l.s4 %v2186_v50 }
 0x304   :  { %1551 = vst [vmem:[#allocation1 + $0x6] ss:$9 sm:$0xff] %v1427_v22 }
 0x305   :  { %v1899_v0 = vunpack.c.0.s8 %v1898_v6 }
 0x30b   :  { %v1552_v10 = vld [vmem:[#allocation1] sm:$0xff] }
 0x30c   :  { %1553 = vst [vmem:[#allocation1] ss:$9 sm:$0xff] %v1428_v46  ;;  %v1575_v21 = vpack.c.bf16 %v1552_v10, %v1552_v10 }
 0x30d   :  { %1554 = vst [vmem:[#allocation1 + $0x1] ss:$9 sm:$0xff] %v1429_v34 }
 0x30e   :  { %1555 = vst [vmem:[#allocation1 + $0x2] ss:$9 sm:$0xff] %v1430_v31 }
 0x30f   :  { %1556 = vst [vmem:[#allocation1 + $0x3] ss:$9 sm:$0xff] %v1431_v32 }
 0x310   :  { %1557 = vst [vmem:[#allocation1 + $0x4] ss:$9 sm:$0xff] %v1432_v23 }
 0x311   :  { %1558 = vst [vmem:[#allocation1 + $0x5] ss:$9 sm:$0xff] %v1433_v25 }
 0x312   :  { %1559 = vst [vmem:[#allocation1 + $0x6] ss:$9 sm:$0xff] %v1434_v59 }
 0x319   :  { %v1560_v7 = vld [vmem:[#allocation1] sm:$0xff] }
 0x31a   :  { %v1576_v14 = vpack.c.bf16 %v1560_v7, %v1560_v7 }
 0x31c   :  { %2030 = vxpose.binary.xlu0.c.b16.start.end [1/2] (short) (narrow) %v1576_v14, %v1572_v56, 16 }
 0x32c   :  { %1800 = vxpose.xlu0.c.b16.start.end [1/1] (short) (narrow) %v1575_v21, 16 }
 0x374   :  { %v2025_v54 = vpop.trf.xlu1 }
 0x375   :  { %1988 = vmatmul.msk.bf16.vlgmr.msra.gmra.mxu2 %vm1601_vm14, %v2025_v54  ;;  %v2036_v54 = vld [vmem:[%s3116_s6] ss:$0 sm:$0xff] }
 0x376   :  { %1864 = vmatpush.bf16.msra.mxu2 %v1855_v15 }
 0x37c   :  { %v2026_v63 = vpop.trf.xlu1 }
 0x37d   :  { %1987 = vmatmul.msk.bf16.vlgmr.msra.gmra.mxu1 %vm1601_vm14, %v2026_v63 }
 0x37e   :  { %1829 = vmatpush.bf16.msra.mxu1 %v1820_v49 }
 0x393   :  { %v2028_v57 = vpop.trf.xlu2 }
 0x394   :  { %1991 = vmatmul.msk.bf16.vlgmr.msrb.gmra.mxu2 %vm1601_vm14, %v2028_v57 }
 0x39b   :  { %v2029_v12 = vpop.trf.xlu2 }
 0x39c   :  { %1989 = vmatmul.msk.bf16.vlgmr.msra.gmra.mxu3 %vm1601_vm14, %v2029_v12 }
 0x39d   :  { %1961 = vmatpush.bf16.msra.mxu3 %v2017_v35 }
 0x3a1   :  { %1962 = vmatpush.bf16.msra.mxu3 %v2016_v28 }
 0x3a3   :  { %v1773_v39 = vpop.trf.xlu2 }
 0x3a5   :  { %1963 = vmatpush.bf16.msra.mxu3 %v2015_v9 }
 0x3a9   :  { %1964 = vmatpush.bf16.msra.mxu3 %v2014_v38 }
 0x3ac   :  { %1992 = vmatmul.msk.bf16.vlgmr.msrb.gmra.mxu3 %vm1601_vm14, %v1773_v39 }
 0x3c8   :  { %v2031_v19 = vpop.trf.xlu0 }
 0x3c9   :  { %1990 = vmatmul.msk.bf16.vlgmr.msrb.gmra.mxu1 %vm1601_vm14, %v2031_v19 }
 0x3d0   :  { %v2032_v17 = vpop.trf.xlu0 }
 0x3d1   :  { %1994 = vmatmul.msk.bf16.vlgmr.msra.gmra.mxu2 %vm1601_vm14, %v2032_v17 }
 0x3d8   :  { %v1808_v18 = vpop.trf.xlu0 }
 0x3d9   :  { %1993 = vmatmul.msk.bf16.vlgmr.msra.gmra.mxu1 %vm1601_vm14, %v1808_v18 }
 0x3f8   :  { %v1656_v1 = vpop.f32.mrf.mxu2 }
 0x3fa   :  { %v1621_v16 = vpop.f32.mrf.mxu1 }
 0x400   :  { %v1658_v60 = vpop.f32.mrf.mxu2 }
 0x402   :  { %v1623_v52 = vpop.f32.mrf.mxu1 }
 0x417   :  { %v1761_v55 = vpop.f32.mrf.mxu2 }
 0x41f   :  { %v1691_v33 = vpop.f32.mrf.mxu3  ;;  %v1763_v27 = vpop.f32.mrf.mxu2 }
 0x420   :  { %v1870_v24 = vrot.slane %v1691_v33, 4 }
 0x422   :  { %v1872_v5 = vsel %vm1871_vm15, %v1870_v24, %v1621_v16 }
 0x423   :  { %v1876_v42 = vperm.slane %v1872_v5, %v1875_v44 }
 0x427   :  { %v1693_v61 = vpop.f32.mrf.mxu3 }
 0x42f   :  { %v1796_v11 = vpop.f32.mrf.mxu3 }
 0x437   :  { %v1798_v47 = vpop.f32.mrf.mxu3 }
 0x446   :  { %v1726_v37 = vpop.f32.mrf.mxu1 }
 0x447   :  { %v1877_v20 = vrot.slane %v1726_v37, 4 }
 0x449   :  { %v1878_v13 = vsel %vm1871_vm15, %v1877_v20, %v1656_v1 }
 0x44a   :  { %v1882_v3 = vperm.slane %v1878_v13, %v1875_v44 }
 0x44c   :  { %v1895_v22 = vrot.slane %v1882_v3, 4 }
 0x44e   :  { %v1728_v2 = vpop.f32.mrf.mxu1  ;;  %v1896_v46 = vsel %vm1871_vm15, %v1895_v22, %v1876_v42 }
 0x44f   :  { %v1900_v31 = vperm.slane %v1896_v46, %v1899_v0 }
 0x451   :  { %v1909_v62 = vrot.slane %v1900_v31, 4 }
 0x454   :  { %v1866_v58 = vpop.f32.mrf.mxu2 }
 0x455   :  { %v1889_v43 = vrot.slane %v1866_v58, 4 }
 0x456   :  { %v1831_v29 = vpop.f32.mrf.mxu1 }
 0x457   :  { %v1890_v41 = vsel %vm1871_vm15, %v1889_v43, %v1796_v11  ;;  %v1883_v34 = vrot.slane %v1831_v29, 4 }
 0x458   :  { %v1894_v10 = vperm.slane %v1890_v41, %v1875_v44 }
 0x459   :  { %v1884_v8 = vsel %vm1871_vm15, %v1883_v34, %v1761_v55 }
 0x45a   :  { %v1901_v32 = vrot.slane %v1894_v10, 4  ;;  %v1888_v26 = vperm.slane %v1884_v8, %v1875_v44 }
 0x45c   :  { %v1868_v23 = vpop.f32.mrf.mxu2  ;;  %v1902_v45 = vsel %vm1871_vm15, %v1901_v32, %v1888_v26 }
 0x45d   :  { %v1906_v25 = vperm.slane %v1902_v45, %v1899_v0 }
 0x45e   :  { %v1833_v59 = vpop.f32.mrf.mxu1 }
 0x45f   :  { %v1910_v7 = vsel %vm1871_vm15, %v1906_v25, %v1909_v62  ;;  %v1907_v56 = vrot.slane %v1906_v25, 4 }
 0x460   :  { %1912 = vrot.lane.b32.xlu2 %v1910_v7, %s2187_s5 }
 0x461   :  { %v1908_v14 = vsel %vm1871_vm15, %v1907_v56, %v1900_v31 }
 0x4ba   :  { %v1913_v21 = vpop.permute.xlu2 %1912 }
 0x4bb   :  { %v1915_v51 = vsel %vm396_vm6, %v1908_v14, %v1913_v21 }
 0x4bc   :  { %v1924_v30 = vpack.c.bf16 %v1915_v51, %v1915_v51 }
 0x4be   :  { %2011 = vmatmul.msk.bf16.vlgmr.msra.gmra.mxu3 %vm1953_vm0, %v1924_v30 }
 0x541   :  { %v1966_v53 = vpop.f32.mrf.mxu3 }
 0x542   :  { %v1967_v15 = vadd.f32 %v2036_v54, %v1966_v53 }
 0x544   :  { %1970 = vst.msk [vmem:[%s3117_s7] sm:$0xff] %vm396_vm6, %v1967_v15 }
 0x549   :  { %v1968_v40 = vpop.f32.mrf.mxu3 }

// kernel: hgt_decoder_forward.17
= control target key start
LH: loop header
LB: loop body
LE: loop exit
PB: predicated region body
PF: predicated region fallthrough
CT: control target
= control target key end

     0   :  { %vm101_vm0 = vcmask 1046528   ;;  %s215_s1 = inlined_call_operand.vmem [shape: bf16[128,128], index: 1, kind: input, shape index: {}]   ;;  %s216_s0 = inlined_call_operand.vmem [shape: f32[7,128], index: 0, kind: input, shape index: {}, may-alias: {0,2}]   ;;  %s217_s2 = inlined_call_operand.vmem [shape: f32[7,128], index: 2, kind: input, shape index: {}, may-alias: {0,2}]   ;;  %s218_s3 = inlined_call_operand.vmem [shape: f32[1,8,128], index: 3, kind: output, shape index: {}]  }
   0x1   :  { %v158_v0 = vld [vmem:[%s215_s1 + $0x38] sm:$0xff]  ;;  %v157_v1 = vld [vmem:[%s215_s1 + $0x30] sm:$0xff]  ;;  %v156_v2 = vld [vmem:[%s215_s1 + $0x28] sm:$0xff] }
   0x2   :  { %85 = vmatpush.bf16.msra.mxu0 %v158_v0  ;;  %v155_v3 = vld [vmem:[%s215_s1 + $0x20] sm:$0xff]  ;;  %v154_v4 = vld [vmem:[%s215_s1 + $0x18] sm:$0xff]  ;;  %v153_v5 = vld [vmem:[%s215_s1 + $0x10] sm:$0xff] }
   0x3   :  { %v152_v6 = vld [vmem:[%s215_s1 + $0x8] sm:$0xff]  ;;  %v151_v7 = vld [vmem:[%s215_s1] sm:$0xff] }
   0x4   :  { %v19_v8 = vld [vmem:[%s216_s0] sm:$0x7f] }
   0x5   :  { %v20_v9 = vpack.c.bf16 %v19_v8, %v19_v8  ;;  %v99_v10 = vld [vmem:[%s217_s2] sm:$0x7f] }
   0x6   :  { %86 = vmatpush.bf16.msra.mxu0 %v157_v1 }
   0xa   :  { %87 = vmatpush.bf16.msra.mxu0 %v156_v2 }
   0xe   :  { %88 = vmatpush.bf16.msra.mxu0 %v155_v3 }
  0x12   :  { %89 = vmatpush.bf16.msra.mxu0 %v154_v4 }
  0x16   :  { %90 = vmatpush.bf16.msra.mxu0 %v153_v5 }
  0x1a   :  { %91 = vmatpush.bf16.msra.mxu0 %v152_v6 }
  0x1e   :  { %92 = vmatpush.bf16.msra.mxu0 %v151_v7 }
  0x21   :  { %93 = vmatmul.bf16.vlgmr.msra.gmra.mxu0 %v20_v9 }
  0x9e   :  { %v94_v11 = vpop.f32.mrf.mxu0 }
  0x9f   :  { %v100_v12 = vmul.f32 %v99_v10, %v94_v11 }
  0xa1   :  { %v102_v13 = vsel %vm101_vm0, %v100_v12, 0.0 }
  0xa2   :  { %103 = vadd.xlane.f32.xlu0 %v102_v13 }
  0xa6   :  { %v96_v14 = vpop.f32.mrf.mxu0 }
 0x115   :  { %v104_v15 = vpop.xlane.xlu0 %103 }
 0x116   :  { %v105_v16 = vrot.slane %v104_v15, 4 }
 0x118   :  { %v106_v17 = vadd.f32 %v105_v16, %v104_v15 }
 0x11a   :  { %v107_v18 = vrot.slane %v106_v17, 2 }
 0x11c   :  { %v108_v19 = vadd.f32 %v107_v18, %v106_v17 }
 0x11e   :  { %v109_v20 = vrot.slane %v108_v19, 1 }
 0x120   :  { %v110_v21 = vadd.f32 %v109_v20, %v108_v19 }
 0x122   :  { %159 = vpush %v110_v21 }
 0x153   :  { %s160_s0 = spop %159 }
 0x154   :  { %v112_v22 = vstv %s160_s0 }
 0x155   :  { %114 = vst [vmem:[%s218_s3] sm:$0xff] %v112_v22 }

</bundles_post_ra>
